<compile_context>
chip_gen: v7x
topology: tpu7x:2x2x1
jax: 0.10.0
libtpu: 0.0.40
codegen_flags: <defaults>
</compile_context>

<pallas_src>
import functools

import numpy as np
import jax
import jax.numpy as jnp
from jax.experimental import pallas as pl
from jax.experimental.pallas import tpu as pltpu


# ----------------------------------------------------------------------------
# Kernel 1: fused 1x1 convs (+BN+ReLU) for all four branches.
# ----------------------------------------------------------------------------
def _conv1x1_kernel(x_ref, w_ref, b_ref, o_ref, acc_ref):
    @pl.when(pl.program_id(1) == 0)
    def _():
        acc_ref[...] = jnp.zeros_like(acc_ref)

    acc_ref[...] += jnp.dot(x_ref[...], w_ref[...],
                            preferred_element_type=jnp.float32)

    @pl.when(pl.program_id(1) == pl.num_programs(1) - 1)
    def _():
        o_ref[...] = jnp.maximum(acc_ref[...] + b_ref[...], 0.0).astype(o_ref.dtype)


def _pick_m_tile(m):
    # prefer multiples of 16 (bf16 sublane packing); keep >=2 tiles when possible
    for t in (256, 128, 64, 32, 16):
        if t < m and m % t == 0:
            return t
    return m


def _pick_k_tile(k):
    for t in (512, 256, 128):
        if t < k and k % t == 0:
            return t
    return k


def conv1x1_fused(x, w, b):
    """x:[M,K] bf16, w:[K,N] bf16 (BN scale folded), b:[1,N] f32 -> [M,N] bf16."""
    M, K = x.shape
    _, N = w.shape
    tm = _pick_m_tile(M)
    tk = _pick_k_tile(K)
    return pl.pallas_call(
        _conv1x1_kernel,
        out_shape=jax.ShapeDtypeStruct((M, N), jnp.bfloat16),
        grid=(M // tm, K // tk),
        in_specs=[pl.BlockSpec((tm, tk), lambda i, k: (i, k)),
                  pl.BlockSpec((tk, N), lambda i, k: (k, 0)),
                  pl.BlockSpec((1, N), lambda i, k: (0, 0))],
        out_specs=pl.BlockSpec((tm, N), lambda i, k: (i, 0)),
        scratch_shapes=[pltpu.VMEM((tm, N), jnp.float32)],
        compiler_params=pltpu.CompilerParams(
            dimension_semantics=("parallel", "arbitrary"),
            vmem_limit_bytes=32 * 1024 * 1024),
    )(x, w, b)


# ----------------------------------------------------------------------------
# Kernel 2: the whole tail (im2col + 3x3 conv + BN + ReLU + pool + FC stacks
#           + classifier heads), grid over the four branches.
# ----------------------------------------------------------------------------
def _tail_kernel(h_ref, sel_ref, shift_ref, w3_ref, b3_ref,
                 w1_ref, b1_ref, w2_ref, b2_ref,
                 cw_ref, cb_ref, cm_ref, o_ref, fc_ref,
                 *, batch, hw, n_chunk):
    g = pl.program_id(0)
    F = sel_ref.shape[2]
    N = w3_ref.shape[2]

    # branch column selection (replaces XLA reshape/transpose glue): [BHW, F]
    v = jnp.dot(h_ref[...], sel_ref[0],
                preferred_element_type=jnp.float32).astype(jnp.bfloat16)

    # in-kernel im2col: 9 shifted+masked copies of v via 0/1 selection matmuls
    taps = [jnp.dot(shift_ref[t], v,
                    preferred_element_type=jnp.float32).astype(jnp.bfloat16)
            for t in range(9)]

    # 3x3 conv + BN bias + ReLU + global average pool, N tiled so the f32
    # accumulator stays ~16 vregs instead of the whole register file.
    inv_hw = 1.0 / hw
    pooled_chunks = []
    for c in range(N // n_chunk):
        cs = c * n_chunk
        acc = jnp.dot(taps[0], w3_ref[0, 0:F, cs:cs + n_chunk],
                      preferred_element_type=jnp.float32)
        for t in range(1, 9):
            acc += jnp.dot(taps[t], w3_ref[0, t * F:(t + 1) * F, cs:cs + n_chunk],
                           preferred_element_type=jnp.float32)
        acc = jnp.maximum(acc + b3_ref[0, :, cs:cs + n_chunk], 0.0)
        # AdaptiveAvgPool2d(1): per-batch mean over the HW rows (plain reduce).
        rows = [jnp.sum(acc[b * hw:(b + 1) * hw, :], axis=0, keepdims=True)
                for b in range(batch)]
        pooled_chunks.append(jnp.concatenate(rows, axis=0) * inv_hw)   # [B, nc]
    pooled = jnp.concatenate(pooled_chunks, axis=1)                    # [B, N]

    # FC stack: (BN1d folded) Linear -> (BN1d folded) -> ELU -> Linear
    h1 = jnp.dot(pooled.astype(jnp.bfloat16), w1_ref[0],
                 preferred_element_type=jnp.float32) + b1_ref[0]
    h1 = jnp.where(h1 > 0.0, h1, jnp.exp(jnp.minimum(h1, 0.0)) - 1.0)  # ELU(1)
    fc = jnp.dot(h1.astype(jnp.bfloat16), w2_ref[0],
                 preferred_element_type=jnp.float32) + b2_ref[0]       # [B, 512]
    fc_ref[g] = fc

    # last branch step: six classifier heads (3 shared inputs, packed N=128)
    @pl.when(g == pl.num_programs(0) - 1)
    def _():
        feats = (jnp.maximum(fc_ref[0] + fc_ref[1], 0.0),   # order+species sum
                 jnp.maximum(fc_ref[2], 0.0),                # shape
                 jnp.maximum(fc_ref[3], 0.0))                # attribute
        for i in range(3):
            logits = jnp.dot(feats[i].astype(jnp.bfloat16), cw_ref[i],
                             preferred_element_type=jnp.float32) + cb_ref[i]
            ex = jnp.exp(-jnp.abs(logits))                   # stable sigmoid
            sig = jnp.where(logits >= 0.0, 1.0 / (1.0 + ex), ex / (1.0 + ex))
            o_ref[i] = jnp.where(cm_ref[i] > 0.5, sig, logits)


def tail_fused(h, sel, shifts, w3, b3, w1, b1, w2, b2, cw, cb, cm, batch):
    """Fused post-1x1 tail.  Returns packed classifier heads [3, B, 128] f32."""
    BHW, NBF = h.shape
    G, K9, N = w3.shape
    F = sel.shape[2]
    B512 = w2.shape[2]
    NH = cw.shape[2]
    hw = BHW // batch
    n_chunk = 512 if N % 512 == 0 else N
    kernel = functools.partial(_tail_kernel, batch=batch, hw=hw, n_chunk=n_chunk)
    return pl.pallas_call(
        kernel,
        out_shape=jax.ShapeDtypeStruct((3, batch, NH), jnp.float32),
        grid=(G,),
        in_specs=[
            pl.BlockSpec((BHW, NBF), lambda g: (0, 0)),        # 1x1 output (all br)
            pl.BlockSpec((1, NBF, F), lambda g: (g, 0, 0)),    # branch col selector
            pl.BlockSpec((9, BHW, BHW), lambda g: (0, 0, 0)),  # im2col shift mats
            pl.BlockSpec((1, K9, N), lambda g: (g, 0, 0)),     # conv3x3 weight
            pl.BlockSpec((1, 1, N), lambda g: (g, 0, 0)),      # conv3x3 folded bias
            pl.BlockSpec((1, N, F), lambda g: (g, 0, 0)),      # fc w1 (BN folded)
            pl.BlockSpec((1, 1, F), lambda g: (g, 0, 0)),      # fc b1
            pl.BlockSpec((1, F, B512), lambda g: (g, 0, 0)),   # fc w2
            pl.BlockSpec((1, 1, B512), lambda g: (g, 0, 0)),   # fc b2
            pl.BlockSpec((3, B512, NH), lambda g: (0, 0, 0)),  # classifier weights
            pl.BlockSpec((3, 1, NH), lambda g: (0, 0, 0)),     # classifier bias
            pl.BlockSpec((3, 1, NH), lambda g: (0, 0, 0)),     # sigmoid mask
        ],
        out_specs=pl.BlockSpec((3, batch, NH), lambda g: (0, 0, 0)),
        scratch_shapes=[pltpu.VMEM((G, batch, B512), jnp.float32)],
        compiler_params=pltpu.CompilerParams(
            dimension_semantics=("arbitrary",),
            vmem_limit_bytes=32 * 1024 * 1024),
    )(h, sel, shifts, w3, b3, w1, b1, w2, b2, cw, cb, cm)


# ----------------------------------------------------------------------------
# Compile-time constant selection matrices (built with numpy at trace time).
# ----------------------------------------------------------------------------
def _branch_select(num_branches, f):
    e = np.zeros((num_branches, num_branches * f, f), np.float32)
    for g in range(num_branches):
        e[g, g * f:(g + 1) * f, :] = np.eye(f, dtype=np.float32)
    return jnp.asarray(e, dtype=jnp.bfloat16)


def _shift_matrices(b, h, w):
    """S[t] @ v == v shifted by 3x3 tap t (pad=1), zero outside the image."""
    bhw = b * h * w
    s = np.zeros((9, bhw, bhw), np.float32)
    taps = [(dy, dx) for dy in range(3) for dx in range(3)]
    for t, (dy, dx) in enumerate(taps):
        for bi in range(b):
            for y in range(h):
                for x in range(w):
                    yy, xx = y + dy - 1, x + dx - 1
                    if 0 <= yy < h and 0 <= xx < w:
                        r = (bi * h + y) * w + x
                        rp = (bi * h + yy) * w + xx
                        s[t, r, rp] = 1.0
    return jnp.asarray(s, dtype=jnp.bfloat16)


# ----------------------------------------------------------------------------
# Forward pass
# ----------------------------------------------------------------------------
def akg_forward(params, x_nchw):
    B, C, H, W = x_nchw.shape
    # cast to bf16 BEFORE the transpose: halves the only sizable XLA data move.
    x = x_nchw.astype(jnp.bfloat16)
    x = jnp.transpose(x, (0, 2, 3, 1)).reshape(B * H * W, C)

    # 1) four branch 1x1 convs (+BN+ReLU) as one lane-dense N=128 matmul.
    h = conv1x1_fused(x, params["w1x1"], params["b1x1"])          # [B*H*W, 4F] bf16

    # 2) everything else (im2col, 3x3 conv+BN+ReLU+pool, FC stacks, feature sum,
    #    classifier heads) is ONE fused kernel with a grid over the 4 branches.
    G = params["w3x3"].shape[0]
    F = params["fc_w1"].shape[2]
    sel = _branch_select(G, F)
    shifts = _shift_matrices(B, H, W)
    heads = tail_fused(h, sel, shifts,
                       params["w3x3"], params["b3x3"],
                       params["fc_w1"], params["fc_b1"],
                       params["fc_w2"], params["fc_b2"],
                       params["cls_w"], params["cls_b"], params["cls_mask"],
                       batch=B)                                    # [3, B, 128] f32

    h0, h1, h2 = heads[0], heads[1], heads[2]
    y_order_sig = h0[:, 0:4]
    y_species_sig = h0[:, 4:15]
    y_species_sof = h0[:, 15:26]
    shape_sof = h1[:, 0:29]
    shape_sig = h1[:, 29:58]
    y_att_sig = h2[:, 0:96]
    return (y_order_sig, y_species_sof, y_species_sig, shape_sof, shape_sig, y_att_sig)


# ----------------------------------------------------------------------------
# Deterministic parameter initialization (synthetic — no checkpoint), with
# BN folding, branch concatenation, head packing (padded to 128 lanes) and
# bf16 casting done at prep time.
# ----------------------------------------------------------------------------
def make_params(key, feature_size=32, num_ftrs=2048, num_branches=4):
    keys = iter(jax.random.split(key, 160))
    eps = 1e-5

    def bn_fold(n):
        g = jax.random.uniform(next(keys), (n,), jnp.float32, 0.5, 1.5)
        b = 0.1 * jax.random.normal(next(keys), (n,), jnp.float32)
        rm = 0.1 * jax.random.normal(next(keys), (n,), jnp.float32)
        rv = jax.random.uniform(next(keys), (n,), jnp.float32, 0.5, 1.5)
        s = g / jnp.sqrt(rv + eps)
        return s, b - rm * s

    def conv_bn(cin, cout, ks):
        w = jax.random.normal(next(keys), (ks * ks * cin, cout), jnp.float32)
        w = w / jnp.sqrt(float(cin * ks * ks))
        s, c = bn_fold(cout)
        return w * s[None, :], c              # BN scale folded into weight cols

    w1_list, b1_list, w3_list, b3_list = [], [], [], []
    for _ in range(num_branches):
        w1, c1 = conv_bn(num_ftrs, feature_size, 1)
        w3, c3 = conv_bn(feature_size, num_ftrs, 3)
        w1_list.append(w1); b1_list.append(c1)
        w3_list.append(w3); b3_list.append(c3)

    fcw1, fcb1, fcw2, fcb2 = [], [], [], []
    for _ in range(num_branches):
        s0, c0 = bn_fold(num_ftrs)
        w1 = jax.random.normal(next(keys), (num_ftrs, feature_size), jnp.float32)
        w1 = w1 / jnp.sqrt(float(num_ftrs))
        b1 = 0.1 * jax.random.normal(next(keys), (feature_size,), jnp.float32)
        s1, c1 = bn_fold(feature_size)
        w2 = jax.random.normal(next(keys), (feature_size, 512), jnp.float32)
        w2 = w2 / jnp.sqrt(float(feature_size))
        b2 = 0.1 * jax.random.normal(next(keys), (512,), jnp.float32)
        # BN1d(num_ftrs) and BN1d(feature_size) folded exactly into Linear1.
        fcw1.append(s0[:, None] * w1 * s1[None, :])
        fcb1.append((c0 @ w1 + b1) * s1 + c1)
        fcw2.append(w2)
        fcb2.append(b2)

    def classifier(n):
        w = jax.random.normal(next(keys), (512, n), jnp.float32) / jnp.sqrt(512.0)
        b = 0.1 * jax.random.normal(next(keys), (n,), jnp.float32)
        return w, b

    heads = dict(
        cls1=classifier(4), cls2=classifier(11), cls2_1=classifier(11),
        cls_shape=classifier(29), cls_shape2=classifier(29), cls_att=classifier(96),
    )
    # (head name, apply sigmoid?) grouped by shared classifier input.
    groups = [
        [("cls1", True), ("cls2", True), ("cls2_1", False)],      # order+species sum
        [("cls_shape", False), ("cls_shape2", True)],             # shape_fc
        [("cls_att", True)],                                      # att_fc
    ]
    NH = 128   # pad packed heads to a full 128-lane tile (lane-dense stores)
    cw, cb, cm = [], [], []
    for grp in groups:
        ws = jnp.concatenate([heads[n][0] for n, _ in grp], axis=1)
        bs = jnp.concatenate([heads[n][1] for n, _ in grp], axis=0)
        ms = jnp.concatenate([jnp.full((heads[n][0].shape[1],), 1.0 if sig else 0.0)
                              for n, sig in grp], axis=0)
        pad = NH - ws.shape[1]
        cw.append(jnp.pad(ws, ((0, 0), (0, pad))))
        cb.append(jnp.pad(bs, (0, pad)))
        cm.append(jnp.pad(ms, (0, pad)))

    return dict(
        w1x1=jnp.concatenate(w1_list, axis=1).astype(jnp.bfloat16),        # [2048, 4F]
        b1x1=jnp.concatenate(b1_list, axis=0).reshape(1, -1),              # [1, 4F]
        w3x3=jnp.stack(w3_list).astype(jnp.bfloat16),                      # [4, 9F, 2048]
        b3x3=jnp.stack(b3_list).reshape(num_branches, 1, num_ftrs),        # [4, 1, 2048]
        fc_w1=jnp.stack(fcw1).astype(jnp.bfloat16),                        # [4, 2048, F]
        fc_b1=jnp.stack(fcb1).reshape(num_branches, 1, feature_size),      # [4, 1, F]
        fc_w2=jnp.stack(fcw2).astype(jnp.bfloat16),                        # [4, F, 512]
        fc_b2=jnp.stack(fcb2).reshape(num_branches, 1, 512),               # [4, 1, 512]
        cls_w=jnp.stack(cw).astype(jnp.bfloat16),                          # [3, 512, 128]
        cls_b=jnp.stack(cb).reshape(3, 1, NH),                             # [3, 1, 128]
        cls_mask=jnp.stack(cm).reshape(3, 1, NH),                          # [3, 1, 128]
    )


# ----------------------------------------------------------------------------
if __name__ == "__main__":
    B, C, H, W = 2, 2048, 4, 4        # backbone feature map (num_ftrs = 2048)
    feature_size = 32

    key = jax.random.PRNGKey(0)
    k_x, k_p = jax.random.split(key)
    x = jax.random.normal(k_x, (B, C, H, W), jnp.float32)
    params = make_params(k_p, feature_size=feature_size, num_ftrs=C)

    fwd = jax.jit(akg_forward)
    outs = jax.block_until_ready(fwd(params, x))

    expected = [(B, 4), (B, 11), (B, 11), (B, 29), (B, 29), (B, 96)]
    assert [tuple(o.shape) for o in outs] == expected, [o.shape for o in outs]
    assert all(bool(jnp.all(jnp.isfinite(o))) for o in outs)
    print("KERNEL_OK")
</pallas_src>

<mosaic_0001>
module attributes {stable_mosaic.version = 11 : i64} {
  func.func @_conv1x1_kernel(%arg0: i32, %arg1: i32, %arg2: memref<16x512xbf16, #tpu.memory_space<vmem>>, %arg3: memref<512x128xbf16, #tpu.memory_space<vmem>>, %arg4: memref<1x128xf32, #tpu.memory_space<vmem>>, %arg5: memref<16x128xbf16, #tpu.memory_space<vmem>>, %arg6: memref<16x128xf32, #tpu.memory_space<vmem>>) attributes {dimension_semantics = [#tpu.dimension_semantics<parallel>, #tpu.dimension_semantics<arbitrary>], iteration_bounds = array<i64: 2, 4>, scalar_prefetch = 0 : i64, scratch_operands = 1 : i64, tpu.core_type = #tpu.core_type<tc>, window_params = [{transform_indices = @transform_0, window_bounds = array<i64: 16, 512>}, {transform_indices = @transform_1, window_bounds = array<i64: 512, 128>}, {pipeline_mode = #tpu.pipeline_mode<synchronous>, transform_indices = @transform_2, window_bounds = array<i64: 1, 128>}, {transform_indices = @transform_3, window_bounds = array<i64: 16, 128>}]} {
    %c0_i32 = arith.constant 0 : i32
    %0 = arith.cmpi eq, %arg1, %c0_i32 : i32
    %1 = arith.extui %0 : i1 to i32
    %c0_i32_0 = arith.constant 0 : i32
    %2 = arith.cmpi ne, %1, %c0_i32_0 : i32
    scf.if %2 {
      %cst_9 = arith.constant 0.000000e+00 : f32
      %12 = vector.broadcast %cst_9 : f32 to vector<16x128xf32>
      %c0_10 = arith.constant 0 : index
      %c0_11 = arith.constant 0 : index
      %13 = vector.load %arg6[%c0_10, %c0_11] : memref<16x128xf32, #tpu.memory_space<vmem>>, vector<16x128xf32>
      tpu.vector_store %arg6[%c0_10, %c0_11], %12 {strides = array<i32>} : memref<16x128xf32, #tpu.memory_space<vmem>>, vector<16x128xf32>,
    } else {
    }
    %c0 = arith.constant 0 : index
    %c0_1 = arith.constant 0 : index
    %3 = vector.load %arg6[%c0, %c0_1] : memref<16x128xf32, #tpu.memory_space<vmem>>, vector<16x128xf32>
    %c0_2 = arith.constant 0 : index
    %c0_3 = arith.constant 0 : index
    %4 = vector.load %arg2[%c0_2, %c0_3] : memref<16x512xbf16, #tpu.memory_space<vmem>>, vector<16x512xbf16>
    %c0_4 = arith.constant 0 : index
    %c0_5 = arith.constant 0 : index
    %5 = vector.load %arg3[%c0_4, %c0_5] : memref<512x128xbf16, #tpu.memory_space<vmem>>, vector<512x128xbf16>
    %cst = arith.constant dense<0.000000e+00> : vector<16x128xf32>
    %6 = tpu.matmul %4, %5, %cst {dimension_numbers = #tpu.dot_dimension_numbers<[1], [0], [0], [1], [0, 0, 1, 1], [], []>} : vector<16x512xbf16>, vector<512x128xbf16>, vector<16x128xf32> -> vector<16x128xf32>
    %7 = arith.addf %3, %6 : vector<16x128xf32>
    %c0_6 = arith.constant 0 : index
    %c0_7 = arith.constant 0 : index
    %8 = vector.load %arg6[%c0_6, %c0_7] : memref<16x128xf32, #tpu.memory_space<vmem>>, vector<16x128xf32>
    tpu.vector_store %arg6[%c0_6, %c0_7], %7 {strides = array<i32>} : memref<16x128xf32, #tpu.memory_space<vmem>>, vector<16x128xf32>,
    %c3_i32 = arith.constant 3 : i32
    %9 = arith.cmpi eq, %arg1, %c3_i32 : i32
    %10 = arith.extui %9 : i1 to i32
    %c0_i32_8 = arith.constant 0 : i32
    %11 = arith.cmpi ne, %10, %c0_i32_8 : i32
    scf.if %11 {
      %c0_9 = arith.constant 0 : index
      %c0_10 = arith.constant 0 : index
      %12 = vector.load %arg6[%c0_9, %c0_10] : memref<16x128xf32, #tpu.memory_space<vmem>>, vector<16x128xf32>
      %c0_11 = arith.constant 0 : index
      %c0_12 = arith.constant 0 : index
      %13 = vector.load %arg4[%c0_11, %c0_12] : memref<1x128xf32, #tpu.memory_space<vmem>>, vector<1x128xf32>
      %14 = vector.broadcast %13 : vector<1x128xf32> to vector<16x128xf32>
      %15 = arith.addf %12, %14 : vector<16x128xf32>
      %cst_13 = arith.constant 0.000000e+00 : f32
      %16 = vector.broadcast %cst_13 : f32 to vector<16x128xf32>
      %17 = arith.maximumf %15, %16 : vector<16x128xf32>
      %18 = arith.truncf %17 : vector<16x128xf32> to vector<16x128xbf16>
      %c0_14 = arith.constant 0 : index
      %c0_15 = arith.constant 0 : index
      %19 = vector.load %arg5[%c0_14, %c0_15] : memref<16x128xbf16, #tpu.memory_space<vmem>>, vector<16x128xbf16>
      tpu.vector_store %arg5[%c0_14, %c0_15], %18 {strides = array<i32>} : memref<16x128xbf16, #tpu.memory_space<vmem>>, vector<16x128xbf16>,
    } else {
    }
    return
  }
  func.func @transform_0(%arg0: i32, %arg1: i32) -> (i32, i32) {
    %c0_i32 = arith.constant 0 : i32
    return %arg0, %arg1 : i32, i32
  }
  func.func @transform_1(%arg0: i32, %arg1: i32) -> (i32, i32) {
    %c0_i32 = arith.constant 0 : i32
    %c0_i32_0 = arith.constant 0 : i32
    return %arg1, %c0_i32 : i32, i32
  }
  func.func @transform_2(%arg0: i32, %arg1: i32) -> (i32, i32) {
    %c0_i32 = arith.constant 0 : i32
    %c0_i32_0 = arith.constant 0 : i32
    %c0_i32_1 = arith.constant 0 : i32
    return %c0_i32, %c0_i32_0 : i32, i32
  }
  func.func @transform_3(%arg0: i32, %arg1: i32) -> (i32, i32) {
    %c0_i32 = arith.constant 0 : i32
    %c0_i32_0 = arith.constant 0 : i32
    return %arg0, %c0_i32 : i32, i32
  }
}

module attributes {stable_mosaic.version = 11 : i64} {
  func.func @_tail_kernel(%arg0: i32, %arg1: memref<32x128xbf16, #tpu.memory_space<vmem>>, %arg2: memref<1x128x32xbf16, #tpu.memory_space<vmem>>, %arg3: memref<9x32x32xbf16, #tpu.memory_space<vmem>>, %arg4: memref<1x288x2048xbf16, #tpu.memory_space<vmem>>, %arg5: memref<1x1x2048xf32, #tpu.memory_space<vmem>>, %arg6: memref<1x2048x32xbf16, #tpu.memory_space<vmem>>, %arg7: memref<1x1x32xf32, #tpu.memory_space<vmem>>, %arg8: memref<1x32x512xbf16, #tpu.memory_space<vmem>>, %arg9: memref<1x1x512xf32, #tpu.memory_space<vmem>>, %arg10: memref<3x512x128xbf16, #tpu.memory_space<vmem>>, %arg11: memref<3x1x128xf32, #tpu.memory_space<vmem>>, %arg12: memref<3x1x128xf32, #tpu.memory_space<vmem>>, %arg13: memref<3x2x128xf32, #tpu.memory_space<vmem>>, %arg14: memref<4x2x512xf32, #tpu.memory_space<vmem>>) attributes {dimension_semantics = [#tpu.dimension_semantics<arbitrary>], iteration_bounds = array<i64: 4>, scalar_prefetch = 0 : i64, scratch_operands = 1 : i64, tpu.core_type = #tpu.core_type<tc>, window_params = [{pipeline_mode = #tpu.pipeline_mode<synchronous>, transform_indices = @transform_0, window_bounds = array<i64: 32, 128>}, {transform_indices = @transform_1, window_bounds = array<i64: 1, 128, 32>}, {pipeline_mode = #tpu.pipeline_mode<synchronous>, transform_indices = @transform_2, window_bounds = array<i64: 9, 32, 32>}, {transform_indices = @transform_3, window_bounds = array<i64: 1, 288, 2048>}, {transform_indices = @transform_4, window_bounds = array<i64: 1, 1, 2048>}, {transform_indices = @transform_5, window_bounds = array<i64: 1, 2048, 32>}, {transform_indices = @transform_6, window_bounds = array<i64: 1, 1, 32>}, {transform_indices = @transform_7, window_bounds = array<i64: 1, 32, 512>}, {transform_indices = @transform_8, window_bounds = array<i64: 1, 1, 512>}, {pipeline_mode = #tpu.pipeline_mode<synchronous>, transform_indices = @transform_9, window_bounds = array<i64: 3, 512, 128>}, {pipeline_mode = #tpu.pipeline_mode<synchronous>, transform_indices = @transform_10, window_bounds = array<i64: 3, 1, 128>}, {pipeline_mode = #tpu.pipeline_mode<synchronous>, transform_indices = @transform_11, window_bounds = array<i64: 3, 1, 128>}, {pipeline_mode = #tpu.pipeline_mode<synchronous>, transform_indices = @transform_12, window_bounds = array<i64: 3, 2, 128>}]} {
    %c0 = arith.constant 0 : index
    %c0_0 = arith.constant 0 : index
    %0 = vector.load %arg1[%c0, %c0_0] : memref<32x128xbf16, #tpu.memory_space<vmem>>, vector<32x128xbf16>
    %c0_1 = arith.constant 0 : index
    %c0_2 = arith.constant 0 : index
    %c0_3 = arith.constant 0 : index
    %1 = vector.load %arg2[%c0_1, %c0_2, %c0_3] : memref<1x128x32xbf16, #tpu.memory_space<vmem>>, vector<1x128x32xbf16>
    %2 = vector.shape_cast %1 : vector<1x128x32xbf16> to vector<128x32xbf16>
    %cst = arith.constant dense<0.000000e+00> : vector<32x32xf32>
    %3 = tpu.matmul %0, %2, %cst {dimension_numbers = #tpu.dot_dimension_numbers<[1], [0], [0], [1], [0, 0, 1, 1], [], []>} : vector<32x128xbf16>, vector<128x32xbf16>, vector<32x32xf32> -> vector<32x32xf32>
    %4 = arith.truncf %3 : vector<32x32xf32> to vector<32x32xbf16>
    %c0_4 = arith.constant 0 : index
    %c0_5 = arith.constant 0 : index
    %c0_6 = arith.constant 0 : index
    %5 = vector.load %arg3[%c0_4, %c0_5, %c0_6] : memref<9x32x32xbf16, #tpu.memory_space<vmem>>, vector<1x32x32xbf16>
    %6 = vector.shape_cast %5 : vector<1x32x32xbf16> to vector<32x32xbf16>
    %cst_7 = arith.constant dense<0.000000e+00> : vector<32x32xf32>
    %7 = tpu.matmul %6, %4, %cst_7 {dimension_numbers = #tpu.dot_dimension_numbers<[1], [0], [0], [1], [0, 0, 1, 1], [], []>} : vector<32x32xbf16>, vector<32x32xbf16>, vector<32x32xf32> -> vector<32x32xf32>
    %8 = arith.truncf %7 : vector<32x32xf32> to vector<32x32xbf16>
    %c1 = arith.constant 1 : index
    %c0_8 = arith.constant 0 : index
    %c0_9 = arith.constant 0 : index
    %9 = vector.load %arg3[%c1, %c0_8, %c0_9] : memref<9x32x32xbf16, #tpu.memory_space<vmem>>, vector<1x32x32xbf16>
    %10 = vector.shape_cast %9 : vector<1x32x32xbf16> to vector<32x32xbf16>
    %cst_10 = arith.constant dense<0.000000e+00> : vector<32x32xf32>
    %11 = tpu.matmul %10, %4, %cst_10 {dimension_numbers = #tpu.dot_dimension_numbers<[1], [0], [0], [1], [0, 0, 1, 1], [], []>} : vector<32x32xbf16>, vector<32x32xbf16>, vector<32x32xf32> -> vector<32x32xf32>
    %12 = arith.truncf %11 : vector<32x32xf32> to vector<32x32xbf16>
    %c2 = arith.constant 2 : index
    %c0_11 = arith.constant 0 : index
    %c0_12 = arith.constant 0 : index
    %13 = vector.load %arg3[%c2, %c0_11, %c0_12] : memref<9x32x32xbf16, #tpu.memory_space<vmem>>, vector<1x32x32xbf16>
    %14 = vector.shape_cast %13 : vector<1x32x32xbf16> to vector<32x32xbf16>
    %cst_13 = arith.constant dense<0.000000e+00> : vector<32x32xf32>
    %15 = tpu.matmul %14, %4, %cst_13 {dimension_numbers = #tpu.dot_dimension_numbers<[1], [0], [0], [1], [0, 0, 1, 1], [], []>} : vector<32x32xbf16>, vector<32x32xbf16>, vector<32x32xf32> -> vector<32x32xf32>
    %16 = arith.truncf %15 : vector<32x32xf32> to vector<32x32xbf16>
    %c3 = arith.constant 3 : index
    %c0_14 = arith.constant 0 : index
    %c0_15 = arith.constant 0 : index
    %17 = vector.load %arg3[%c3, %c0_14, %c0_15] : memref<9x32x32xbf16, #tpu.memory_space<vmem>>, vector<1x32x32xbf16>
    %18 = vector.shape_cast %17 : vector<1x32x32xbf16> to vector<32x32xbf16>
    %cst_16 = arith.constant dense<0.000000e+00> : vector<32x32xf32>
    %19 = tpu.matmul %18, %4, %cst_16 {dimension_numbers = #tpu.dot_dimension_numbers<[1], [0], [0], [1], [0, 0, 1, 1], [], []>} : vector<32x32xbf16>, vector<32x32xbf16>, vector<32x32xf32> -> vector<32x32xf32>
    %20 = arith.truncf %19 : vector<32x32xf32> to vector<32x32xbf16>
    %c4 = arith.constant 4 : index
    %c0_17 = arith.constant 0 : index
    %c0_18 = arith.constant 0 : index
    %21 = vector.load %arg3[%c4, %c0_17, %c0_18] : memref<9x32x32xbf16, #tpu.memory_space<vmem>>, vector<1x32x32xbf16>
    %22 = vector.shape_cast %21 : vector<1x32x32xbf16> to vector<32x32xbf16>
    %cst_19 = arith.constant dense<0.000000e+00> : vector<32x32xf32>
    %23 = tpu.matmul %22, %4, %cst_19 {dimension_numbers = #tpu.dot_dimension_numbers<[1], [0], [0], [1], [0, 0, 1, 1], [], []>} : vector<32x32xbf16>, vector<32x32xbf16>, vector<32x32xf32> -> vector<32x32xf32>
    %24 = arith.truncf %23 : vector<32x32xf32> to vector<32x32xbf16>
    %c5 = arith.constant 5 : index
    %c0_20 = arith.constant 0 : index
    %c0_21 = arith.constant 0 : index
    %25 = vector.load %arg3[%c5, %c0_20, %c0_21] : memref<9x32x32xbf16, #tpu.memory_space<vmem>>, vector<1x32x32xbf16>
    %26 = vector.shape_cast %25 : vector<1x32x32xbf16> to vector<32x32xbf16>
    %cst_22 = arith.constant dense<0.000000e+00> : vector<32x32xf32>
    %27 = tpu.matmul %26, %4, %cst_22 {dimension_numbers = #tpu.dot_dimension_numbers<[1], [0], [0], [1], [0, 0, 1, 1], [], []>} : vector<32x32xbf16>, vector<32x32xbf16>, vector<32x32xf32> -> vector<32x32xf32>
    %28 = arith.truncf %27 : vector<32x32xf32> to vector<32x32xbf16>
    %c6 = arith.constant 6 : index
    %c0_23 = arith.constant 0 : index
    %c0_24 = arith.constant 0 : index
    %29 = vector.load %arg3[%c6, %c0_23, %c0_24] : memref<9x32x32xbf16, #tpu.memory_space<vmem>>, vector<1x32x32xbf16>
    %30 = vector.shape_cast %29 : vector<1x32x32xbf16> to vector<32x32xbf16>
    %cst_25 = arith.constant dense<0.000000e+00> : vector<32x32xf32>
    %31 = tpu.matmul %30, %4, %cst_25 {dimension_numbers = #tpu.dot_dimension_numbers<[1], [0], [0], [1], [0, 0, 1, 1], [], []>} : vector<32x32xbf16>, vector<32x32xbf16>, vector<32x32xf32> -> vector<32x32xf32>
    %32 = arith.truncf %31 : vector<32x32xf32> to vector<32x32xbf16>
    %c7 = arith.constant 7 : index
    %c0_26 = arith.constant 0 : index
    %c0_27 = arith.constant 0 : index
    %33 = vector.load %arg3[%c7, %c0_26, %c0_27] : memref<9x32x32xbf16, #tpu.memory_space<vmem>>, vector<1x32x32xbf16>
    %34 = vector.shape_cast %33 : vector<1x32x32xbf16> to vector<32x32xbf16>
    %cst_28 = arith.constant dense<0.000000e+00> : vector<32x32xf32>
    %35 = tpu.matmul %34, %4, %cst_28 {dimension_numbers = #tpu.dot_dimension_numbers<[1], [0], [0], [1], [0, 0, 1, 1], [], []>} : vector<32x32xbf16>, vector<32x32xbf16>, vector<32x32xf32> -> vector<32x32xf32>
    %36 = arith.truncf %35 : vector<32x32xf32> to vector<32x32xbf16>
    %c8 = arith.constant 8 : index
    %c0_29 = arith.constant 0 : index
    %c0_30 = arith.constant 0 : index
    %37 = vector.load %arg3[%c8, %c0_29, %c0_30] : memref<9x32x32xbf16, #tpu.memory_space<vmem>>, vector<1x32x32xbf16>
    %38 = vector.shape_cast %37 : vector<1x32x32xbf16> to vector<32x32xbf16>
    %cst_31 = arith.constant dense<0.000000e+00> : vector<32x32xf32>
    %39 = tpu.matmul %38, %4, %cst_31 {dimension_numbers = #tpu.dot_dimension_numbers<[1], [0], [0], [1], [0, 0, 1, 1], [], []>} : vector<32x32xbf16>, vector<32x32xbf16>, vector<32x32xf32> -> vector<32x32xf32>
    %40 = arith.truncf %39 : vector<32x32xf32> to vector<32x32xbf16>
    %c0_32 = arith.constant 0 : index
    %c0_33 = arith.constant 0 : index
    %c0_34 = arith.constant 0 : index
    %41 = vector.load %arg4[%c0_32, %c0_33, %c0_34] : memref<1x288x2048xbf16, #tpu.memory_space<vmem>>, vector<1x32x512xbf16>
    %42 = vector.shape_cast %41 : vector<1x32x512xbf16> to vector<32x512xbf16>
    %cst_35 = arith.constant dense<0.000000e+00> : vector<32x512xf32>
    %43 = tpu.matmul %8, %42, %cst_35 {dimension_numbers = #tpu.dot_dimension_numbers<[1], [0], [0], [1], [0, 0, 1, 1], [], []>} : vector<32x32xbf16>, vector<32x512xbf16>, vector<32x512xf32> -> vector<32x512xf32>
    %c0_36 = arith.constant 0 : index
    %c32 = arith.constant 32 : index
    %c0_37 = arith.constant 0 : index
    %44 = vector.load %arg4[%c0_36, %c32, %c0_37] : memref<1x288x2048xbf16, #tpu.memory_space<vmem>>, vector<1x32x512xbf16>
    %45 = vector.shape_cast %44 : vector<1x32x512xbf16> to vector<32x512xbf16>
    %cst_38 = arith.constant dense<0.000000e+00> : vector<32x512xf32>
    %46 = tpu.matmul %12, %45, %cst_38 {dimension_numbers = #tpu.dot_dimension_numbers<[1], [0], [0], [1], [0, 0, 1, 1], [], []>} : vector<32x32xbf16>, vector<32x512xbf16>, vector<32x512xf32> -> vector<32x512xf32>
    %47 = arith.addf %43, %46 : vector<32x512xf32>
    %c0_39 = arith.constant 0 : index
    %c64 = arith.constant 64 : index
    %c0_40 = arith.constant 0 : index
    %48 = vector.load %arg4[%c0_39, %c64, %c0_40] : memref<1x288x2048xbf16, #tpu.memory_space<vmem>>, vector<1x32x512xbf16>
    %49 = vector.shape_cast %48 : vector<1x32x512xbf16> to vector<32x512xbf16>
    %cst_41 = arith.constant dense<0.000000e+00> : vector<32x512xf32>
    %50 = tpu.matmul %16, %49, %cst_41 {dimension_numbers = #tpu.dot_dimension_numbers<[1], [0], [0], [1], [0, 0, 1, 1], [], []>} : vector<32x32xbf16>, vector<32x512xbf16>, vector<32x512xf32> -> vector<32x512xf32>
    %51 = arith.addf %47, %50 : vector<32x512xf32>
    %c0_42 = arith.constant 0 : index
    %c96 = arith.constant 96 : index
    %c0_43 = arith.constant 0 : index
    %52 = vector.load %arg4[%c0_42, %c96, %c0_43] : memref<1x288x2048xbf16, #tpu.memory_space<vmem>>, vector<1x32x512xbf16>
    %53 = vector.shape_cast %52 : vector<1x32x512xbf16> to vector<32x512xbf16>
    %cst_44 = arith.constant dense<0.000000e+00> : vector<32x512xf32>
    %54 = tpu.matmul %20, %53, %cst_44 {dimension_numbers = #tpu.dot_dimension_numbers<[1], [0], [0], [1], [0, 0, 1, 1], [], []>} : vector<32x32xbf16>, vector<32x512xbf16>, vector<32x512xf32> -> vector<32x512xf32>
    %55 = arith.addf %51, %54 : vector<32x512xf32>
    %c0_45 = arith.constant 0 : index
    %c128 = arith.constant 128 : index
    %c0_46 = arith.constant 0 : index
    %56 = vector.load %arg4[%c0_45, %c128, %c0_46] : memref<1x288x2048xbf16, #tpu.memory_space<vmem>>, vector<1x32x512xbf16>
    %57 = vector.shape_cast %56 : vector<1x32x512xbf16> to vector<32x512xbf16>
    %cst_47 = arith.constant dense<0.000000e+00> : vector<32x512xf32>
    %58 = tpu.matmul %24, %57, %cst_47 {dimension_numbers = #tpu.dot_dimension_numbers<[1], [0], [0], [1], [0, 0, 1, 1], [], []>} : vector<32x32xbf16>, vector<32x512xbf16>, vector<32x512xf32> -> vector<32x512xf32>
    %59 = arith.addf %55, %58 : vector<32x512xf32>
    %c0_48 = arith.constant 0 : index
    %c160 = arith.constant 160 : index
    %c0_49 = arith.constant 0 : index
    %60 = vector.load %arg4[%c0_48, %c160, %c0_49] : memref<1x288x2048xbf16, #tpu.memory_space<vmem>>, vector<1x32x512xbf16>
    %61 = vector.shape_cast %60 : vector<1x32x512xbf16> to vector<32x512xbf16>
    %cst_50 = arith.constant dense<0.000000e+00> : vector<32x512xf32>
    %62 = tpu.matmul %28, %61, %cst_50 {dimension_numbers = #tpu.dot_dimension_numbers<[1], [0], [0], [1], [0, 0, 1, 1], [], []>} : vector<32x32xbf16>, vector<32x512xbf16>, vector<32x512xf32> -> vector<32x512xf32>
    %63 = arith.addf %59, %62 : vector<32x512xf32>
    %c0_51 = arith.constant 0 : index
    %c192 = arith.constant 192 : index
    %c0_52 = arith.constant 0 : index
    %64 = vector.load %arg4[%c0_51, %c192, %c0_52] : memref<1x288x2048xbf16, #tpu.memory_space<vmem>>, vector<1x32x512xbf16>
    %65 = vector.shape_cast %64 : vector<1x32x512xbf16> to vector<32x512xbf16>
    %cst_53 = arith.constant dense<0.000000e+00> : vector<32x512xf32>
    %66 = tpu.matmul %32, %65, %cst_53 {dimension_numbers = #tpu.dot_dimension_numbers<[1], [0], [0], [1], [0, 0, 1, 1], [], []>} : vector<32x32xbf16>, vector<32x512xbf16>, vector<32x512xf32> -> vector<32x512xf32>
    %67 = arith.addf %63, %66 : vector<32x512xf32>
    %c0_54 = arith.constant 0 : index
    %c224 = arith.constant 224 : index
    %c0_55 = arith.constant 0 : index
    %68 = vector.load %arg4[%c0_54, %c224, %c0_55] : memref<1x288x2048xbf16, #tpu.memory_space<vmem>>, vector<1x32x512xbf16>
    %69 = vector.shape_cast %68 : vector<1x32x512xbf16> to vector<32x512xbf16>
    %cst_56 = arith.constant dense<0.000000e+00> : vector<32x512xf32>
    %70 = tpu.matmul %36, %69, %cst_56 {dimension_numbers = #tpu.dot_dimension_numbers<[1], [0], [0], [1], [0, 0, 1, 1], [], []>} : vector<32x32xbf16>, vector<32x512xbf16>, vector<32x512xf32> -> vector<32x512xf32>
    %71 = arith.addf %67, %70 : vector<32x512xf32>
    %c0_57 = arith.constant 0 : index
    %c256 = arith.constant 256 : index
    %c0_58 = arith.constant 0 : index
    %72 = vector.load %arg4[%c0_57, %c256, %c0_58] : memref<1x288x2048xbf16, #tpu.memory_space<vmem>>, vector<1x32x512xbf16>
    %73 = vector.shape_cast %72 : vector<1x32x512xbf16> to vector<32x512xbf16>
    %cst_59 = arith.constant dense<0.000000e+00> : vector<32x512xf32>
    %74 = tpu.matmul %40, %73, %cst_59 {dimension_numbers = #tpu.dot_dimension_numbers<[1], [0], [0], [1], [0, 0, 1, 1], [], []>} : vector<32x32xbf16>, vector<32x512xbf16>, vector<32x512xf32> -> vector<32x512xf32>
    %75 = arith.addf %71, %74 : vector<32x512xf32>
    %c0_60 = arith.constant 0 : index
    %c0_61 = arith.constant 0 : index
    %c0_62 = arith.constant 0 : index
    %76 = vector.load %arg5[%c0_60, %c0_61, %c0_62] : memref<1x1x2048xf32, #tpu.memory_space<vmem>>, vector<1x1x512xf32>
    %77 = vector.shape_cast %76 : vector<1x1x512xf32> to vector<1x512xf32>
    %78 = vector.broadcast %77 : vector<1x512xf32> to vector<32x512xf32>
    %79 = arith.addf %75, %78 : vector<32x512xf32>
    %cst_63 = arith.constant 0.000000e+00 : f32
    %80 = vector.broadcast %cst_63 : f32 to vector<32x512xf32>
    %81 = arith.maximumf %79, %80 : vector<32x512xf32>
    %82 = vector.extract_strided_slice %81 {offsets = [0, 0], sizes = [16, 512], strides = [1, 1]} : vector<32x512xf32> to vector<16x512xf32>
    %cst_64 = arith.constant dense<0.000000e+00> : vector<512xf32>
    %83 = vector.multi_reduction <add>, %82, %cst_64 [0] : vector<16x512xf32> to vector<512xf32>
    %84 = vector.shape_cast %83 : vector<512xf32> to vector<1x512xf32>
    %85 = vector.extract_strided_slice %81 {offsets = [16, 0], sizes = [16, 512], strides = [1, 1]} : vector<32x512xf32> to vector<16x512xf32>
    %cst_65 = arith.constant dense<0.000000e+00> : vector<512xf32>
    %86 = vector.multi_reduction <add>, %85, %cst_65 [0] : vector<16x512xf32> to vector<512xf32>
    %87 = vector.shape_cast %86 : vector<512xf32> to vector<1x512xf32>
    %88 = tpu.concatenate %84, %87 in 0 : vector<1x512xf32>, vector<1x512xf32> -> vector<2x512xf32>
    %cst_66 = arith.constant 6.250000e-02 : f32
    %89 = vector.broadcast %cst_66 : f32 to vector<2x512xf32>
    %90 = arith.mulf %88, %89 : vector<2x512xf32>
    %c0_67 = arith.constant 0 : index
    %c0_68 = arith.constant 0 : index
    %c512 = arith.constant 512 : index
    %91 = vector.load %arg4[%c0_67, %c0_68, %c512] : memref<1x288x2048xbf16, #tpu.memory_space<vmem>>, vector<1x32x512xbf16>
    %92 = vector.shape_cast %91 : vector<1x32x512xbf16> to vector<32x512xbf16>
    %cst_69 = arith.constant dense<0.000000e+00> : vector<32x512xf32>
    %93 = tpu.matmul %8, %92, %cst_69 {dimension_numbers = #tpu.dot_dimension_numbers<[1], [0], [0], [1], [0, 0, 1, 1], [], []>} : vector<32x32xbf16>, vector<32x512xbf16>, vector<32x512xf32> -> vector<32x512xf32>
    %c0_70 = arith.constant 0 : index
    %c32_71 = arith.constant 32 : index
    %c512_72 = arith.constant 512 : index
    %94 = vector.load %arg4[%c0_70, %c32_71, %c512_72] : memref<1x288x2048xbf16, #tpu.memory_space<vmem>>, vector<1x32x512xbf16>
    %95 = vector.shape_cast %94 : vector<1x32x512xbf16> to vector<32x512xbf16>
    %cst_73 = arith.constant dense<0.000000e+00> : vector<32x512xf32>
    %96 = tpu.matmul %12, %95, %cst_73 {dimension_numbers = #tpu.dot_dimension_numbers<[1], [0], [0], [1], [0, 0, 1, 1], [], []>} : vector<32x32xbf16>, vector<32x512xbf16>, vector<32x512xf32> -> vector<32x512xf32>
    %97 = arith.addf %93, %96 : vector<32x512xf32>
    %c0_74 = arith.constant 0 : index
    %c64_75 = arith.constant 64 : index
    %c512_76 = arith.constant 512 : index
    %98 = vector.load %arg4[%c0_74, %c64_75, %c512_76] : memref<1x288x2048xbf16, #tpu.memory_space<vmem>>, vector<1x32x512xbf16>
    %99 = vector.shape_cast %98 : vector<1x32x512xbf16> to vector<32x512xbf16>
    %cst_77 = arith.constant dense<0.000000e+00> : vector<32x512xf32>
    %100 = tpu.matmul %16, %99, %cst_77 {dimension_numbers = #tpu.dot_dimension_numbers<[1], [0], [0], [1], [0, 0, 1, 1], [], []>} : vector<32x32xbf16>, vector<32x512xbf16>, vector<32x512xf32> -> vector<32x512xf32>
    %101 = arith.addf %97, %100 : vector<32x512xf32>
    %c0_78 = arith.constant 0 : index
    %c96_79 = arith.constant 96 : index
    %c512_80 = arith.constant 512 : index
    %102 = vector.load %arg4[%c0_78, %c96_79, %c512_80] : memref<1x288x2048xbf16, #tpu.memory_space<vmem>>, vector<1x32x512xbf16>
    %103 = vector.shape_cast %102 : vector<1x32x512xbf16> to vector<32x512xbf16>
    %cst_81 = arith.constant dense<0.000000e+00> : vector<32x512xf32>
    %104 = tpu.matmul %20, %103, %cst_81 {dimension_numbers = #tpu.dot_dimension_numbers<[1], [0], [0], [1], [0, 0, 1, 1], [], []>} : vector<32x32xbf16>, vector<32x512xbf16>, vector<32x512xf32> -> vector<32x512xf32>
    %105 = arith.addf %101, %104 : vector<32x512xf32>
    %c0_82 = arith.constant 0 : index
    %c128_83 = arith.constant 128 : index
    %c512_84 = arith.constant 512 : index
    %106 = vector.load %arg4[%c0_82, %c128_83, %c512_84] : memref<1x288x2048xbf16, #tpu.memory_space<vmem>>, vector<1x32x512xbf16>
    %107 = vector.shape_cast %106 : vector<1x32x512xbf16> to vector<32x512xbf16>
    %cst_85 = arith.constant dense<0.000000e+00> : vector<32x512xf32>
    %108 = tpu.matmul %24, %107, %cst_85 {dimension_numbers = #tpu.dot_dimension_numbers<[1], [0], [0], [1], [0, 0, 1, 1], [], []>} : vector<32x32xbf16>, vector<32x512xbf16>, vector<32x512xf32> -> vector<32x512xf32>
    %109 = arith.addf %105, %108 : vector<32x512xf32>
    %c0_86 = arith.constant 0 : index
    %c160_87 = arith.constant 160 : index
    %c512_88 = arith.constant 512 : index
    %110 = vector.load %arg4[%c0_86, %c160_87, %c512_88] : memref<1x288x2048xbf16, #tpu.memory_space<vmem>>, vector<1x32x512xbf16>
    %111 = vector.shape_cast %110 : vector<1x32x512xbf16> to vector<32x512xbf16>
    %cst_89 = arith.constant dense<0.000000e+00> : vector<32x512xf32>
    %112 = tpu.matmul %28, %111, %cst_89 {dimension_numbers = #tpu.dot_dimension_numbers<[1], [0], [0], [1], [0, 0, 1, 1], [], []>} : vector<32x32xbf16>, vector<32x512xbf16>, vector<32x512xf32> -> vector<32x512xf32>
    %113 = arith.addf %109, %112 : vector<32x512xf32>
    %c0_90 = arith.constant 0 : index
    %c192_91 = arith.constant 192 : index
    %c512_92 = arith.constant 512 : index
    %114 = vector.load %arg4[%c0_90, %c192_91, %c512_92] : memref<1x288x2048xbf16, #tpu.memory_space<vmem>>, vector<1x32x512xbf16>
    %115 = vector.shape_cast %114 : vector<1x32x512xbf16> to vector<32x512xbf16>
    %cst_93 = arith.constant dense<0.000000e+00> : vector<32x512xf32>
    %116 = tpu.matmul %32, %115, %cst_93 {dimension_numbers = #tpu.dot_dimension_numbers<[1], [0], [0], [1], [0, 0, 1, 1], [], []>} : vector<32x32xbf16>, vector<32x512xbf16>, vector<32x512xf32> -> vector<32x512xf32>
    %117 = arith.addf %113, %116 : vector<32x512xf32>
    %c0_94 = arith.constant 0 : index
    %c224_95 = arith.constant 224 : index
    %c512_96 = arith.constant 512 : index
    %118 = vector.load %arg4[%c0_94, %c224_95, %c512_96] : memref<1x288x2048xbf16, #tpu.memory_space<vmem>>, vector<1x32x512xbf16>
    %119 = vector.shape_cast %118 : vector<1x32x512xbf16> to vector<32x512xbf16>
    %cst_97 = arith.constant dense<0.000000e+00> : vector<32x512xf32>
    %120 = tpu.matmul %36, %119, %cst_97 {dimension_numbers = #tpu.dot_dimension_numbers<[1], [0], [0], [1], [0, 0, 1, 1], [], []>} : vector<32x32xbf16>, vector<32x512xbf16>, vector<32x512xf32> -> vector<32x512xf32>
    %121 = arith.addf %117, %120 : vector<32x512xf32>
    %c0_98 = arith.constant 0 : index
    %c256_99 = arith.constant 256 : index
    %c512_100 = arith.constant 512 : index
    %122 = vector.load %arg4[%c0_98, %c256_99, %c512_100] : memref<1x288x2048xbf16, #tpu.memory_space<vmem>>, vector<1x32x512xbf16>
    %123 = vector.shape_cast %122 : vector<1x32x512xbf16> to vector<32x512xbf16>
    %cst_101 = arith.constant dense<0.000000e+00> : vector<32x512xf32>
    %124 = tpu.matmul %40, %123, %cst_101 {dimension_numbers = #tpu.dot_dimension_numbers<[1], [0], [0], [1], [0, 0, 1, 1], [], []>} : vector<32x32xbf16>, vector<32x512xbf16>, vector<32x512xf32> -> vector<32x512xf32>
    %125 = arith.addf %121, %124 : vector<32x512xf32>
    %c0_102 = arith.constant 0 : index
    %c0_103 = arith.constant 0 : index
    %c512_104 = arith.constant 512 : index
    %126 = vector.load %arg5[%c0_102, %c0_103, %c512_104] : memref<1x1x2048xf32, #tpu.memory_space<vmem>>, vector<1x1x512xf32>
    %127 = vector.shape_cast %126 : vector<1x1x512xf32> to vector<1x512xf32>
    %128 = vector.broadcast %127 : vector<1x512xf32> to vector<32x512xf32>
    %129 = arith.addf %125, %128 : vector<32x512xf32>
    %cst_105 = arith.constant 0.000000e+00 : f32
    %130 = vector.broadcast %cst_105 : f32 to vector<32x512xf32>
    %131 = arith.maximumf %129, %130 : vector<32x512xf32>
    %132 = vector.extract_strided_slice %131 {offsets = [0, 0], sizes = [16, 512], strides = [1, 1]} : vector<32x512xf32> to vector<16x512xf32>
    %cst_106 = arith.constant dense<0.000000e+00> : vector<512xf32>
    %133 = vector.multi_reduction <add>, %132, %cst_106 [0] : vector<16x512xf32> to vector<512xf32>
    %134 = vector.shape_cast %133 : vector<512xf32> to vector<1x512xf32>
    %135 = vector.extract_strided_slice %131 {offsets = [16, 0], sizes = [16, 512], strides = [1, 1]} : vector<32x512xf32> to vector<16x512xf32>
    %cst_107 = arith.constant dense<0.000000e+00> : vector<512xf32>
    %136 = vector.multi_reduction <add>, %135, %cst_107 [0] : vector<16x512xf32> to vector<512xf32>
    %137 = vector.shape_cast %136 : vector<512xf32> to vector<1x512xf32>
    %138 = tpu.concatenate %134, %137 in 0 : vector<1x512xf32>, vector<1x512xf32> -> vector<2x512xf32>
    %cst_108 = arith.constant 6.250000e-02 : f32
    %139 = vector.broadcast %cst_108 : f32 to vector<2x512xf32>
    %140 = arith.mulf %138, %139 : vector<2x512xf32>
    %c0_109 = arith.constant 0 : index
    %c0_110 = arith.constant 0 : index
    %c1024 = arith.constant 1024 : index
    %141 = vector.load %arg4[%c0_109, %c0_110, %c1024] : memref<1x288x2048xbf16, #tpu.memory_space<vmem>>, vector<1x32x512xbf16>
    %142 = vector.shape_cast %141 : vector<1x32x512xbf16> to vector<32x512xbf16>
    %cst_111 = arith.constant dense<0.000000e+00> : vector<32x512xf32>
    %143 = tpu.matmul %8, %142, %cst_111 {dimension_numbers = #tpu.dot_dimension_numbers<[1], [0], [0], [1], [0, 0, 1, 1], [], []>} : vector<32x32xbf16>, vector<32x512xbf16>, vector<32x512xf32> -> vector<32x512xf32>
    %c0_112 = arith.constant 0 : index
    %c32_113 = arith.constant 32 : index
    %c1024_114 = arith.constant 1024 : index
    %144 = vector.load %arg4[%c0_112, %c32_113, %c1024_114] : memref<1x288x2048xbf16, #tpu.memory_space<vmem>>, vector<1x32x512xbf16>
    %145 = vector.shape_cast %144 : vector<1x32x512xbf16> to vector<32x512xbf16>
    %cst_115 = arith.constant dense<0.000000e+00> : vector<32x512xf32>
    %146 = tpu.matmul %12, %145, %cst_115 {dimension_numbers = #tpu.dot_dimension_numbers<[1], [0], [0], [1], [0, 0, 1, 1], [], []>} : vector<32x32xbf16>, vector<32x512xbf16>, vector<32x512xf32> -> vector<32x512xf32>
    %147 = arith.addf %143, %146 : vector<32x512xf32>
    %c0_116 = arith.constant 0 : index
    %c64_117 = arith.constant 64 : index
    %c1024_118 = arith.constant 1024 : index
    %148 = vector.load %arg4[%c0_116, %c64_117, %c1024_118] : memref<1x288x2048xbf16, #tpu.memory_space<vmem>>, vector<1x32x512xbf16>
    %149 = vector.shape_cast %148 : vector<1x32x512xbf16> to vector<32x512xbf16>
    %cst_119 = arith.constant dense<0.000000e+00> : vector<32x512xf32>
    %150 = tpu.matmul %16, %149, %cst_119 {dimension_numbers = #tpu.dot_dimension_numbers<[1], [0], [0], [1], [0, 0, 1, 1], [], []>} : vector<32x32xbf16>, vector<32x512xbf16>, vector<32x512xf32> -> vector<32x512xf32>
    %151 = arith.addf %147, %150 : vector<32x512xf32>
    %c0_120 = arith.constant 0 : index
    %c96_121 = arith.constant 96 : index
    %c1024_122 = arith.constant 1024 : index
    %152 = vector.load %arg4[%c0_120, %c96_121, %c1024_122] : memref<1x288x2048xbf16, #tpu.memory_space<vmem>>, vector<1x32x512xbf16>
    %153 = vector.shape_cast %152 : vector<1x32x512xbf16> to vector<32x512xbf16>
    %cst_123 = arith.constant dense<0.000000e+00> : vector<32x512xf32>
    %154 = tpu.matmul %20, %153, %cst_123 {dimension_numbers = #tpu.dot_dimension_numbers<[1], [0], [0], [1], [0, 0, 1, 1], [], []>} : vector<32x32xbf16>, vector<32x512xbf16>, vector<32x512xf32> -> vector<32x512xf32>
    %155 = arith.addf %151, %154 : vector<32x512xf32>
    %c0_124 = arith.constant 0 : index
    %c128_125 = arith.constant 128 : index
    %c1024_126 = arith.constant 1024 : index
    %156 = vector.load %arg4[%c0_124, %c128_125, %c1024_126] : memref<1x288x2048xbf16, #tpu.memory_space<vmem>>, vector<1x32x512xbf16>
    %157 = vector.shape_cast %156 : vector<1x32x512xbf16> to vector<32x512xbf16>
    %cst_127 = arith.constant dense<0.000000e+00> : vector<32x512xf32>
    %158 = tpu.matmul %24, %157, %cst_127 {dimension_numbers = #tpu.dot_dimension_numbers<[1], [0], [0], [1], [0, 0, 1, 1], [], []>} : vector<32x32xbf16>, vector<32x512xbf16>, vector<32x512xf32> -> vector<32x512xf32>
    %159 = arith.addf %155, %158 : vector<32x512xf32>
    %c0_128 = arith.constant 0 : index
    %c160_129 = arith.constant 160 : index
    %c1024_130 = arith.constant 1024 : index
    %160 = vector.load %arg4[%c0_128, %c160_129, %c1024_130] : memref<1x288x2048xbf16, #tpu.memory_space<vmem>>, vector<1x32x512xbf16>
    %161 = vector.shape_cast %160 : vector<1x32x512xbf16> to vector<32x512xbf16>
    %cst_131 = arith.constant dense<0.000000e+00> : vector<32x512xf32>
    %162 = tpu.matmul %28, %161, %cst_131 {dimension_numbers = #tpu.dot_dimension_numbers<[1], [0], [0], [1], [0, 0, 1, 1], [], []>} : vector<32x32xbf16>, vector<32x512xbf16>, vector<32x512xf32> -> vector<32x512xf32>
    %163 = arith.addf %159, %162 : vector<32x512xf32>
    %c0_132 = arith.constant 0 : index
    %c192_133 = arith.constant 192 : index
    %c1024_134 = arith.constant 1024 : index
    %164 = vector.load %arg4[%c0_132, %c192_133, %c1024_134] : memref<1x288x2048xbf16, #tpu.memory_space<vmem>>, vector<1x32x512xbf16>
    %165 = vector.shape_cast %164 : vector<1x32x512xbf16> to vector<32x512xbf16>
    %cst_135 = arith.constant dense<0.000000e+00> : vector<32x512xf32>
    %166 = tpu.matmul %32, %165, %cst_135 {dimension_numbers = #tpu.dot_dimension_numbers<[1], [0], [0], [1], [0, 0, 1, 1], [], []>} : vector<32x32xbf16>, vector<32x512xbf16>, vector<32x512xf32> -> vector<32x512xf32>
    %167 = arith.addf %163, %166 : vector<32x512xf32>
    %c0_136 = arith.constant 0 : index
    %c224_137 = arith.constant 224 : index
    %c1024_138 = arith.constant 1024 : index
    %168 = vector.load %arg4[%c0_136, %c224_137, %c1024_138] : memref<1x288x2048xbf16, #tpu.memory_space<vmem>>, vector<1x32x512xbf16>
    %169 = vector.shape_cast %168 : vector<1x32x512xbf16> to vector<32x512xbf16>
    %cst_139 = arith.constant dense<0.000000e+00> : vector<32x512xf32>
    %170 = tpu.matmul %36, %169, %cst_139 {dimension_numbers = #tpu.dot_dimension_numbers<[1], [0], [0], [1], [0, 0, 1, 1], [], []>} : vector<32x32xbf16>, vector<32x512xbf16>, vector<32x512xf32> -> vector<32x512xf32>
    %171 = arith.addf %167, %170 : vector<32x512xf32>
    %c0_140 = arith.constant 0 : index
    %c256_141 = arith.constant 256 : index
    %c1024_142 = arith.constant 1024 : index
    %172 = vector.load %arg4[%c0_140, %c256_141, %c1024_142] : memref<1x288x2048xbf16, #tpu.memory_space<vmem>>, vector<1x32x512xbf16>
    %173 = vector.shape_cast %172 : vector<1x32x512xbf16> to vector<32x512xbf16>
    %cst_143 = arith.constant dense<0.000000e+00> : vector<32x512xf32>
    %174 = tpu.matmul %40, %173, %cst_143 {dimension_numbers = #tpu.dot_dimension_numbers<[1], [0], [0], [1], [0, 0, 1, 1], [], []>} : vector<32x32xbf16>, vector<32x512xbf16>, vector<32x512xf32> -> vector<32x512xf32>
    %175 = arith.addf %171, %174 : vector<32x512xf32>
    %c0_144 = arith.constant 0 : index
    %c0_145 = arith.constant 0 : index
    %c1024_146 = arith.constant 1024 : index
    %176 = vector.load %arg5[%c0_144, %c0_145, %c1024_146] : memref<1x1x2048xf32, #tpu.memory_space<vmem>>, vector<1x1x512xf32>
    %177 = vector.shape_cast %176 : vector<1x1x512xf32> to vector<1x512xf32>
    %178 = vector.broadcast %177 : vector<1x512xf32> to vector<32x512xf32>
    %179 = arith.addf %175, %178 : vector<32x512xf32>
    %cst_147 = arith.constant 0.000000e+00 : f32
    %180 = vector.broadcast %cst_147 : f32 to vector<32x512xf32>
    %181 = arith.maximumf %179, %180 : vector<32x512xf32>
    %182 = vector.extract_strided_slice %181 {offsets = [0, 0], sizes = [16, 512], strides = [1, 1]} : vector<32x512xf32> to vector<16x512xf32>
    %cst_148 = arith.constant dense<0.000000e+00> : vector<512xf32>
    %183 = vector.multi_reduction <add>, %182, %cst_148 [0] : vector<16x512xf32> to vector<512xf32>
    %184 = vector.shape_cast %183 : vector<512xf32> to vector<1x512xf32>
    %185 = vector.extract_strided_slice %181 {offsets = [16, 0], sizes = [16, 512], strides = [1, 1]} : vector<32x512xf32> to vector<16x512xf32>
    %cst_149 = arith.constant dense<0.000000e+00> : vector<512xf32>
    %186 = vector.multi_reduction <add>, %185, %cst_149 [0] : vector<16x512xf32> to vector<512xf32>
    %187 = vector.shape_cast %186 : vector<512xf32> to vector<1x512xf32>
    %188 = tpu.concatenate %184, %187 in 0 : vector<1x512xf32>, vector<1x512xf32> -> vector<2x512xf32>
    %cst_150 = arith.constant 6.250000e-02 : f32
    %189 = vector.broadcast %cst_150 : f32 to vector<2x512xf32>
    %190 = arith.mulf %188, %189 : vector<2x512xf32>
    %c0_151 = arith.constant 0 : index
    %c0_152 = arith.constant 0 : index
    %c1536 = arith.constant 1536 : index
    %191 = vector.load %arg4[%c0_151, %c0_152, %c1536] : memref<1x288x2048xbf16, #tpu.memory_space<vmem>>, vector<1x32x512xbf16>
    %192 = vector.shape_cast %191 : vector<1x32x512xbf16> to vector<32x512xbf16>
    %cst_153 = arith.constant dense<0.000000e+00> : vector<32x512xf32>
    %193 = tpu.matmul %8, %192, %cst_153 {dimension_numbers = #tpu.dot_dimension_numbers<[1], [0], [0], [1], [0, 0, 1, 1], [], []>} : vector<32x32xbf16>, vector<32x512xbf16>, vector<32x512xf32> -> vector<32x512xf32>
    %c0_154 = arith.constant 0 : index
    %c32_155 = arith.constant 32 : index
    %c1536_156 = arith.constant 1536 : index
    %194 = vector.load %arg4[%c0_154, %c32_155, %c1536_156] : memref<1x288x2048xbf16, #tpu.memory_space<vmem>>, vector<1x32x512xbf16>
    %195 = vector.shape_cast %194 : vector<1x32x512xbf16> to vector<32x512xbf16>
    %cst_157 = arith.constant dense<0.000000e+00> : vector<32x512xf32>
    %196 = tpu.matmul %12, %195, %cst_157 {dimension_numbers = #tpu.dot_dimension_numbers<[1], [0], [0], [1], [0, 0, 1, 1], [], []>} : vector<32x32xbf16>, vector<32x512xbf16>, vector<32x512xf32> -> vector<32x512xf32>
    %197 = arith.addf %193, %196 : vector<32x512xf32>
    %c0_158 = arith.constant 0 : index
    %c64_159 = arith.constant 64 : index
    %c1536_160 = arith.constant 1536 : index
    %198 = vector.load %arg4[%c0_158, %c64_159, %c1536_160] : memref<1x288x2048xbf16, #tpu.memory_space<vmem>>, vector<1x32x512xbf16>
    %199 = vector.shape_cast %198 : vector<1x32x512xbf16> to vector<32x512xbf16>
    %cst_161 = arith.constant dense<0.000000e+00> : vector<32x512xf32>
    %200 = tpu.matmul %16, %199, %cst_161 {dimension_numbers = #tpu.dot_dimension_numbers<[1], [0], [0], [1], [0, 0, 1, 1], [], []>} : vector<32x32xbf16>, vector<32x512xbf16>, vector<32x512xf32> -> vector<32x512xf32>
    %201 = arith.addf %197, %200 : vector<32x512xf32>
    %c0_162 = arith.constant 0 : index
    %c96_163 = arith.constant 96 : index
    %c1536_164 = arith.constant 1536 : index
    %202 = vector.load %arg4[%c0_162, %c96_163, %c1536_164] : memref<1x288x2048xbf16, #tpu.memory_space<vmem>>, vector<1x32x512xbf16>
    %203 = vector.shape_cast %202 : vector<1x32x512xbf16> to vector<32x512xbf16>
    %cst_165 = arith.constant dense<0.000000e+00> : vector<32x512xf32>
    %204 = tpu.matmul %20, %203, %cst_165 {dimension_numbers = #tpu.dot_dimension_numbers<[1], [0], [0], [1], [0, 0, 1, 1], [], []>} : vector<32x32xbf16>, vector<32x512xbf16>, vector<32x512xf32> -> vector<32x512xf32>
    %205 = arith.addf %201, %204 : vector<32x512xf32>
    %c0_166 = arith.constant 0 : index
    %c128_167 = arith.constant 128 : index
    %c1536_168 = arith.constant 1536 : index
    %206 = vector.load %arg4[%c0_166, %c128_167, %c1536_168] : memref<1x288x2048xbf16, #tpu.memory_space<vmem>>, vector<1x32x512xbf16>
    %207 = vector.shape_cast %206 : vector<1x32x512xbf16> to vector<32x512xbf16>
    %cst_169 = arith.constant dense<0.000000e+00> : vector<32x512xf32>
    %208 = tpu.matmul %24, %207, %cst_169 {dimension_numbers = #tpu.dot_dimension_numbers<[1], [0], [0], [1], [0, 0, 1, 1], [], []>} : vector<32x32xbf16>, vector<32x512xbf16>, vector<32x512xf32> -> vector<32x512xf32>
    %209 = arith.addf %205, %208 : vector<32x512xf32>
    %c0_170 = arith.constant 0 : index
    %c160_171 = arith.constant 160 : index
    %c1536_172 = arith.constant 1536 : index
    %210 = vector.load %arg4[%c0_170, %c160_171, %c1536_172] : memref<1x288x2048xbf16, #tpu.memory_space<vmem>>, vector<1x32x512xbf16>
    %211 = vector.shape_cast %210 : vector<1x32x512xbf16> to vector<32x512xbf16>
    %cst_173 = arith.constant dense<0.000000e+00> : vector<32x512xf32>
    %212 = tpu.matmul %28, %211, %cst_173 {dimension_numbers = #tpu.dot_dimension_numbers<[1], [0], [0], [1], [0, 0, 1, 1], [], []>} : vector<32x32xbf16>, vector<32x512xbf16>, vector<32x512xf32> -> vector<32x512xf32>
    %213 = arith.addf %209, %212 : vector<32x512xf32>
    %c0_174 = arith.constant 0 : index
    %c192_175 = arith.constant 192 : index
    %c1536_176 = arith.constant 1536 : index
    %214 = vector.load %arg4[%c0_174, %c192_175, %c1536_176] : memref<1x288x2048xbf16, #tpu.memory_space<vmem>>, vector<1x32x512xbf16>
    %215 = vector.shape_cast %214 : vector<1x32x512xbf16> to vector<32x512xbf16>
    %cst_177 = arith.constant dense<0.000000e+00> : vector<32x512xf32>
    %216 = tpu.matmul %32, %215, %cst_177 {dimension_numbers = #tpu.dot_dimension_numbers<[1], [0], [0], [1], [0, 0, 1, 1], [], []>} : vector<32x32xbf16>, vector<32x512xbf16>, vector<32x512xf32> -> vector<32x512xf32>
    %217 = arith.addf %213, %216 : vector<32x512xf32>
    %c0_178 = arith.constant 0 : index
    %c224_179 = arith.constant 224 : index
    %c1536_180 = arith.constant 1536 : index
    %218 = vector.load %arg4[%c0_178, %c224_179, %c1536_180] : memref<1x288x2048xbf16, #tpu.memory_space<vmem>>, vector<1x32x512xbf16>
    %219 = vector.shape_cast %218 : vector<1x32x512xbf16> to vector<32x512xbf16>
    %cst_181 = arith.constant dense<0.000000e+00> : vector<32x512xf32>
    %220 = tpu.matmul %36, %219, %cst_181 {dimension_numbers = #tpu.dot_dimension_numbers<[1], [0], [0], [1], [0, 0, 1, 1], [], []>} : vector<32x32xbf16>, vector<32x512xbf16>, vector<32x512xf32> -> vector<32x512xf32>
    %221 = arith.addf %217, %220 : vector<32x512xf32>
    %c0_182 = arith.constant 0 : index
    %c256_183 = arith.constant 256 : index
    %c1536_184 = arith.constant 1536 : index
    %222 = vector.load %arg4[%c0_182, %c256_183, %c1536_184] : memref<1x288x2048xbf16, #tpu.memory_space<vmem>>, vector<1x32x512xbf16>
    %223 = vector.shape_cast %222 : vector<1x32x512xbf16> to vector<32x512xbf16>
    %cst_185 = arith.constant dense<0.000000e+00> : vector<32x512xf32>
    %224 = tpu.matmul %40, %223, %cst_185 {dimension_numbers = #tpu.dot_dimension_numbers<[1], [0], [0], [1], [0, 0, 1, 1], [], []>} : vector<32x32xbf16>, vector<32x512xbf16>, vector<32x512xf32> -> vector<32x512xf32>
    %225 = arith.addf %221, %224 : vector<32x512xf32>
    %c0_186 = arith.constant 0 : index
    %c0_187 = arith.constant 0 : index
    %c1536_188 = arith.constant 1536 : index
    %226 = vector.load %arg5[%c0_186, %c0_187, %c1536_188] : memref<1x1x2048xf32, #tpu.memory_space<vmem>>, vector<1x1x512xf32>
    %227 = vector.shape_cast %226 : vector<1x1x512xf32> to vector<1x512xf32>
    %228 = vector.broadcast %227 : vector<1x512xf32> to vector<32x512xf32>
    %229 = arith.addf %225, %228 : vector<32x512xf32>
    %cst_189 = arith.constant 0.000000e+00 : f32
    %230 = vector.broadcast %cst_189 : f32 to vector<32x512xf32>
    %231 = arith.maximumf %229, %230 : vector<32x512xf32>
    %232 = vector.extract_strided_slice %231 {offsets = [0, 0], sizes = [16, 512], strides = [1, 1]} : vector<32x512xf32> to vector<16x512xf32>
    %cst_190 = arith.constant dense<0.000000e+00> : vector<512xf32>
    %233 = vector.multi_reduction <add>, %232, %cst_190 [0] : vector<16x512xf32> to vector<512xf32>
    %234 = vector.shape_cast %233 : vector<512xf32> to vector<1x512xf32>
    %235 = vector.extract_strided_slice %231 {offsets = [16, 0], sizes = [16, 512], strides = [1, 1]} : vector<32x512xf32> to vector<16x512xf32>
    %cst_191 = arith.constant dense<0.000000e+00> : vector<512xf32>
    %236 = vector.multi_reduction <add>, %235, %cst_191 [0] : vector<16x512xf32> to vector<512xf32>
    %237 = vector.shape_cast %236 : vector<512xf32> to vector<1x512xf32>
    %238 = tpu.concatenate %234, %237 in 0 : vector<1x512xf32>, vector<1x512xf32> -> vector<2x512xf32>
    %cst_192 = arith.constant 6.250000e-02 : f32
    %239 = vector.broadcast %cst_192 : f32 to vector<2x512xf32>
    %240 = arith.mulf %238, %239 : vector<2x512xf32>
    %241 = tpu.concatenate %90, %140, %190, %240 in 1 : vector<2x512xf32>, vector<2x512xf32>, vector<2x512xf32>, vector<2x512xf32> -> vector<2x2048xf32>
    %242 = arith.truncf %241 : vector<2x2048xf32> to vector<2x2048xbf16>
    %c0_193 = arith.constant 0 : index
    %c0_194 = arith.constant 0 : index
    %c0_195 = arith.constant 0 : index
    %243 = vector.load %arg6[%c0_193, %c0_194, %c0_195] : memref<1x2048x32xbf16, #tpu.memory_space<vmem>>, vector<1x2048x32xbf16>
    %244 = vector.shape_cast %243 : vector<1x2048x32xbf16> to vector<2048x32xbf16>
    %cst_196 = arith.constant dense<0.000000e+00> : vector<2x32xf32>
    %245 = tpu.matmul %242, %244, %cst_196 {dimension_numbers = #tpu.dot_dimension_numbers<[1], [0], [0], [1], [0, 0, 1, 1], [], []>} : vector<2x2048xbf16>, vector<2048x32xbf16>, vector<2x32xf32> -> vector<2x32xf32>
    %c0_197 = arith.constant 0 : index
    %c0_198 = arith.constant 0 : index
    %c0_199 = arith.constant 0 : index
    %246 = vector.load %arg7[%c0_197, %c0_198, %c0_199] : memref<1x1x32xf32, #tpu.memory_space<vmem>>, vector<1x1x32xf32>
    %247 = vector.shape_cast %246 : vector<1x1x32xf32> to vector<1x32xf32>
    %248 = vector.broadcast %247 : vector<1x32xf32> to vector<2x32xf32>
    %249 = arith.addf %245, %248 : vector<2x32xf32>
    %cst_200 = arith.constant 0.000000e+00 : f32
    %250 = vector.broadcast %cst_200 : f32 to vector<2x32xf32>
    %251 = arith.cmpf ogt, %249, %250 : vector<2x32xf32>
    %cst_201 = arith.constant 0.000000e+00 : f32
    %252 = vector.broadcast %cst_201 : f32 to vector<2x32xf32>
    %253 = arith.minimumf %249, %252 : vector<2x32xf32>
    %254 = math.exp %253 : vector<2x32xf32>
    %cst_202 = arith.constant 1.000000e+00 : f32
    %255 = vector.broadcast %cst_202 : f32 to vector<2x32xf32>
    %256 = arith.subf %254, %255 : vector<2x32xf32>
    %257 = arith.select %251, %249, %256 : vector<2x32xi1>, vector<2x32xf32>
    %258 = arith.truncf %257 : vector<2x32xf32> to vector<2x32xbf16>
    %c0_203 = arith.constant 0 : index
    %c0_204 = arith.constant 0 : index
    %c0_205 = arith.constant 0 : index
    %259 = vector.load %arg8[%c0_203, %c0_204, %c0_205] : memref<1x32x512xbf16, #tpu.memory_space<vmem>>, vector<1x32x512xbf16>
    %260 = vector.shape_cast %259 : vector<1x32x512xbf16> to vector<32x512xbf16>
    %cst_206 = arith.constant dense<0.000000e+00> : vector<2x512xf32>
    %261 = tpu.matmul %258, %260, %cst_206 {dimension_numbers = #tpu.dot_dimension_numbers<[1], [0], [0], [1], [0, 0, 1, 1], [], []>} : vector<2x32xbf16>, vector<32x512xbf16>, vector<2x512xf32> -> vector<2x512xf32>
    %c0_207 = arith.constant 0 : index
    %c0_208 = arith.constant 0 : index
    %c0_209 = arith.constant 0 : index
    %262 = vector.load %arg9[%c0_207, %c0_208, %c0_209] : memref<1x1x512xf32, #tpu.memory_space<vmem>>, vector<1x1x512xf32>
    %263 = vector.shape_cast %262 : vector<1x1x512xf32> to vector<1x512xf32>
    %264 = vector.broadcast %263 : vector<1x512xf32> to vector<2x512xf32>
    %265 = arith.addf %261, %264 : vector<2x512xf32>
    %266 = arith.index_cast %arg0 : i32 to index
    %c0_210 = arith.constant 0 : index
    %c0_211 = arith.constant 0 : index
    %267 = vector.load %arg14[%266, %c0_210, %c0_211] : memref<4x2x512xf32, #tpu.memory_space<vmem>>, vector<1x2x512xf32>
    %268 = vector.shape_cast %267 : vector<1x2x512xf32> to vector<2x512xf32>
    %269 = vector.shape_cast %265 : vector<2x512xf32> to vector<1x2x512xf32>
    tpu.vector_store %arg14[%266, %c0_210, %c0_211], %269 {strides = array<i32>} : memref<4x2x512xf32, #tpu.memory_space<vmem>>, vector<1x2x512xf32>,
    %c3_i32 = arith.constant 3 : i32
    %270 = arith.cmpi eq, %arg0, %c3_i32 : i32
    %271 = arith.extui %270 : i1 to i32
    %c0_i32 = arith.constant 0 : i32
    %272 = arith.cmpi ne, %271, %c0_i32 : i32
    scf.if %272 {
      %c0_212 = arith.constant 0 : index
      %c0_213 = arith.constant 0 : index
      %c0_214 = arith.constant 0 : index
      %273 = vector.load %arg14[%c0_212, %c0_213, %c0_214] : memref<4x2x512xf32, #tpu.memory_space<vmem>>, vector<1x2x512xf32>
      %274 = vector.shape_cast %273 : vector<1x2x512xf32> to vector<2x512xf32>
      %c1_215 = arith.constant 1 : index
      %c0_216 = arith.constant 0 : index
      %c0_217 = arith.constant 0 : index
      %275 = vector.load %arg14[%c1_215, %c0_216, %c0_217] : memref<4x2x512xf32, #tpu.memory_space<vmem>>, vector<1x2x512xf32>
      %276 = vector.shape_cast %275 : vector<1x2x512xf32> to vector<2x512xf32>
      %277 = arith.addf %274, %276 : vector<2x512xf32>
      %cst_218 = arith.constant 0.000000e+00 : f32
      %278 = vector.broadcast %cst_218 : f32 to vector<2x512xf32>
      %279 = arith.maximumf %277, %278 : vector<2x512xf32>
      %c2_219 = arith.constant 2 : index
      %c0_220 = arith.constant 0 : index
      %c0_221 = arith.constant 0 : index
      %280 = vector.load %arg14[%c2_219, %c0_220, %c0_221] : memref<4x2x512xf32, #tpu.memory_space<vmem>>, vector<1x2x512xf32>
      %281 = vector.shape_cast %280 : vector<1x2x512xf32> to vector<2x512xf32>
      %cst_222 = arith.constant 0.000000e+00 : f32
      %282 = vector.broadcast %cst_222 : f32 to vector<2x512xf32>
      %283 = arith.maximumf %281, %282 : vector<2x512xf32>
      %c3_223 = arith.constant 3 : index
      %c0_224 = arith.constant 0 : index
      %c0_225 = arith.constant 0 : index
      %284 = vector.load %arg14[%c3_223, %c0_224, %c0_225] : memref<4x2x512xf32, #tpu.memory_space<vmem>>, vector<1x2x512xf32>
      %285 = vector.shape_cast %284 : vector<1x2x512xf32> to vector<2x512xf32>
      %cst_226 = arith.constant 0.000000e+00 : f32
      %286 = vector.broadcast %cst_226 : f32 to vector<2x512xf32>
      %287 = arith.maximumf %285, %286 : vector<2x512xf32>
      %288 = arith.truncf %279 : vector<2x512xf32> to vector<2x512xbf16>
      %c0_227 = arith.constant 0 : index
      %c0_228 = arith.constant 0 : index
      %c0_229 = arith.constant 0 : index
      %289 = vector.load %arg10[%c0_227, %c0_228, %c0_229] : memref<3x512x128xbf16, #tpu.memory_space<vmem>>, vector<1x512x128xbf16>
      %290 = vector.shape_cast %289 : vector<1x512x128xbf16> to vector<512x128xbf16>
      %cst_230 = arith.constant dense<0.000000e+00> : vector<2x128xf32>
      %291 = tpu.matmul %288, %290, %cst_230 {dimension_numbers = #tpu.dot_dimension_numbers<[1], [0], [0], [1], [0, 0, 1, 1], [], []>} : vector<2x512xbf16>, vector<512x128xbf16>, vector<2x128xf32> -> vector<2x128xf32>
      %c0_231 = arith.constant 0 : index
      %c0_232 = arith.constant 0 : index
      %c0_233 = arith.constant 0 : index
      %292 = vector.load %arg11[%c0_231, %c0_232, %c0_233] : memref<3x1x128xf32, #tpu.memory_space<vmem>>, vector<1x1x128xf32>
      %293 = vector.shape_cast %292 : vector<1x1x128xf32> to vector<1x128xf32>
      %294 = vector.broadcast %293 : vector<1x128xf32> to vector<2x128xf32>
      %295 = arith.addf %291, %294 : vector<2x128xf32>
      %296 = math.absf %295 : vector<2x128xf32>
      %cst_234 = arith.constant 0.000000e+00 : f32
      %297 = vector.broadcast %cst_234 : f32 to vector<2x128xf32>
      %298 = arith.subf %297, %296 : vector<2x128xf32>
      %299 = math.exp %298 : vector<2x128xf32>
      %cst_235 = arith.constant 0.000000e+00 : f32
      %300 = vector.broadcast %cst_235 : f32 to vector<2x128xf32>
      %301 = arith.cmpf oge, %295, %300 : vector<2x128xf32>
      %cst_236 = arith.constant 1.000000e+00 : f32
      %302 = vector.broadcast %cst_236 : f32 to vector<2x128xf32>
      %303 = arith.addf %302, %299 : vector<2x128xf32>
      %cst_237 = arith.constant 1.000000e+00 : f32
      %304 = vector.broadcast %cst_237 : f32 to vector<2x128xf32>
      %305 = arith.divf %304, %303 : vector<2x128xf32>
      %cst_238 = arith.constant 1.000000e+00 : f32
      %306 = vector.broadcast %cst_238 : f32 to vector<2x128xf32>
      %307 = arith.addf %306, %299 : vector<2x128xf32>
      %308 = arith.divf %299, %307 : vector<2x128xf32>
      %309 = arith.select %301, %305, %308 : vector<2x128xi1>, vector<2x128xf32>
      %c0_239 = arith.constant 0 : index
      %c0_240 = arith.constant 0 : index
      %c0_241 = arith.constant 0 : index
      %310 = vector.load %arg12[%c0_239, %c0_240, %c0_241] : memref<3x1x128xf32, #tpu.memory_space<vmem>>, vector<1x1x128xf32>
      %311 = vector.shape_cast %310 : vector<1x1x128xf32> to vector<1x128xf32>
      %cst_242 = arith.constant 5.000000e-01 : f32
      %312 = vector.broadcast %cst_242 : f32 to vector<1x128xf32>
      %313 = arith.cmpf ogt, %311, %312 : vector<1x128xf32>
      %314 = vector.shape_cast %313 : vector<1x128xi1> to vector<1x128xi1>
      %315 = vector.broadcast %314 : vector<1x128xi1> to vector<2x128xi1>
      %316 = arith.select %315, %309, %295 : vector<2x128xi1>, vector<2x128xf32>
      %c0_243 = arith.constant 0 : index
      %c0_244 = arith.constant 0 : index
      %c0_245 = arith.constant 0 : index
      %317 = vector.load %arg13[%c0_243, %c0_244, %c0_245] : memref<3x2x128xf32, #tpu.memory_space<vmem>>, vector<1x2x128xf32>
      %318 = vector.shape_cast %317 : vector<1x2x128xf32> to vector<2x128xf32>
      %319 = vector.shape_cast %316 : vector<2x128xf32> to vector<1x2x128xf32>
      tpu.vector_store %arg13[%c0_243, %c0_244, %c0_245], %319 {strides = array<i32>} : memref<3x2x128xf32, #tpu.memory_space<vmem>>, vector<1x2x128xf32>,
      %320 = arith.truncf %283 : vector<2x512xf32> to vector<2x512xbf16>
      %c1_246 = arith.constant 1 : index
      %c0_247 = arith.constant 0 : index
      %c0_248 = arith.constant 0 : index
      %321 = vector.load %arg10[%c1_246, %c0_247, %c0_248] : memref<3x512x128xbf16, #tpu.memory_space<vmem>>, vector<1x512x128xbf16>
      %322 = vector.shape_cast %321 : vector<1x512x128xbf16> to vector<512x128xbf16>
      %cst_249 = arith.constant dense<0.000000e+00> : vector<2x128xf32>
      %323 = tpu.matmul %320, %322, %cst_249 {dimension_numbers = #tpu.dot_dimension_numbers<[1], [0], [0], [1], [0, 0, 1, 1], [], []>} : vector<2x512xbf16>, vector<512x128xbf16>, vector<2x128xf32> -> vector<2x128xf32>
      %c1_250 = arith.constant 1 : index
      %c0_251 = arith.constant 0 : index
      %c0_252 = arith.constant 0 : index
      %324 = vector.load %arg11[%c1_250, %c0_251, %c0_252] : memref<3x1x128xf32, #tpu.memory_space<vmem>>, vector<1x1x128xf32>
      %325 = vector.shape_cast %324 : vector<1x1x128xf32> to vector<1x128xf32>
      %326 = vector.broadcast %325 : vector<1x128xf32> to vector<2x128xf32>
      %327 = arith.addf %323, %326 : vector<2x128xf32>
      %328 = math.absf %327 : vector<2x128xf32>
      %cst_253 = arith.constant 0.000000e+00 : f32
      %329 = vector.broadcast %cst_253 : f32 to vector<2x128xf32>
      %330 = arith.subf %329, %328 : vector<2x128xf32>
      %331 = math.exp %330 : vector<2x128xf32>
      %cst_254 = arith.constant 0.000000e+00 : f32
      %332 = vector.broadcast %cst_254 : f32 to vector<2x128xf32>
      %333 = arith.cmpf oge, %327, %332 : vector<2x128xf32>
      %cst_255 = arith.constant 1.000000e+00 : f32
      %334 = vector.broadcast %cst_255 : f32 to vector<2x128xf32>
      %335 = arith.addf %334, %331 : vector<2x128xf32>
      %cst_256 = arith.constant 1.000000e+00 : f32
      %336 = vector.broadcast %cst_256 : f32 to vector<2x128xf32>
      %337 = arith.divf %336, %335 : vector<2x128xf32>
      %cst_257 = arith.constant 1.000000e+00 : f32
      %338 = vector.broadcast %cst_257 : f32 to vector<2x128xf32>
      %339 = arith.addf %338, %331 : vector<2x128xf32>
      %340 = arith.divf %331, %339 : vector<2x128xf32>
      %341 = arith.select %333, %337, %340 : vector<2x128xi1>, vector<2x128xf32>
      %c1_258 = arith.constant 1 : index
      %c0_259 = arith.constant 0 : index
      %c0_260 = arith.constant 0 : index
      %342 = vector.load %arg12[%c1_258, %c0_259, %c0_260] : memref<3x1x128xf32, #tpu.memory_space<vmem>>, vector<1x1x128xf32>
      %343 = vector.shape_cast %342 : vector<1x1x128xf32> to vector<1x128xf32>
      %cst_261 = arith.constant 5.000000e-01 : f32
      %344 = vector.broadcast %cst_261 : f32 to vector<1x128xf32>
      %345 = arith.cmpf ogt, %343, %344 : vector<1x128xf32>
      %346 = vector.shape_cast %345 : vector<1x128xi1> to vector<1x128xi1>
      %347 = vector.broadcast %346 : vector<1x128xi1> to vector<2x128xi1>
      %348 = arith.select %347, %341, %327 : vector<2x128xi1>, vector<2x128xf32>
      %c1_262 = arith.constant 1 : index
      %c0_263 = arith.constant 0 : index
      %c0_264 = arith.constant 0 : index
      %349 = vector.load %arg13[%c1_262, %c0_263, %c0_264] : memref<3x2x128xf32, #tpu.memory_space<vmem>>, vector<1x2x128xf32>
      %350 = vector.shape_cast %349 : vector<1x2x128xf32> to vector<2x128xf32>
      %351 = vector.shape_cast %348 : vector<2x128xf32> to vector<1x2x128xf32>
      tpu.vector_store %arg13[%c1_262, %c0_263, %c0_264], %351 {strides = array<i32>} : memref<3x2x128xf32, #tpu.memory_space<vmem>>, vector<1x2x128xf32>,
      %352 = arith.truncf %287 : vector<2x512xf32> to vector<2x512xbf16>
      %c2_265 = arith.constant 2 : index
      %c0_266 = arith.constant 0 : index
      %c0_267 = arith.constant 0 : index
      %353 = vector.load %arg10[%c2_265, %c0_266, %c0_267] : memref<3x512x128xbf16, #tpu.memory_space<vmem>>, vector<1x512x128xbf16>
      %354 = vector.shape_cast %353 : vector<1x512x128xbf16> to vector<512x128xbf16>
      %cst_268 = arith.constant dense<0.000000e+00> : vector<2x128xf32>
      %355 = tpu.matmul %352, %354, %cst_268 {dimension_numbers = #tpu.dot_dimension_numbers<[1], [0], [0], [1], [0, 0, 1, 1], [], []>} : vector<2x512xbf16>, vector<512x128xbf16>, vector<2x128xf32> -> vector<2x128xf32>
      %c2_269 = arith.constant 2 : index
      %c0_270 = arith.constant 0 : index
      %c0_271 = arith.constant 0 : index
      %356 = vector.load %arg11[%c2_269, %c0_270, %c0_271] : memref<3x1x128xf32, #tpu.memory_space<vmem>>, vector<1x1x128xf32>
      %357 = vector.shape_cast %356 : vector<1x1x128xf32> to vector<1x128xf32>
      %358 = vector.broadcast %357 : vector<1x128xf32> to vector<2x128xf32>
      %359 = arith.addf %355, %358 : vector<2x128xf32>
      %360 = math.absf %359 : vector<2x128xf32>
      %cst_272 = arith.constant 0.000000e+00 : f32
      %361 = vector.broadcast %cst_272 : f32 to vector<2x128xf32>
      %362 = arith.subf %361, %360 : vector<2x128xf32>
      %363 = math.exp %362 : vector<2x128xf32>
      %cst_273 = arith.constant 0.000000e+00 : f32
      %364 = vector.broadcast %cst_273 : f32 to vector<2x128xf32>
      %365 = arith.cmpf oge, %359, %364 : vector<2x128xf32>
      %cst_274 = arith.constant 1.000000e+00 : f32
      %366 = vector.broadcast %cst_274 : f32 to vector<2x128xf32>
      %367 = arith.addf %366, %363 : vector<2x128xf32>
      %cst_275 = arith.constant 1.000000e+00 : f32
      %368 = vector.broadcast %cst_275 : f32 to vector<2x128xf32>
      %369 = arith.divf %368, %367 : vector<2x128xf32>
      %cst_276 = arith.constant 1.000000e+00 : f32
      %370 = vector.broadcast %cst_276 : f32 to vector<2x128xf32>
      %371 = arith.addf %370, %363 : vector<2x128xf32>
      %372 = arith.divf %363, %371 : vector<2x128xf32>
      %373 = arith.select %365, %369, %372 : vector<2x128xi1>, vector<2x128xf32>
      %c2_277 = arith.constant 2 : index
      %c0_278 = arith.constant 0 : index
      %c0_279 = arith.constant 0 : index
      %374 = vector.load %arg12[%c2_277, %c0_278, %c0_279] : memref<3x1x128xf32, #tpu.memory_space<vmem>>, vector<1x1x128xf32>
      %375 = vector.shape_cast %374 : vector<1x1x128xf32> to vector<1x128xf32>
      %cst_280 = arith.constant 5.000000e-01 : f32
      %376 = vector.broadcast %cst_280 : f32 to vector<1x128xf32>
      %377 = arith.cmpf ogt, %375, %376 : vector<1x128xf32>
      %378 = vector.shape_cast %377 : vector<1x128xi1> to vector<1x128xi1>
      %379 = vector.broadcast %378 : vector<1x128xi1> to vector<2x128xi1>
      %380 = arith.select %379, %373, %359 : vector<2x128xi1>, vector<2x128xf32>
      %c2_281 = arith.constant 2 : index
      %c0_282 = arith.constant 0 : index
      %c0_283 = arith.constant 0 : index
      %381 = vector.load %arg13[%c2_281, %c0_282, %c0_283] : memref<3x2x128xf32, #tpu.memory_space<vmem>>, vector<1x2x128xf32>
      %382 = vector.shape_cast %381 : vector<1x2x128xf32> to vector<2x128xf32>
      %383 = vector.shape_cast %380 : vector<2x128xf32> to vector<1x2x128xf32>
      tpu.vector_store %arg13[%c2_281, %c0_282, %c0_283], %383 {strides = array<i32>} : memref<3x2x128xf32, #tpu.memory_space<vmem>>, vector<1x2x128xf32>,
    } else {
    }
    return
  }
  func.func @transform_0(%arg0: i32) -> (i32, i32) {
    %c0_i32 = arith.constant 0 : i32
    %c0_i32_0 = arith.constant 0 : i32
    %c0_i32_1 = arith.constant 0 : i32
    return %c0_i32, %c0_i32_0 : i32, i32
  }
  func.func @transform_1(%arg0: i32) -> (i32, i32, i32) {
    %c0_i32 = arith.constant 0 : i32
    %c0_i32_0 = arith.constant 0 : i32
    %c0_i32_1 = arith.constant 0 : i32
    return %arg0, %c0_i32, %c0_i32_0 : i32, i32, i32
  }
  func.func @transform_2(%arg0: i32) -> (i32, i32, i32) {
    %c0_i32 = arith.constant 0 : i32
    %c0_i32_0 = arith.constant 0 : i32
    %c0_i32_1 = arith.constant 0 : i32
    %c0_i32_2 = arith.constant 0 : i32
    return %c0_i32, %c0_i32_0, %c0_i32_1 : i32, i32, i32
  }
  func.func @transform_3(%arg0: i32) -> (i32, i32, i32) {
    %c0_i32 = arith.constant 0 : i32
    %c0_i32_0 = arith.constant 0 : i32
    %c0_i32_1 = arith.constant 0 : i32
    return %arg0, %c0_i32, %c0_i32_0 : i32, i32, i32
  }
  func.func @transform_4(%arg0: i32) -> (i32, i32, i32) {
    %c0_i32 = arith.constant 0 : i32
    %c0_i32_0 = arith.constant 0 : i32
    %c0_i32_1 = arith.constant 0 : i32
    return %arg0, %c0_i32, %c0_i32_0 : i32, i32, i32
  }
  func.func @transform_5(%arg0: i32) -> (i32, i32, i32) {
    %c0_i32 = arith.constant 0 : i32
    %c0_i32_0 = arith.constant 0 : i32
    %c0_i32_1 = arith.constant 0 : i32
    return %arg0, %c0_i32, %c0_i32_0 : i32, i32, i32
  }
  func.func @transform_6(%arg0: i32) -> (i32, i32, i32) {
    %c0_i32 = arith.constant 0 : i32
    %c0_i32_0 = arith.constant 0 : i32
    %c0_i32_1 = arith.constant 0 : i32
    return %arg0, %c0_i32, %c0_i32_0 : i32, i32, i32
  }
  func.func @transform_7(%arg0: i32) -> (i32, i32, i32) {
    %c0_i32 = arith.constant 0 : i32
    %c0_i32_0 = arith.constant 0 : i32
    %c0_i32_1 = arith.constant 0 : i32
    return %arg0, %c0_i32, %c0_i32_0 : i32, i32, i32
  }
  func.func @transform_8(%arg0: i32) -> (i32, i32, i32) {
    %c0_i32 = arith.constant 0 : i32
    %c0_i32_0 = arith.constant 0 : i32
    %c0_i32_1 = arith.constant 0 : i32
    return %arg0, %c0_i32, %c0_i32_0 : i32, i32, i32
  }
  func.func @transform_9(%arg0: i32) -> (i32, i32, i32) {
    %c0_i32 = arith.constant 0 : i32
    %c0_i32_0 = arith.constant 0 : i32
    %c0_i32_1 = arith.constant 0 : i32
    %c0_i32_2 = arith.constant 0 : i32
    return %c0_i32, %c0_i32_0, %c0_i32_1 : i32, i32, i32
  }
  func.func @transform_10(%arg0: i32) -> (i32, i32, i32) {
    %c0_i32 = arith.constant 0 : i32
    %c0_i32_0 = arith.constant 0 : i32
    %c0_i32_1 = arith.constant 0 : i32
    %c0_i32_2 = arith.constant 0 : i32
    return %c0_i32, %c0_i32_0, %c0_i32_1 : i32, i32, i32
  }
  func.func @transform_11(%arg0: i32) -> (i32, i32, i32) {
    %c0_i32 = arith.constant 0 : i32
    %c0_i32_0 = arith.constant 0 : i32
    %c0_i32_1 = arith.constant 0 : i32
    %c0_i32_2 = arith.constant 0 : i32
    return %c0_i32, %c0_i32_0, %c0_i32_1 : i32, i32, i32
  }
  func.func @transform_12(%arg0: i32) -> (i32, i32, i32) {
    %c0_i32 = arith.constant 0 : i32
    %c0_i32_0 = arith.constant 0 : i32
    %c0_i32_1 = arith.constant 0 : i32
    %c0_i32_2 = arith.constant 0 : i32
    return %c0_i32, %c0_i32_0, %c0_i32_1 : i32, i32, i32
  }
}

</mosaic_0001>

<bundles_post_ra>
// kernel: akg_forward.2
= control target key start
LH: loop header
LB: loop body
LE: loop exit
PB: predicated region body
PF: predicated region fallthrough
CT: control target
= control target key end

     0   :  { %8 = vsyncpa [#allocation5], 0  ;;  %s1459_s0 = inlined_call_operand.vmem [shape: bf16[32,2048], index: 0, kind: input, shape index: {}]   ;;  %s1460_s1 = inlined_call_operand.hbm [shape: bf16[2048,128], index: 1, kind: input, shape index: {}]   ;;  %s1461_s2 = inlined_call_operand.hbm [shape: f32[1,128], index: 2, kind: input, shape index: {}]   ;;  %s1462_s3 = inlined_call_operand.vmem [shape: bf16[32,128], index: 3, kind: output, shape index: {}]  }
   0x1   :  { %10 = vsyncpa [#allocation5 + $0x1], 0 }
   0x2   :  { %11 = vsyncpa [#allocation7], 0  ;;  %s1201_s12 = smov 0   ;;  %s1203_s13 = smov 0  }
   0x3   :  { %s1205_s14 = smov 0   ;;  %s1207_s15 = smov 0  }
   0x4   :  { %s1209_s16 = smov 0   ;;  %s1211_s17 = smov 0  }
   0x5   :  { %s1213_s18 = smov 0   ;;  %s1215_s19 = smov 0  }
   0x6   :  { %s1217_s20 = smov 0   ;;  %s1219_s21 = smov 0  }
   0x7 LB: > { %s783_s22 = sadd.s32 4294967295, %s1174_s21   ;;  %s26_s23 = sadd.s32 1, %s1166_s19  ;;  %s1174_s21 = sphi %s1219_s21, %s17_s21   ;;  %s1170_s20 = sphi %s1217_s20, %s1493_s20   ;;  %s1166_s19 = sphi %s1215_s19, %s1492_s19   ;;  %s1162_s18 = sphi %s1213_s18, %s1491_s18   ;;  %s1158_s17 = sphi %s1211_s17, %s1490_s17   ;;  %s1154_s16 = sphi %s1209_s16, %s1489_s16   ;;  %s1150_s15 = sphi %s1207_s15, %s1488_s15   ;;  %s1146_s14 = sphi %s1205_s14, %s1487_s14   ;;  %s1142_s13 = sphi %s1203_s13, %s1486_s13   ;;  %s1138_s12 = sphi %s1201_s12, %s1485_s12  }
   0x8   : > { %p27_p0 = scmp.ge.s32.totalorder %s26_s23, 4  ;;  %s29_s24 = sadd.s32 1, %s1170_s20 }
   0x9   : > { %s38_s25 = sadd.s32 1, %s1154_s16  ;;  %p45_p1 = scmp.ne.s32.totalorder %s1154_s16, %s1150_s15 }
   0xa   : > { %s1495_s23 = smov (%p27_p0, %s26_s23), 0  ;;  %s1497_s24 = smov (!%p27_p0, %s29_s24), %s1170_s20 }
   0xb   : > { %1470 = sst [smem:[#allocation10_spill]] %s1495_s23  ;;  %s34_s26 = ssub.s32 %s1166_s19, %s1495_s23 }
   0xc   : > { %p46_p2 = scmp.eq.s32.totalorder %s1174_s21, 0  ;;  %p31_p3 = scmp.ge.s32.totalorder %s1497_s24, 2 }
   0xd   : > { %p62_p4 = scmp.eq.s32.totalorder %s34_s26, 0  ;;  %s64_s28 = sadd.s32 1, %s1146_s14 }
   0xe   : > { %p1263_p5 = por %p46_p2, %p45_p1  ;;  %s1499_s24 = smov (%p31_p3, %s1497_s24), 0 }
   0xf   : > { %1472 = sst [smem:[#allocation11_spill]] %s1499_s24  ;;  %s33_s30 = ssub.s32 %s1170_s20, %s1499_s24 }
  0x10   : > { %s1471_s27 = scalar_select %p1263_p5, 1, 0 }
  0x11   : > { %s1271_s29 = scalar_select %p62_p4, %s1146_s14, %s64_s28  }
  0x12   : > { %p71_p6 = scmp.ne.s32.totalorder %s1146_s14, %s1142_s13  ;;  %s35_s4 = sor.u32 %s34_s26, %s33_s30 }
  0x13   : > { %p77_p7 = scmp.ne.s32.totalorder %s1142_s13, %s1138_s12  ;;  %p36_p8 = scmp.eq.s32.totalorder %s35_s4, 0 }
  0x14   : > { %p1279_p9 = por %p71_p6, %p46_p2  ;;  %p1283_p10 = scmp.eq.s32.totalorder %s783_s22, 0 }
  0x15   : > { %p785_p11 = scmp.ge.s32.totalorder %s1174_s21, 1  ;;  %p135_p13 = scmp.lt.s32.totalorder %s1174_s21, 9 }
  0x16   : > { %s1473_s5 = scalar_select %p1279_p9, 1, 0 }
  0x17   : > { %s1474_s6 = scalar_select %p1283_p10, 1, 0 }
  0x18   : > { %s1289_s7 = scalar_select %p36_p8, %s1154_s16, %s38_s25  }
  0x19   : > { %p1293_p12 = por %p1283_p10, %p77_p7  ;;  %p1298_p0 = pnand %p785_p11, %p135_p13 }
  0x1a   : > { %s1176_s10 = smov [#allocation6]   ;;  %s1032_s26 = scalar_lea.hbm %s1461_s2, 16 }
  0x1b   : > { %s1475_s8 = scalar_select %p1293_p12, 1, 0 }
  0x1c   : > { %s1476_s9 = scalar_select %p1298_p0, 1, 0 }
  0x1d   : > { %s148_s11 = sshll.u32 %s1176_s10, 4  ;;  %p904_p1 = pneg %p1298_p0  ;;  %s149_s11 = int_to_ptr.vmem [resolvable:$true] %s148_s11 }
  0x1e   : > { %p1033_p3 = scmp.ne.s32.totalorder %s1461_s2, %s1032_s26  ;;  %p1039_p8 = scmp.lt.u32.totalorder %s1032_s26, %s1461_s2 }
  0x1f   : > { %p1306_p2 = pnand %p904_p1, %p1283_p10 }
  0x21   : > { %p1034_p4 = pneg %p1306_p2 }
  0x23   : > { %p1035_p6 = pnand %p1034_p4, %p1033_p3 }
  0x25   : > { %p1036_p7 = pneg %p1035_p6 }
  0x27   : > { %p1041_p11 = pnand %p1039_p8, %p1036_p7 }
  0x29   : > { %1044 = shalt.err (!%p1041_p11)
}
  0x2a   : > { %s1045_s24 = scalar_lea.vmem %s149_s11, 16  ;;  %s1052_s22 = scalar_lea.vmem %s149_s11, 32 }
  0x2b   : > { %p1046_p13 = scmp.ne.s32.totalorder %s149_s11, %s1045_s24  ;;  %p1053_p12 = scmp.lt.s32.totalorder %s149_s11, %s149_s11 }
  0x2c   : > { %p1054_p0 = scmp.lt.s32.totalorder %s1052_s22, %s1045_s24 }
  0x2d   : > { %p1048_p1 = pnand %p1046_p13, %p1034_p4 }
  0x2e   : > { %p1055_p9 = por %p1054_p0, %p1053_p12 }
  0x2f   : > { %p1049_p10 = pneg %p1048_p1 }
  0x31   : > { %p1056_p5 = pnand %p1055_p9, %p1049_p10 }
  0x33   : > { %1059 = shalt.err (!%p1056_p5)
}
  0x34   : > { %907 = dma.hbm_to_vmem [thread:$0]  (!%p1306_p2), %s1461_s2, 16, %s149_s11, [#allocation7]  }
  0x35   : > { %p787_p3 = scmp.ge.s32.totalorder %s1174_s21, 8 }
  0x36   : > { %p1478_p6 = scmp.ne.s32.totalorder (!%p787_p3), %s1471_s27, 0 }
  0x37   : > { %155 = sbr.rel (%p787_p3) target bundleno = 98 (0x62), region = 20 }
  0x3e   : > { %158 = sbr.rel (!%p1478_p6) target bundleno = 71 (0x47), region = 24  ;;  %s160_s26 = sand.u32 (%p1478_p6), 1, %s1154_s16  }
  0x3f   : > { %s790_s24 = sshll.u32 (%p1478_p6), %s1166_s19, 2  ;;  %s788_s30 = sshll.u32 (%p1478_p6), %s160_s26, 5 }
  0x40   : > { %s845_s4 = sshll.u32 (%p1478_p6), %s1170_s20, 5  ;;  %s162_s11 = scalar_lea.vmem (%p1478_p6), [#allocation3], %s788_s30 }
  0x41   : > { %s166_s10 = sadd.s32 (%p1478_p6), %s845_s4, %s790_s24 }
  0x42   : > { %s792_s22 = sshll.u32 (%p1478_p6), %s166_s10, 2 }
  0x43   : > { %s168_s25 = scalar_lea.vmem (%p1478_p6), %s1459_s0, %s792_s22 }
  0x44   : > { %v181_v0 = vld [vmem:[%s168_s25] sm:$0xff] (%p1478_p6)  ;;  %v183_v1 = vld [vmem:[%s168_s25 + $0x8] sm:$0xff] (%p1478_p6) }
  0x45   : > { %v185_v2 = vld [vmem:[%s168_s25 + $0x40] sm:$0xff]  ;;  %182 = vst [vmem:[%s162_s11] sm:$0xff] %v181_v0  ;;  %184 = vst [vmem:[%s162_s11 + $0x8] sm:$0xff] %v183_v1  ;;  %v187_v3 = vld [vmem:[%s168_s25 + $0x48] sm:$0xff] }
  0x46   : > { %186 = vst [vmem:[%s162_s11 + $0x10] sm:$0xff] %v185_v2  ;;  %188 = vst [vmem:[%s162_s11 + $0x18] sm:$0xff] %v187_v3 }
  0x47 PF: > { %s195_s27 = sand.u32 1, %s1146_s14   ;;  %s846_s28 = sshll.u32 %s1166_s19, 12 }
  0x48   : > { %s793_s26 = sshll.u32 %s195_s27, 8  ;;  %s1340_s23 = scalar_lea.hbm %s1460_s1, %s846_s28 }
  0x49   : > { %s199_s30 = scalar_lea.vmem [#allocation4], %s793_s26  ;;  %s1344_s22 = scalar_lea.sflag [#allocation5], %s195_s27 }
  0x4a   : > { %s206_s10 = sshll.u32 %s199_s30, 4  ;;  %s1060_s12 = scalar_lea.hbm %s1340_s23, 4096  ;;  %s1342_s10 = int_to_ptr.vmem [resolvable:$true] %s206_s10 }
  0x4b   : > { %p1061_p5 = scmp.ne.s32.totalorder %s1340_s23, %s1060_s12  ;;  %p1479_p9 = scmp.ne.s32.totalorder %s1473_s5, 0 }
  0x4c   : > { %s1064_s28 = scalar_lea.hbm %s1460_s1, 16384  ;;  %p1065_p0 = scmp.lt.u32.totalorder %s1340_s23, %s1460_s1 }
  0x4d   : > { %p1062_p10 = pnand %p1061_p5, %p1479_p9  ;;  %p1066_p2 = scmp.lt.u32.totalorder %s1064_s28, %s1060_s12 }
  0x4e   : > { %p1068_p7 = scmp.lt.u32.totalorder %s1060_s12, %s1340_s23 }
  0x4f   : > { %p1063_p12 = pneg %p1062_p10  ;;  %p1067_p4 = por %p1066_p2, %p1065_p0 }
  0x51   : > { %p1069_p8 = por %p1068_p7, %p1067_p4 }
  0x53   : > { %p1070_p11 = pnand %p1069_p8, %p1063_p12 }
  0x55   : > { %1073 = shalt.err (!%p1070_p11)
}
  0x56   : > { %s1074_s27 = scalar_lea.vmem %s1342_s10, 4096  ;;  %s1177_s26 = smov [#allocation4]  }
  0x57   : > { %p1075_p13 = scmp.ne.s32.totalorder %s1342_s10, %s1074_s27  ;;  %s1078_s30 = sshll.u32 %s1177_s26, 4  ;;  %s1079_s30 = int_to_ptr.vmem [resolvable:$false] %s1078_s30 }
  0x58   : > { %s1080_s25 = scalar_lea.vmem %s1079_s30, 8192  ;;  %p1081_p6 = scmp.lt.s32.totalorder %s1342_s10, %s1079_s30 }
  0x59   : > { %p1076_p1 = pnand %p1075_p13, %p1479_p9  ;;  %p1082_p5 = scmp.lt.s32.totalorder %s1080_s25, %s1074_s27 }
  0x5b   : > { %p1077_p3 = pneg %p1076_p1  ;;  %p1083_p10 = por %p1082_p5, %p1081_p6 }
  0x5d   : > { %p1084_p0 = pnand %p1083_p10, %p1077_p3 }
  0x5f   : > { %1087 = shalt.err (!%p1084_p0)
}
  0x60   : > { %s1178_s12 = smov 64   ;;  %s1179_s11 = smov 4  }
  0x61   : > { %900 = dma.hbm_to_vmem [thread:$0]  (%p1479_p9), %s1340_s23, 4096, %s1342_s10, %s1344_s22, %s1178_s12, %s1178_s12, %s1179_s11  }
  0x62 PF: > { %p1480_p12 = scmp.ne.s32.totalorder %s1476_s9, 0 }
  0x63   : > { %s221_s28 = sand.u32 (!%p1480_p12), 1, %s1150_s15   ;;  %s227_s24 = sand.u32 (!%p1480_p12), 1, %s1142_s13  }
  0x64   : > { %218 = sbr.rel (%p1480_p12) target bundleno = 391 (0x187), region = 51  ;;  %s797_s4 = sshll.u32 (!%p1480_p12), %s221_s28, 5 }
  0x65   : > { %s798_s27 = sshll.u32 (!%p1480_p12), %s227_s24, 8  ;;  %s1372_s26 = scalar_lea.vmem (!%p1480_p12), [#allocation3], %s797_s4 }
  0x66   : > { %s228_s30 = scalar_lea.sflag (!%p1480_p12), [#allocation5], %s227_s24  ;;  %s1374_s25 = scalar_lea.vmem (!%p1480_p12), [#allocation4], %s798_s27 }
  0x67   : > { %p1481_p2 = scmp.ne.s32.totalorder (!%p1480_p12), %s1475_s8, 0 }
  0x6b   : > { %1129 = dma.done.wait (%p1481_p2), %s228_s30, 4096  }
  0x6c   : > { %1131 = vsyncadd (%p1481_p2), %s228_s30, 4294963200  ;;  %p1482_p9 = scmp.ne.s32.totalorder %s1474_s6, 0 }
  0x6e   : > { %1133 = dma.done.wait (%p1482_p9), [#allocation7], 16  }
  0x6f   : > { %1135 = vsyncadd (%p1482_p9), [#allocation7], 4294967280  ;;  %s800_s15 = sshll.u32 %s1162_s18, 1  ;;  %p802_p7 = scmp.ne.s32.totalorder %s1158_s17, 0 }
  0x70   : > { %p266_p4 = scmp.lt.s32.totalorder %s800_s15, 3  ;;  %v1180_v4 = vmov (!%p802_p7), 0.0  }
  0x71   : > { %275 = sbr.rel (%p802_p7) target bundleno = 120 (0x78), region = 67  ;;  %276 = vst [vmem:[#allocation2] sm:$0xff] (!%p802_p7), %v1180_v4  ;;  %277 = vst [vmem:[#allocation2 + $0x8] sm:$0xff] (!%p802_p7), %v1180_v4 }
  0x72   : > { %s1501_s15 = smov (!%p266_p4, %s800_s15), 3 }
  0x73   : > { %s801_s5 = sshll.u32 %s1501_s15, 2 }
  0x74   : > { %s1388_s10 = scalar_lea.vmem %s1462_s3, %s801_s5 }
  0x78 PF: > { %v994_v5 = vld [vmem:[%s1374_s25 + $0x40] sm:$0xff]   ;;  %v998_v9 = vld [vmem:[%s1374_s25 + $0x48] sm:$0xff]   ;;  %v1002_v13 = vld [vmem:[%s1374_s25 + $0x50] sm:$0xff]   ;;  %p839_p8 = scmp.ne.s32.totalorder %s1158_s17, 3 }
  0x79   : > { %v995_v6 = vld [vmem:[%s1374_s25 + $0xc0] sm:$0xff]   ;;  %854 = vmatprep.subr.bf16.mxu0 %v994_v5  ;;  %v999_v10 = vld [vmem:[%s1374_s25 + $0xc8] sm:$0xff]   ;;  %v1003_v14 = vld [vmem:[%s1374_s25 + $0xd0] sm:$0xff]  }
  0x7a   : > { %v996_v7 = vld [vmem:[%s1374_s25] sm:$0xff]   ;;  %876 = vmatprep.subr.bf16.mxu1 %v995_v6  ;;  %v1000_v11 = vld [vmem:[%s1374_s25 + $0x8] sm:$0xff]   ;;  %v1004_v15 = vld [vmem:[%s1374_s25 + $0x10] sm:$0xff]  }
  0x7b   : > { %v997_v8 = vld [vmem:[%s1374_s25 + $0x80] sm:$0xff]   ;;  %855 = vmatpush3.bf16.msra.mxu0 %v996_v7  ;;  %v1001_v12 = vld [vmem:[%s1374_s25 + $0x88] sm:$0xff]   ;;  %v1005_v16 = vld [vmem:[%s1374_s25 + $0x90] sm:$0xff]  }
  0x7c   : > { %877 = vmatpush3.bf16.msra.mxu1 %v997_v8  ;;  %856 = vmatprep.subr.bf16.mxu0 %v998_v9  ;;  %v1006_v17 = vld [vmem:[%s1374_s25 + $0x58] sm:$0xff]   ;;  %v1010_v21 = vld [vmem:[%s1374_s25 + $0x60] sm:$0xff]   ;;  %v1014_v25 = vld [vmem:[%s1374_s25 + $0x68] sm:$0xff]  }
  0x7d   : > { %878 = vmatprep.subr.bf16.mxu1 %v999_v10  ;;  %v1007_v18 = vld [vmem:[%s1374_s25 + $0xd8] sm:$0xff]   ;;  %v1011_v22 = vld [vmem:[%s1374_s25 + $0xe0] sm:$0xff]   ;;  %v1015_v26 = vld [vmem:[%s1374_s25 + $0xe8] sm:$0xff]  }
  0x7e   : > { %v1008_v19 = vld [vmem:[%s1374_s25 + $0x18] sm:$0xff]   ;;  %v1012_v23 = vld [vmem:[%s1374_s25 + $0x20] sm:$0xff]   ;;  %v1016_v27 = vld [vmem:[%s1374_s25 + $0x28] sm:$0xff]  }
  0x7f   : > { %857 = vmatpush3.bf16.msra.mxu0 %v1000_v11  ;;  %v1009_v20 = vld [vmem:[%s1374_s25 + $0x98] sm:$0xff]   ;;  %v1013_v24 = vld [vmem:[%s1374_s25 + $0xa0] sm:$0xff]   ;;  %v1017_v28 = vld [vmem:[%s1374_s25 + $0xa8] sm:$0xff]  }
  0x80   : > { %879 = vmatpush3.bf16.msra.mxu1 %v1001_v12  ;;  %858 = vmatprep.subr.bf16.mxu0 %v1002_v13  ;;  %v1018_v29 = vld [vmem:[%s1374_s25 + $0x70] sm:$0xff]   ;;  %v1022_v33 = vld [vmem:[%s1374_s25 + $0x78] sm:$0xff]   ;;  %v840_v61 = vld [vmem:[#allocation6] ss:$0 sm:$0xff] (!%p839_p8) }
  0x81   : > { %880 = vmatprep.subr.bf16.mxu1 %v1003_v14  ;;  %v1019_v30 = vld [vmem:[%s1374_s25 + $0xf0] sm:$0xff]   ;;  %v1023_v34 = vld [vmem:[%s1374_s25 + $0xf8] sm:$0xff]  }
  0x82   : > { %v1020_v31 = vld [vmem:[%s1374_s25 + $0x30] sm:$0xff]   ;;  %v1024_v35 = vld [vmem:[%s1374_s25 + $0x38] sm:$0xff]  }
  0x83   : > { %859 = vmatpush3.bf16.msra.mxu0 %v1004_v15  ;;  %v1021_v32 = vld [vmem:[%s1374_s25 + $0xb0] sm:$0xff]   ;;  %v1025_v36 = vld [vmem:[%s1374_s25 + $0xb8] sm:$0xff]  }
  0x84   : > { %881 = vmatpush3.bf16.msra.mxu1 %v1005_v16  ;;  %860 = vmatprep.subr.bf16.mxu0 %v1006_v17  ;;  %v1026_v37 = vld [vmem:[%s1372_s26] ss:$16 sps:$4 sm:$0xff]   ;;  %v1028_v38 = vld [vmem:[%s1372_s26 + $0x4] ss:$16 sps:$4 sm:$0xff]   ;;  %v1029_v39 = vld [vmem:[%s1372_s26 + $0x8] ss:$16 sps:$4 sm:$0xff]  }
  0x85   : > { %882 = vmatprep.subr.bf16.mxu1 %v1007_v18  ;;  %v1031_v40 = vld [vmem:[%s1372_s26 + $0xc] ss:$16 sps:$4 sm:$0xff]   ;;  %592 = vmatprep.mubr.bf16.mxu0 %v1028_v38  ;;  %v278_v50 = vld [vmem:[#allocation2] sm:$0xff] }
  0x86   : > { %633 = vmatprep.mubr.bf16.mxu1 %v1031_v40  ;;  %v279_v55 = vld [vmem:[#allocation2 + $0x8] sm:$0xff] }
  0x87   : > { %861 = vmatpush3.bf16.msra.mxu0 %v1008_v19 }
  0x88   : > { %883 = vmatpush3.bf16.msra.mxu1 %v1009_v20  ;;  %862 = vmatprep.subr.bf16.mxu0 %v1010_v21 }
  0x89   : > { %884 = vmatprep.subr.bf16.mxu1 %v1011_v22 }
  0x8b   : > { %863 = vmatpush3.bf16.msra.mxu0 %v1012_v23 }
  0x8c   : > { %885 = vmatpush3.bf16.msra.mxu1 %v1013_v24  ;;  %864 = vmatprep.subr.bf16.mxu0 %v1014_v25 }
  0x8d   : > { %886 = vmatprep.subr.bf16.mxu1 %v1015_v26 }
  0x8f   : > { %865 = vmatpush3.bf16.msra.mxu0 %v1016_v27 }
  0x90   : > { %887 = vmatpush3.bf16.msra.mxu1 %v1017_v28  ;;  %866 = vmatprep.subr.bf16.mxu0 %v1018_v29 }
  0x91   : > { %888 = vmatprep.subr.bf16.mxu1 %v1019_v30 }
  0x93   : > { %867 = vmatpush3.bf16.msra.mxu0 %v1020_v31 }
  0x94   : > { %889 = vmatpush3.bf16.msra.mxu1 %v1021_v32  ;;  %868 = vmatprep.subr.bf16.mxu0 %v1022_v33 }
  0x95   : > { %890 = vmatprep.subr.bf16.mxu1 %v1023_v34 }
  0x97   : > { %869 = vmatpush3.bf16.msra.mxu0 %v1024_v35 }
  0x98   : > { %891 = vmatpush3.bf16.msra.mxu1 %v1025_v36 }
  0x9a   : > { %593 = vmatmul.mubr.bf16.vlgmr.msra.gmra.mrb[0].mxu0 %v1026_v37 }
  0x9b   : > { %634 = vmatmul.mubr.bf16.vlgmr.msra.gmra.mrb[0].mxu1 %v1029_v39 }
 0x16d   : > { %v870_v41 = vpop.f32.mrb[0].mxu0 }
 0x16e   : > { %v892_v42 = vpop.f32.mrb[0].mxu1  ;;  %v871_v43 = vpop.f32.mrb[1].mxu0 }
 0x16f   : > { %v872_v44 = vadd.f32 %v871_v43, %v870_v41  ;;  %v893_v45 = vpop.f32.mrb[1].mxu1  ;;  %v873_v46 = vpop.f32.mrb[2].mxu0 }
 0x170   : > { %v894_v47 = vadd.f32 %v893_v45, %v892_v42  ;;  %v895_v48 = vpop.f32.mrb[2].mxu1  ;;  %v874_v49 = vpop.f32.mrb[3].mxu0 }
 0x171   : > { %v875_v51 = vadd.f32 %v874_v49, %v873_v46  ;;  %v896_v52 = vpop.f32.mrb[3].mxu1 }
 0x172   : > { %v636_v53 = vadd.f32 %v894_v47, %v872_v44  ;;  %v897_v54 = vadd.f32 %v896_v52, %v895_v48  ;;  %649 = sbr.rel (%p839_p8) target bundleno = 391 (0x187), region = 71 }
 0x174   : > { %v642_v56 = vadd.f32 %v636_v53, %v278_v50  ;;  %v639_v57 = vadd.f32 %v897_v54, %v875_v51 }
 0x176   : > { %644 = vst [vmem:[#allocation2] sm:$0xff] %v642_v56  ;;  %v643_v58 = vadd.f32 %v639_v57, %v279_v55 }
 0x178   : > { %645 = vst [vmem:[#allocation2 + $0x8] sm:$0xff] %v643_v58 }
 0x17d   : > { %v650_v59 = vld [vmem:[#allocation2] sm:$0xff] }
 0x17e   : > { %v659_v62 = vadd.f32 %v840_v61, %v650_v59 }
 0x17f   : > { %v651_v60 = vld [vmem:[#allocation2 + $0x8] sm:$0xff] }
 0x180   : > { %v660_v63 = vadd.f32 %v840_v61, %v651_v60  ;;  %v661_v0 = vmax.f32 %v659_v62, 0.0 }
 0x182   : > { %v662_v1 = vmax.f32 %v660_v63, 0.0 }
 0x184   : > { %v852_v2 = vpack.c.bf16 %v662_v1, %v661_v0 }
 0x186   : > { %853 = vst [vmem:[%s1388_s10] sm:$0xff] %v852_v2  }
 0x187 PF: > { %s17_s21 = sadd.s32 1, %s1174_s21   ;;  %s1483_s6 = sld [smem:[#allocation10_spill]] }
 0x188   : > { %p14_p11 = scmp.ge.s32.totalorder %s17_s21, 10   ;;  %s1484_s8 = sld [smem:[#allocation11_spill]] }
 0x189   : > { %s1485_s12 = smov %s1142_s13  ;;  %s1486_s13 = smov %s1146_s14 }
 0x18a   : > { %s1487_s14 = smov %s1271_s29  ;;  %s1488_s15 = smov %s1154_s16 }
 0x18b   : > { %s1489_s16 = smov %s1289_s7  ;;  %s1490_s17 = smov %s1166_s19 }
 0x18c   : > { %s1491_s18 = smov %s1170_s20  ;;  %16 = sbr.rel (!%p14_p11) target bundleno = 7 (0x7), region = 115 }
 0x18d   : > { %s1492_s19 = smov %s1483_s6 }
 0x18e   : > { %s1493_s20 = smov %s1484_s8 }
 0x193   :  { %695 = vsyncpa [#allocation5], 1 }
 0x194   :  { %697 = vsyncpa [#allocation5 + $0x1], 1 }
 0x195   :  { %698 = vsyncpa [#allocation7], 1 }

// kernel: akg_forward.3
= control target key start
LH: loop header
LB: loop body
LE: loop exit
PB: predicated region body
PF: predicated region fallthrough
CT: control target
= control target key end

     0   :  { %s15100_s0 = inlined_call_operand.vmem [shape: bf16[32,128], index: 0, kind: input, shape index: {}]   ;;  %s15101_s1 = inlined_call_operand.hbm [shape: bf16[4,128,32], index: 1, kind: input, shape index: {}]   ;;  %s15102_s2 = inlined_call_operand.hbm [shape: bf16[9,32,32], index: 2, kind: input, shape index: {}]   ;;  %s15103_s3 = inlined_call_operand.hbm [shape: bf16[4,288,2048], index: 3, kind: input, shape index: {}]   ;;  %s15104_s4 = inlined_call_operand.hbm [shape: f32[4,1,2048], index: 4, kind: input, shape index: {}]   ;;  %s15105_s5 = inlined_call_operand.vmem [shape: bf16[4,2048,32], index: 5, kind: input, shape index: {}]   ;;  %s15106_s6 = inlined_call_operand.hbm [shape: f32[4,1,32], index: 6, kind: input, shape index: {}]   ;;  %s15107_s7 = inlined_call_operand.hbm [shape: bf16[4,32,512], index: 7, kind: input, shape index: {}]   ;;  %s15108_s8 = inlined_call_operand.hbm [shape: f32[4,1,512], index: 8, kind: input, shape index: {}]   ;;  %s15109_s9 = inlined_call_operand.hbm [shape: bf16[3,512,128], index: 9, kind: input, shape index: {}]   ;;  %s15110_s10 = inlined_call_operand.hbm [shape: f32[3,1,128], index: 10, kind: input, shape index: {}]   ;;  %s15111_s11 = inlined_call_operand.hbm [shape: f32[3,1,128], index: 11, kind: input, shape index: {}]   ;;  %s15112_s12 = inlined_call_operand.vmem [shape: f32[3,2,128], index: 12, kind: output, shape index: {}]  }
   0x1   :  { %15141 = sst [smem:[#allocation28_spill]] %s15100_s0 }
   0x2   :  { %15142 = sst [smem:[#allocation29_spill]] %s15101_s1 }
   0x3   :  { %15143 = sst [smem:[#allocation30_spill]] %s15103_s3 }
   0x4   :  { %15144 = sst [smem:[#allocation31_spill]] %s15104_s4 }
   0x5   :  { %15145 = sst [smem:[#allocation32_spill]] %s15105_s5 }
   0x6   :  { %15146 = sst [smem:[#allocation33_spill]] %s15106_s6 }
   0x7   :  { %15147 = sst [smem:[#allocation34_spill]] %s15112_s12 }
   0x8   :  { %17 = vsyncpa [#allocation4], 0 }
   0x9   :  { %19 = vsyncpa [#allocation4 + $0x1], 0 }
   0xa   :  { %20 = vsyncpa [#allocation6], 0 }
   0xb   :  { %21 = vsyncpa [#allocation14], 0  ;;  %s13447_s21 = smov 0   ;;  %s13449_s22 = smov 0  }
   0xc   :  { %s13451_s23 = smov 0   ;;  %s13453_s24 = smov 0  }
   0xd LB: > { %15148 = sst [smem:[#allocation21_spill]] %s13353_s22  ;;  %s13468_s25 = sadd.s32 1, %s13361_s24   ;;  %s13361_s24 = sphi %s13453_s24, %s15191_s24   ;;  %s13357_s23 = sphi %s13451_s23, %s15194_s23   ;;  %s13353_s22 = sphi %s13449_s22, %s15193_s22   ;;  %s13349_s21 = sphi %s13447_s21, %s15192_s21  }
   0xe   : > { %15149 = sst [smem:[#allocation22_spill]] %s13357_s23  ;;  %s55_s26 = sadd.s32 1, %s13357_s23 }
   0xf   : > { %15150 = sst [smem:[#allocation23_spill]] %s13468_s25  ;;  %s52_s27 = ssub.s32 %s13361_s24, %s13468_s25 }
  0x10   : > { %p62_p0 = scmp.ne.s32.totalorder %s13357_s23, %s13353_s22  ;;  %p53_p1 = scmp.eq.s32.totalorder %s52_s27, 0 }
  0x11   : > { %p63_p2 = scmp.eq.s32.totalorder %s13361_s24, 0  ;;  %p12691_p4 = scmp.lt.s32.totalorder %s13361_s24, 4 }
  0x12   : > { %s13477_s28 = scalar_select %p53_p1, %s13357_s23, %s55_s26  }
  0x13   : > { %p64_p3 = por %p63_p2, %p62_p0  ;;  %s408_s29 = sand.u32 1, %s13361_s24  }
  0x14   : > { %15151 = sst [smem:[#allocation24_spill]] %s13477_s28  ;;  %s13482_s30 = sand.u32 1, %s13357_s23  }
  0x15   : > { %s15113_s13 = sshll.u32 %s13482_s30, 6  ;;  %s11660_s14 = sshll.u32 %s13361_s24, 10 }
  0x16   : > { %s15152_s1 = sld [smem:[#allocation29_spill]]  ;;  %s412_s18 = scalar_lea.vmem [#allocation3], %s15113_s13 }
  0x17   : > { %s419_s19 = sshll.u32 %s412_s18, 4  ;;  %p13493_p5 = pnand %p12691_p4, %p64_p3  ;;  %s13497_s19 = int_to_ptr.vmem [resolvable:$true] %s419_s19 }
  0x18   : > { %s13502_s15 = scalar_lea.hbm %s15107_s7, %s11660_s14  ;;  %s13504_s16 = scalar_lea.sflag [#allocation4], %s408_s29 }
  0x19   : > { %s15153_s20 = scalar_select %p13493_p5, 1, 0 }
  0x1a   : > { %p13510_p7 = pneg %p13493_p5 }
  0x1c   : > { %s13489_s17 = scalar_lea.hbm %s15152_s1, %s11660_s14  ;;  %s13024_s25 = scalar_lea.hbm %s15152_s1, 4096 }
  0x1d   : > { %s13019_s28 = scalar_lea.hbm %s13489_s17, 1024  ;;  %p13025_p10 = scmp.lt.u32.totalorder %s13489_s17, %s15152_s1 }
  0x1e   : > { %p13020_p6 = scmp.ne.s32.totalorder %s13489_s17, %s13019_s28  ;;  %p13026_p11 = scmp.lt.u32.totalorder %s13024_s25, %s13019_s28 }
  0x1f   : > { %s15154_s13 = scalar_select %p13510_p7, 1, 0 }
  0x20   : > { %p13022_p8 = pnand %p13510_p7, %p13020_p6  ;;  %p13027_p12 = por %p13026_p11, %p13025_p10 }
  0x21   : > { %p13028_p13 = scmp.lt.u32.totalorder %s13019_s28, %s13489_s17 }
  0x22   : > { %p13023_p9 = pneg %p13022_p8 }
  0x23   : > { %p13029_p0 = por %p13028_p13, %p13027_p12 }
  0x25   : > { %p13030_p1 = pnand %p13029_p0, %p13023_p9 }
  0x27   : > { %13033 = shalt.err (!%p13030_p1)
}
  0x28   : > { %s13034_s29 = scalar_lea.vmem %s13497_s19, 1024  ;;  %s13363_s23 = smov [#allocation3]  }
  0x29   : > { %p13035_p2 = scmp.ne.s32.totalorder %s13497_s19, %s13034_s29  ;;  %s13039_s27 = sshll.u32 %s13363_s23, 4  ;;  %s13040_s27 = int_to_ptr.vmem [resolvable:$false] %s13039_s27 }
  0x2a   : > { %s13041_s18 = scalar_lea.vmem %s13040_s27, 2048  ;;  %p13042_p6 = scmp.lt.s32.totalorder %s13497_s19, %s13040_s27 }
  0x2b   : > { %p13037_p3 = pnand %p13035_p2, %p13510_p7  ;;  %p13043_p8 = scmp.lt.s32.totalorder %s13041_s18, %s13034_s29 }
  0x2d   : > { %p13038_p4 = pneg %p13037_p3  ;;  %p13044_p10 = por %p13043_p8, %p13042_p6 }
  0x2f   : > { %p13045_p11 = pnand %p13044_p10, %p13038_p4 }
  0x31   : > { %13048 = shalt.err (!%p13045_p11)
}
  0x32   : > { %s15121_s25 = smov 64   ;;  %s15123_s28 = smov 4  }
  0x33   : > { %12671 = dma.hbm_to_vmem [thread:$0]  (!%p13493_p5), %s13489_s17, 1024, %s13497_s19, %s13504_s16, %s15121_s25, %s15121_s25, %s15123_s28  }
  0x34   : > { %s15155_s26 = sshll.u32 %s13482_s30, 6  ;;  %s12624_s23 = smul.u32 2304, %s13482_s30 }
  0x35   : > { %s498_s14 = scalar_lea.vmem [#allocation10], %s15155_s26  ;;  %s12625_s27 = smul.u32 36864, %s13361_s24 }
  0x36   : > { %s505_s29 = sshll.u32 %s498_s14, 4  ;;  %s15156_s3 = sld [smem:[#allocation30_spill]]  ;;  %s13540_s29 = int_to_ptr.vmem [resolvable:$true] %s505_s29 }
  0x37   : > { %s433_s5 = scalar_lea.vmem [#allocation7], %s12624_s23  ;;  %s10915_s17 = sshll.u32 %s13482_s30, 4 }
  0x38   : > { %s440_s0 = sshll.u32 %s433_s5, 4  ;;  %s13548_s0 = int_to_ptr.vmem [resolvable:$true] %s440_s0 }
  0x3c   : > { %s13546_s12 = scalar_lea.hbm %s15156_s3, %s12625_s27  ;;  %s13054_s1 = scalar_lea.hbm %s15156_s3, 147456 }
  0x3d   : > { %s13049_s19 = scalar_lea.hbm %s13546_s12, 36864  ;;  %p13055_p0 = scmp.lt.u32.totalorder %s13546_s12, %s15156_s3 }
  0x3e   : > { %p13050_p9 = scmp.ne.s32.totalorder %s13546_s12, %s13049_s19  ;;  %p13056_p1 = scmp.lt.u32.totalorder %s13054_s1, %s13049_s19 }
  0x3f   : > { %p13058_p3 = scmp.lt.u32.totalorder %s13049_s19, %s13546_s12 }
  0x40   : > { %p13052_p12 = pnand %p13050_p9, %p13510_p7  ;;  %p13057_p2 = por %p13056_p1, %p13055_p0 }
  0x42   : > { %p13053_p13 = pneg %p13052_p12  ;;  %p13059_p4 = por %p13058_p3, %p13057_p2 }
  0x44   : > { %p13060_p6 = pnand %p13059_p4, %p13053_p13 }
  0x46   : > { %13063 = shalt.err (!%p13060_p6)
}
  0x47   : > { %s13064_s5 = scalar_lea.vmem %s13548_s0, 36864  ;;  %s13366_s23 = smov [#allocation7]  }
  0x48   : > { %p13065_p8 = scmp.ne.s32.totalorder %s13548_s0, %s13064_s5  ;;  %s13069_s26 = sshll.u32 %s13366_s23, 4  ;;  %s13070_s26 = int_to_ptr.vmem [resolvable:$false] %s13069_s26 }
  0x49   : > { %s13071_s14 = scalar_lea.vmem %s13070_s26, 73728  ;;  %p13072_p9 = scmp.lt.s32.totalorder %s13548_s0, %s13070_s26 }
  0x4a   : > { %p13067_p10 = pnand %p13065_p8, %p13510_p7  ;;  %p13073_p12 = scmp.lt.s32.totalorder %s13071_s14, %s13064_s5 }
  0x4c   : > { %p13068_p11 = pneg %p13067_p10  ;;  %p13074_p0 = por %p13073_p12, %p13072_p9 }
  0x4e   : > { %p13075_p1 = pnand %p13074_p0, %p13068_p11 }
  0x50   : > { %13078 = shalt.err (!%p13075_p1)
}
  0x51   : > { %s13367_s19 = smov 1024   ;;  %s11661_s1 = sshll.u32 %s13361_s24, 8 }
  0x52   : > { %12674 = dma.hbm_to_vmem [thread:$0]  (!%p13493_p5), %s13546_s12, 36864, %s13548_s0, %s13504_s16, %s13367_s19, %s13367_s19, %s15121_s25  }
  0x53   : > { %s15157_s4 = sld [smem:[#allocation31_spill]]  ;;  %s454_s5 = scalar_lea.vmem [#allocation8], %s10915_s17 }
  0x54   : > { %s462_s26 = sshll.u32 %s454_s5, 4  ;;  %s463_s26 = int_to_ptr.vmem [resolvable:$true] %s462_s26 }
  0x59   : > { %s13578_s23 = scalar_lea.hbm %s15157_s4, %s11661_s1  ;;  %s13084_s19 = scalar_lea.hbm %s15157_s4, 1024 }
  0x5a   : > { %s13079_s14 = scalar_lea.hbm %s13578_s23, 256  ;;  %p13085_p4 = scmp.lt.u32.totalorder %s13578_s23, %s15157_s4 }
  0x5b   : > { %p13080_p13 = scmp.ne.s32.totalorder %s13578_s23, %s13079_s14  ;;  %p13086_p6 = scmp.lt.u32.totalorder %s13084_s19, %s13079_s14 }
  0x5c   : > { %p13088_p10 = scmp.lt.u32.totalorder %s13079_s14, %s13578_s23 }
  0x5d   : > { %p13082_p2 = pnand %p13080_p13, %p13510_p7  ;;  %p13087_p8 = por %p13086_p6, %p13085_p4 }
  0x5f   : > { %p13083_p3 = pneg %p13082_p2  ;;  %p13089_p11 = por %p13088_p10, %p13087_p8 }
  0x61   : > { %p13090_p9 = pnand %p13089_p11, %p13083_p3 }
  0x63   : > { %13093 = shalt.err (!%p13090_p9)
}
  0x64   : > { %s13094_s17 = scalar_lea.vmem %s463_s26, 256  ;;  %s13368_s18 = smov [#allocation8]  }
  0x65   : > { %p13095_p12 = scmp.ne.s32.totalorder %s463_s26, %s13094_s17  ;;  %s13099_s5 = sshll.u32 %s13368_s18, 4  ;;  %s13100_s5 = int_to_ptr.vmem [resolvable:$false] %s13099_s5 }
  0x66   : > { %s13101_s0 = scalar_lea.vmem %s13100_s5, 512  ;;  %p13102_p13 = scmp.lt.s32.totalorder %s463_s26, %s13100_s5 }
  0x67   : > { %p13097_p0 = pnand %p13095_p12, %p13510_p7  ;;  %p13103_p2 = scmp.lt.s32.totalorder %s13101_s0, %s13094_s17 }
  0x69   : > { %p13098_p1 = pneg %p13097_p0  ;;  %p13104_p5 = por %p13103_p2, %p13102_p13 }
  0x6b   : > { %p13105_p4 = pnand %p13104_p5, %p13098_p1 }
  0x6d   : > { %13108 = shalt.err (!%p13105_p4)
}
  0x6e   : > { %p15158_p6 = scmp.ne.s32.totalorder %s15153_s20, 0  ;;  %s10918_s14 = sshll.u32 %s13361_s24, 4 }
  0x6f   : > { %s480_s12 = scalar_lea.vmem [#allocation9], %s13482_s30  ;;  %s15159_s6 = sld [smem:[#allocation33_spill]] }
  0x70   : > { %12677 = dma.hbm_to_vmem [thread:$0]  (!%p15158_p6), %s13578_s23, 256, %s463_s26, %s13504_s16  }
  0x71   : > { %s487_s19 = sshll.u32 %s480_s12, 4  ;;  %s488_s19 = int_to_ptr.vmem [resolvable:$true] %s487_s19 }
  0x75   : > { %s485_s18 = scalar_lea.hbm %s15159_s6, %s10918_s14  ;;  %s13114_s25 = scalar_lea.hbm %s15159_s6, 64 }
  0x76   : > { %s13109_s17 = scalar_lea.hbm %s485_s18, 16  ;;  %p13115_p10 = scmp.lt.u32.totalorder %s485_s18, %s15159_s6 }
  0x77   : > { %p13110_p3 = scmp.ne.s32.totalorder %s485_s18, %s13109_s17  ;;  %p13116_p11 = scmp.lt.u32.totalorder %s13114_s25, %s13109_s17 }
  0x78   : > { %p13118_p12 = scmp.lt.u32.totalorder %s13109_s17, %s485_s18 }
  0x79   : > { %p13112_p5 = pnand %p13110_p3, %p13510_p7  ;;  %p13117_p9 = por %p13116_p11, %p13115_p10 }
  0x7b   : > { %p13113_p8 = pneg %p13112_p5  ;;  %p13119_p0 = por %p13118_p12, %p13117_p9 }
  0x7d   : > { %p13120_p1 = pnand %p13119_p0, %p13113_p8 }
  0x7f   : > { %13123 = shalt.err (!%p13120_p1)
}
  0x80   : > { %s13124_s23 = scalar_lea.vmem %s488_s19, 16  ;;  %s13369_s26 = smov [#allocation9]  }
  0x81   : > { %p13125_p13 = scmp.ne.s32.totalorder %s488_s19, %s13124_s23  ;;  %s13129_s14 = sshll.u32 %s13369_s26, 4  ;;  %s13130_s14 = int_to_ptr.vmem [resolvable:$false] %s13129_s14 }
  0x82   : > { %s13131_s12 = scalar_lea.vmem %s13130_s14, 32  ;;  %p13132_p3 = scmp.lt.s32.totalorder %s488_s19, %s13130_s14 }
  0x83   : > { %p13127_p2 = pnand %p13125_p13, %p13510_p7  ;;  %p13133_p5 = scmp.lt.s32.totalorder %s13131_s12, %s13124_s23 }
  0x85   : > { %p13128_p4 = pneg %p13127_p2  ;;  %p13134_p6 = por %p13133_p5, %p13132_p3 }
  0x87   : > { %p13135_p10 = pnand %p13134_p6, %p13128_p4 }
  0x89   : > { %13138 = shalt.err (!%p13135_p10)
}
  0x8a   : > { %p15160_p11 = scmp.ne.s32.totalorder %s15153_s20, 0  ;;  %s13619_s3 = sadd.s32 4294967295, %s13361_s24  }
  0x8b   : > { %p15125_p8 = scmp.eq.s32.totalorder %s13619_s3, 0  ;;  %p68_p9 = scmp.ne.s32.totalorder %s13353_s22, %s13349_s21 }
  0x8c   : > { %12680 = dma.hbm_to_vmem [thread:$0]  (!%p15160_p11), %s485_s18, 16, %s488_s19, %s13504_s16  }
  0x8d   : > { %p10905_p12 = scmp.ge.s32.totalorder %s13361_s24, 1  ;;  %p340_p0 = scmp.lt.s32.totalorder %s13361_s24, 5 }
  0x8e   : > { %p13628_p6 = por %p15125_p8, %p68_p9  ;;  %s13370_s19 = smov [#allocation5]  }
  0x8f   : > { %p13632_p1 = pnand %p10905_p12, %p340_p0  ;;  %s355_s27 = sshll.u32 %s13370_s19, 4  ;;  %s356_s27 = int_to_ptr.vmem [resolvable:$true] %s355_s27 }
  0x90   : > { %s15161_s25 = scalar_select %p13628_p6, 1, 0 }
  0x91   : > { %s15163_s28 = scalar_select %p13632_p1, 1, 0 }
  0x92   : > { %15162 = sst [smem:[#allocation25_spill]] %s15161_s25  ;;  %p12655_p13 = pneg %p13632_p1 }
  0x93   : > { %s13371_s1 = smov [#allocation13]   ;;  %s13372_s17 = smov [#allocation12]  }
  0x94   : > { %s381_s18 = sshll.u32 %s13371_s1, 4  ;;  %p13642_p2 = pnand %p12655_p13, %p15125_p8  ;;  %s13638_s18 = int_to_ptr.vmem [resolvable:$true] %s381_s18 }
  0x95   : > { %s13646_s5 = sshll.u32 %s13372_s17, 4  ;;  %s13139_s26 = scalar_lea.hbm %s15102_s2, 2304  ;;  %s369_s5 = int_to_ptr.vmem [resolvable:$true] %s13646_s5 }
  0x96   : > { %s15164_s21 = scalar_select %p13642_p2, 1, 0 }
  0x97   : > { %p13140_p4 = scmp.ne.s32.totalorder %s15102_s2, %s13139_s26  ;;  %p13656_p3 = pneg %p13642_p2 }
  0x98   : > { %p13146_p9 = scmp.lt.u32.totalorder %s13139_s26, %s15102_s2 }
  0x99   : > { %p13142_p5 = pnand %p13656_p3, %p13140_p4 }
  0x9b   : > { %p13143_p10 = pneg %p13142_p5 }
  0x9d   : > { %p13148_p12 = pnand %p13146_p9, %p13143_p10 }
  0x9f   : > { %13151 = shalt.err (!%p13148_p12)
}
  0xa0   : > { %s13152_s0 = scalar_lea.vmem %s356_s27, 2304  ;;  %p13160_p6 = scmp.lt.s32.totalorder %s356_s27, %s356_s27 }
  0xa1   : > { %p13153_p0 = scmp.ne.s32.totalorder %s356_s27, %s13152_s0  ;;  %p13161_p1 = scmp.lt.s32.totalorder %s13152_s0, %s13152_s0 }
  0xa3   : > { %p13155_p13 = pnand %p13153_p0, %p13656_p3  ;;  %p13162_p11 = por %p13161_p1, %p13160_p6 }
  0xa5   : > { %p13156_p8 = pneg %p13155_p13 }
  0xa7   : > { %p13163_p7 = pnand %p13162_p11, %p13156_p8 }
  0xa9   : > { %13166 = shalt.err (!%p13163_p7)
}
  0xaa   : > { %s15166_s23 = smov 4   ;;  %s15167_s14 = smov 64  }
  0xab   : > { %12658 = dma.hbm_to_vmem [thread:$0]  (!%p13642_p2), %s15102_s2, 2304, %s356_s27, [#allocation6], %s15167_s14, %s15167_s14, %s15166_s23  }
  0xac   : > { %s13167_s4 = scalar_lea.hbm %s15110_s10, 48 }
  0xad   : > { %p13168_p6 = scmp.ne.s32.totalorder %s15110_s10, %s13167_s4  ;;  %p13174_p8 = scmp.lt.u32.totalorder %s13167_s4, %s15110_s10 }
  0xaf   : > { %p13170_p7 = pnand %p13168_p6, %p13656_p3 }
  0xb1   : > { %p13171_p11 = pneg %p13170_p7 }
  0xb3   : > { %p13176_p1 = pnand %p13174_p8, %p13171_p11 }
  0xb5   : > { %13179 = shalt.err (!%p13176_p1)
}
  0xb6   : > { %s13180_s27 = scalar_lea.vmem %s13638_s18, 48  ;;  %s13187_s6 = scalar_lea.vmem %s13638_s18, 64 }
  0xb7   : > { %p13181_p4 = scmp.ne.s32.totalorder %s13638_s18, %s13180_s27  ;;  %p13188_p9 = scmp.lt.s32.totalorder %s13638_s18, %s13638_s18 }
  0xb8   : > { %p13189_p12 = scmp.lt.s32.totalorder %s13187_s6, %s13180_s27 }
  0xb9   : > { %p13183_p5 = pnand %p13181_p4, %p13656_p3 }
  0xba   : > { %p13190_p0 = por %p13189_p12, %p13188_p9 }
  0xbb   : > { %p13184_p10 = pneg %p13183_p5 }
  0xbd   : > { %p13191_p13 = pnand %p13190_p0, %p13184_p10 }
  0xbf   : > { %13194 = shalt.err (!%p13191_p13)
}
  0xc0   : > { %s13373_s4 = smov 16   ;;  %s13374_s22 = smov 1  }
  0xc1   : > { %12664 = dma.hbm_to_vmem [thread:$0]  (!%p13642_p2), %s15110_s10, 48, %s13638_s18, [#allocation14], %s13373_s4, %s13373_s4, %s13374_s22  }
  0xc2   : > { %s13195_s26 = scalar_lea.hbm %s13502_s15, 1024  ;;  %p15168_p7 = scmp.ne.s32.totalorder %s15154_s13, 0 }
  0xc3   : > { %p13196_p6 = scmp.ne.s32.totalorder %s13502_s15, %s13195_s26  ;;  %s13200_s0 = scalar_lea.hbm %s15107_s7, 4096 }
  0xc4   : > { %p13201_p1 = scmp.lt.u32.totalorder %s13502_s15, %s15107_s7  ;;  %p13202_p4 = scmp.lt.u32.totalorder %s13200_s0, %s13195_s26 }
  0xc5   : > { %p13198_p11 = pnand %p13196_p6, %p15168_p7  ;;  %p13204_p10 = scmp.lt.u32.totalorder %s13195_s26, %s13502_s15 }
  0xc6   : > { %p13203_p5 = por %p13202_p4, %p13201_p1 }
  0xc7   : > { %p13199_p8 = pneg %p13198_p11 }
  0xc8   : > { %p13205_p9 = por %p13204_p10, %p13203_p5 }
  0xca   : > { %p13206_p12 = pnand %p13205_p9, %p13199_p8 }
  0xcc   : > { %13209 = shalt.err (!%p13206_p12)
}
  0xcd   : > { %s13210_s18 = scalar_lea.vmem %s13540_s29, 1024  ;;  %s13375_s25 = smov [#allocation10]  }
  0xce   : > { %p13211_p0 = scmp.ne.s32.totalorder %s13540_s29, %s13210_s18  ;;  %s13215_s12 = sshll.u32 %s13375_s25, 4  ;;  %s13216_s12 = int_to_ptr.vmem [resolvable:$false] %s13215_s12 }
  0xcf   : > { %s13217_s1 = scalar_lea.vmem %s13216_s12, 2048  ;;  %p13218_p11 = scmp.lt.s32.totalorder %s13540_s29, %s13216_s12 }
  0xd0   : > { %p13213_p13 = pnand %p13211_p0, %p15168_p7  ;;  %p13219_p2 = scmp.lt.s32.totalorder %s13217_s1, %s13210_s18 }
  0xd2   : > { %p13214_p6 = pneg %p13213_p13  ;;  %p13220_p1 = por %p13219_p2, %p13218_p11 }
  0xd4   : > { %p13221_p4 = pnand %p13220_p1, %p13214_p6 }
  0xd6   : > { %13224 = shalt.err (!%p13221_p4)
}
  0xd7   : > { %s13376_s26 = smov 256   ;;  %p15169_p8 = scmp.ne.s32.totalorder %s15153_s20, 0 }
  0xd8   : > { %s13225_s27 = scalar_lea.hbm %s15109_s9, 12288 }
  0xd9   : > { %12683 = dma.hbm_to_vmem [thread:$0]  (!%p15169_p8), %s13502_s15, 1024, %s13540_s29, %s13504_s16, %s13376_s26, %s13376_s26, %s13373_s4  }
  0xda   : > { %p13226_p2 = scmp.ne.s32.totalorder %s15109_s9, %s13225_s27  ;;  %p13232_p9 = scmp.lt.u32.totalorder %s13225_s27, %s15109_s9 }
  0xdc   : > { %p13228_p5 = pnand %p13226_p2, %p13656_p3 }
  0xde   : > { %p13229_p10 = pneg %p13228_p5 }
  0xe0   : > { %p13234_p12 = pnand %p13232_p9, %p13229_p10 }
  0xe2   : > { %13237 = shalt.err (!%p13234_p12)
}
  0xe3   : > { %s13238_s1 = scalar_lea.vmem %s369_s5, 12288  ;;  %p13246_p11 = scmp.lt.s32.totalorder %s369_s5, %s369_s5 }
  0xe4   : > { %p13239_p0 = scmp.ne.s32.totalorder %s369_s5, %s13238_s1  ;;  %p13247_p1 = scmp.lt.s32.totalorder %s13238_s1, %s13238_s1 }
  0xe6   : > { %p13241_p13 = pnand %p13239_p0, %p13656_p3  ;;  %p13248_p4 = por %p13247_p1, %p13246_p11 }
  0xe8   : > { %p13242_p6 = pneg %p13241_p13 }
  0xea   : > { %p13249_p8 = pnand %p13248_p4, %p13242_p6 }
  0xec   : > { %13252 = shalt.err (!%p13249_p8)
}
  0xed   : > { %p15170_p2 = scmp.ne.s32.totalorder %s15164_s21, 0  ;;  %s13377_s26 = smov [#allocation15]  }
  0xee   : > { %s394_s17 = sshll.u32 %s13377_s26, 4  ;;  %s10922_s0 = sshll.u32 %s13482_s30, 2  ;;  %s395_s17 = int_to_ptr.vmem [resolvable:$true] %s394_s17 }
  0xef   : > { %12661 = dma.hbm_to_vmem [thread:$0]  (!%p15170_p2), %s15109_s9, 12288, %s369_s5, [#allocation6], %s15167_s14, %s15167_s14, %s15166_s23  }
  0xf0   : > { %s13253_s18 = scalar_lea.hbm %s15111_s11, 48 }
  0xf1   : > { %p13254_p8 = scmp.ne.s32.totalorder %s15111_s11, %s13253_s18  ;;  %p13260_p9 = scmp.lt.u32.totalorder %s13253_s18, %s15111_s11 }
  0xf3   : > { %p13256_p5 = pnand %p13254_p8, %p13656_p3 }
  0xf5   : > { %p13257_p10 = pneg %p13256_p5 }
  0xf7   : > { %p13262_p12 = pnand %p13260_p9, %p13257_p10 }
  0xf9   : > { %13265 = shalt.err (!%p13262_p12)
}
  0xfa   : > { %s13266_s5 = scalar_lea.vmem %s395_s17, 48  ;;  %s13273_s30 = scalar_lea.vmem %s395_s17, 64 }
  0xfb   : > { %p13267_p0 = scmp.ne.s32.totalorder %s395_s17, %s13266_s5  ;;  %p13274_p11 = scmp.lt.s32.totalorder %s395_s17, %s395_s17 }
  0xfc   : > { %p13275_p1 = scmp.lt.s32.totalorder %s13273_s30, %s13266_s5 }
  0xfd   : > { %p13269_p13 = pnand %p13267_p0, %p13656_p3 }
  0xfe   : > { %p13276_p4 = por %p13275_p1, %p13274_p11 }
  0xff   : > { %p13270_p6 = pneg %p13269_p13 }
 0x101   : > { %p13277_p7 = pnand %p13276_p4, %p13270_p6 }
 0x103   : > { %13280 = shalt.err (!%p13277_p7)
}
 0x104   : > { %12667 = dma.hbm_to_vmem [thread:$0]  (!%p15170_p2), %s15111_s11, 48, %s395_s17, [#allocation14], %s13373_s4, %s13373_s4, %s13374_s22  }
 0x105   : > { %s11663_s19 = sshll.u32 %s13361_s24, 6  ;;  %s519_s29 = scalar_lea.vmem [#allocation11], %s10922_s0 }
 0x106   : > { %s527_s26 = sshll.u32 %s519_s29, 4  ;;  %s525_s18 = scalar_lea.hbm %s15108_s8, %s11663_s19  ;;  %s528_s26 = int_to_ptr.vmem [resolvable:$true] %s527_s26 }
 0x107   : > { %s13281_s25 = scalar_lea.hbm %s525_s18, 64  ;;  %p15171_p7 = scmp.ne.s32.totalorder %s15154_s13, 0 }
 0x108   : > { %p13282_p3 = scmp.ne.s32.totalorder %s525_s18, %s13281_s25  ;;  %s13286_s1 = scalar_lea.hbm %s15108_s8, 256 }
 0x109   : > { %p13287_p2 = scmp.lt.u32.totalorder %s525_s18, %s15108_s8  ;;  %p13288_p10 = scmp.lt.u32.totalorder %s13286_s1, %s13281_s25 }
 0x10a   : > { %p13284_p8 = pnand %p13282_p3, %p15171_p7  ;;  %p13290_p12 = scmp.lt.u32.totalorder %s13281_s25, %s525_s18 }
 0x10b   : > { %p13289_p9 = por %p13288_p10, %p13287_p2 }
 0x10c   : > { %p13285_p5 = pneg %p13284_p8 }
 0x10d   : > { %p13291_p0 = por %p13290_p12, %p13289_p9 }
 0x10f   : > { %p13292_p13 = pnand %p13291_p0, %p13285_p5 }
 0x111   : > { %13295 = shalt.err (!%p13292_p13)
}
 0x112   : > { %s13296_s24 = scalar_lea.vmem %s528_s26, 64  ;;  %s13378_s4 = smov [#allocation11]  }
 0x113   : > { %p13297_p6 = scmp.ne.s32.totalorder %s528_s26, %s13296_s24  ;;  %s13301_s22 = sshll.u32 %s13378_s4, 4  ;;  %s13302_s22 = int_to_ptr.vmem [resolvable:$false] %s13301_s22 }
 0x114   : > { %s13303_s17 = scalar_lea.vmem %s13302_s22, 128  ;;  %p13304_p4 = scmp.lt.s32.totalorder %s528_s26, %s13302_s22 }
 0x115   : > { %p13299_p11 = pnand %p13297_p6, %p15171_p7  ;;  %p13305_p3 = scmp.lt.s32.totalorder %s13303_s17, %s13296_s24 }
 0x117   : > { %p13300_p1 = pneg %p13299_p11  ;;  %p13306_p8 = por %p13305_p3, %p13304_p4 }
 0x119   : > { %p13307_p2 = pnand %p13306_p8, %p13300_p1 }
 0x11b   : > { %13310 = shalt.err (!%p13307_p2)
}
 0x11c   : > { %p15172_p10 = scmp.ne.s32.totalorder %s15153_s20, 0  ;;  %p15173_p5 = scmp.ne.s32.totalorder %s15163_s28, 0 }
 0x11e   : > { %12686 = dma.hbm_to_vmem [thread:$0]  (!%p15172_p10), %s525_s18, 64, %s528_s26, %s13504_s16  }
 0x11f   : > { %536 = sbr.rel (%p15173_p5) target bundleno = 2407 (0x967), region = 68 }
 0x126   : > { %s15174_s13 = sld [smem:[#allocation21_spill]]  ;;  %s15175_s0 = sld [smem:[#allocation25_spill]] }
 0x127   : > { %s538_s30 = sand.u32 1, %s13619_s3  }
 0x128   : > { %s539_s19 = scalar_lea.sflag [#allocation4], %s538_s30 }
 0x12c   : > { %s13790_s23 = sand.u32 1, %s15174_s13   ;;  %p15176_p7 = scmp.ne.s32.totalorder %s15175_s0, 0 }
 0x12d   : > { %s10926_s14 = sshll.u32 %s13790_s23, 6 }
 0x12e   : > { %s13793_s29 = scalar_lea.vmem [#allocation3], %s10926_s14 }
 0x12f   : > { %13328 = dma.done.wait (%p15176_p7), %s539_s19, 1024  }
 0x130   : > { %13330 = vsyncadd (%p15176_p7), %s539_s19, 4294966272  ;;  %p15177_p9 = scmp.eq.s32.totalorder %s13619_s3, 0 }
 0x132   : > { %13332 = dma.done.wait (%p15177_p9), [#allocation6], 2304   ;;  %p15178_p12 = pmov %p15177_p9 }
 0x133   : > { %s12626_s20 = smul.u32 2304, %s13790_s23 }
 0x134   : > { %13334 = vsyncadd (%p15178_p12), [#allocation6], 4294964992 }
 0x135   : > { %s13804_s16 = scalar_lea.vmem [#allocation7], %s12626_s20 }
 0x136   : > { %13336 = dma.done.wait (%p15176_p7), %s539_s19, 38224  }
 0x137   : > { %13338 = vsyncadd (%p15176_p7), %s539_s19, 4294929072  ;;  %s10928_s28 = sshll.u32 %s13790_s23, 4  ;;  %s10930_s26 = sshll.u32 %s13790_s23, 2 }
 0x138   : > { %s13812_s27 = scalar_lea.vmem [#allocation8], %s10928_s28  ;;  %s572_s6 = scalar_lea.vmem [#allocation9], %s13790_s23 }
 0x139   : > { %s13815_s18 = scalar_lea.vmem [#allocation10], %s10926_s14  ;;  %s13817_s25 = scalar_lea.vmem [#allocation11], %s10930_s26 }
 0x13a   : > { %p15179_p0 = pmov %p15177_p9 }
 0x13c   : > { %13340 = dma.done.wait (%p15179_p0), [#allocation6], 12288   ;;  %p15180_p13 = pmov %p15179_p0 }
 0x13d   : > { %p15181_p6 = pmov %p15179_p0 }
 0x13e   : > { %13342 = vsyncadd (%p15180_p13), [#allocation6], 4294955008 }
 0x13f   : > { %13344 = dma.done.wait (%p15181_p6), [#allocation14], 96   ;;  %p15182_p11 = pmov %p15179_p0 }
 0x140   : > { %v12741_v0 = vld [vmem:[%s13793_s29] sm:$0xff]   ;;  %v12742_v1 = vld [vmem:[%s13793_s29 + $0x8] sm:$0xff]   ;;  %v12743_v2 = vld [vmem:[%s13793_s29 + $0x10] sm:$0xff]   ;;  %s15183_s1 = sld [smem:[#allocation28_spill]]  ;;  %vm818_vm0 = vcmask 261120   ;;  %v15136_v50 = vmov 0  }
 0x141   : > { %13346 = vsyncadd (%p15182_p11), [#allocation14], 4294967200  ;;  %12020 = vmatprep.subr.bf16.mxu0 %v12741_v0  ;;  %v12744_v3 = vld [vmem:[%s13793_s29 + $0x18] sm:$0xff]   ;;  %v12745_v5 = vld [vmem:[%s13793_s29 + $0x20] sm:$0xff]   ;;  %vm3114_vm1 = vcmask 1040384   ;;  %p667_p1 = scmp.lt.s32.totalorder %s13619_s3, 3 }
 0x142   : > { %12021 = vmatpush3.bf16.msra.mxu0 %v12741_v0  ;;  %v12746_v6 = vld [vmem:[%s13793_s29 + $0x28] sm:$0xff]   ;;  %v12747_v7 = vld [vmem:[%s13793_s29 + $0x30] sm:$0xff]   ;;  %v12748_v8 = vld [vmem:[%s13793_s29 + $0x38] sm:$0xff]   ;;  %s15187_s13 = sld [smem:[#allocation32_spill]]  ;;  %s11665_s30 = sshll.u32 %s13619_s3, 3 }
 0x143   : > { %12022 = vmatprep.subr.bf16.mxu0 %v12742_v1  ;;  %v12751_v10 = vld [vmem:[#allocation5] sm:$0xff]   ;;  %v12752_v18 = vld [vmem:[#allocation5 + $0x8] sm:$0xff]   ;;  %v12755_v20 = vld [vmem:[#allocation5 + $0x10] sm:$0xff]   ;;  %s668_s24 = scalar_select %p667_p1, %s13619_s3, 3 }
 0x144   : > { %v12753_v11 = vld [vmem:[#allocation5 + $0x40] sm:$0xff]   ;;  %12044 = vmatprep.mubr.msk.bf16.mxu1 %vm818_vm0, %v12751_v10  ;;  %v12754_v19 = vld [vmem:[#allocation5 + $0x48] sm:$0xff]   ;;  %v12756_v22 = vld [vmem:[#allocation5 + $0x18] sm:$0xff]   ;;  %s9524_s23 = scalar_lea.vmem [#allocation2], %s11665_s30  ;;  %p11556_p4 = scmp.ne.s32.totalorder %s13619_s3, 3 }
 0x145   : > { %v12757_v21 = vld [vmem:[#allocation5 + $0x60] sm:$0xff]   ;;  %v12758_v23 = vld [vmem:[#allocation5 + $0x68] sm:$0xff]   ;;  %v12761_v28 = vld [vmem:[#allocation5 + $0x30] sm:$0xff]   ;;  %s11664_s4 = sshll.u32 %s668_s24, 10  ;;  %s15190_s19 = sld [smem:[#allocation34_spill]] (!%p11556_p4) }
 0x146   : > { %12023 = vmatpush3.bf16.msra.mxu0 %v12742_v1  ;;  %v12749_v4 = vld [vmem:[%s15183_s1] sm:$0xff]   ;;  %v12750_v9 = vld [vmem:[%s15183_s1 + $0x8] sm:$0xff]   ;;  %v12762_v29 = vld [vmem:[#allocation5 + $0x38] sm:$0xff]  }
 0x147   : > { %12024 = vmatprep.subr.bf16.mxu0 %v12743_v2  ;;  %12036 = vmatprep.mubr.bf16.mxu0 %v12749_v4  ;;  %v12759_v24 = vld [vmem:[#allocation5 + $0x20] sm:$0xff]   ;;  %v12760_v26 = vld [vmem:[#allocation5 + $0x28] sm:$0xff]   ;;  %v12763_v30 = vld [vmem:[#allocation5 + $0x50] sm:$0xff]  }
 0x148   : > { %v12767_v25 = vld [vmem:[#allocation5 + $0x80] sm:$0xff]   ;;  %v12768_v27 = vld [vmem:[#allocation5 + $0x88] sm:$0xff]   ;;  %v12764_v31 = vld [vmem:[#allocation5 + $0x58] sm:$0xff]   ;;  %s14604_s0 = scalar_lea.vmem %s15187_s13, %s11664_s4 }
 0x149   : > { %v12765_v32 = vld [vmem:[#allocation5 + $0x70] sm:$0xff]   ;;  %v12766_v33 = vld [vmem:[#allocation5 + $0x78] sm:$0xff]  }
 0x14a   : > { %12025 = vmatpush3.bf16.msra.mxu0 %v12743_v2  ;;  %v1460_v34 = vld [vmem:[%s13804_s16 + $0x100] sm:$0xff]  ;;  %v1461_v36 = vld [vmem:[%s13804_s16 + $0x108] sm:$0xff] }
 0x14b   : > { %12026 = vmatprep.subr.bf16.mxu0 %v12744_v3  ;;  %v1462_v35 = vld [vmem:[%s13804_s16 + $0x140] sm:$0xff]  ;;  %v1463_v39 = vld [vmem:[%s13804_s16 + $0x148] sm:$0xff] }
 0x14c   : > { %v10982_v37 = vcombine.low %v1460_v34, %v1462_v35  ;;  %v10983_v38 = vcombine.high %v1460_v34, %v1462_v35  ;;  %v10984_v40 = vcombine.low %v1461_v36, %v1463_v39  ;;  %v10985_v41 = vcombine.high %v1461_v36, %v1463_v39  ;;  %v1464_v42 = vld [vmem:[%s13804_s16 + $0x180] sm:$0xff]  ;;  %v1465_v44 = vld [vmem:[%s13804_s16 + $0x188] sm:$0xff] }
 0x14d   : > { %v1466_v43 = vld [vmem:[%s13804_s16 + $0x1c0] sm:$0xff]  ;;  %v1467_v46 = vld [vmem:[%s13804_s16 + $0x1c8] sm:$0xff] }
 0x14e   : > { %12027 = vmatpush3.bf16.msra.mxu0 %v12744_v3  ;;  %v10987_v45 = vcombine.high %v1464_v42, %v1466_v43  ;;  %v10986_v47 = vcombine.low %v1464_v42, %v1466_v43  ;;  %v10988_v48 = vcombine.low %v1465_v44, %v1467_v46  ;;  %v10989_v49 = vcombine.high %v1465_v44, %v1467_v46  ;;  %v1452_v51 = vld [vmem:[%s13804_s16] sm:$0xff]  ;;  %v1453_v55 = vld [vmem:[%s13804_s16 + $0x8] sm:$0xff] }
 0x14f   : > { %12028 = vmatprep.subr.bf16.mxu0 %v12745_v5  ;;  %v1454_v52 = vld [vmem:[%s13804_s16 + $0x40] sm:$0xff]  ;;  %v1455_v56 = vld [vmem:[%s13804_s16 + $0x48] sm:$0xff] }
 0x150   : > { %v10994_v53 = vcombine.low %v1452_v51, %v1454_v52  ;;  %v10995_v54 = vcombine.high %v1452_v51, %v1454_v52  ;;  %v10996_v57 = vcombine.low %v1453_v55, %v1455_v56  ;;  %v10997_v58 = vcombine.high %v1453_v55, %v1455_v56  ;;  %v1456_v10 = vld [vmem:[%s13804_s16 + $0x80] sm:$0xff]  ;;  %v1779_v51 = vld [vmem:[%s13804_s16 + $0x2c8] sm:$0xff] }
 0x151   : > { %v1776_v46 = vld [vmem:[%s13804_s16 + $0x280] sm:$0xff] }
 0x152   : > { %12029 = vmatpush3.bf16.msra.mxu0 %v12745_v5 }
 0x153   : > { %12030 = vmatprep.subr.bf16.mxu0 %v12746_v6 }
 0x156   : > { %12031 = vmatpush3.bf16.msra.mxu0 %v12746_v6 }
 0x157   : > { %12032 = vmatprep.subr.bf16.mxu0 %v12747_v7 }
 0x15a   : > { %12033 = vmatpush3.bf16.msra.mxu0 %v12747_v7 }
 0x15b   : > { %12034 = vmatprep.subr.bf16.mxu0 %v12748_v8 }
 0x15e   : > { %12035 = vmatpush3.bf16.msra.mxu0 %v12748_v8 }
 0x161   : > { %12037 = vmatmul.mubr.bf16.vlgmr.msra.gmra.mrb[0].mxu0 %v12750_v9 }
 0x162   : > { %12076 = vmatprep.mubr.msk.bf16.mxu0 %vm818_vm0, %v12753_v11 }
 0x234   : > { %v12038_v12 = vpop.f32.mrb[0].mxu0 }
 0x235   : > { %v787_v13 = vpop.f32.mrb[1].mxu0 }
 0x236   : > { %v12039_v14 = vpop.f32.mrb[2].mxu0 }
 0x237   : > { %v13843_v15 = vpack.c.bf16 %v12039_v14, %v12038_v12  ;;  %v790_v16 = vpop.f32.mrb[3].mxu0  ;;  %v1457_v14 = vld [vmem:[%s13804_s16 + $0x88] sm:$0xff] }
 0x238   : > { %v13845_v17 = vpack.c.bf16 %v790_v16, %v787_v13  ;;  %v1458_v13 = vld [vmem:[%s13804_s16 + $0xc0] sm:$0xff] }
 0x23a   : > { %12040 = vmatprep.subr.bf16.mxu1 %v13845_v17  ;;  %12072 = vmatprep.subr.bf16.mxu0 %v13845_v17 }
 0x23b   : > { %12041 = vmatpush3.bf16.msra.mxu1 %v13845_v17  ;;  %12073 = vmatpush3.bf16.msra.mxu0 %v13845_v17 }
 0x23c   : > { %12042 = vmatprep.subr.bf16.mxu1 %v13843_v15  ;;  %12074 = vmatprep.subr.bf16.mxu0 %v13843_v15 }
 0x23f   : > { %12043 = vmatpush3.bf16.msra.mxu1 %v13843_v15  ;;  %12075 = vmatpush3.bf16.msra.mxu0 %v13843_v15 }
 0x240   : > { %12048 = vmatprep.subr.bf16.mxu1 %v13845_v17  ;;  %12088 = vmatprep.subr.bf16.mxu0 %v13845_v17 }
 0x242   : > { %12045 = vmatmul.mubr.msk.bf16.vlgmr.msra.gmra.mrb[0].mxu1 %vm818_vm0, %v12752_v18  ;;  %12077 = vmatmul.mubr.msk.bf16.vlgmr.msra.gmra.mrb[4].mxu0 %vm818_vm0, %v12754_v19 }
 0x243   : > { %12049 = vmatpush3.bf16.msra.mxu1 %v13845_v17  ;;  %12089 = vmatpush3.bf16.msra.mxu0 %v13845_v17 }
 0x244   : > { %12050 = vmatprep.subr.bf16.mxu1 %v13843_v15  ;;  %12090 = vmatprep.subr.bf16.mxu0 %v13843_v15 }
 0x245   : > { %12052 = vmatprep.mubr.msk.bf16.mxu1 %vm818_vm0, %v12755_v20  ;;  %12092 = vmatprep.mubr.msk.bf16.mxu0 %vm818_vm0, %v12757_v21 }
 0x247   : > { %12051 = vmatpush3.bf16.msra.mxu1 %v13843_v15  ;;  %12091 = vmatpush3.bf16.msra.mxu0 %v13843_v15 }
 0x248   : > { %12056 = vmatprep.subr.bf16.mxu1 %v13845_v17  ;;  %12104 = vmatprep.subr.bf16.mxu0 %v13845_v17 }
 0x24a   : > { %12053 = vmatmul.mubr.msk.bf16.vlgmr.msra.gmra.mrb[4].mxu1 %vm818_vm0, %v12756_v22  ;;  %12093 = vmatmul.mubr.msk.bf16.vlgmr.msra.gmra.mrb[8].mxu0 %vm818_vm0, %v12758_v23  ;;  %v1772_v22 = vld [vmem:[%s13804_s16 + $0x200] sm:$0xff] }
 0x24b   : > { %12057 = vmatpush3.bf16.msra.mxu1 %v13845_v17  ;;  %12105 = vmatpush3.bf16.msra.mxu0 %v13845_v17 }
 0x24c   : > { %12058 = vmatprep.subr.bf16.mxu1 %v13843_v15  ;;  %12106 = vmatprep.subr.bf16.mxu0 %v13843_v15 }
 0x24d   : > { %12060 = vmatprep.mubr.msk.bf16.mxu1 %vm818_vm0, %v12759_v24  ;;  %12108 = vmatprep.mubr.msk.bf16.mxu0 %vm818_vm0, %v12767_v25  ;;  %v10999_v24 = vcombine.high %v1456_v10, %v1458_v13 }
 0x24f   : > { %12059 = vmatpush3.bf16.msra.mxu1 %v13843_v15  ;;  %12107 = vmatpush3.bf16.msra.mxu0 %v13843_v15 }
 0x250   : > { %12064 = vmatprep.subr.bf16.mxu1 %v13845_v17  ;;  %1567 = vmatprep.subr.bf16.mxu0 %v10985_v41 }
 0x252   : > { %12061 = vmatmul.mubr.msk.bf16.vlgmr.msra.gmra.mrb[8].mxu1 %vm818_vm0, %v12760_v26  ;;  %12109 = vmatmul.mubr.msk.bf16.vlgmr.msra.gmra.mrb[12].mxu0 %vm818_vm0, %v12768_v27  ;;  %v1774_v26 = vld [vmem:[%s13804_s16 + $0x240] sm:$0xff]  ;;  %v1773_v27 = vld [vmem:[%s13804_s16 + $0x208] sm:$0xff] }
 0x253   : > { %12065 = vmatpush3.bf16.msra.mxu1 %v13845_v17  ;;  %12068 = vmatprep.mubr.msk.bf16.mxu1 %vm818_vm0, %v12761_v28  ;;  %v1775_v28 = vld [vmem:[%s13804_s16 + $0x248] sm:$0xff] }
 0x254   : > { %12066 = vmatprep.subr.bf16.mxu1 %v13843_v15  ;;  %1568 = vmatpush1.bf16.msra.mxu0 %v10984_v40 }
 0x255   : > { %1569 = vmatprep.subr.bf16.mxu0 %v10989_v49  ;;  %1599 = vmatprep.mubr.bf16.mxu0 %v15136_v50  ;;  %v1777_v49 = vld [vmem:[%s13804_s16 + $0x288] sm:$0xff] }
 0x257   : > { %12067 = vmatpush3.bf16.msra.mxu1 %v13843_v15 }
 0x258   : > { %12080 = vmatprep.subr.bf16.mxu1 %v13845_v17  ;;  %1570 = vmatpush1.bf16.msra.mxu0 %v10988_v48  ;;  %v1778_v48 = vld [vmem:[%s13804_s16 + $0x2c0] sm:$0xff] }
 0x259   : > { %1719 = vmatprep.subr.bf16.mxu0 %v10997_v58 }
 0x25a   : > { %12069 = vmatmul.mubr.msk.bf16.vlgmr.msra.gmra.mrb[12].mxu1 %vm818_vm0, %v12762_v29  ;;  %v10998_v29 = vcombine.low %v1456_v10, %v1458_v13 }
 0x25b   : > { %12081 = vmatpush3.bf16.msra.mxu1 %v13845_v17  ;;  %12084 = vmatprep.mubr.msk.bf16.mxu1 %vm818_vm0, %v12763_v30 }
 0x25c   : > { %12082 = vmatprep.subr.bf16.mxu1 %v13843_v15 }
 0x25f   : > { %12083 = vmatpush3.bf16.msra.mxu1 %v13843_v15 }
 0x260   : > { %12096 = vmatprep.subr.bf16.mxu1 %v13845_v17 }
 0x262   : > { %12085 = vmatmul.mubr.msk.bf16.vlgmr.msra.gmra.mrb[16].mxu1 %vm818_vm0, %v12764_v31  ;;  %v11007_v31 = vcombine.high %v1772_v22, %v1774_v26 }
 0x263   : > { %12097 = vmatpush3.bf16.msra.mxu1 %v13845_v17  ;;  %12100 = vmatprep.mubr.msk.bf16.mxu1 %vm818_vm0, %v12765_v32  ;;  %v11009_v32 = vcombine.high %v1773_v27, %v1775_v28 }
 0x264   : > { %12098 = vmatprep.subr.bf16.mxu1 %v13843_v15 }
 0x267   : > { %12099 = vmatpush3.bf16.msra.mxu1 %v13843_v15  ;;  %v1459_v15 = vld [vmem:[%s13804_s16 + $0xc8] sm:$0xff] }
 0x268   : > { %1514 = vmatprep.subr.bf16.mxu1 %v10983_v38  ;;  %v11001_v25 = vcombine.high %v1457_v14, %v1459_v15  ;;  %v11000_v30 = vcombine.low %v1457_v14, %v1459_v15  ;;  %v1952_v15 = vld [vmem:[%s13804_s16 + $0x380] sm:$0xff] }
 0x26a   : > { %12101 = vmatmul.mubr.msk.bf16.vlgmr.msra.gmra.mrb[20].mxu1 %vm818_vm0, %v12766_v33 }
 0x26b   : > { %1515 = vmatpush1.bf16.msra.mxu1 %v10982_v37  ;;  %1546 = vmatprep.mubr.bf16.mxu1 %v15136_v50 }
 0x26c   : > { %1516 = vmatprep.subr.bf16.mxu1 %v10987_v45 }
 0x26f   : > { %1517 = vmatpush1.bf16.msra.mxu1 %v10986_v47 }
 0x270   : > { %1666 = vmatprep.subr.bf16.mxu1 %v10995_v54  ;;  %v11008_v54 = vcombine.low %v1773_v27, %v1775_v28 }
 0x315   : > { %v12046_v59 = vpop.f32.mrb[0].mxu1  ;;  %v12078_v60 = vpop.f32.mrb[4].mxu0 }
 0x316   : > { %v859_v61 = vpop.f32.mrb[1].mxu1  ;;  %v1147_v62 = vpop.f32.mrb[5].mxu0 }
 0x317   : > { %v12047_v63 = vpop.f32.mrb[2].mxu1  ;;  %v12079_v0 = vpop.f32.mrb[6].mxu0 }
 0x318   : > { %v13913_v1 = vpack.c.bf16 %v12047_v63, %v12046_v59  ;;  %v862_v2 = vpop.f32.mrb[3].mxu1  ;;  %v13915_v3 = vpack.c.bf16 %v12079_v0, %v12078_v60  ;;  %v1150_v4 = vpop.f32.mrb[7].mxu0  ;;  %v11011_v59 = vcombine.high %v1776_v46, %v1778_v48  ;;  %v11013_v60 = vcombine.high %v1777_v49, %v1779_v51  ;;  %v1951_v63 = vld [vmem:[%s13804_s16 + $0x348] sm:$0xff] }
 0x319   : > { %v13917_v5 = vpack.c.bf16 %v862_v2, %v859_v61  ;;  %v13919_v6 = vpack.c.bf16 %v1150_v4, %v1147_v62  ;;  %v1950_v61 = vld [vmem:[%s13804_s16 + $0x340] sm:$0xff]  ;;  %v1949_v62 = vld [vmem:[%s13804_s16 + $0x308] sm:$0xff]  ;;  %v11010_v0 = vcombine.low %v1776_v46, %v1778_v48  ;;  %v11012_v2 = vcombine.low %v1777_v49, %v1779_v51 }
 0x31a   : > { %15184 = vst [vmem:[#allocation26_spill] sm:$0xff] %v13915_v3  ;;  %v2129_v46 = vld [vmem:[%s13804_s16 + $0x488] sm:$0xff]  ;;  %v2300_v51 = vld [vmem:[%s13804_s16 + $0x500] sm:$0xff] }
 0x31d   : > { %v12054_v7 = vpop.f32.mrb[4].mxu1  ;;  %v12094_v8 = vpop.f32.mrb[8].mxu0 }
 0x31e   : > { %v931_v9 = vpop.f32.mrb[5].mxu1  ;;  %v1291_v11 = vpop.f32.mrb[9].mxu0 }
 0x31f   : > { %v12055_v12 = vpop.f32.mrb[6].mxu1  ;;  %v12095_v16 = vpop.f32.mrb[10].mxu0 }
 0x320   : > { %v13925_v17 = vpack.c.bf16 %v12055_v12, %v12054_v7  ;;  %v934_v18 = vpop.f32.mrb[7].mxu1  ;;  %v13927_v19 = vpack.c.bf16 %v12095_v16, %v12094_v8  ;;  %v1294_v20 = vpop.f32.mrb[11].mxu0  ;;  %v11021_v7 = vcombine.high %v1949_v62, %v1951_v63 }
 0x321   : > { %v13929_v21 = vpack.c.bf16 %v934_v18, %v931_v9  ;;  %v13932_v23 = vpack.c.bf16 %v1294_v20, %v1291_v11  ;;  %v1954_v18 = vld [vmem:[%s13804_s16 + $0x3c0] sm:$0xff]  ;;  %v1953_v20 = vld [vmem:[%s13804_s16 + $0x388] sm:$0xff] }
 0x323   : > { %10990 = vmatmul.mubr.msk.bf16.vlgmr.msra.gmra.mrb[24].mxu1 %vm818_vm0, %v13929_v21  ;;  %10992 = vmatmul.mubr.msk.bf16.vlgmr.msra.gmra.mrb[16].mxu0 %vm818_vm0, %v13929_v21 }
 0x324   : > { %1667 = vmatpush1.bf16.msra.mxu1 %v10994_v53  ;;  %1720 = vmatpush1.bf16.msra.mxu0 %v10996_v57  ;;  %v11006_v53 = vcombine.low %v1772_v22, %v1774_v26  ;;  %v1948_v57 = vld [vmem:[%s13804_s16 + $0x300] sm:$0xff]  ;;  %v1955_v22 = vld [vmem:[%s13804_s16 + $0x3c8] sm:$0xff]  ;;  %v11020_v26 = vcombine.low %v1949_v62, %v1951_v63 }
 0x325   : > { %1556 = vmatprep.mubr.bf16.mxu1 %v15136_v50  ;;  %1609 = vmatprep.mubr.bf16.mxu0 %v15136_v50  ;;  %v12062_v33 = vpop.f32.mrb[8].mxu1  ;;  %v12110_v34 = vpop.f32.mrb[12].mxu0  ;;  %v11019_v4 = vcombine.high %v1948_v57, %v1950_v61  ;;  %v2304_v63 = vld [vmem:[%s13804_s16 + $0x580] sm:$0xff] }
 0x326   : > { %1668 = vmatprep.subr.bf16.mxu1 %v10999_v24  ;;  %1721 = vmatprep.subr.bf16.mxu0 %v11001_v25  ;;  %v1003_v35 = vpop.f32.mrb[9].mxu1  ;;  %v1435_v36 = vpop.f32.mrb[13].mxu0  ;;  %v11018_v25 = vcombine.low %v1948_v57, %v1950_v61  ;;  %v2303_v57 = vld [vmem:[%s13804_s16 + $0x548] sm:$0xff] }
 0x327   : > { %v12063_v37 = vpop.f32.mrb[10].mxu1  ;;  %v12111_v38 = vpop.f32.mrb[14].mxu0 }
 0x328   : > { %1669 = vmatpush1.bf16.msra.mxu1 %v10998_v29  ;;  %1722 = vmatpush1.bf16.msra.mxu0 %v11000_v30  ;;  %v13943_v39 = vpack.c.bf16 %v12063_v37, %v12062_v33  ;;  %v1006_v40 = vpop.f32.mrb[11].mxu1  ;;  %v13945_v41 = vpack.c.bf16 %v12111_v38, %v12110_v34  ;;  %v1438_v42 = vpop.f32.mrb[15].mxu0  ;;  %v2124_v29 = vld [vmem:[%s13804_s16 + $0x400] sm:$0xff]  ;;  %v2125_v34 = vld [vmem:[%s13804_s16 + $0x408] sm:$0xff]  ;;  %v11024_v37 = vcombine.low %v1953_v20, %v1955_v22 }
 0x329   : > { %1826 = vmatprep.subr.bf16.mxu1 %v11007_v31  ;;  %1879 = vmatprep.subr.bf16.mxu0 %v11009_v32  ;;  %v13947_v43 = vpack.c.bf16 %v1006_v40, %v1003_v35  ;;  %v13949_v44 = vpack.c.bf16 %v1438_v42, %v1435_v36  ;;  %v11023_v31 = vcombine.high %v1952_v15, %v1954_v18  ;;  %v2126_v33 = vld [vmem:[%s13804_s16 + $0x440] sm:$0xff]  ;;  %v2127_v35 = vld [vmem:[%s13804_s16 + $0x448] sm:$0xff] }
 0x32a   : > { %v11025_v32 = vcombine.high %v1953_v20, %v1955_v22  ;;  %v11022_v36 = vcombine.low %v1952_v15, %v1954_v18  ;;  %v11031_v38 = vcombine.high %v2124_v29, %v2126_v33  ;;  %v11033_v40 = vcombine.high %v2125_v34, %v2127_v35  ;;  %v2128_v42 = vld [vmem:[%s13804_s16 + $0x480] sm:$0xff]  ;;  %v2477_v15 = vld [vmem:[%s13804_s16 + $0x608] sm:$0xff] }
 0x32b   : > { %10991 = vmatmul.mubr.msk.bf16.gmra.mrb[28].mxu1 %vm818_vm0, %v13925_v17  ;;  %10993 = vmatmul.mubr.msk.bf16.gmra.mrb[20].mxu0 %vm818_vm0, %v13925_v17  ;;  %v11030_v48 = vcombine.low %v2124_v29, %v2126_v33  ;;  %v11032_v49 = vcombine.low %v2125_v34, %v2127_v35  ;;  %v2483_v29 = vld [vmem:[%s13804_s16 + $0x6c8] sm:$0xff]  ;;  %v2652_v33 = vld [vmem:[%s13804_s16 + $0x700] sm:$0xff] }
 0x32c   : > { %1698 = vmatprep.mubr.bf16.mxu1 %v15136_v50  ;;  %1751 = vmatprep.mubr.bf16.mxu0 %v15136_v50 }
 0x32d   : > { %v12070_v45 = vpop.f32.mrb[12].mxu1 }
 0x32e   : > { %v1075_v47 = vpop.f32.mrb[13].mxu1 }
 0x32f   : > { %v12071_v52 = vpop.f32.mrb[14].mxu1 }
 0x330   : > { %v13961_v55 = vpack.c.bf16 %v12071_v52, %v12070_v45  ;;  %v1078_v56 = vpop.f32.mrb[15].mxu1  ;;  %v2130_v45 = vld [vmem:[%s13804_s16 + $0x4c0] sm:$0xff] }
 0x331   : > { %v13964_v58 = vpack.c.bf16 %v1078_v56, %v1075_v47  ;;  %v2131_v47 = vld [vmem:[%s13804_s16 + $0x4c8] sm:$0xff]  ;;  %v11035_v52 = vcombine.high %v2128_v42, %v2130_v45 }
 0x332   : > { %v2301_v56 = vld [vmem:[%s13804_s16 + $0x508] sm:$0xff] }
 0x333   : > { %11002 = vmatmul.mubr.msk.bf16.vlgmr.msra.gmra.mrb[24].mxu1 %vm818_vm0, %v13917_v5  ;;  %11004 = vmatmul.mubr.msk.bf16.vlgmr.msra.gmra.mrb[16].mxu0 %vm818_vm0, %v13917_v5  ;;  %v11045_v62 = vcombine.high %v2301_v56, %v2303_v57 }
 0x334   : > { %1827 = vmatpush1.bf16.msra.mxu1 %v11006_v53  ;;  %1880 = vmatpush1.bf16.msra.mxu0 %v11008_v54  ;;  %v11037_v53 = vcombine.high %v2129_v46, %v2131_v47  ;;  %v2302_v54 = vld [vmem:[%s13804_s16 + $0x540] sm:$0xff] }
 0x335   : > { %1708 = vmatprep.mubr.bf16.mxu1 %v15136_v50  ;;  %1761 = vmatprep.mubr.bf16.mxu0 %v15136_v50  ;;  %v12086_v8 = vpop.f32.mrb[16].mxu1  ;;  %v11043_v61 = vcombine.high %v2300_v51, %v2302_v54 }
 0x336   : > { %1828 = vmatprep.subr.bf16.mxu1 %v11011_v59  ;;  %1881 = vmatprep.subr.bf16.mxu0 %v11013_v60  ;;  %v1219_v9 = vpop.f32.mrb[17].mxu1  ;;  %v11034_v59 = vcombine.low %v2128_v42, %v2130_v45  ;;  %v11036_v60 = vcombine.low %v2129_v46, %v2131_v47  ;;  %v2656_v47 = vld [vmem:[%s13804_s16 + $0x780] sm:$0xff] }
 0x337   : > { %v12087_v10 = vpop.f32.mrb[18].mxu1 }
 0x338   : > { %1829 = vmatpush1.bf16.msra.mxu1 %v11010_v0  ;;  %1882 = vmatpush1.bf16.msra.mxu0 %v11012_v2  ;;  %v13975_v11 = vpack.c.bf16 %v12087_v10, %v12086_v8  ;;  %v1222_v12 = vpop.f32.mrb[19].mxu1  ;;  %v2306_v0 = vld [vmem:[%s13804_s16 + $0x5c0] sm:$0xff]  ;;  %v2305_v2 = vld [vmem:[%s13804_s16 + $0x588] sm:$0xff]  ;;  %v11044_v8 = vcombine.low %v2301_v56, %v2303_v57 }
 0x339   : > { %2002 = vmatprep.subr.bf16.mxu1 %v11019_v4  ;;  %2055 = vmatprep.subr.bf16.mxu0 %v11021_v7  ;;  %v13977_v13 = vpack.c.bf16 %v1222_v12, %v1219_v9  ;;  %v2307_v4 = vld [vmem:[%s13804_s16 + $0x5c8] sm:$0xff]  ;;  %v11042_v7 = vcombine.low %v2300_v51, %v2302_v54  ;;  %v2476_v9 = vld [vmem:[%s13804_s16 + $0x600] sm:$0xff]  ;;  %v11047_v10 = vcombine.high %v2304_v63, %v2306_v0 }
 0x33a   : > { %v11049_v12 = vcombine.high %v2305_v2, %v2307_v4  ;;  %v11046_v18 = vcombine.low %v2304_v63, %v2306_v0  ;;  %v11048_v20 = vcombine.low %v2305_v2, %v2307_v4  ;;  %v2659_v51 = vld [vmem:[%s13804_s16 + $0x7c8] sm:$0xff]  ;;  %v2828_v54 = vld [vmem:[%s13804_s16 + $0x800] sm:$0xff] }
 0x33b   : > { %11003 = vmatmul.mubr.msk.bf16.gmra.mrb[28].mxu1 %vm818_vm0, %v13913_v1  ;;  %11005 = vmatmul.mubr.msk.bf16.gmra.mrb[20].mxu0 %vm818_vm0, %v13913_v1  ;;  %v2832_v4 = vld [vmem:[%s13804_s16 + $0x880] sm:$0xff] }
 0x33c   : > { %1858 = vmatprep.mubr.bf16.mxu1 %v15136_v50  ;;  %1911 = vmatprep.mubr.bf16.mxu0 %v15136_v50 }
 0x33d   : > { %v12102_v14 = vpop.f32.mrb[20].mxu1 }
 0x33e   : > { %v1363_v16 = vpop.f32.mrb[21].mxu1 }
 0x33f   : > { %v12103_v24 = vpop.f32.mrb[22].mxu1 }
 0x340   : > { %v13989_v27 = vpack.c.bf16 %v12103_v24, %v12102_v14  ;;  %v1366_v28 = vpop.f32.mrb[23].mxu1  ;;  %v2478_v14 = vld [vmem:[%s13804_s16 + $0x640] sm:$0xff] }
 0x341   : > { %v13992_v30 = vpack.c.bf16 %v1366_v28, %v1363_v16  ;;  %v2479_v16 = vld [vmem:[%s13804_s16 + $0x648] sm:$0xff]  ;;  %v11055_v22 = vcombine.high %v2476_v9, %v2478_v14 }
 0x342   : > { %v11057_v24 = vcombine.high %v2477_v15, %v2479_v16  ;;  %v2481_v28 = vld [vmem:[%s13804_s16 + $0x688] sm:$0xff] }
 0x343   : > { %11014 = vmatmul.mubr.msk.bf16.vlgmr.msra.gmra.mrb[24].mxu1 %vm818_vm0, %v13947_v43  ;;  %11016 = vmatmul.mubr.msk.bf16.vlgmr.msra.gmra.mrb[16].mxu0 %vm818_vm0, %v13947_v43  ;;  %v11061_v35 = vcombine.high %v2481_v28, %v2483_v29  ;;  %v11060_v42 = vcombine.low %v2481_v28, %v2483_v29  ;;  %v3135_v29 = vld [vmem:[%s13804_s16 + $0x190] sm:$0xff] }
 0x344   : > { %2003 = vmatpush1.bf16.msra.mxu1 %v11018_v25  ;;  %2056 = vmatpush1.bf16.msra.mxu0 %v11020_v26  ;;  %v2480_v25 = vld [vmem:[%s13804_s16 + $0x680] sm:$0xff] }
 0x345   : > { %1868 = vmatprep.mubr.bf16.mxu1 %v15136_v50  ;;  %1921 = vmatprep.mubr.bf16.mxu0 %v15136_v50  ;;  %v2482_v26 = vld [vmem:[%s13804_s16 + $0x6c0] sm:$0xff] }
 0x346   : > { %2004 = vmatprep.subr.bf16.mxu1 %v11023_v31  ;;  %2057 = vmatprep.subr.bf16.mxu0 %v11025_v32  ;;  %v11054_v31 = vcombine.low %v2476_v9, %v2478_v14  ;;  %v11056_v32 = vcombine.low %v2477_v15, %v2479_v16  ;;  %v11059_v34 = vcombine.high %v2480_v25, %v2482_v26  ;;  %v2835_v9 = vld [vmem:[%s13804_s16 + $0x8c8] sm:$0xff]  ;;  %v3131_v14 = vld [vmem:[%s13804_s16 + $0x110] sm:$0xff] }
 0x348   : > { %2005 = vmatpush1.bf16.msra.mxu1 %v11022_v36  ;;  %2058 = vmatpush1.bf16.msra.mxu0 %v11024_v37  ;;  %v2654_v36 = vld [vmem:[%s13804_s16 + $0x740] sm:$0xff]  ;;  %v2653_v37 = vld [vmem:[%s13804_s16 + $0x708] sm:$0xff] }
 0x349   : > { %2178 = vmatprep.subr.bf16.mxu1 %v11031_v38  ;;  %2231 = vmatprep.subr.bf16.mxu0 %v11033_v40  ;;  %v2655_v38 = vld [vmem:[%s13804_s16 + $0x748] sm:$0xff]  ;;  %v11058_v40 = vcombine.low %v2480_v25, %v2482_v26  ;;  %v11067_v45 = vcombine.high %v2652_v33, %v2654_v36 }
 0x34a   : > { %v11069_v46 = vcombine.high %v2653_v37, %v2655_v38 }
 0x34b   : > { %11015 = vmatmul.mubr.msk.bf16.gmra.mrb[28].mxu1 %vm818_vm0, %v13943_v39  ;;  %11017 = vmatmul.mubr.msk.bf16.gmra.mrb[20].mxu0 %vm818_vm0, %v13943_v39 }
 0x34c   : > { %2034 = vmatprep.mubr.bf16.mxu1 %v15136_v50  ;;  %2087 = vmatprep.mubr.bf16.mxu0 %v15136_v50 }
 0x353   : > { %11026 = vmatmul.mubr.msk.bf16.vlgmr.msra.gmra.mrb[24].mxu1 %vm818_vm0, %v13964_v58  ;;  %11028 = vmatmul.mubr.msk.bf16.vlgmr.msra.gmra.mrb[16].mxu0 %vm818_vm0, %v13964_v58 }
 0x354   : > { %2179 = vmatpush1.bf16.msra.mxu1 %v11030_v48  ;;  %2232 = vmatpush1.bf16.msra.mxu0 %v11032_v49  ;;  %v2658_v48 = vld [vmem:[%s13804_s16 + $0x7c0] sm:$0xff]  ;;  %v2657_v49 = vld [vmem:[%s13804_s16 + $0x788] sm:$0xff] }
 0x355   : > { %2044 = vmatprep.mubr.bf16.mxu1 %v15136_v50  ;;  %2097 = vmatprep.mubr.bf16.mxu0 %v15136_v50  ;;  %v11071_v56 = vcombine.high %v2656_v47, %v2658_v48  ;;  %v11073_v57 = vcombine.high %v2657_v49, %v2659_v51  ;;  %v11072_v63 = vcombine.low %v2657_v49, %v2659_v51  ;;  %v3127_v51 = vld [vmem:[%s13804_s16 + $0x90] sm:$0xff] }
 0x356   : > { %2180 = vmatprep.subr.bf16.mxu1 %v11035_v52  ;;  %2233 = vmatprep.subr.bf16.mxu0 %v11037_v53  ;;  %v11066_v52 = vcombine.low %v2652_v33, %v2654_v36  ;;  %v11068_v53 = vcombine.low %v2653_v37, %v2655_v38  ;;  %v3138_v33 = vld [vmem:[%s13804_s16 + $0x1d8] sm:$0xff]  ;;  %v3123_v36 = vld [vmem:[%s13804_s16 + $0x10] sm:$0xff] }
 0x358   : > { %2181 = vmatpush1.bf16.msra.mxu1 %v11034_v59  ;;  %2234 = vmatpush1.bf16.msra.mxu0 %v11036_v60  ;;  %v2830_v59 = vld [vmem:[%s13804_s16 + $0x840] sm:$0xff]  ;;  %v2829_v60 = vld [vmem:[%s13804_s16 + $0x808] sm:$0xff] }
 0x359   : > { %2354 = vmatprep.subr.bf16.mxu1 %v11043_v61  ;;  %2407 = vmatprep.subr.bf16.mxu0 %v11045_v62  ;;  %v2831_v61 = vld [vmem:[%s13804_s16 + $0x848] sm:$0xff]  ;;  %v11070_v62 = vcombine.low %v2656_v47, %v2658_v48  ;;  %v11079_v0 = vcombine.high %v2828_v54, %v2830_v59 }
 0x35a   : > { %v11081_v2 = vcombine.high %v2829_v60, %v2831_v61 }
 0x35b   : > { %11027 = vmatmul.mubr.msk.bf16.gmra.mrb[28].mxu1 %vm818_vm0, %v13961_v55  ;;  %11029 = vmatmul.mubr.msk.bf16.gmra.mrb[20].mxu0 %vm818_vm0, %v13961_v55 }
 0x35c   : > { %2210 = vmatprep.mubr.bf16.mxu1 %v15136_v50  ;;  %2263 = vmatprep.mubr.bf16.mxu0 %v15136_v50 }
 0x363   : > { %11038 = vmatmul.mubr.msk.bf16.vlgmr.msra.gmra.mrb[24].mxu1 %vm818_vm0, %v13919_v6  ;;  %11040 = vmatmul.mubr.msk.bf16.vlgmr.msra.gmra.mrb[16].mxu0 %vm818_vm0, %v13919_v6 }
 0x364   : > { %2355 = vmatpush1.bf16.msra.mxu1 %v11042_v7  ;;  %2408 = vmatpush1.bf16.msra.mxu0 %v11044_v8  ;;  %v2834_v7 = vld [vmem:[%s13804_s16 + $0x8c0] sm:$0xff]  ;;  %v2833_v8 = vld [vmem:[%s13804_s16 + $0x888] sm:$0xff] }
 0x365   : > { %2220 = vmatprep.mubr.bf16.mxu1 %v15136_v50  ;;  %2273 = vmatprep.mubr.bf16.mxu0 %v15136_v50  ;;  %v11083_v15 = vcombine.high %v2832_v4, %v2834_v7  ;;  %v11085_v16 = vcombine.high %v2833_v8, %v2835_v9  ;;  %v11084_v25 = vcombine.low %v2833_v8, %v2835_v9  ;;  %v3435_v9 = vld [vmem:[%s13804_s16 + $0x290] sm:$0xff] }
 0x366   : > { %2356 = vmatprep.subr.bf16.mxu1 %v11047_v10  ;;  %2409 = vmatprep.subr.bf16.mxu0 %v11049_v12  ;;  %v11078_v10 = vcombine.low %v2828_v54, %v2830_v59  ;;  %v11080_v12 = vcombine.low %v2829_v60, %v2831_v61  ;;  %v3130_v54 = vld [vmem:[%s13804_s16 + $0xd8] sm:$0xff]  ;;  %v3431_v59 = vld [vmem:[%s13804_s16 + $0x210] sm:$0xff] }
 0x368   : > { %2357 = vmatpush1.bf16.msra.mxu1 %v11046_v18  ;;  %2410 = vmatpush1.bf16.msra.mxu0 %v11048_v20  ;;  %v3133_v18 = vld [vmem:[%s13804_s16 + $0x150] sm:$0xff]  ;;  %v3132_v20 = vld [vmem:[%s13804_s16 + $0x118] sm:$0xff] }
 0x369   : > { %2530 = vmatprep.subr.bf16.mxu1 %v11055_v22  ;;  %2583 = vmatprep.subr.bf16.mxu0 %v11057_v24  ;;  %v3134_v22 = vld [vmem:[%s13804_s16 + $0x158] sm:$0xff]  ;;  %v11082_v24 = vcombine.low %v2832_v4, %v2834_v7  ;;  %v11091_v26 = vcombine.high %v3131_v14, %v3133_v18 }
 0x36a   : > { %v11093_v28 = vcombine.high %v3132_v20, %v3134_v22 }
 0x36b   : > { %11039 = vmatmul.mubr.msk.bf16.gmra.mrb[28].mxu1 %vm818_vm0, %v13915_v3  ;;  %11041 = vmatmul.mubr.msk.bf16.gmra.mrb[20].mxu0 %vm818_vm0, %v13915_v3 }
 0x36c   : > { %2386 = vmatprep.mubr.bf16.mxu1 %v15136_v50  ;;  %2439 = vmatprep.mubr.bf16.mxu0 %v15136_v50 }
 0x373   : > { %11050 = vmatmul.mubr.msk.bf16.vlgmr.msra.gmra.mrb[24].mxu1 %vm818_vm0, %v13977_v13  ;;  %11052 = vmatmul.mubr.msk.bf16.vlgmr.msra.gmra.mrb[16].mxu0 %vm818_vm0, %v13977_v13 }
 0x374   : > { %2531 = vmatpush1.bf16.msra.mxu1 %v11054_v31  ;;  %2584 = vmatpush1.bf16.msra.mxu0 %v11056_v32  ;;  %v3137_v31 = vld [vmem:[%s13804_s16 + $0x1d0] sm:$0xff]  ;;  %v3136_v32 = vld [vmem:[%s13804_s16 + $0x198] sm:$0xff] }
 0x375   : > { %2396 = vmatprep.mubr.bf16.mxu1 %v15136_v50  ;;  %2449 = vmatprep.mubr.bf16.mxu0 %v15136_v50  ;;  %v11095_v37 = vcombine.high %v3135_v29, %v3137_v31  ;;  %v11097_v38 = vcombine.high %v3136_v32, %v3138_v33  ;;  %v11096_v47 = vcombine.low %v3136_v32, %v3138_v33  ;;  %v3605_v33 = vld [vmem:[%s13804_s16 + $0x390] sm:$0xff] }
 0x376   : > { %2532 = vmatprep.subr.bf16.mxu1 %v11059_v34  ;;  %2585 = vmatprep.subr.bf16.mxu0 %v11061_v35  ;;  %v11090_v34 = vcombine.low %v3131_v14, %v3133_v18  ;;  %v11092_v35 = vcombine.low %v3132_v20, %v3134_v22  ;;  %v3438_v14 = vld [vmem:[%s13804_s16 + $0x2d8] sm:$0xff]  ;;  %v3601_v18 = vld [vmem:[%s13804_s16 + $0x310] sm:$0xff] }
 0x378   : > { %2533 = vmatpush1.bf16.msra.mxu1 %v11058_v40  ;;  %2586 = vmatpush1.bf16.msra.mxu0 %v11060_v42  ;;  %v3125_v40 = vld [vmem:[%s13804_s16 + $0x50] sm:$0xff]  ;;  %v3124_v42 = vld [vmem:[%s13804_s16 + $0x18] sm:$0xff] }
 0x379   : > { %2706 = vmatprep.subr.bf16.mxu1 %v11067_v45  ;;  %2759 = vmatprep.subr.bf16.mxu0 %v11069_v46  ;;  %v3126_v45 = vld [vmem:[%s13804_s16 + $0x58] sm:$0xff]  ;;  %v11094_v46 = vcombine.low %v3135_v29, %v3137_v31  ;;  %v11103_v48 = vcombine.high %v3123_v36, %v3125_v40 }
 0x37a   : > { %v11105_v49 = vcombine.high %v3124_v42, %v3126_v45 }
 0x37b   : > { %11051 = vmatmul.mubr.msk.bf16.gmra.mrb[28].mxu1 %vm818_vm0, %v13975_v11  ;;  %11053 = vmatmul.mubr.msk.bf16.gmra.mrb[20].mxu0 %vm818_vm0, %v13975_v11 }
 0x37c   : > { %2562 = vmatprep.mubr.bf16.mxu1 %v15136_v50  ;;  %2615 = vmatprep.mubr.bf16.mxu0 %v15136_v50 }
 0x383   : > { %11062 = vmatmul.mubr.msk.bf16.vlgmr.msra.gmra.mrb[24].mxu1 %vm818_vm0, %v13932_v23  ;;  %11064 = vmatmul.mubr.msk.bf16.vlgmr.msra.gmra.mrb[16].mxu0 %vm818_vm0, %v13932_v23 }
 0x384   : > { %2707 = vmatpush1.bf16.msra.mxu1 %v11066_v52  ;;  %2760 = vmatpush1.bf16.msra.mxu0 %v11068_v53  ;;  %v3129_v52 = vld [vmem:[%s13804_s16 + $0xd0] sm:$0xff]  ;;  %v3128_v53 = vld [vmem:[%s13804_s16 + $0x98] sm:$0xff] }
 0x385   : > { %2572 = vmatprep.mubr.bf16.mxu1 %v15136_v50  ;;  %2625 = vmatprep.mubr.bf16.mxu0 %v15136_v50  ;;  %v11107_v60 = vcombine.high %v3127_v51, %v3129_v52  ;;  %v11109_v61 = vcombine.high %v3128_v53, %v3130_v54  ;;  %v11108_v4 = vcombine.low %v3128_v53, %v3130_v54  ;;  %v3775_v54 = vld [vmem:[%s13804_s16 + $0x490] sm:$0xff] }
 0x386   : > { %2708 = vmatprep.subr.bf16.mxu1 %v11071_v56  ;;  %2761 = vmatprep.subr.bf16.mxu0 %v11073_v57  ;;  %v11102_v56 = vcombine.low %v3123_v36, %v3125_v40  ;;  %v11104_v57 = vcombine.low %v3124_v42, %v3126_v45  ;;  %v3608_v36 = vld [vmem:[%s13804_s16 + $0x3d8] sm:$0xff]  ;;  %v3771_v40 = vld [vmem:[%s13804_s16 + $0x410] sm:$0xff] }
 0x388   : > { %2709 = vmatpush1.bf16.msra.mxu1 %v11070_v62  ;;  %2762 = vmatpush1.bf16.msra.mxu0 %v11072_v63  ;;  %v3433_v62 = vld [vmem:[%s13804_s16 + $0x250] sm:$0xff]  ;;  %v3432_v63 = vld [vmem:[%s13804_s16 + $0x218] sm:$0xff] }
 0x389   : > { %2882 = vmatprep.subr.bf16.mxu1 %v11079_v0  ;;  %2935 = vmatprep.subr.bf16.mxu0 %v11081_v2  ;;  %v3434_v0 = vld [vmem:[%s13804_s16 + $0x258] sm:$0xff]  ;;  %v11106_v2 = vcombine.low %v3127_v51, %v3129_v52  ;;  %v11115_v7 = vcombine.high %v3431_v59, %v3433_v62 }
 0x38a   : > { %v11117_v8 = vcombine.high %v3432_v63, %v3434_v0 }
 0x38b   : > { %11063 = vmatmul.mubr.msk.bf16.gmra.mrb[28].mxu1 %vm818_vm0, %v13927_v19  ;;  %11065 = vmatmul.mubr.msk.bf16.gmra.mrb[20].mxu0 %vm818_vm0, %v13927_v19 }
 0x38c   : > { %2738 = vmatprep.mubr.bf16.mxu1 %v15136_v50  ;;  %2791 = vmatprep.mubr.bf16.mxu0 %v15136_v50 }
 0x393   : > { %11074 = vmatmul.mubr.msk.bf16.vlgmr.msra.gmra.mrb[24].mxu1 %vm818_vm0, %v13992_v30  ;;  %11076 = vmatmul.mubr.msk.bf16.vlgmr.msra.gmra.mrb[16].mxu0 %vm818_vm0, %v13992_v30 }
 0x394   : > { %2883 = vmatpush1.bf16.msra.mxu1 %v11078_v10  ;;  %2936 = vmatpush1.bf16.msra.mxu0 %v11080_v12  ;;  %v3437_v10 = vld [vmem:[%s13804_s16 + $0x2d0] sm:$0xff]  ;;  %v3436_v12 = vld [vmem:[%s13804_s16 + $0x298] sm:$0xff] }
 0x395   : > { %2748 = vmatprep.mubr.bf16.mxu1 %v15136_v50  ;;  %2801 = vmatprep.mubr.bf16.mxu0 %v15136_v50  ;;  %v11119_v20 = vcombine.high %v3435_v9, %v3437_v10  ;;  %v11121_v22 = vcombine.high %v3436_v12, %v3438_v14  ;;  %v11120_v29 = vcombine.low %v3436_v12, %v3438_v14  ;;  %v3945_v14 = vld [vmem:[%s13804_s16 + $0x590] sm:$0xff] }
 0x396   : > { %2884 = vmatprep.subr.bf16.mxu1 %v11083_v15  ;;  %2937 = vmatprep.subr.bf16.mxu0 %v11085_v16  ;;  %v11114_v15 = vcombine.low %v3431_v59, %v3433_v62  ;;  %v11116_v16 = vcombine.low %v3432_v63, %v3434_v0  ;;  %v3778_v59 = vld [vmem:[%s13804_s16 + $0x4d8] sm:$0xff]  ;;  %v3941_v62 = vld [vmem:[%s13804_s16 + $0x510] sm:$0xff] }
 0x398   : > { %2885 = vmatpush1.bf16.msra.mxu1 %v11082_v24  ;;  %2938 = vmatpush1.bf16.msra.mxu0 %v11084_v25  ;;  %v3603_v24 = vld [vmem:[%s13804_s16 + $0x350] sm:$0xff]  ;;  %v3602_v25 = vld [vmem:[%s13804_s16 + $0x318] sm:$0xff] }
 0x399   : > { %3179 = vmatprep.subr.bf16.mxu1 %v11091_v26  ;;  %3232 = vmatprep.subr.bf16.mxu0 %v11093_v28  ;;  %v3604_v26 = vld [vmem:[%s13804_s16 + $0x358] sm:$0xff]  ;;  %v11118_v28 = vcombine.low %v3435_v9, %v3437_v10  ;;  %v11127_v31 = vcombine.high %v3601_v18, %v3603_v24 }
 0x39a   : > { %v11129_v32 = vcombine.high %v3602_v25, %v3604_v26 }
 0x39b   : > { %11075 = vmatmul.mubr.msk.bf16.gmra.mrb[28].mxu1 %vm818_vm0, %v13989_v27  ;;  %11077 = vmatmul.mubr.msk.bf16.gmra.mrb[20].mxu0 %vm818_vm0, %v13989_v27 }
 0x39c   : > { %2914 = vmatprep.mubr.bf16.mxu1 %v15136_v50  ;;  %2967 = vmatprep.mubr.bf16.mxu0 %v15136_v50 }
 0x3a3   : > { %11086 = vmatmul.mubr.msk.bf16.vlgmr.msra.gmra.mrb[24].mxu1 %vm818_vm0, %v13949_v44  ;;  %11088 = vmatmul.mubr.msk.bf16.vlgmr.msra.gmra.mrb[16].mxu0 %vm818_vm0, %v13949_v44 }
 0x3a4   : > { %3180 = vmatpush1.bf16.msra.mxu1 %v11090_v34  ;;  %3233 = vmatpush1.bf16.msra.mxu0 %v11092_v35  ;;  %v3607_v34 = vld [vmem:[%s13804_s16 + $0x3d0] sm:$0xff]  ;;  %v3606_v35 = vld [vmem:[%s13804_s16 + $0x398] sm:$0xff] }
 0x3a5   : > { %2924 = vmatprep.mubr.bf16.mxu1 %v15136_v50  ;;  %2977 = vmatprep.mubr.bf16.mxu0 %v15136_v50  ;;  %v11131_v42 = vcombine.high %v3605_v33, %v3607_v34  ;;  %v11133_v45 = vcombine.high %v3606_v35, %v3608_v36  ;;  %v11132_v51 = vcombine.low %v3606_v35, %v3608_v36  ;;  %v4115_v36 = vld [vmem:[%s13804_s16 + $0x690] sm:$0xff] }
 0x3a6   : > { %3181 = vmatprep.subr.bf16.mxu1 %v11095_v37  ;;  %3234 = vmatprep.subr.bf16.mxu0 %v11097_v38  ;;  %v11126_v37 = vcombine.low %v3601_v18, %v3603_v24  ;;  %v11128_v38 = vcombine.low %v3602_v25, %v3604_v26  ;;  %v3948_v18 = vld [vmem:[%s13804_s16 + $0x5d8] sm:$0xff]  ;;  %v4111_v24 = vld [vmem:[%s13804_s16 + $0x610] sm:$0xff] }
 0x3a8   : > { %3182 = vmatpush1.bf16.msra.mxu1 %v11094_v46  ;;  %3235 = vmatpush1.bf16.msra.mxu0 %v11096_v47  ;;  %v3773_v46 = vld [vmem:[%s13804_s16 + $0x450] sm:$0xff]  ;;  %v3772_v47 = vld [vmem:[%s13804_s16 + $0x418] sm:$0xff] }
 0x3a9   : > { %3325 = vmatprep.subr.bf16.mxu1 %v11103_v48  ;;  %3378 = vmatprep.subr.bf16.mxu0 %v11105_v49  ;;  %v3774_v48 = vld [vmem:[%s13804_s16 + $0x458] sm:$0xff]  ;;  %v11130_v49 = vcombine.low %v3605_v33, %v3607_v34  ;;  %v11139_v52 = vcombine.high %v3771_v40, %v3773_v46 }
 0x3aa   : > { %v11141_v53 = vcombine.high %v3772_v47, %v3774_v48 }
 0x3ab   : > { %11087 = vmatmul.mubr.msk.bf16.gmra.mrb[28].mxu1 %vm818_vm0, %v13945_v41  ;;  %11089 = vmatmul.mubr.msk.bf16.gmra.mrb[20].mxu0 %vm818_vm0, %v13945_v41 }
 0x3ac   : > { %3211 = vmatprep.mubr.bf16.mxu1 %v15136_v50  ;;  %3264 = vmatprep.mubr.bf16.mxu0 %v15136_v50 }
 0x3b3   : > { %11098 = vmatmul.mubr.msk.bf16.vlgmr.msra.gmra.mrb[32].mxu1 %vm818_vm0, %v13929_v21  ;;  %11100 = vmatmul.mubr.msk.bf16.vlgmr.msra.gmra.mrb[24].mxu0 %vm818_vm0, %v13929_v21 }
 0x3b4   : > { %3326 = vmatpush1.bf16.msra.mxu1 %v11102_v56  ;;  %3379 = vmatpush1.bf16.msra.mxu0 %v11104_v57  ;;  %v3777_v56 = vld [vmem:[%s13804_s16 + $0x4d0] sm:$0xff]  ;;  %v3776_v57 = vld [vmem:[%s13804_s16 + $0x498] sm:$0xff] }
 0x3b5   : > { %3221 = vmatprep.mubr.bf16.mxu1 %v15136_v50  ;;  %3274 = vmatprep.mubr.bf16.mxu0 %v15136_v50  ;;  %v11143_v63 = vcombine.high %v3775_v54, %v3777_v56  ;;  %v11145_v0 = vcombine.high %v3776_v57, %v3778_v59  ;;  %v11144_v9 = vcombine.low %v3776_v57, %v3778_v59  ;;  %v4285_v59 = vld [vmem:[%s13804_s16 + $0x790] sm:$0xff] }
 0x3b6   : > { %3327 = vmatprep.subr.bf16.mxu1 %v11107_v60  ;;  %3380 = vmatprep.subr.bf16.mxu0 %v11109_v61  ;;  %v11138_v60 = vcombine.low %v3771_v40, %v3773_v46  ;;  %v11140_v61 = vcombine.low %v3772_v47, %v3774_v48  ;;  %v4118_v40 = vld [vmem:[%s13804_s16 + $0x6d8] sm:$0xff]  ;;  %v4281_v46 = vld [vmem:[%s13804_s16 + $0x710] sm:$0xff] }
 0x3b8   : > { %3328 = vmatpush1.bf16.msra.mxu1 %v11106_v2  ;;  %3381 = vmatpush1.bf16.msra.mxu0 %v11108_v4  ;;  %v3943_v2 = vld [vmem:[%s13804_s16 + $0x550] sm:$0xff]  ;;  %v3942_v4 = vld [vmem:[%s13804_s16 + $0x518] sm:$0xff] }
 0x3b9   : > { %3479 = vmatprep.subr.bf16.mxu1 %v11115_v7  ;;  %3532 = vmatprep.subr.bf16.mxu0 %v11117_v8  ;;  %v3944_v7 = vld [vmem:[%s13804_s16 + $0x558] sm:$0xff]  ;;  %v11142_v8 = vcombine.low %v3775_v54, %v3777_v56  ;;  %v11151_v10 = vcombine.high %v3941_v62, %v3943_v2 }
 0x3ba   : > { %v11153_v12 = vcombine.high %v3942_v4, %v3944_v7 }
 0x3bb   : > { %11099 = vmatmul.mubr.msk.bf16.gmra.mrb[36].mxu1 %vm818_vm0, %v13925_v17  ;;  %11101 = vmatmul.mubr.msk.bf16.gmra.mrb[28].mxu0 %vm818_vm0, %v13925_v17 }
 0x3bc   : > { %3357 = vmatprep.mubr.bf16.mxu1 %v15136_v50  ;;  %3410 = vmatprep.mubr.bf16.mxu0 %v15136_v50 }
 0x3c3   : > { %11110 = vmatmul.mubr.msk.bf16.vlgmr.msra.gmra.mrb[32].mxu1 %vm818_vm0, %v13917_v5  ;;  %11112 = vmatmul.mubr.msk.bf16.vlgmr.msra.gmra.mrb[24].mxu0 %vm818_vm0, %v13917_v5 }
 0x3c4   : > { %3480 = vmatpush1.bf16.msra.mxu1 %v11114_v15  ;;  %3533 = vmatpush1.bf16.msra.mxu0 %v11116_v16  ;;  %v3947_v15 = vld [vmem:[%s13804_s16 + $0x5d0] sm:$0xff]  ;;  %v3946_v16 = vld [vmem:[%s13804_s16 + $0x598] sm:$0xff] }
 0x3c5   : > { %3367 = vmatprep.mubr.bf16.mxu1 %v15136_v50  ;;  %3420 = vmatprep.mubr.bf16.mxu0 %v15136_v50  ;;  %v11155_v25 = vcombine.high %v3945_v14, %v3947_v15  ;;  %v11157_v26 = vcombine.high %v3946_v16, %v3948_v18  ;;  %v11156_v33 = vcombine.low %v3946_v16, %v3948_v18  ;;  %v4455_v18 = vld [vmem:[%s13804_s16 + $0x890] sm:$0xff] }
 0x3c6   : > { %3481 = vmatprep.subr.bf16.mxu1 %v11119_v20  ;;  %3534 = vmatprep.subr.bf16.mxu0 %v11121_v22  ;;  %v11150_v20 = vcombine.low %v3941_v62, %v3943_v2  ;;  %v11152_v22 = vcombine.low %v3942_v4, %v3944_v7  ;;  %v4288_v62 = vld [vmem:[%s13804_s16 + $0x7d8] sm:$0xff]  ;;  %v4451_v2 = vld [vmem:[%s13804_s16 + $0x810] sm:$0xff] }
 0x3c8   : > { %3482 = vmatpush1.bf16.msra.mxu1 %v11118_v28  ;;  %3535 = vmatpush1.bf16.msra.mxu0 %v11120_v29  ;;  %v4113_v28 = vld [vmem:[%s13804_s16 + $0x650] sm:$0xff]  ;;  %v4112_v29 = vld [vmem:[%s13804_s16 + $0x618] sm:$0xff] }
 0x3c9   : > { %3649 = vmatprep.subr.bf16.mxu1 %v11127_v31  ;;  %3702 = vmatprep.subr.bf16.mxu0 %v11129_v32  ;;  %v4114_v31 = vld [vmem:[%s13804_s16 + $0x658] sm:$0xff]  ;;  %v11154_v32 = vcombine.low %v3945_v14, %v3947_v15  ;;  %v11163_v34 = vcombine.high %v4111_v24, %v4113_v28 }
 0x3ca   : > { %v11165_v35 = vcombine.high %v4112_v29, %v4114_v31 }
 0x3cb   : > { %11111 = vmatmul.mubr.msk.bf16.gmra.mrb[36].mxu1 %vm818_vm0, %v13913_v1  ;;  %11113 = vmatmul.mubr.msk.bf16.gmra.mrb[28].mxu0 %vm818_vm0, %v13913_v1 }
 0x3cc   : > { %3511 = vmatprep.mubr.bf16.mxu1 %v15136_v50  ;;  %3564 = vmatprep.mubr.bf16.mxu0 %v15136_v50 }
 0x3d3   : > { %11122 = vmatmul.mubr.msk.bf16.vlgmr.msra.gmra.mrb[32].mxu1 %vm818_vm0, %v13947_v43  ;;  %11124 = vmatmul.mubr.msk.bf16.vlgmr.msra.gmra.mrb[24].mxu0 %vm818_vm0, %v13947_v43 }
 0x3d4   : > { %3650 = vmatpush1.bf16.msra.mxu1 %v11126_v37  ;;  %3703 = vmatpush1.bf16.msra.mxu0 %v11128_v38  ;;  %v4117_v37 = vld [vmem:[%s13804_s16 + $0x6d0] sm:$0xff]  ;;  %v4116_v38 = vld [vmem:[%s13804_s16 + $0x698] sm:$0xff] }
 0x3d5   : > { %3521 = vmatprep.mubr.bf16.mxu1 %v15136_v50  ;;  %3574 = vmatprep.mubr.bf16.mxu0 %v15136_v50  ;;  %v11167_v47 = vcombine.high %v4115_v36, %v4117_v37  ;;  %v11169_v48 = vcombine.high %v4116_v38, %v4118_v40  ;;  %v11168_v54 = vcombine.low %v4116_v38, %v4118_v40  ;;  %v4751_v40 = vld [vmem:[%s13804_s16 + $0x1a0] sm:$0xff] }
 0x3d6   : > { %3651 = vmatprep.subr.bf16.mxu1 %v11131_v42  ;;  %3704 = vmatprep.subr.bf16.mxu0 %v11133_v45  ;;  %v11162_v42 = vcombine.low %v4111_v24, %v4113_v28  ;;  %v11164_v45 = vcombine.low %v4112_v29, %v4114_v31  ;;  %v4458_v24 = vld [vmem:[%s13804_s16 + $0x8d8] sm:$0xff]  ;;  %v4747_v28 = vld [vmem:[%s13804_s16 + $0x120] sm:$0xff] }
 0x3d8   : > { %3652 = vmatpush1.bf16.msra.mxu1 %v11130_v49  ;;  %3705 = vmatpush1.bf16.msra.mxu0 %v11132_v51  ;;  %v4283_v49 = vld [vmem:[%s13804_s16 + $0x750] sm:$0xff]  ;;  %v4282_v51 = vld [vmem:[%s13804_s16 + $0x718] sm:$0xff] }
 0x3d9   : > { %3819 = vmatprep.subr.bf16.mxu1 %v11139_v52  ;;  %3872 = vmatprep.subr.bf16.mxu0 %v11141_v53  ;;  %v4284_v52 = vld [vmem:[%s13804_s16 + $0x758] sm:$0xff]  ;;  %v11166_v53 = vcombine.low %v4115_v36, %v4117_v37  ;;  %v11175_v56 = vcombine.high %v4281_v46, %v4283_v49 }
 0x3da   : > { %v11177_v57 = vcombine.high %v4282_v51, %v4284_v52 }
 0x3db   : > { %11123 = vmatmul.mubr.msk.bf16.gmra.mrb[36].mxu1 %vm818_vm0, %v13943_v39  ;;  %11125 = vmatmul.mubr.msk.bf16.gmra.mrb[28].mxu0 %vm818_vm0, %v13943_v39 }
 0x3dc   : > { %3681 = vmatprep.mubr.bf16.mxu1 %v15136_v50  ;;  %3734 = vmatprep.mubr.bf16.mxu0 %v15136_v50 }
 0x3e3   : > { %11134 = vmatmul.mubr.msk.bf16.vlgmr.msra.gmra.mrb[32].mxu1 %vm818_vm0, %v13964_v58  ;;  %11136 = vmatmul.mubr.msk.bf16.vlgmr.msra.gmra.mrb[24].mxu0 %vm818_vm0, %v13964_v58 }
 0x3e4   : > { %3820 = vmatpush1.bf16.msra.mxu1 %v11138_v60  ;;  %3873 = vmatpush1.bf16.msra.mxu0 %v11140_v61  ;;  %v4287_v60 = vld [vmem:[%s13804_s16 + $0x7d0] sm:$0xff]  ;;  %v4286_v61 = vld [vmem:[%s13804_s16 + $0x798] sm:$0xff] }
 0x3e5   : > { %3691 = vmatprep.mubr.bf16.mxu1 %v15136_v50  ;;  %3744 = vmatprep.mubr.bf16.mxu0 %v15136_v50  ;;  %v11179_v4 = vcombine.high %v4285_v59, %v4287_v60  ;;  %v11181_v7 = vcombine.high %v4286_v61, %v4288_v62  ;;  %v11180_v14 = vcombine.low %v4286_v61, %v4288_v62  ;;  %v4743_v62 = vld [vmem:[%s13804_s16 + $0xa0] sm:$0xff] }
 0x3e6   : > { %3821 = vmatprep.subr.bf16.mxu1 %v11143_v63  ;;  %3874 = vmatprep.subr.bf16.mxu0 %v11145_v0  ;;  %v11174_v63 = vcombine.low %v4281_v46, %v4283_v49  ;;  %v11176_v0 = vcombine.low %v4282_v51, %v4284_v52  ;;  %v4754_v46 = vld [vmem:[%s13804_s16 + $0x1e8] sm:$0xff]  ;;  %v4739_v49 = vld [vmem:[%s13804_s16 + $0x20] sm:$0xff] }
 0x3e8   : > { %3822 = vmatpush1.bf16.msra.mxu1 %v11142_v8  ;;  %3875 = vmatpush1.bf16.msra.mxu0 %v11144_v9  ;;  %v4453_v8 = vld [vmem:[%s13804_s16 + $0x850] sm:$0xff]  ;;  %v4452_v9 = vld [vmem:[%s13804_s16 + $0x818] sm:$0xff] }
 0x3e9   : > { %3989 = vmatprep.subr.bf16.mxu1 %v11151_v10  ;;  %4042 = vmatprep.subr.bf16.mxu0 %v11153_v12  ;;  %v4454_v10 = vld [vmem:[%s13804_s16 + $0x858] sm:$0xff]  ;;  %v11178_v12 = vcombine.low %v4285_v59, %v4287_v60  ;;  %v11187_v15 = vcombine.high %v4451_v2, %v4453_v8 }
 0x3ea   : > { %v11189_v16 = vcombine.high %v4452_v9, %v4454_v10 }
 0x3eb   : > { %11135 = vmatmul.mubr.msk.bf16.gmra.mrb[36].mxu1 %vm818_vm0, %v13961_v55  ;;  %11137 = vmatmul.mubr.msk.bf16.gmra.mrb[28].mxu0 %vm818_vm0, %v13961_v55 }
 0x3ec   : > { %3851 = vmatprep.mubr.bf16.mxu1 %v15136_v50  ;;  %3904 = vmatprep.mubr.bf16.mxu0 %v15136_v50 }
 0x3f3   : > { %11146 = vmatmul.mubr.msk.bf16.vlgmr.msra.gmra.mrb[32].mxu1 %vm818_vm0, %v13919_v6  ;;  %11148 = vmatmul.mubr.msk.bf16.vlgmr.msra.gmra.mrb[24].mxu0 %vm818_vm0, %v13919_v6 }
 0x3f4   : > { %3990 = vmatpush1.bf16.msra.mxu1 %v11150_v20  ;;  %4043 = vmatpush1.bf16.msra.mxu0 %v11152_v22  ;;  %v4457_v20 = vld [vmem:[%s13804_s16 + $0x8d0] sm:$0xff]  ;;  %v4456_v22 = vld [vmem:[%s13804_s16 + $0x898] sm:$0xff] }
 0x3f5   : > { %3861 = vmatprep.mubr.bf16.mxu1 %v15136_v50  ;;  %3914 = vmatprep.mubr.bf16.mxu0 %v15136_v50  ;;  %v11191_v29 = vcombine.high %v4455_v18, %v4457_v20  ;;  %v11193_v31 = vcombine.high %v4456_v22, %v4458_v24  ;;  %v11192_v36 = vcombine.low %v4456_v22, %v4458_v24  ;;  %v5051_v24 = vld [vmem:[%s13804_s16 + $0x2a0] sm:$0xff] }
 0x3f6   : > { %3991 = vmatprep.subr.bf16.mxu1 %v11155_v25  ;;  %4044 = vmatprep.subr.bf16.mxu0 %v11157_v26  ;;  %v11186_v25 = vcombine.low %v4451_v2, %v4453_v8  ;;  %v11188_v26 = vcombine.low %v4452_v9, %v4454_v10  ;;  %v4746_v2 = vld [vmem:[%s13804_s16 + $0xe8] sm:$0xff]  ;;  %v5047_v8 = vld [vmem:[%s13804_s16 + $0x220] sm:$0xff] }
 0x3f8   : > { %3992 = vmatpush1.bf16.msra.mxu1 %v11154_v32  ;;  %4045 = vmatpush1.bf16.msra.mxu0 %v11156_v33  ;;  %v4749_v32 = vld [vmem:[%s13804_s16 + $0x160] sm:$0xff]  ;;  %v4748_v33 = vld [vmem:[%s13804_s16 + $0x128] sm:$0xff] }
 0x3f9   : > { %4159 = vmatprep.subr.bf16.mxu1 %v11163_v34  ;;  %4212 = vmatprep.subr.bf16.mxu0 %v11165_v35  ;;  %v4750_v34 = vld [vmem:[%s13804_s16 + $0x168] sm:$0xff]  ;;  %v11190_v35 = vcombine.low %v4455_v18, %v4457_v20  ;;  %v11199_v37 = vcombine.high %v4747_v28, %v4749_v32 }
 0x3fa   : > { %v11201_v38 = vcombine.high %v4748_v33, %v4750_v34 }
 0x3fb   : > { %11147 = vmatmul.mubr.msk.bf16.gmra.mrb[36].mxu1 %vm818_vm0, %v13915_v3  ;;  %11149 = vmatmul.mubr.msk.bf16.gmra.mrb[28].mxu0 %vm818_vm0, %v13915_v3 }
 0x3fc   : > { %4021 = vmatprep.mubr.bf16.mxu1 %v15136_v50  ;;  %4074 = vmatprep.mubr.bf16.mxu0 %v15136_v50 }
 0x403   : > { %11158 = vmatmul.mubr.msk.bf16.vlgmr.msra.gmra.mrb[32].mxu1 %vm818_vm0, %v13977_v13  ;;  %11160 = vmatmul.mubr.msk.bf16.vlgmr.msra.gmra.mrb[24].mxu0 %vm818_vm0, %v13977_v13 }
 0x404   : > { %4160 = vmatpush1.bf16.msra.mxu1 %v11162_v42  ;;  %4213 = vmatpush1.bf16.msra.mxu0 %v11164_v45  ;;  %v4753_v42 = vld [vmem:[%s13804_s16 + $0x1e0] sm:$0xff]  ;;  %v4752_v45 = vld [vmem:[%s13804_s16 + $0x1a8] sm:$0xff] }
 0x405   : > { %4031 = vmatprep.mubr.bf16.mxu1 %v15136_v50  ;;  %4084 = vmatprep.mubr.bf16.mxu0 %v15136_v50  ;;  %v11203_v51 = vcombine.high %v4751_v40, %v4753_v42  ;;  %v11205_v52 = vcombine.high %v4752_v45, %v4754_v46  ;;  %v11204_v59 = vcombine.low %v4752_v45, %v4754_v46  ;;  %v5221_v46 = vld [vmem:[%s13804_s16 + $0x3a0] sm:$0xff] }
 0x406   : > { %4161 = vmatprep.subr.bf16.mxu1 %v11167_v47  ;;  %4214 = vmatprep.subr.bf16.mxu0 %v11169_v48  ;;  %v11198_v47 = vcombine.low %v4747_v28, %v4749_v32  ;;  %v11200_v48 = vcombine.low %v4748_v33, %v4750_v34  ;;  %v5054_v28 = vld [vmem:[%s13804_s16 + $0x2e8] sm:$0xff]  ;;  %v5217_v32 = vld [vmem:[%s13804_s16 + $0x320] sm:$0xff] }
 0x408   : > { %4162 = vmatpush1.bf16.msra.mxu1 %v11166_v53  ;;  %4215 = vmatpush1.bf16.msra.mxu0 %v11168_v54  ;;  %v4741_v53 = vld [vmem:[%s13804_s16 + $0x60] sm:$0xff]  ;;  %v4740_v54 = vld [vmem:[%s13804_s16 + $0x28] sm:$0xff] }
 0x409   : > { %4329 = vmatprep.subr.bf16.mxu1 %v11175_v56  ;;  %4382 = vmatprep.subr.bf16.mxu0 %v11177_v57  ;;  %v4742_v56 = vld [vmem:[%s13804_s16 + $0x68] sm:$0xff]  ;;  %v11202_v57 = vcombine.low %v4751_v40, %v4753_v42  ;;  %v11211_v60 = vcombine.high %v4739_v49, %v4741_v53 }
 0x40a   : > { %v11213_v61 = vcombine.high %v4740_v54, %v4742_v56 }
 0x40b   : > { %11159 = vmatmul.mubr.msk.bf16.gmra.mrb[36].mxu1 %vm818_vm0, %v13975_v11  ;;  %11161 = vmatmul.mubr.msk.bf16.gmra.mrb[28].mxu0 %vm818_vm0, %v13975_v11 }
 0x40c   : > { %4191 = vmatprep.mubr.bf16.mxu1 %v15136_v50  ;;  %4244 = vmatprep.mubr.bf16.mxu0 %v15136_v50 }
 0x413   : > { %11170 = vmatmul.mubr.msk.bf16.vlgmr.msra.gmra.mrb[32].mxu1 %vm818_vm0, %v13932_v23  ;;  %11172 = vmatmul.mubr.msk.bf16.vlgmr.msra.gmra.mrb[24].mxu0 %vm818_vm0, %v13932_v23 }
 0x414   : > { %4330 = vmatpush1.bf16.msra.mxu1 %v11174_v63  ;;  %4383 = vmatpush1.bf16.msra.mxu0 %v11176_v0  ;;  %v4745_v63 = vld [vmem:[%s13804_s16 + $0xe0] sm:$0xff]  ;;  %v4744_v0 = vld [vmem:[%s13804_s16 + $0xa8] sm:$0xff] }
 0x415   : > { %4201 = vmatprep.mubr.bf16.mxu1 %v15136_v50  ;;  %4254 = vmatprep.mubr.bf16.mxu0 %v15136_v50  ;;  %v11215_v9 = vcombine.high %v4743_v62, %v4745_v63  ;;  %v11217_v10 = vcombine.high %v4744_v0, %v4746_v2  ;;  %v11216_v18 = vcombine.low %v4744_v0, %v4746_v2  ;;  %v3006_v2 = vlaneseq }
 0x416   : > { %4331 = vmatprep.subr.bf16.mxu1 %v11179_v4  ;;  %4384 = vmatprep.subr.bf16.mxu0 %v11181_v7  ;;  %v11210_v4 = vcombine.low %v4739_v49, %v4741_v53  ;;  %v11212_v7 = vcombine.low %v4740_v54, %v4742_v56  ;;  %v5224_v49 = vld [vmem:[%s13804_s16 + $0x3e8] sm:$0xff]  ;;  %v5387_v53 = vld [vmem:[%s13804_s16 + $0x420] sm:$0xff] }
 0x418   : > { %4332 = vmatpush1.bf16.msra.mxu1 %v11178_v12  ;;  %4385 = vmatpush1.bf16.msra.mxu0 %v11180_v14  ;;  %v5049_v12 = vld [vmem:[%s13804_s16 + $0x260] sm:$0xff]  ;;  %v5048_v14 = vld [vmem:[%s13804_s16 + $0x228] sm:$0xff] }
 0x419   : > { %4499 = vmatprep.subr.bf16.mxu1 %v11187_v15  ;;  %4552 = vmatprep.subr.bf16.mxu0 %v11189_v16  ;;  %v5050_v15 = vld [vmem:[%s13804_s16 + $0x268] sm:$0xff]  ;;  %v11214_v16 = vcombine.low %v4743_v62, %v4745_v63  ;;  %v11223_v20 = vcombine.high %v5047_v8, %v5049_v12 }
 0x41a   : > { %v11225_v22 = vcombine.high %v5048_v14, %v5050_v15 }
 0x41b   : > { %11171 = vmatmul.mubr.msk.bf16.gmra.mrb[36].mxu1 %vm818_vm0, %v13927_v19  ;;  %11173 = vmatmul.mubr.msk.bf16.gmra.mrb[28].mxu0 %vm818_vm0, %v13927_v19 }
 0x41c   : > { %4361 = vmatprep.mubr.bf16.mxu1 %v15136_v50  ;;  %4414 = vmatprep.mubr.bf16.mxu0 %v15136_v50 }
 0x423   : > { %11182 = vmatmul.mubr.msk.bf16.vlgmr.msra.gmra.mrb[32].mxu1 %vm818_vm0, %v13992_v30  ;;  %11184 = vmatmul.mubr.msk.bf16.vlgmr.msra.gmra.mrb[24].mxu0 %vm818_vm0, %v13992_v30 }
 0x424   : > { %4500 = vmatpush1.bf16.msra.mxu1 %v11186_v25  ;;  %4553 = vmatpush1.bf16.msra.mxu0 %v11188_v26  ;;  %v5053_v25 = vld [vmem:[%s13804_s16 + $0x2e0] sm:$0xff]  ;;  %v5052_v26 = vld [vmem:[%s13804_s16 + $0x2a8] sm:$0xff] }
 0x425   : > { %4371 = vmatprep.mubr.bf16.mxu1 %v15136_v50  ;;  %4424 = vmatprep.mubr.bf16.mxu0 %v15136_v50  ;;  %v11227_v33 = vcombine.high %v5051_v24, %v5053_v25  ;;  %v11229_v34 = vcombine.high %v5052_v26, %v5054_v28  ;;  %v11228_v40 = vcombine.low %v5052_v26, %v5054_v28  ;;  %v14392_v28 = vld [vmem:[%s13804_s16 + $0x560] sm:$0xff] }
 0x426   : > { %4501 = vmatprep.subr.bf16.mxu1 %v11191_v29  ;;  %4554 = vmatprep.subr.bf16.mxu0 %v11193_v31  ;;  %v11222_v29 = vcombine.low %v5047_v8, %v5049_v12  ;;  %v11224_v31 = vcombine.low %v5048_v14, %v5050_v15  ;;  %v5393_v12 = vld [vmem:[%s13804_s16 + $0x4e0] sm:$0xff]  ;;  %v5392_v14 = vld [vmem:[%s13804_s16 + $0x4a8] sm:$0xff] }
 0x427   : > { %v5394_v15 = vld [vmem:[%s13804_s16 + $0x4e8] sm:$0xff] }
 0x428   : > { %4502 = vmatpush1.bf16.msra.mxu1 %v11190_v35  ;;  %4555 = vmatpush1.bf16.msra.mxu0 %v11192_v36  ;;  %v5219_v35 = vld [vmem:[%s13804_s16 + $0x360] sm:$0xff]  ;;  %v5218_v36 = vld [vmem:[%s13804_s16 + $0x328] sm:$0xff]  ;;  %v11253_v26 = vcombine.high %v5392_v14, %v5394_v15 }
 0x429   : > { %4795 = vmatprep.subr.bf16.mxu1 %v11199_v37  ;;  %4848 = vmatprep.subr.bf16.mxu0 %v11201_v38  ;;  %v5220_v37 = vld [vmem:[%s13804_s16 + $0x368] sm:$0xff]  ;;  %v11226_v38 = vcombine.low %v5051_v24, %v5053_v25  ;;  %v11235_v42 = vcombine.high %v5217_v32, %v5219_v35  ;;  %v14389_v24 = vld [vmem:[%s13804_s16 + $0x520] sm:$0xff] }
 0x42a   : > { %v11237_v45 = vcombine.high %v5218_v36, %v5220_v37 }
 0x42b   : > { %11183 = vmatmul.mubr.msk.bf16.gmra.mrb[36].mxu1 %vm818_vm0, %v13989_v27  ;;  %11185 = vmatmul.mubr.msk.bf16.gmra.mrb[28].mxu0 %vm818_vm0, %v13989_v27 }
 0x42c   : > { %4531 = vmatprep.mubr.bf16.mxu1 %v15136_v50  ;;  %4584 = vmatprep.mubr.bf16.mxu0 %v15136_v50 }
 0x433   : > { %11194 = vmatmul.mubr.msk.bf16.vlgmr.msra.gmra.mrb[32].mxu1 %vm818_vm0, %v13949_v44  ;;  %11196 = vmatmul.mubr.msk.bf16.vlgmr.msra.gmra.mrb[24].mxu0 %vm818_vm0, %v13949_v44 }
 0x434   : > { %4796 = vmatpush1.bf16.msra.mxu1 %v11198_v47  ;;  %4849 = vmatpush1.bf16.msra.mxu0 %v11200_v48  ;;  %v5223_v47 = vld [vmem:[%s13804_s16 + $0x3e0] sm:$0xff]  ;;  %v5222_v48 = vld [vmem:[%s13804_s16 + $0x3a8] sm:$0xff] }
 0x435   : > { %4541 = vmatprep.mubr.bf16.mxu1 %v15136_v50  ;;  %4594 = vmatprep.mubr.bf16.mxu0 %v15136_v50  ;;  %v11239_v54 = vcombine.high %v5221_v46, %v5223_v47  ;;  %v11241_v56 = vcombine.high %v5222_v48, %v5224_v49  ;;  %v11240_v62 = vcombine.low %v5222_v48, %v5224_v49 }
 0x436   : > { %4797 = vmatprep.subr.bf16.mxu1 %v11203_v51  ;;  %4850 = vmatprep.subr.bf16.mxu0 %v11205_v52  ;;  %v11234_v51 = vcombine.low %v5217_v32, %v5219_v35  ;;  %v11236_v52 = vcombine.low %v5218_v36, %v5220_v37  ;;  %v11252_v37 = vcombine.low %v5392_v14, %v5394_v15 }
 0x438   : > { %4798 = vmatpush1.bf16.msra.mxu1 %v11202_v57  ;;  %4851 = vmatpush1.bf16.msra.mxu0 %v11204_v59  ;;  %v5389_v57 = vld [vmem:[%s13804_s16 + $0x460] sm:$0xff]  ;;  %v5388_v59 = vld [vmem:[%s13804_s16 + $0x428] sm:$0xff] }
 0x439   : > { %4941 = vmatprep.subr.bf16.mxu1 %v11211_v60  ;;  %4994 = vmatprep.subr.bf16.mxu0 %v11213_v61  ;;  %v5390_v60 = vld [vmem:[%s13804_s16 + $0x468] sm:$0xff]  ;;  %v11238_v61 = vcombine.low %v5221_v46, %v5223_v47  ;;  %v11247_v63 = vcombine.high %v5387_v53, %v5389_v57 }
 0x43a   : > { %v11249_v0 = vcombine.high %v5388_v59, %v5390_v60 }
 0x43b   : > { %11195 = vmatmul.mubr.msk.bf16.gmra.mrb[36].mxu1 %vm818_vm0, %v13945_v41  ;;  %11197 = vmatmul.mubr.msk.bf16.gmra.mrb[28].mxu0 %vm818_vm0, %v13945_v41 }
 0x43c   : > { %4827 = vmatprep.mubr.bf16.mxu1 %v15136_v50  ;;  %4880 = vmatprep.mubr.bf16.mxu0 %v15136_v50 }
 0x443   : > { %11206 = vmatmul.mubr.msk.bf16.vlgmr.msra.gmra.mrb[40].mxu1 %vm818_vm0, %v13929_v21  ;;  %11208 = vmatmul.mubr.msk.bf16.vlgmr.msra.gmra.mrb[32].mxu0 %vm818_vm0, %v13929_v21 }
 0x444   : > { %4942 = vmatpush1.bf16.msra.mxu1 %v11210_v4  ;;  %4995 = vmatpush1.bf16.msra.mxu0 %v11212_v7  ;;  %v14367_v4 = vshrl.u32 %v3006_v2, 7  ;;  %v5391_v7 = vld [vmem:[%s13804_s16 + $0x4a0] sm:$0xff] }
 0x445   : > { %4837 = vmatprep.mubr.bf16.mxu1 %v15136_v50  ;;  %4890 = vmatprep.mubr.bf16.mxu0 %v15136_v50  ;;  %v11251_v25 = vcombine.high %v5391_v7, %v5393_v12  ;;  %v11250_v36 = vcombine.low %v5391_v7, %v5393_v12 }
 0x446   : > { %4943 = vmatprep.subr.bf16.mxu1 %v11215_v9  ;;  %4996 = vmatprep.subr.bf16.mxu0 %v11217_v10  ;;  %15185 = vst [vmem:[#allocation27_spill] sm:$0xff] %v14367_v4  ;;  %v14373_v8 = vsub.s32 0, %v14367_v4  ;;  %v14376_v9 = vsub.s32 2, %v14367_v4  ;;  %v14379_v10 = vsub.s32 1, %v14367_v4 }
 0x448   : > { %4944 = vmatpush1.bf16.msra.mxu1 %v11214_v16  ;;  %4997 = vmatpush1.bf16.msra.mxu0 %v11216_v18  ;;  %v11246_v16 = vcombine.low %v5387_v53, %v5389_v57  ;;  %v11248_v18 = vcombine.low %v5388_v59, %v5390_v60 }
 0x449   : > { %5095 = vmatprep.subr.bf16.mxu1 %v11223_v20  ;;  %5148 = vmatprep.subr.bf16.mxu0 %v11225_v22  ;;  %v3004_v20 = vld [vmem:[%s13812_s27] sm:$0xf]  ;;  %v14386_v22 = vsub.s32 3, %v14367_v4  ;;  %v5900_v4 = vld [vmem:[%s13804_s16 + $0x768] sm:$0xff] }
 0x44a   : > { %v14405_v32 = vrot.slane %v3004_v20, %v14373_v8 }
 0x44b   : > { %11207 = vmatmul.mubr.msk.bf16.gmra.mrb[44].mxu1 %vm818_vm0, %v13925_v17  ;;  %11209 = vmatmul.mubr.msk.bf16.gmra.mrb[36].mxu0 %vm818_vm0, %v13925_v17  ;;  %v14414_v35 = vrot.slane %v3004_v20, %v14386_v22 }
 0x44c   : > { %4973 = vmatprep.mubr.bf16.mxu1 %v15136_v50  ;;  %5026 = vmatprep.mubr.bf16.mxu0 %v15136_v50 }
 0x453   : > { %11218 = vmatmul.mubr.msk.bf16.vlgmr.msra.gmra.mrb[40].mxu1 %vm818_vm0, %v13917_v5  ;;  %11220 = vmatmul.mubr.msk.bf16.vlgmr.msra.gmra.mrb[32].mxu0 %vm818_vm0, %v13917_v5 }
 0x454   : > { %5096 = vmatpush1.bf16.msra.mxu1 %v11222_v29  ;;  %5149 = vmatpush1.bf16.msra.mxu0 %v11224_v31  ;;  %v14395_v29 = vld [vmem:[%s13804_s16 + $0x528] sm:$0xff] }
 0x455   : > { %4983 = vmatprep.mubr.bf16.mxu1 %v15136_v50  ;;  %5036 = vmatprep.mubr.bf16.mxu0 %v15136_v50  ;;  %v14398_v31 = vld [vmem:[%s13804_s16 + $0x568] sm:$0xff] }
 0x456   : > { %5097 = vmatprep.subr.bf16.mxu1 %v11227_v33  ;;  %5150 = vmatprep.subr.bf16.mxu0 %v11229_v34  ;;  %v14408_v33 = vrot.slane %v3004_v20, %v14376_v9  ;;  %v14411_v34 = vrot.slane %v3004_v20, %v14379_v10  ;;  %v14440_v20 = vld [vmem:[%s13804_s16 + $0x5e0] sm:$0xff] }
 0x458   : > { %5098 = vmatpush1.bf16.msra.mxu1 %v11226_v38  ;;  %5151 = vmatpush1.bf16.msra.mxu0 %v11228_v40  ;;  %v11259_v38 = vcombine.high %v14389_v24, %v14392_v28  ;;  %v11261_v40 = vcombine.high %v14395_v29, %v14398_v31 }
 0x459   : > { %5265 = vmatprep.subr.bf16.mxu1 %v11235_v42  ;;  %5318 = vmatprep.subr.bf16.mxu0 %v11237_v45 }
 0x45b   : > { %11219 = vmatmul.mubr.msk.bf16.gmra.mrb[44].mxu1 %vm818_vm0, %v13913_v1  ;;  %11221 = vmatmul.mubr.msk.bf16.gmra.mrb[36].mxu0 %vm818_vm0, %v13913_v1 }
 0x45c   : > { %5127 = vmatprep.mubr.bf16.mxu1 %v15136_v50  ;;  %5180 = vmatprep.mubr.bf16.mxu0 %v15136_v50 }
 0x463   : > { %11230 = vmatmul.mubr.msk.bf16.vlgmr.msra.gmra.mrb[40].mxu1 %vm818_vm0, %v13947_v43  ;;  %11232 = vmatmul.mubr.msk.bf16.vlgmr.msra.gmra.mrb[32].mxu0 %vm818_vm0, %v13947_v43 }
 0x464   : > { %5266 = vmatpush1.bf16.msra.mxu1 %v11234_v51  ;;  %5319 = vmatpush1.bf16.msra.mxu0 %v11236_v52 }
 0x465   : > { %5137 = vmatprep.mubr.bf16.mxu1 %v15136_v50  ;;  %5190 = vmatprep.mubr.bf16.mxu0 %v15136_v50 }
 0x466   : > { %5267 = vmatprep.subr.bf16.mxu1 %v11239_v54  ;;  %5320 = vmatprep.subr.bf16.mxu0 %v11241_v56 }
 0x468   : > { %5268 = vmatpush1.bf16.msra.mxu1 %v11238_v61  ;;  %5321 = vmatpush1.bf16.msra.mxu0 %v11240_v62 }
 0x469   : > { %5435 = vmatprep.subr.bf16.mxu1 %v11247_v63  ;;  %5488 = vmatprep.subr.bf16.mxu0 %v11249_v0 }
 0x46b   : > { %11231 = vmatmul.mubr.msk.bf16.gmra.mrb[44].mxu1 %vm818_vm0, %v13943_v39  ;;  %11233 = vmatmul.mubr.msk.bf16.gmra.mrb[36].mxu0 %vm818_vm0, %v13943_v39 }
 0x46c   : > { %5297 = vmatprep.mubr.bf16.mxu1 %v15136_v50  ;;  %5350 = vmatprep.mubr.bf16.mxu0 %v15136_v50 }
 0x473   : > { %11242 = vmatmul.mubr.msk.bf16.vlgmr.msra.gmra.mrb[40].mxu1 %vm818_vm0, %v13964_v58  ;;  %11244 = vmatmul.mubr.msk.bf16.vlgmr.msra.gmra.mrb[32].mxu0 %vm818_vm0, %v13964_v58 }
 0x474   : > { %5436 = vmatpush1.bf16.msra.mxu1 %v11246_v16  ;;  %5489 = vmatpush1.bf16.msra.mxu0 %v11248_v18  ;;  %v14437_v18 = vld [vmem:[%s13804_s16 + $0x5a0] sm:$0xff] }
 0x475   : > { %5307 = vmatprep.mubr.bf16.mxu1 %v15136_v50  ;;  %5360 = vmatprep.mubr.bf16.mxu0 %v15136_v50 }
 0x476   : > { %v2916_v42 = vpop.f32.mrb[24].mxu1  ;;  %v2969_v45 = vpop.f32.mrb[16].mxu0  ;;  %5437 = vmatprep.subr.bf16.mxu1 %v11251_v25  ;;  %5490 = vmatprep.subr.bf16.mxu0 %v11253_v26 }
 0x477   : > { %v3026_v46 = vadd.f32 %v14405_v32, %v2916_v42  ;;  %v3028_v47 = vadd.f32 %v14408_v33, %v2969_v45  ;;  %v2918_v48 = vpop.f32.mrb[25].mxu1  ;;  %v2971_v49 = vpop.f32.mrb[17].mxu0  ;;  %v11258_v45 = vcombine.low %v14389_v24, %v14392_v28  ;;  %v14463_v24 = vld [vmem:[%s13804_s16 + $0x668] sm:$0xff] }
 0x478   : > { %v3027_v51 = vadd.f32 %v14411_v34, %v2918_v48  ;;  %v3029_v52 = vadd.f32 %v14414_v35, %v2971_v49  ;;  %v2920_v53 = vpop.f32.mrb[26].mxu1  ;;  %v2973_v54 = vpop.f32.mrb[18].mxu0  ;;  %5438 = vmatpush1.bf16.msra.mxu1 %v11250_v36  ;;  %5491 = vmatpush1.bf16.msra.mxu0 %v11252_v37  ;;  %v14443_v36 = vld [vmem:[%s13804_s16 + $0x5a8] sm:$0xff]  ;;  %v14451_v48 = vld [vmem:[%s13804_s16 + $0x620] sm:$0xff] }
 0x479   : > { %v3030_v56 = vadd.f32 %v14405_v32, %v2920_v53  ;;  %v3032_v57 = vadd.f32 %v14408_v33, %v2973_v54  ;;  %v2922_v59 = vpop.f32.mrb[27].mxu1  ;;  %v2975_v60 = vpop.f32.mrb[19].mxu0  ;;  %5605 = vmatprep.subr.bf16.mxu1 %v11259_v38  ;;  %5658 = vmatprep.subr.bf16.mxu0 %v11261_v40  ;;  %v3042_v63 = vmax.f32 %v3026_v46, 0.0  ;;  %v3044_v0 = vmax.f32 %v3028_v47, 0.0  ;;  %v5564_v47 = vld [vmem:[%s13804_s16 + $0x5e8] sm:$0xff]  ;;  %v14454_v49 = vld [vmem:[%s13804_s16 + $0x660] sm:$0xff] }
 0x47a   : > { %v3031_v61 = vadd.f32 %v14411_v34, %v2922_v59  ;;  %v3033_v62 = vadd.f32 %v14414_v35, %v2975_v60  ;;  %v3043_v12 = vmax.f32 %v3027_v51, 0.0  ;;  %v3045_v14 = vmax.f32 %v3029_v52, 0.0  ;;  %v14460_v59 = vld [vmem:[%s13804_s16 + $0x628] sm:$0xff] }
 0x47b   : > { %v3046_v2 = vmax.f32 %v3030_v56, 0.0  ;;  %v3048_v7 = vmax.f32 %v3032_v57, 0.0  ;;  %11243 = vmatmul.mubr.msk.bf16.gmra.mrb[44].mxu1 %vm818_vm0, %v13961_v55  ;;  %11245 = vmatmul.mubr.msk.bf16.gmra.mrb[36].mxu0 %vm818_vm0, %v13961_v55  ;;  %v11260_v46 = vcombine.low %v14395_v29, %v14398_v31  ;;  %v11263_v57 = vcombine.high %v14437_v18, %v14440_v20 }
 0x47c   : > { %v3047_v15 = vmax.f32 %v3031_v61, 0.0  ;;  %v3049_v16 = vmax.f32 %v3033_v62, 0.0  ;;  %5467 = vmatprep.mubr.bf16.mxu1 %v15136_v50  ;;  %5520 = vmatprep.mubr.bf16.mxu0 %v15136_v50  ;;  %v11262_v62 = vcombine.low %v14437_v18, %v14440_v20 }
 0x47d   : > { %v3058_v25 = vadd.f32 %v3046_v2, %v3042_v63  ;;  %v3072_v26 = vadd.f32 %v3048_v7, %v3044_v0 }
 0x47e   : > { %v3065_v37 = vadd.f32 %v3047_v15, %v3043_v12  ;;  %v3079_v38 = vadd.f32 %v3049_v16, %v3045_v14  ;;  %v2926_v40 = vpop.f32.mrb[28].mxu1  ;;  %v2979_v42 = vpop.f32.mrb[20].mxu0  ;;  %v11264_v12 = vcombine.low %v14443_v36, %v5564_v47  ;;  %v11265_v14 = vcombine.high %v14443_v36, %v5564_v47 }
 0x47f   : > { %v3059_v51 = vrot.slane %v3058_v25, 4  ;;  %v3073_v52 = vrot.slane %v3072_v26, 4  ;;  %v3034_v53 = vadd.f32 %v14405_v32, %v2926_v40  ;;  %v2928_v54 = vpop.f32.mrb[29].mxu1  ;;  %v2981_v56 = vpop.f32.mrb[21].mxu0  ;;  %v3036_v31 = vadd.f32 %v14408_v33, %v2979_v42 }
 0x480   : > { %v3066_v28 = vrot.slane %v3065_v37, 4  ;;  %v3080_v29 = vrot.slane %v3079_v38, 4  ;;  %v2930_v60 = vpop.f32.mrb[30].mxu1  ;;  %v2983_v61 = vpop.f32.mrb[22].mxu0  ;;  %v3035_v63 = vadd.f32 %v14411_v34, %v2928_v54  ;;  %v3037_v0 = vadd.f32 %v14414_v35, %v2981_v56 }
 0x481   : > { %v2932_v2 = vpop.f32.mrb[31].mxu1  ;;  %v2985_v7 = vpop.f32.mrb[23].mxu0  ;;  %v3060_v15 = vadd.f32 %v3059_v51, %v3058_v25  ;;  %v3074_v16 = vadd.f32 %v3073_v52, %v3072_v26  ;;  %v11271_v40 = vcombine.high %v14451_v48, %v14454_v49  ;;  %v11273_v42 = vcombine.high %v14460_v59, %v14463_v24 }
 0x482   : > { %v3067_v50 = vadd.f32 %v3066_v28, %v3065_v37  ;;  %v3050_v18 = vmax.f32 %v3034_v53, 0.0  ;;  %v3038_v20 = vadd.f32 %v14405_v32, %v2930_v60  ;;  %v3040_v54 = vadd.f32 %v14408_v33, %v2983_v61 }
 0x483   : > { %11254 = vmatmul.mubr.msk.bf16.vlgmr.msra.gmra.mrb[40].mxu1 %vm818_vm0, %v13919_v6  ;;  %11256 = vmatmul.mubr.msk.bf16.vlgmr.msra.gmra.mrb[32].mxu0 %vm818_vm0, %v13919_v6  ;;  %v3081_v25 = vadd.f32 %v3080_v29, %v3079_v38  ;;  %v3052_v26 = vmax.f32 %v3036_v31, 0.0  ;;  %v3039_v36 = vadd.f32 %v14411_v34, %v2932_v2  ;;  %v3041_v47 = vadd.f32 %v14414_v35, %v2985_v7 }
 0x484   : > { %5606 = vmatpush1.bf16.msra.mxu1 %v11258_v45  ;;  %5659 = vmatpush1.bf16.msra.mxu0 %v11260_v46  ;;  %v3051_v37 = vmax.f32 %v3035_v63, 0.0  ;;  %v3053_v51 = vmax.f32 %v3037_v0, 0.0  ;;  %v3054_v52 = vmax.f32 %v3038_v20, 0.0  ;;  %v3056_v32 = vmax.f32 %v3040_v54, 0.0 }
 0x485   : > { %v15186_v53 = vmov 0   ;;  %v3061_v33 = vrot.slane %v3060_v15, 2  ;;  %v3075_v56 = vrot.slane %v3074_v16, 2  ;;  %v3055_v28 = vmax.f32 %v3039_v36, 0.0  ;;  %5607 = vmatprep.subr.bf16.mxu1 %v11263_v57  ;;  %5660 = vmatprep.subr.bf16.mxu0 %v11265_v14  ;;  %v14489_v14 = vld [vmem:[%s13804_s16 + $0x6a0] sm:$0xff] }
 0x486   : > { %5477 = vmatprep.mubr.bf16.mxu1 %v15186_v53  ;;  %5530 = vmatprep.mubr.bf16.mxu0 %v15186_v53  ;;  %v3057_v60 = vmax.f32 %v3041_v47, 0.0  ;;  %v3068_v38 = vrot.slane %v3067_v50, 2  ;;  %v3086_v34 = vadd.f32 %v3054_v52, %v3050_v18  ;;  %v3100_v35 = vadd.f32 %v3056_v32, %v3052_v26  ;;  %v5733_v18 = vld [vmem:[%s13804_s16 + $0x6e0] sm:$0xff]  ;;  %v5734_v26 = vld [vmem:[%s13804_s16 + $0x6e8] sm:$0xff] }
 0x487   : > { %v3082_v45 = vrot.slane %v3081_v25, 2  ;;  %v3093_v46 = vadd.f32 %v3055_v28, %v3051_v37  ;;  %v11270_v63 = vcombine.low %v14451_v48, %v14454_v49  ;;  %v3062_v0 = vadd.f32 %v3061_v33, %v3060_v15  ;;  %v5899_v52 = vld [vmem:[%s13804_s16 + $0x760] sm:$0xff] }
 0x488   : > { %v3107_v29 = vadd.f32 %v3057_v60, %v3053_v51  ;;  %5608 = vmatpush1.bf16.msra.mxu1 %v11262_v62  ;;  %5661 = vmatpush1.bf16.msra.mxu0 %v11264_v12  ;;  %v3087_v31 = vrot.slane %v3086_v34, 4  ;;  %v3101_v61 = vrot.slane %v3100_v35, 4  ;;  %v3076_v57 = vadd.f32 %v3075_v56, %v3074_v16  ;;  %v5897_v51 = vld [vmem:[%s13804_s16 + $0x720] sm:$0xff] }
 0x489   : > { %5775 = vmatprep.subr.bf16.mxu1 %v11271_v40  ;;  %5828 = vmatprep.subr.bf16.mxu0 %v11273_v42  ;;  %v3094_v2 = vrot.slane %v3093_v46, 4  ;;  %v3069_v20 = vadd.f32 %v3068_v38, %v3067_v50  ;;  %v3083_v48 = vadd.f32 %v3082_v45, %v3081_v25  ;;  %v11272_v16 = vcombine.low %v14460_v59, %v14463_v24  ;;  %v5732_v42 = vld [vmem:[%s13804_s16 + $0x6a8] sm:$0xff] }
 0x48a   : > { %v3108_v7 = vrot.slane %v3107_v29, 4  ;;  %v3088_v54 = vadd.f32 %v3087_v31, %v3086_v34  ;;  %v3102_v62 = vadd.f32 %v3101_v61, %v3100_v35  ;;  %v11274_v40 = vcombine.low %v14489_v14, %v5733_v18 }
 0x48b   : > { %11255 = vmatmul.mubr.msk.bf16.gmra.mrb[44].mxu1 %vm818_vm0, %v13915_v3  ;;  %11257 = vmatmul.mubr.msk.bf16.gmra.mrb[36].mxu0 %vm818_vm0, %v13915_v3  ;;  %v3095_v49 = vadd.f32 %v3094_v2, %v3093_v46  ;;  %v3063_v36 = vrot.slane %v3062_v0, 1  ;;  %v3077_v25 = vrot.slane %v3076_v57, 1  ;;  %v3070_v32 = vrot.slane %v3069_v20, 1 }
 0x48c   : > { %v3109_v12 = vadd.f32 %v3108_v7, %v3107_v29  ;;  %5637 = vmatprep.mubr.bf16.mxu1 %v15186_v53  ;;  %5690 = vmatprep.mubr.bf16.mxu0 %v15186_v53  ;;  %v3089_v50 = vrot.slane %v3088_v54, 2  ;;  %v3103_v15 = vrot.slane %v3102_v62, 2  ;;  %v11275_v28 = vcombine.high %v14489_v14, %v5733_v18  ;;  %v5898_v7 = vld [vmem:[%s13804_s16 + $0x728] sm:$0xff] }
 0x48d   : > { %v3096_v47 = vrot.slane %v3095_v49, 2  ;;  %v3084_v60 = vrot.slane %v3083_v48, 1  ;;  %v11276_v24 = vcombine.low %v5732_v42, %v5734_v26  ;;  %v11277_v45 = vcombine.high %v5732_v42, %v5734_v26  ;;  %v6067_v42 = vld [vmem:[%s13804_s16 + $0x820] sm:$0xff] }
 0x48e   : > { %v3110_v37 = vrot.slane %v3109_v12, 2  ;;  %v3090_v33 = vadd.f32 %v3089_v50, %v3088_v54  ;;  %v3104_v56 = vadd.f32 %v3103_v15, %v3102_v62  ;;  %v11283_v46 = vcombine.high %v5897_v51, %v5899_v52  ;;  %v5904_v15 = vld [vmem:[%s13804_s16 + $0x7e8] sm:$0xff] }
 0x48f   : > { %v3097_v38 = vadd.f32 %v3096_v47, %v3095_v49  ;;  %v3064_v29 = vadd.f32 %v3063_v36, %v3062_v0  ;;  %v3078_v31 = vadd.f32 %v3077_v25, %v3076_v57  ;;  %v3071_v3 = vadd.f32 %v3070_v32, %v3069_v20  ;;  %v5903_v49 = vld [vmem:[%s13804_s16 + $0x7e0] sm:$0xff]  ;;  %v6068_v47 = vld [vmem:[%s13804_s16 + $0x828] sm:$0xff] }
 0x490   : > { %v3111_v59 = vadd.f32 %v3110_v37, %v3109_v12  ;;  %v3091_v34 = vrot.slane %v3090_v33, 1  ;;  %v3105_v35 = vrot.slane %v3104_v56, 1  ;;  %v3085_v14 = vadd.f32 %v3084_v60, %v3083_v48  ;;  %v5902_v12 = vld [vmem:[%s13804_s16 + $0x7a8] sm:$0xff]  ;;  %v6069_v25 = vld [vmem:[%s13804_s16 + $0x860] sm:$0xff] }
 0x491   : > { %v3098_v61 = vrot.slane %v3097_v38, 1  ;;  %v11285_v0 = vcombine.high %v5898_v7, %v5900_v4  ;;  %v11289_v36 = vcombine.high %v5902_v12, %v5904_v15  ;;  %v6070_v37 = vld [vmem:[%s13804_s16 + $0x868] sm:$0xff] }
 0x492   : > { %v3112_v2 = vrot.slane %v3111_v59, 1  ;;  %v3092_v54 = vadd.f32 %v3091_v34, %v3090_v33  ;;  %v3106_v50 = vadd.f32 %v3105_v35, %v3104_v56  ;;  %v11288_v33 = vcombine.low %v5902_v12, %v5904_v15  ;;  %v6073_v56 = vld [vmem:[%s13804_s16 + $0x8e0] sm:$0xff]  ;;  %v6074_v60 = vld [vmem:[%s13804_s16 + $0x8e8] sm:$0xff]  ;;  %v6357_v15 = vld [vmem:[%s13804_s16 + $0x70] sm:$0xff] }
 0x493   : > { %11266 = vmatmul.mubr.msk.bf16.vlgmr.msra.gmra.mrb[40].mxu1 %vm818_vm0, %v13977_v13  ;;  %11268 = vmatmul.mubr.msk.bf16.vlgmr.msra.gmra.mrb[32].mxu0 %vm818_vm0, %v13977_v13  ;;  %v3099_v18 = vadd.f32 %v3098_v61, %v3097_v38  ;;  %v11294_v38 = vcombine.low %v6067_v42, %v6069_v25 }
 0x494   : > { %v3113_v62 = vadd.f32 %v3112_v2, %v3111_v59  ;;  %5776 = vmatpush1.bf16.msra.mxu1 %v11270_v63  ;;  %5829 = vmatpush1.bf16.msra.mxu0 %v11272_v16  ;;  %v14515_v57 = vsel %vm3114_vm1, %v3064_v29, %v3092_v54  ;;  %v14518_v20 = vsel %vm3114_vm1, %v3078_v31, %v3106_v50  ;;  %v6366_v29 = vld [vmem:[%s13804_s16 + $0x178] sm:$0xff]  ;;  %v6367_v54 = vld [vmem:[%s13804_s16 + $0x1b0] sm:$0xff] }
 0x495   : > { %5647 = vmatprep.mubr.bf16.mxu1 %v15186_v53  ;;  %5700 = vmatprep.mubr.bf16.mxu0 %v15186_v53  ;;  %v14521_v63 = vsel %vm3114_vm1, %v3071_v3, %v3099_v18  ;;  %v5901_v3 = vld [vmem:[%s13804_s16 + $0x7a0] sm:$0xff]  ;;  %v11282_v16 = vcombine.low %v5897_v51, %v5899_v52  ;;  %v11297_v51 = vcombine.high %v6068_v47, %v6070_v37  ;;  %v6369_v50 = vld [vmem:[%s13804_s16 + $0x1f0] sm:$0xff]  ;;  %v6370_v18 = vld [vmem:[%s13804_s16 + $0x1f8] sm:$0xff] }
 0x496   : > { %5777 = vmatprep.subr.bf16.mxu1 %v11275_v28  ;;  %5830 = vmatprep.subr.bf16.mxu0 %v11277_v45  ;;  %v14524_v48 = vsel %vm3114_vm1, %v3085_v14, %v3113_v62  ;;  %v11287_v26 = vcombine.high %v5901_v3, %v5903_v49  ;;  %v11286_v32 = vcombine.low %v5901_v3, %v5903_v49  ;;  %v6071_v52 = vld [vmem:[%s13804_s16 + $0x8a0] sm:$0xff]  ;;  %v6072_v28 = vld [vmem:[%s13804_s16 + $0x8a8] sm:$0xff]  ;;  %v6365_v45 = vld [vmem:[%s13804_s16 + $0x170] sm:$0xff] }
 0x497   : > { %v11296_v59 = vcombine.low %v6068_v47, %v6070_v37  ;;  %v11299_v34 = vcombine.high %v6071_v52, %v6073_v56  ;;  %v11301_v35 = vcombine.high %v6072_v28, %v6074_v60  ;;  %v11298_v31 = vcombine.low %v6071_v52, %v6073_v56  ;;  %v6368_v14 = vld [vmem:[%s13804_s16 + $0x1b8] sm:$0xff]  ;;  %v6355_v3 = vld [vmem:[%s13804_s16 + $0x30] sm:$0xff] }
 0x498   : > { %5778 = vmatpush1.bf16.msra.mxu1 %v11274_v40  ;;  %5831 = vmatpush1.bf16.msra.mxu0 %v11276_v24  ;;  %v11284_v40 = vcombine.low %v5898_v7, %v5900_v4  ;;  %v11295_v4 = vcombine.high %v6067_v42, %v6069_v25  ;;  %v6363_v24 = vld [vmem:[%s13804_s16 + $0x130] sm:$0xff]  ;;  %v11300_v61 = vcombine.low %v6072_v28, %v6074_v60  ;;  %v6664_v28 = vld [vmem:[%s13804_s16 + $0x238] sm:$0xff] }
 0x499   : > { %5945 = vmatprep.subr.bf16.mxu1 %v11283_v46  ;;  %5998 = vmatprep.subr.bf16.mxu0 %v11285_v0  ;;  %v6364_v46 = vld [vmem:[%s13804_s16 + $0x138] sm:$0xff]  ;;  %v11307_v2 = vcombine.high %v6363_v24, %v6365_v45  ;;  %v11306_v62 = vcombine.low %v6363_v24, %v6365_v45  ;;  %v11311_v49 = vcombine.high %v6367_v54, %v6369_v50  ;;  %v6359_v47 = vld [vmem:[%s13804_s16 + $0xb0] sm:$0xff] }
 0x49a   : > { %v11309_v7 = vcombine.high %v6364_v46, %v6366_v29  ;;  %v11308_v0 = vcombine.low %v6364_v46, %v6366_v29  ;;  %v11313_v12 = vcombine.high %v6368_v14, %v6370_v18  ;;  %v11310_v42 = vcombine.low %v6367_v54, %v6369_v50  ;;  %v6361_v37 = vld [vmem:[%s13804_s16 + $0xf0] sm:$0xff]  ;;  %v6668_v29 = vld [vmem:[%s13804_s16 + $0x2b8] sm:$0xff] }
 0x49b   : > { %11267 = vmatmul.mubr.msk.bf16.gmra.mrb[44].mxu1 %vm818_vm0, %v13975_v11  ;;  %11269 = vmatmul.mubr.msk.bf16.gmra.mrb[36].mxu0 %vm818_vm0, %v13975_v11  ;;  %v6663_v52 = vld [vmem:[%s13804_s16 + $0x230] sm:$0xff]  ;;  %v11323_v60 = vcombine.high %v6359_v47, %v6361_v37  ;;  %v11322_v24 = vcombine.low %v6359_v47, %v6361_v37  ;;  %v6834_v50 = vld [vmem:[%s13804_s16 + $0x338] sm:$0xff] }
 0x49c   : > { %5807 = vmatprep.mubr.bf16.mxu1 %v15186_v53  ;;  %5860 = vmatprep.mubr.bf16.mxu0 %v15186_v53  ;;  %v6665_v56 = vld [vmem:[%s13804_s16 + $0x270] sm:$0xff] }
 0x49d   : > { %v6669_v46 = vld [vmem:[%s13804_s16 + $0x2f0] sm:$0xff] }
 0x49e   : > { %v6835_v54 = vld [vmem:[%s13804_s16 + $0x370] sm:$0xff] }
 0x4a3   : > { %11278 = vmatmul.mubr.msk.bf16.vlgmr.msra.gmra.mrb[40].mxu1 %vm818_vm0, %v13932_v23  ;;  %11280 = vmatmul.mubr.msk.bf16.vlgmr.msra.gmra.mrb[32].mxu0 %vm818_vm0, %v13932_v23 }
 0x4a4   : > { %5946 = vmatpush1.bf16.msra.mxu1 %v11282_v16  ;;  %5999 = vmatpush1.bf16.msra.mxu0 %v11284_v40  ;;  %v6356_v16 = vld [vmem:[%s13804_s16 + $0x38] sm:$0xff] }
 0x4a5   : > { %5817 = vmatprep.mubr.bf16.mxu1 %v15186_v53  ;;  %5870 = vmatprep.mubr.bf16.mxu0 %v15186_v53  ;;  %v6358_v40 = vld [vmem:[%s13804_s16 + $0x78] sm:$0xff] }
 0x4a6   : > { %5947 = vmatprep.subr.bf16.mxu1 %v11287_v26  ;;  %6000 = vmatprep.subr.bf16.mxu0 %v11289_v36  ;;  %v11312_v26 = vcombine.low %v6368_v14, %v6370_v18  ;;  %v11319_v36 = vcombine.high %v6355_v3, %v6357_v15  ;;  %v11321_v25 = vcombine.high %v6356_v16, %v6358_v40 }
 0x4a8   : > { %5948 = vmatpush1.bf16.msra.mxu1 %v11286_v32  ;;  %6001 = vmatpush1.bf16.msra.mxu0 %v11288_v33  ;;  %v6360_v32 = vld [vmem:[%s13804_s16 + $0xb8] sm:$0xff] }
 0x4a9   : > { %6115 = vmatprep.subr.bf16.mxu1 %v11295_v4  ;;  %6168 = vmatprep.subr.bf16.mxu0 %v11297_v51  ;;  %v6362_v33 = vld [vmem:[%s13804_s16 + $0xf8] sm:$0xff]  ;;  %v11318_v4 = vcombine.low %v6355_v3, %v6357_v15  ;;  %v11320_v51 = vcombine.low %v6356_v16, %v6358_v40 }
 0x4aa   : > { %v6838_v15 = vld [vmem:[%s13804_s16 + $0x3b8] sm:$0xff] }
 0x4ab   : > { %11279 = vmatmul.mubr.msk.bf16.gmra.mrb[44].mxu1 %vm818_vm0, %v13927_v19  ;;  %11281 = vmatmul.mubr.msk.bf16.gmra.mrb[36].mxu0 %vm818_vm0, %v13927_v19  ;;  %v6840_v16 = vld [vmem:[%s13804_s16 + $0x3f8] sm:$0xff] }
 0x4ac   : > { %5977 = vmatprep.mubr.bf16.mxu1 %v15186_v53  ;;  %6030 = vmatprep.mubr.bf16.mxu0 %v15186_v53  ;;  %v11349_v37 = vcombine.high %v6838_v15, %v6840_v16 }
 0x4b3   : > { %11290 = vmatmul.mubr.msk.bf16.vlgmr.msra.gmra.mrb[40].mxu1 %vm818_vm0, %v13992_v30  ;;  %11292 = vmatmul.mubr.msk.bf16.vlgmr.msra.gmra.mrb[32].mxu0 %vm818_vm0, %v13992_v30 }
 0x4b4   : > { %6116 = vmatpush1.bf16.msra.mxu1 %v11294_v38  ;;  %6169 = vmatpush1.bf16.msra.mxu0 %v11296_v59  ;;  %v11325_v38 = vcombine.high %v6360_v32, %v6362_v33  ;;  %v6666_v59 = vld [vmem:[%s13804_s16 + $0x278] sm:$0xff] }
 0x4b5   : > { %5987 = vmatprep.mubr.bf16.mxu1 %v15186_v53  ;;  %6040 = vmatprep.mubr.bf16.mxu0 %v15186_v53  ;;  %v11333_v45 = vcombine.high %v6664_v28, %v6666_v59 }
 0x4b6   : > { %6117 = vmatprep.subr.bf16.mxu1 %v11299_v34  ;;  %6170 = vmatprep.subr.bf16.mxu0 %v11301_v35  ;;  %v11324_v34 = vcombine.low %v6360_v32, %v6362_v33  ;;  %v11331_v35 = vcombine.high %v6663_v52, %v6665_v56  ;;  %v7006_v32 = vld [vmem:[%s13804_s16 + $0x478] sm:$0xff]  ;;  %v11348_v33 = vcombine.low %v6838_v15, %v6840_v16 }
 0x4b8   : > { %6118 = vmatpush1.bf16.msra.mxu1 %v11298_v31  ;;  %6171 = vmatpush1.bf16.msra.mxu0 %v11300_v61  ;;  %v6670_v31 = vld [vmem:[%s13804_s16 + $0x2f8] sm:$0xff]  ;;  %v11330_v61 = vcombine.low %v6663_v52, %v6665_v56  ;;  %v7009_v52 = vld [vmem:[%s13804_s16 + $0x4f0] sm:$0xff] }
 0x4b9   : > { %6411 = vmatprep.subr.bf16.mxu1 %v11307_v2  ;;  %6464 = vmatprep.subr.bf16.mxu0 %v11309_v7  ;;  %v11332_v2 = vcombine.low %v6664_v28, %v6666_v59  ;;  %v6833_v7 = vld [vmem:[%s13804_s16 + $0x330] sm:$0xff]  ;;  %v11337_v18 = vcombine.high %v6668_v29, %v6670_v31  ;;  %v7008_v28 = vld [vmem:[%s13804_s16 + $0x4b8] sm:$0xff] }
 0x4ba   : > { %v11343_v3 = vcombine.high %v6833_v7, %v6835_v54  ;;  %v11342_v40 = vcombine.low %v6833_v7, %v6835_v54  ;;  %v4621_v56 = vld [vmem:[%s13812_s27 + $0x4] sm:$0xf] }
 0x4bb   : > { %11291 = vmatmul.mubr.msk.bf16.gmra.mrb[44].mxu1 %vm818_vm0, %v13989_v27  ;;  %11293 = vmatmul.mubr.msk.bf16.gmra.mrb[36].mxu0 %vm818_vm0, %v13989_v27 }
 0x4bc   : > { %6147 = vmatprep.mubr.bf16.mxu1 %v15186_v53  ;;  %6200 = vmatprep.mubr.bf16.mxu0 %v15186_v53 }
 0x4c3   : > { %11302 = vmatmul.mubr.msk.bf16.vlgmr.msra.gmra.mrb[40].mxu1 %vm818_vm0, %v13949_v44  ;;  %11304 = vmatmul.mubr.msk.bf16.vlgmr.msra.gmra.mrb[32].mxu0 %vm818_vm0, %v13949_v44 }
 0x4c4   : > { %6412 = vmatpush1.bf16.msra.mxu1 %v11306_v62  ;;  %6465 = vmatpush1.bf16.msra.mxu0 %v11308_v0  ;;  %v6836_v62 = vld [vmem:[%s13804_s16 + $0x378] sm:$0xff]  ;;  %v11336_v0 = vcombine.low %v6668_v29, %v6670_v31  ;;  %v14684_v29 = vrot.slane %v4621_v56, %v14376_v9  ;;  %v14687_v31 = vrot.slane %v4621_v56, %v14379_v10 }
 0x4c5   : > { %6157 = vmatprep.mubr.bf16.mxu1 %v15186_v53  ;;  %6210 = vmatprep.mubr.bf16.mxu0 %v15186_v53 }
 0x4c6   : > { %6413 = vmatprep.subr.bf16.mxu1 %v11311_v49  ;;  %6466 = vmatprep.subr.bf16.mxu0 %v11313_v12  ;;  %v11345_v49 = vcombine.high %v6834_v50, %v6836_v62  ;;  %v6839_v12 = vld [vmem:[%s13804_s16 + $0x3f0] sm:$0xff] }
 0x4c8   : > { %6414 = vmatpush1.bf16.msra.mxu1 %v11310_v42  ;;  %6467 = vmatpush1.bf16.msra.mxu0 %v11312_v26  ;;  %v11344_v42 = vcombine.low %v6834_v50, %v6836_v62  ;;  %v7003_v26 = vld [vmem:[%s13804_s16 + $0x430] sm:$0xff] }
 0x4c9   : > { %6557 = vmatprep.subr.bf16.mxu1 %v11319_v36  ;;  %6610 = vmatprep.subr.bf16.mxu0 %v11321_v25  ;;  %v7005_v36 = vld [vmem:[%s13804_s16 + $0x470] sm:$0xff]  ;;  %v7004_v25 = vld [vmem:[%s13804_s16 + $0x438] sm:$0xff] }
 0x4ca   : > { %v11356_v59 = vcombine.low %v7004_v25, %v7006_v32 }
 0x4cb   : > { %11303 = vmatmul.mubr.msk.bf16.gmra.mrb[44].mxu1 %vm818_vm0, %v13945_v41  ;;  %11305 = vmatmul.mubr.msk.bf16.gmra.mrb[36].mxu0 %vm818_vm0, %v13945_v41 }
 0x4cc   : > { %6443 = vmatprep.mubr.bf16.mxu1 %v15186_v53  ;;  %6496 = vmatprep.mubr.bf16.mxu0 %v15186_v53 }
 0x4d3   : > { %11314 = vmatmul.mubr.msk.bf16.vlgmr.msra.gmra.mrb[48].mxu1 %vm818_vm0, %v13929_v21  ;;  %11316 = vmatmul.mubr.msk.bf16.vlgmr.msra.gmra.mrb[40].mxu0 %vm818_vm0, %v13929_v21  ;;  %v6667_v21 = vld [vmem:[%s13804_s16 + $0x2b0] sm:$0xff] }
 0x4d4   : > { %6558 = vmatpush1.bf16.msra.mxu1 %v11318_v4  ;;  %6611 = vmatpush1.bf16.msra.mxu0 %v11320_v51  ;;  %v11335_v14 = vcombine.high %v6667_v21, %v6669_v46  ;;  %v11355_v4 = vcombine.high %v7003_v26, %v7005_v36  ;;  %v11357_v51 = vcombine.high %v7004_v25, %v7006_v32  ;;  %v14710_v32 = vld [vmem:[%s13804_s16 + $0x5f0] sm:$0xff] }
 0x4d5   : > { %6453 = vmatprep.mubr.bf16.mxu1 %v15186_v53  ;;  %6506 = vmatprep.mubr.bf16.mxu0 %v15186_v53 }
 0x4d6   : > { %6559 = vmatprep.subr.bf16.mxu1 %v11323_v60  ;;  %6612 = vmatprep.subr.bf16.mxu0 %v11325_v38  ;;  %v7010_v60 = vld [vmem:[%s13804_s16 + $0x4f8] sm:$0xff]  ;;  %v11354_v38 = vcombine.low %v7003_v26, %v7005_v36 }
 0x4d7   : > { %v11360_v7 = vcombine.low %v7008_v28, %v7010_v60 }
 0x4d8   : > { %6560 = vmatpush1.bf16.msra.mxu1 %v11322_v24  ;;  %6613 = vmatpush1.bf16.msra.mxu0 %v11324_v34  ;;  %v14665_v24 = vld [vmem:[%s13804_s16 + $0x530] sm:$0xff] }
 0x4d9   : > { %6711 = vmatprep.subr.bf16.mxu1 %v11331_v35  ;;  %6764 = vmatprep.subr.bf16.mxu0 %v11333_v45  ;;  %v14668_v34 = vld [vmem:[%s13804_s16 + $0x570] sm:$0xff]  ;;  %v14671_v35 = vld [vmem:[%s13804_s16 + $0x538] sm:$0xff] }
 0x4db   : > { %11315 = vmatmul.mubr.msk.bf16.gmra.mrb[52].mxu1 %vm818_vm0, %v13925_v17  ;;  %11317 = vmatmul.mubr.msk.bf16.gmra.mrb[44].mxu0 %vm818_vm0, %v13925_v17  ;;  %v11334_v17 = vcombine.low %v6667_v21, %v6669_v46  ;;  %v11361_v21 = vcombine.high %v7008_v28, %v7010_v60  ;;  %v14681_v46 = vrot.slane %v4621_v56, %v14373_v8  ;;  %v14722_v28 = vld [vmem:[%s13804_s16 + $0x5f8] sm:$0xff] }
 0x4dc   : > { %6589 = vmatprep.mubr.bf16.mxu1 %v15186_v53  ;;  %6642 = vmatprep.mubr.bf16.mxu0 %v15186_v53 }
 0x4e3   : > { %11326 = vmatmul.mubr.msk.bf16.vlgmr.msra.gmra.mrb[48].mxu1 %vm818_vm0, %v13917_v5  ;;  %11328 = vmatmul.mubr.msk.bf16.vlgmr.msra.gmra.mrb[40].mxu0 %vm818_vm0, %v13917_v5  ;;  %v6837_v5 = vld [vmem:[%s13804_s16 + $0x3b0] sm:$0xff] }
 0x4e4   : > { %6712 = vmatpush1.bf16.msra.mxu1 %v11330_v61  ;;  %6765 = vmatpush1.bf16.msra.mxu0 %v11332_v2  ;;  %v11347_v47 = vcombine.high %v6837_v5, %v6839_v12  ;;  %v14690_v61 = vrot.slane %v4621_v56, %v14386_v22  ;;  %v14719_v56 = vld [vmem:[%s13804_s16 + $0x5b8] sm:$0xff] }
 0x4e5   : > { %6599 = vmatprep.mubr.bf16.mxu1 %v15186_v53  ;;  %6652 = vmatprep.mubr.bf16.mxu0 %v15186_v53 }
 0x4e6   : > { %6713 = vmatprep.subr.bf16.mxu1 %v11335_v14  ;;  %6766 = vmatprep.subr.bf16.mxu0 %v11337_v18 }
 0x4e8   : > { %6714 = vmatpush1.bf16.msra.mxu1 %v11334_v17  ;;  %6767 = vmatpush1.bf16.msra.mxu0 %v11336_v0 }
 0x4e9   : > { %6881 = vmatprep.subr.bf16.mxu1 %v11343_v3  ;;  %6934 = vmatprep.subr.bf16.mxu0 %v11345_v49 }
 0x4eb   : > { %11327 = vmatmul.mubr.msk.bf16.gmra.mrb[52].mxu1 %vm818_vm0, %v13913_v1  ;;  %11329 = vmatmul.mubr.msk.bf16.gmra.mrb[44].mxu0 %vm818_vm0, %v13913_v1  ;;  %v11346_v1 = vcombine.low %v6837_v5, %v6839_v12 }
 0x4ec   : > { %6743 = vmatprep.mubr.bf16.mxu1 %v15186_v53  ;;  %6796 = vmatprep.mubr.bf16.mxu0 %v15186_v53 }
 0x4f3   : > { %11338 = vmatmul.mubr.msk.bf16.vlgmr.msra.gmra.mrb[48].mxu1 %vm818_vm0, %v13947_v43  ;;  %11340 = vmatmul.mubr.msk.bf16.vlgmr.msra.gmra.mrb[40].mxu0 %vm818_vm0, %v13947_v43  ;;  %v7007_v43 = vld [vmem:[%s13804_s16 + $0x4b0] sm:$0xff] }
 0x4f4   : > { %6882 = vmatpush1.bf16.msra.mxu1 %v11342_v40  ;;  %6935 = vmatpush1.bf16.msra.mxu0 %v11344_v42  ;;  %v11359_v45 = vcombine.high %v7007_v43, %v7009_v52  ;;  %v11358_v2 = vcombine.low %v7007_v43, %v7009_v52 }
 0x4f5   : > { %6753 = vmatprep.mubr.bf16.mxu1 %v15186_v53  ;;  %6806 = vmatprep.mubr.bf16.mxu0 %v15186_v53 }
 0x4f6   : > { %6883 = vmatprep.subr.bf16.mxu1 %v11347_v47  ;;  %6936 = vmatprep.subr.bf16.mxu0 %v11349_v37  ;;  %v14707_v37 = vld [vmem:[%s13804_s16 + $0x5b0] sm:$0xff] }
 0x4f8   : > { %6884 = vmatpush1.bf16.msra.mxu1 %v11346_v1  ;;  %6937 = vmatpush1.bf16.msra.mxu0 %v11348_v33 }
 0x4f9   : > { %7051 = vmatprep.subr.bf16.mxu1 %v11355_v4  ;;  %7104 = vmatprep.subr.bf16.mxu0 %v11357_v51 }
 0x4fb   : > { %11339 = vmatmul.mubr.msk.bf16.gmra.mrb[52].mxu1 %vm818_vm0, %v13943_v39  ;;  %11341 = vmatmul.mubr.msk.bf16.gmra.mrb[44].mxu0 %vm818_vm0, %v13943_v39  ;;  %v14674_v39 = vld [vmem:[%s13804_s16 + $0x578] sm:$0xff] }
 0x4fc   : > { %6913 = vmatprep.mubr.bf16.mxu1 %v15186_v53  ;;  %6966 = vmatprep.mubr.bf16.mxu0 %v15186_v53  ;;  %v11369_v54 = vcombine.high %v14671_v35, %v14674_v39 }
 0x503   : > { %11350 = vmatmul.mubr.msk.bf16.vlgmr.msra.gmra.mrb[48].mxu1 %vm818_vm0, %v13964_v58  ;;  %11352 = vmatmul.mubr.msk.bf16.vlgmr.msra.gmra.mrb[40].mxu0 %vm818_vm0, %v13964_v58  ;;  %v11367_v58 = vcombine.high %v14665_v24, %v14668_v34 }
 0x504   : > { %7052 = vmatpush1.bf16.msra.mxu1 %v11354_v38  ;;  %7105 = vmatpush1.bf16.msra.mxu0 %v11356_v59  ;;  %v14725_v59 = vld [vmem:[%s13804_s16 + $0x630] sm:$0xff] }
 0x505   : > { %6923 = vmatprep.mubr.bf16.mxu1 %v15186_v53  ;;  %6976 = vmatprep.mubr.bf16.mxu0 %v15186_v53 }
 0x506   : > { %v4533_v50 = vpop.f32.mrb[32].mxu1  ;;  %v4586_v14 = vpop.f32.mrb[24].mxu0  ;;  %7053 = vmatprep.subr.bf16.mxu1 %v11359_v45  ;;  %7106 = vmatprep.subr.bf16.mxu0 %v11361_v21  ;;  %v14728_v45 = vld [vmem:[%s13804_s16 + $0x670] sm:$0xff] }
 0x507   : > { %v4643_v18 = vadd.f32 %v14681_v46, %v4533_v50  ;;  %v4645_v62 = vadd.f32 %v14684_v29, %v4586_v14  ;;  %v4535_v17 = vpop.f32.mrb[33].mxu1  ;;  %v4588_v0 = vpop.f32.mrb[25].mxu0  ;;  %v14735_v50 = vld [vmem:[%s13804_s16 + $0x638] sm:$0xff] }
 0x508   : > { %v4644_v3 = vadd.f32 %v14687_v31, %v4535_v17  ;;  %v4646_v49 = vadd.f32 %v14690_v61, %v4588_v0  ;;  %v4537_v5 = vpop.f32.mrb[34].mxu1  ;;  %v4590_v12 = vpop.f32.mrb[26].mxu0  ;;  %7054 = vmatpush1.bf16.msra.mxu1 %v11358_v2  ;;  %7107 = vmatpush1.bf16.msra.mxu0 %v11360_v7  ;;  %v14738_v14 = vld [vmem:[%s13804_s16 + $0x678] sm:$0xff] }
 0x509   : > { %v4647_v15 = vadd.f32 %v14681_v46, %v4537_v5  ;;  %v4649_v16 = vadd.f32 %v14684_v29, %v4590_v12  ;;  %v4539_v40 = vpop.f32.mrb[35].mxu1  ;;  %v4592_v42 = vpop.f32.mrb[27].mxu0  ;;  %7221 = vmatprep.subr.bf16.mxu1 %v11367_v58  ;;  %7274 = vmatprep.subr.bf16.mxu0 %v11369_v54  ;;  %v4659_v26 = vmax.f32 %v4643_v18, 0.0  ;;  %v4661_v36 = vmax.f32 %v4645_v62, 0.0 }
 0x50a   : > { %v4648_v25 = vadd.f32 %v14687_v31, %v4539_v40  ;;  %v4650_v47 = vadd.f32 %v14690_v61, %v4592_v42  ;;  %v4660_v4 = vmax.f32 %v4644_v3, 0.0  ;;  %v4662_v51 = vmax.f32 %v4646_v49, 0.0 }
 0x50b   : > { %v4663_v1 = vmax.f32 %v4647_v15, 0.0  ;;  %v4665_v33 = vmax.f32 %v4649_v16, 0.0  ;;  %11351 = vmatmul.mubr.msk.bf16.gmra.mrb[52].mxu1 %vm818_vm0, %v13961_v55  ;;  %11353 = vmatmul.mubr.msk.bf16.gmra.mrb[44].mxu0 %vm818_vm0, %v13961_v55  ;;  %v11366_v58 = vcombine.low %v14665_v24, %v14668_v34  ;;  %v11368_v54 = vcombine.low %v14671_v35, %v14674_v39 }
 0x50c   : > { %v4664_v43 = vmax.f32 %v4648_v25, 0.0  ;;  %v4666_v52 = vmax.f32 %v4650_v47, 0.0  ;;  %7083 = vmatprep.mubr.bf16.mxu1 %v15186_v53  ;;  %7136 = vmatprep.mubr.bf16.mxu0 %v15186_v53  ;;  %v11371_v49 = vcombine.high %v14707_v37, %v14710_v32  ;;  %v11370_v35 = vcombine.low %v14707_v37, %v14710_v32 }
 0x50d   : > { %v4675_v60 = vadd.f32 %v4663_v1, %v4659_v26  ;;  %v4689_v38 = vadd.f32 %v4665_v33, %v4661_v36  ;;  %v11372_v26 = vcombine.low %v14719_v56, %v14722_v28  ;;  %v11373_v36 = vcombine.high %v14719_v56, %v14722_v28 }
 0x50e   : > { %v4682_v55 = vadd.f32 %v4664_v43, %v4660_v4  ;;  %v4696_v21 = vadd.f32 %v4666_v52, %v4662_v51  ;;  %v4543_v2 = vpop.f32.mrb[36].mxu1  ;;  %v4596_v7 = vpop.f32.mrb[28].mxu0  ;;  %v11379_v1 = vcombine.high %v14725_v59, %v14728_v45  ;;  %v11381_v37 = vcombine.high %v14735_v50, %v14738_v14 }
 0x50f   : > { %v4676_v18 = vrot.slane %v4675_v60, 4  ;;  %v4690_v62 = vrot.slane %v4689_v38, 4  ;;  %v4651_v17 = vadd.f32 %v14681_v46, %v4543_v2  ;;  %v4545_v0 = vpop.f32.mrb[37].mxu1  ;;  %v4598_v3 = vpop.f32.mrb[29].mxu0  ;;  %v4653_v24 = vadd.f32 %v14684_v29, %v4596_v7 }
 0x510   : > { %v4683_v5 = vrot.slane %v4682_v55, 4  ;;  %v4697_v12 = vrot.slane %v4696_v21, 4  ;;  %v4547_v34 = vpop.f32.mrb[38].mxu1  ;;  %v4600_v15 = vpop.f32.mrb[30].mxu0  ;;  %v4652_v39 = vadd.f32 %v14687_v31, %v4545_v0  ;;  %v4654_v16 = vadd.f32 %v14690_v61, %v4598_v3 }
 0x511   : > { %v4549_v40 = vpop.f32.mrb[39].mxu1  ;;  %v4602_v42 = vpop.f32.mrb[31].mxu0  ;;  %v4677_v25 = vadd.f32 %v4676_v18, %v4675_v60  ;;  %v4691_v47 = vadd.f32 %v4690_v62, %v4689_v38  ;;  %v4667_v33 = vmax.f32 %v4651_v17, 0.0  ;;  %v4655_v4 = vadd.f32 %v14681_v46, %v4547_v34  ;;  %v7349_v34 = vld [vmem:[%s13804_s16 + $0x6f0] sm:$0xff] }
 0x512   : > { %v4684_v32 = vadd.f32 %v4683_v5, %v4682_v55  ;;  %v4657_v51 = vadd.f32 %v14684_v29, %v4600_v15  ;;  %v4698_v43 = vadd.f32 %v4697_v12, %v4696_v21  ;;  %v4669_v52 = vmax.f32 %v4653_v24, 0.0  ;;  %v7347_v24 = vld [vmem:[%s13804_s16 + $0x6b0] sm:$0xff] }
 0x513   : > { %11362 = vmatmul.mubr.msk.bf16.vlgmr.msra.gmra.mrb[48].mxu1 %vm818_vm0, %v13919_v6  ;;  %11364 = vmatmul.mubr.msk.bf16.vlgmr.msra.gmra.mrb[40].mxu0 %vm818_vm0, %v13919_v6  ;;  %v4656_v56 = vadd.f32 %v14687_v31, %v4549_v40  ;;  %v4658_v28 = vadd.f32 %v14690_v61, %v4602_v42  ;;  %v4668_v60 = vmax.f32 %v4652_v39, 0.0  ;;  %v4670_v38 = vmax.f32 %v4654_v16, 0.0  ;;  %v15188_v16 = vld [vmem:[#allocation26_spill] sm:$0xff] }
 0x514   : > { %7222 = vmatpush1.bf16.msra.mxu1 %v11366_v58  ;;  %7275 = vmatpush1.bf16.msra.mxu0 %v11368_v54  ;;  %v4671_v55 = vmax.f32 %v4655_v4, 0.0  ;;  %v4673_v46 = vmax.f32 %v4657_v51, 0.0  ;;  %v4678_v29 = vrot.slane %v4677_v25, 2  ;;  %v4692_v2 = vrot.slane %v4691_v47, 2 }
 0x515   : > { %7093 = vmatprep.mubr.bf16.mxu1 %v15186_v53  ;;  %7146 = vmatprep.mubr.bf16.mxu0 %v15186_v53  ;;  %v4672_v7 = vmax.f32 %v4656_v56, 0.0  ;;  %v4674_v6 = vmax.f32 %v4658_v28, 0.0  ;;  %v4685_v21 = vrot.slane %v4684_v32, 2  ;;  %v4699_v58 = vrot.slane %v4698_v43, 2 }
 0x516   : > { %7223 = vmatprep.subr.bf16.mxu1 %v11371_v49  ;;  %7276 = vmatprep.subr.bf16.mxu0 %v11373_v36  ;;  %v4703_v31 = vadd.f32 %v4671_v55, %v4667_v33  ;;  %v4717_v61 = vadd.f32 %v4673_v46, %v4669_v52  ;;  %v11378_v0 = vcombine.low %v14725_v59, %v14728_v45  ;;  %v7348_v59 = vld [vmem:[%s13804_s16 + $0x6b8] sm:$0xff]  ;;  %v14779_v36 = vld [vmem:[%s13804_s16 + $0x730] sm:$0xff] }
 0x517   : > { %v4710_v54 = vadd.f32 %v4672_v7, %v4668_v60  ;;  %v4724_v18 = vadd.f32 %v4674_v6, %v4670_v38  ;;  %v4679_v3 = vadd.f32 %v4678_v29, %v4677_v25  ;;  %v4693_v49 = vadd.f32 %v4692_v2, %v4691_v47  ;;  %v7350_v45 = vld [vmem:[%s13804_s16 + $0x6f8] sm:$0xff]  ;;  %v14782_v25 = vld [vmem:[%s13804_s16 + $0x770] sm:$0xff] }
 0x518   : > { %7224 = vmatpush1.bf16.msra.mxu1 %v11370_v35  ;;  %7277 = vmatpush1.bf16.msra.mxu0 %v11372_v26  ;;  %v4704_v62 = vrot.slane %v4703_v31, 4  ;;  %v4718_v17 = vrot.slane %v4717_v61, 4  ;;  %v4686_v15 = vadd.f32 %v4685_v21, %v4684_v32  ;;  %v4700_v40 = vadd.f32 %v4699_v58, %v4698_v43  ;;  %v7514_v58 = vld [vmem:[%s13804_s16 + $0x738] sm:$0xff] }
 0x519   : > { %7391 = vmatprep.subr.bf16.mxu1 %v11379_v1  ;;  %7444 = vmatprep.subr.bf16.mxu0 %v11381_v37  ;;  %v4711_v5 = vrot.slane %v4710_v54, 4  ;;  %v4725_v12 = vrot.slane %v4724_v18, 4  ;;  %v11380_v37 = vcombine.low %v14735_v50, %v14738_v14  ;;  %v11382_v32 = vcombine.low %v7347_v24, %v7349_v34 }
 0x51a   : > { %v4705_v35 = vadd.f32 %v4704_v62, %v4703_v31  ;;  %v4719_v39 = vadd.f32 %v4718_v17, %v4717_v61  ;;  %v4680_v33 = vrot.slane %v4679_v3, 1  ;;  %v4694_v4 = vrot.slane %v4693_v49, 1 }
 0x51b   : > { %11363 = vmatmul.mubr.msk.bf16.gmra.mrb[52].mxu1 %vm818_vm0, %v15188_v16  ;;  %11365 = vmatmul.mubr.msk.bf16.gmra.mrb[44].mxu0 %vm818_vm0, %v15188_v16  ;;  %v4712_v42 = vadd.f32 %v4711_v5, %v4710_v54  ;;  %v4726_v26 = vadd.f32 %v4725_v12, %v4724_v18  ;;  %v4687_v52 = vrot.slane %v4686_v15, 1  ;;  %v11383_v60 = vcombine.high %v7347_v24, %v7349_v34  ;;  %v7516_v54 = vld [vmem:[%s13804_s16 + $0x778] sm:$0xff] }
 0x51c   : > { %7253 = vmatprep.mubr.bf16.mxu1 %v15186_v53  ;;  %7306 = vmatprep.mubr.bf16.mxu0 %v15186_v53  ;;  %v4706_v47 = vrot.slane %v4705_v35, 2  ;;  %v4720_v1 = vrot.slane %v4719_v39, 2  ;;  %v4701_v38 = vrot.slane %v4700_v40, 1  ;;  %v11384_v29 = vcombine.low %v7348_v59, %v7350_v45  ;;  %v7520_v16 = vld [vmem:[%s13804_s16 + $0x7f8] sm:$0xff] }
 0x51d   : > { %v4713_v51 = vrot.slane %v4712_v42, 2  ;;  %v4727_v43 = vrot.slane %v4726_v26, 2  ;;  %v11385_v6 = vcombine.high %v7348_v59, %v7350_v45  ;;  %v11391_v50 = vcombine.high %v14779_v36, %v14782_v25 }
 0x51e   : > { %v4707_v56 = vadd.f32 %v4706_v47, %v4705_v35  ;;  %v4721_v28 = vadd.f32 %v4720_v1, %v4719_v39  ;;  %v4681_v14 = vadd.f32 %v4680_v33, %v4679_v3  ;;  %v4695_v21 = vadd.f32 %v4694_v4, %v4693_v49  ;;  %v7519_v35 = vld [vmem:[%s13804_s16 + $0x7f0] sm:$0xff]  ;;  %v7518_v39 = vld [vmem:[%s13804_s16 + $0x7b8] sm:$0xff] }
 0x51f   : > { %v4714_v55 = vadd.f32 %v4713_v51, %v4712_v42  ;;  %v4728_v46 = vadd.f32 %v4727_v43, %v4726_v26  ;;  %v4688_v18 = vadd.f32 %v4687_v52, %v4686_v15  ;;  %v4702_v5 = vadd.f32 %v4701_v38, %v4700_v40  ;;  %v7517_v15 = vld [vmem:[%s13804_s16 + $0x7b0] sm:$0xff]  ;;  %v7684_v1 = vld [vmem:[%s13804_s16 + $0x838] sm:$0xff] }
 0x520   : > { %v4708_v2 = vrot.slane %v4707_v56, 1  ;;  %v4722_v7 = vrot.slane %v4721_v28, 1  ;;  %v11393_v3 = vcombine.high %v7514_v58, %v7516_v54  ;;  %v11390_v59 = vcombine.low %v14779_v36, %v14782_v25  ;;  %v7683_v40 = vld [vmem:[%s13804_s16 + $0x830] sm:$0xff]  ;;  %v7688_v4 = vld [vmem:[%s13804_s16 + $0x8b8] sm:$0xff] }
 0x521   : > { %v4715_v31 = vrot.slane %v4714_v55, 1  ;;  %v4729_v61 = vrot.slane %v4728_v46, 1  ;;  %v11392_v45 = vcombine.low %v7514_v58, %v7516_v54  ;;  %v7685_v42 = vld [vmem:[%s13804_s16 + $0x870] sm:$0xff]  ;;  %v11395_v26 = vcombine.high %v7517_v15, %v7519_v35  ;;  %v7690_v51 = vld [vmem:[%s13804_s16 + $0x8f8] sm:$0xff]  ;;  %v12782_v58 = vld [vmem:[%s14604_s0 + $0xd8] sm:$0xff]  }
 0x522   : > { %v4709_v62 = vadd.f32 %v4708_v2, %v4707_v56  ;;  %v4723_v17 = vadd.f32 %v4722_v7, %v4721_v28  ;;  %v11397_v47 = vcombine.high %v7518_v39, %v7520_v16  ;;  %v11403_v36 = vcombine.high %v7683_v40, %v7685_v42  ;;  %v7689_v33 = vld [vmem:[%s13804_s16 + $0x8f0] sm:$0xff]  ;;  %v12774_v2 = vld [vmem:[%s14604_s0 + $0xc8] sm:$0xff]   ;;  %v12783_v54 = vld [vmem:[%s14604_s0 + $0x18] sm:$0xff]  }
 0x523   : > { %11374 = vmatmul.mubr.msk.bf16.vlgmr.msra.gmra.mrb[48].mxu1 %vm818_vm0, %v13977_v13  ;;  %11376 = vmatmul.mubr.msk.bf16.vlgmr.msra.gmra.mrb[40].mxu0 %vm818_vm0, %v13977_v13  ;;  %v4716_v12 = vadd.f32 %v4715_v31, %v4714_v55  ;;  %v4730_v24 = vadd.f32 %v4729_v61, %v4728_v46  ;;  %v11402_v43 = vcombine.low %v7683_v40, %v7685_v42  ;;  %v12772_v46 = vld [vmem:[%s14604_s0 + $0x80] sm:$0xff]   ;;  %v12776_v7 = vld [vmem:[%s14604_s0 + $0x88] sm:$0xff]   ;;  %v12780_v31 = vld [vmem:[%s14604_s0 + $0x90] sm:$0xff]  }
 0x524   : > { %7392 = vmatpush1.bf16.msra.mxu1 %v11378_v0  ;;  %7445 = vmatpush1.bf16.msra.mxu0 %v11380_v37  ;;  %v14797_v49 = vsel %vm3114_vm1, %v4681_v14, %v4709_v62  ;;  %v14800_v34 = vsel %vm3114_vm1, %v4695_v21, %v4723_v17  ;;  %v7686_v37 = vld [vmem:[%s13804_s16 + $0x878] sm:$0xff]  ;;  %v11409_v28 = vcombine.high %v7688_v4, %v7690_v51  ;;  %v3120_v14 = vmul.f32 0.0625, %v14521_v63  ;;  %v12779_v21 = vld [vmem:[%s14604_s0 + $0x10] sm:$0xff]   ;;  %v12781_v61 = vld [vmem:[%s14604_s0 + $0x58] sm:$0xff]  }
 0x525   : > { %7263 = vmatprep.mubr.bf16.mxu1 %v15186_v53  ;;  %7316 = vmatprep.mubr.bf16.mxu0 %v15186_v53  ;;  %v14803_v13 = vsel %vm3114_vm1, %v4688_v18, %v4716_v12  ;;  %v14806_v0 = vsel %vm3114_vm1, %v4702_v5, %v4730_v24  ;;  %v11405_v25 = vcombine.high %v7684_v1, %v7686_v37  ;;  %v12784_v18 = vld [vmem:[%s14604_s0 + $0x98] sm:$0xff]   ;;  %v12785_v62 = vld [vmem:[%s14604_s0 + $0x60] sm:$0xff]   ;;  %v12789_v12 = vld [vmem:[%s14604_s0 + $0x68] sm:$0xff]  }
 0x526   : > { %7393 = vmatprep.subr.bf16.mxu1 %v11383_v60  ;;  %7446 = vmatprep.subr.bf16.mxu0 %v11385_v6  ;;  %v11404_v52 = vcombine.low %v7684_v1, %v7686_v37  ;;  %v12769_v60 = vld [vmem:[%s14604_s0 + $0x40] sm:$0xff]   ;;  %v11408_v55 = vcombine.low %v7688_v4, %v7690_v51  ;;  %v12777_v6 = vld [vmem:[%s14604_s0 + $0x50] sm:$0xff]   ;;  %v7972_v63 = vpack.c.bf16 %v3120_v14, %v3120_v14  ;;  %v12790_v24 = vld [vmem:[%s14604_s0 + $0xe8] sm:$0xff]   ;;  %v3121_v1 = vmul.f32 0.0625, %v14518_v20 }
 0x527   : > { %v12786_v17 = vld [vmem:[%s14604_s0 + $0xe0] sm:$0xff]   ;;  %v12798_v40 = vld [vmem:[%s14604_s0 + $0xf8] sm:$0xff]   ;;  %v12805_v20 = vld [vmem:[%s14604_s0 + $0x148] sm:$0xff]  }
 0x528   : > { %7394 = vmatpush1.bf16.msra.mxu1 %v11382_v32  ;;  %7447 = vmatpush1.bf16.msra.mxu0 %v11384_v29  ;;  %v11396_v32 = vcombine.low %v7518_v39, %v7520_v16  ;;  %v12773_v29 = vld [vmem:[%s14604_s0 + $0x48] sm:$0xff]   ;;  %v12788_v5 = vld [vmem:[%s14604_s0 + $0xa0] sm:$0xff]   ;;  %v12794_v39 = vld [vmem:[%s14604_s0 + $0xf0] sm:$0xff]  }
 0x529   : > { %7561 = vmatprep.subr.bf16.mxu1 %v11391_v50  ;;  %7614 = vmatprep.subr.bf16.mxu0 %v11393_v3  ;;  %v12778_v50 = vld [vmem:[%s14604_s0 + $0xd0] sm:$0xff]   ;;  %v12791_v3 = vld [vmem:[%s14604_s0 + $0x28] sm:$0xff]   ;;  %v12799_v42 = vld [vmem:[%s14604_s0 + $0x38] sm:$0xff]  }
 0x52a   : > { %v12795_v16 = vld [vmem:[%s14604_s0 + $0x30] sm:$0xff]   ;;  %v12801_v37 = vld [vmem:[%s14604_s0 + $0x140] sm:$0xff]   ;;  %v12806_v51 = vld [vmem:[%s14604_s0 + $0x1c8] sm:$0xff]  }
 0x52b   : > { %11375 = vmatmul.mubr.msk.bf16.gmra.mrb[52].mxu1 %vm818_vm0, %v13975_v11  ;;  %11377 = vmatmul.mubr.msk.bf16.gmra.mrb[44].mxu0 %vm818_vm0, %v13975_v11  ;;  %v11394_v11 = vcombine.low %v7517_v15, %v7519_v35  ;;  %v12792_v15 = vld [vmem:[%s14604_s0 + $0xa8] sm:$0xff]   ;;  %v12793_v35 = vld [vmem:[%s14604_s0 + $0x70] sm:$0xff]  }
 0x52c   : > { %7423 = vmatprep.mubr.bf16.mxu1 %v15186_v53  ;;  %7476 = vmatprep.mubr.bf16.mxu0 %v15186_v53  ;;  %v12824_v14 = vld [vmem:[%s14604_s0 + $0x1a8] sm:$0xff]  }
 0x533   : > { %11386 = vmatmul.mubr.msk.bf16.vlgmr.msra.gmra.mrb[48].mxu1 %vm818_vm0, %v13932_v23  ;;  %11388 = vmatmul.mubr.msk.bf16.vlgmr.msra.gmra.mrb[40].mxu0 %vm818_vm0, %v13932_v23  ;;  %v7687_v23 = vld [vmem:[%s13804_s16 + $0x8b0] sm:$0xff] }
 0x534   : > { %7562 = vmatpush1.bf16.msra.mxu1 %v11390_v59  ;;  %7615 = vmatpush1.bf16.msra.mxu0 %v11392_v45  ;;  %v11407_v56 = vcombine.high %v7687_v23, %v7689_v33  ;;  %v11406_v38 = vcombine.low %v7687_v23, %v7689_v33  ;;  %v12796_v59 = vld [vmem:[%s14604_s0 + $0xb0] sm:$0xff]   ;;  %v12797_v45 = vld [vmem:[%s14604_s0 + $0x78] sm:$0xff]   ;;  %v7973_v33 = vpack.c.bf16 %v3121_v1, %v3121_v1 }
 0x535   : > { %7433 = vmatprep.mubr.bf16.mxu1 %v15186_v53  ;;  %7486 = vmatprep.mubr.bf16.mxu0 %v15186_v53  ;;  %v12842_v1 = vld [vmem:[%s14604_s0 + $0x2d0] sm:$0xff]  }
 0x536   : > { %7563 = vmatprep.subr.bf16.mxu1 %v11395_v26  ;;  %7616 = vmatprep.subr.bf16.mxu0 %v11397_v47  ;;  %v12800_v26 = vld [vmem:[%s14604_s0 + $0xb8] sm:$0xff]   ;;  %v3119_v47 = vmul.f32 0.0625, %v14515_v57  ;;  %v12804_v57 = vld [vmem:[%s14604_s0 + $0x180] sm:$0xff]  }
 0x538   : > { %7564 = vmatpush1.bf16.msra.mxu1 %v11394_v11  ;;  %7617 = vmatpush1.bf16.msra.mxu0 %v11396_v32  ;;  %v12802_v11 = vld [vmem:[%s14604_s0 + $0x1c0] sm:$0xff]   ;;  %v4736_v32 = vmul.f32 0.0625, %v14803_v13  ;;  %v7971_v23 = vpack.c.bf16 %v3119_v47, %v3119_v47 }
 0x539   : > { %7731 = vmatprep.subr.bf16.mxu1 %v11403_v36  ;;  %7784 = vmatprep.subr.bf16.mxu0 %v11405_v25  ;;  %v4738_v36 = vmul.f32 0.0625, %v14806_v0  ;;  %v12803_v25 = vld [vmem:[%s14604_s0 + $0x100] sm:$0xff]   ;;  %v12807_v0 = vld [vmem:[%s14604_s0 + $0x108] sm:$0xff]  }
 0x53a   : > { %v7976_v4 = vpack.c.bf16 %v4736_v32, %v4736_v32 }
 0x53b   : > { %11387 = vmatmul.mubr.msk.bf16.gmra.mrb[52].mxu1 %vm818_vm0, %v13927_v19  ;;  %11389 = vmatmul.mubr.msk.bf16.gmra.mrb[44].mxu0 %vm818_vm0, %v13927_v19  ;;  %v12770_v19 = vld [vmem:[%s14604_s0 + $0xc0] sm:$0xff]   ;;  %v7978_v13 = vpack.c.bf16 %v4738_v36, %v4738_v36 }
 0x53c   : > { %7593 = vmatprep.mubr.bf16.mxu1 %v15186_v53  ;;  %7646 = vmatprep.mubr.bf16.mxu0 %v15186_v53 }
 0x543   : > { %11398 = vmatmul.mubr.msk.bf16.vlgmr.msra.gmra.mrb[48].mxu1 %vm818_vm0, %v13992_v30  ;;  %11400 = vmatmul.mubr.msk.bf16.vlgmr.msra.gmra.mrb[40].mxu0 %vm818_vm0, %v13992_v30  ;;  %v12771_v30 = vld [vmem:[%s14604_s0] sm:$0xff]  }
 0x544   : > { %7732 = vmatpush1.bf16.msra.mxu1 %v11402_v43  ;;  %7785 = vmatpush1.bf16.msra.mxu0 %v11404_v52  ;;  %v12808_v43 = vld [vmem:[%s14604_s0 + $0x188] sm:$0xff]   ;;  %v12809_v52 = vld [vmem:[%s14604_s0 + $0x150] sm:$0xff]  }
 0x545   : > { %7603 = vmatprep.mubr.bf16.mxu1 %v15186_v53  ;;  %7656 = vmatprep.mubr.bf16.mxu0 %v15186_v53 }
 0x546   : > { %7733 = vmatprep.subr.bf16.mxu1 %v11407_v56  ;;  %7786 = vmatprep.subr.bf16.mxu0 %v11409_v28  ;;  %v12810_v56 = vld [vmem:[%s14604_s0 + $0x1d0] sm:$0xff]  }
 0x547   : > { %v12811_v28 = vld [vmem:[%s14604_s0 + $0x110] sm:$0xff]  }
 0x548   : > { %7734 = vmatpush1.bf16.msra.mxu1 %v11406_v38  ;;  %7787 = vmatpush1.bf16.msra.mxu0 %v11408_v55  ;;  %v12814_v38 = vld [vmem:[%s14604_s0 + $0x1d8] sm:$0xff]  }
 0x549   : > { %11712 = vmatprep.subr.bf16.mxu1 %v12769_v60  ;;  %11734 = vmatprep.subr.bf16.mxu0 %v12770_v19  ;;  %v12812_v60 = vld [vmem:[%s14604_s0 + $0x190] sm:$0xff]   ;;  %v12813_v19 = vld [vmem:[%s14604_s0 + $0x158] sm:$0xff]  }
 0x54a   : > { %v12815_v55 = vld [vmem:[%s14604_s0 + $0x118] sm:$0xff]  }
 0x54b   : > { %11399 = vmatmul.mubr.msk.bf16.gmra.mrb[52].mxu1 %vm818_vm0, %v13989_v27  ;;  %11401 = vmatmul.mubr.msk.bf16.gmra.mrb[44].mxu0 %vm818_vm0, %v13989_v27  ;;  %v12775_v27 = vld [vmem:[%s14604_s0 + $0x8] sm:$0xff]  }
 0x54c   : > { %7763 = vmatprep.mubr.bf16.mxu1 %v15186_v53  ;;  %7816 = vmatprep.mubr.bf16.mxu0 %v15186_v53 }
 0x553   : > { %11410 = vmatmul.mubr.msk.bf16.vlgmr.msra.gmra.mrb[48].mxu1 %vm818_vm0, %v13949_v44  ;;  %11412 = vmatmul.mubr.msk.bf16.vlgmr.msra.gmra.mrb[40].mxu0 %vm818_vm0, %v13949_v44  ;;  %v3122_v44 = vmul.f32 0.0625, %v14524_v48 }
 0x554   : > { %11713 = vmatpush3.bf16.msra.mxu1 %v12771_v30  ;;  %11735 = vmatpush3.bf16.msra.mxu0 %v12772_v46  ;;  %v12816_v30 = vld [vmem:[%s14604_s0 + $0x198] sm:$0xff]   ;;  %v12817_v46 = vld [vmem:[%s14604_s0 + $0x160] sm:$0xff]  }
 0x555   : > { %11714 = vmatprep.subr.bf16.mxu1 %v12773_v29  ;;  %11736 = vmatprep.subr.bf16.mxu0 %v12774_v2  ;;  %v7974_v48 = vpack.c.bf16 %v3122_v44, %v3122_v44  ;;  %v12818_v29 = vld [vmem:[%s14604_s0 + $0x1e0] sm:$0xff]   ;;  %v12825_v44 = vld [vmem:[%s14604_s0 + $0x170] sm:$0xff]  }
 0x556   : > { %7773 = vmatprep.mubr.bf16.mxu1 %v15186_v53  ;;  %7826 = vmatprep.mubr.bf16.mxu0 %v15186_v53  ;;  %v12819_v2 = vld [vmem:[%s14604_s0 + $0x120] sm:$0xff]  }
 0x558   : > { %11715 = vmatpush3.bf16.msra.mxu1 %v12775_v27  ;;  %11737 = vmatpush3.bf16.msra.mxu0 %v12776_v7  ;;  %v12820_v27 = vld [vmem:[%s14604_s0 + $0x1a0] sm:$0xff]   ;;  %v12821_v7 = vld [vmem:[%s14604_s0 + $0x168] sm:$0xff]  }
 0x559   : > { %11716 = vmatprep.subr.bf16.mxu1 %v12777_v6  ;;  %11738 = vmatprep.subr.bf16.mxu0 %v12778_v50  ;;  %v12822_v6 = vld [vmem:[%s14604_s0 + $0x1e8] sm:$0xff]  }
 0x55a   : > { %v12823_v50 = vld [vmem:[%s14604_s0 + $0x128] sm:$0xff]  }
 0x55b   : > { %11411 = vmatmul.mubr.msk.bf16.gmra.mrb[52].mxu1 %vm818_vm0, %v13945_v41  ;;  %11413 = vmatmul.mubr.msk.bf16.gmra.mrb[44].mxu0 %vm818_vm0, %v13945_v41  ;;  %v12787_v41 = vld [vmem:[%s14604_s0 + $0x20] sm:$0xff]  }
 0x55c   : > { %11717 = vmatpush3.bf16.msra.mxu1 %v12779_v21  ;;  %11739 = vmatpush3.bf16.msra.mxu0 %v12780_v31  ;;  %v12826_v21 = vld [vmem:[%s14604_s0 + $0x1f0] sm:$0xff]  }
 0x55d   : > { %9050 = vmatprep.mubr.bf16.mxu1 %v7972_v63  ;;  %9090 = vmatprep.mubr.bf16.mxu0 %v7974_v48  ;;  %v12827_v31 = vld [vmem:[%s14604_s0 + $0x130] sm:$0xff]   ;;  %v12830_v63 = vld [vmem:[%s14604_s0 + $0x1f8] sm:$0xff]  }
 0x55e   : > { %11718 = vmatprep.subr.bf16.mxu1 %v12781_v61  ;;  %11740 = vmatprep.subr.bf16.mxu0 %v12782_v58  ;;  %v12828_v61 = vld [vmem:[%s14604_s0 + $0x1b0] sm:$0xff]   ;;  %v12829_v58 = vld [vmem:[%s14604_s0 + $0x178] sm:$0xff]  }
 0x55f   : > { %v12831_v48 = vld [vmem:[%s14604_s0 + $0x138] sm:$0xff]  }
 0x560   : > { %11719 = vmatpush3.bf16.msra.mxu1 %v12783_v54  ;;  %11741 = vmatpush3.bf16.msra.mxu0 %v12784_v18  ;;  %v12832_v54 = vld [vmem:[%s14604_s0 + $0x1b8] sm:$0xff]   ;;  %v4735_v18 = vmul.f32 0.0625, %v14797_v49 }
 0x561   : > { %11720 = vmatprep.subr.bf16.mxu1 %v12785_v62  ;;  %11742 = vmatprep.subr.bf16.mxu0 %v12786_v17  ;;  %v12833_v62 = vld [vmem:[%s14604_s0 + $0x240] sm:$0xff]   ;;  %v4737_v17 = vmul.f32 0.0625, %v14800_v34 }
 0x564   : > { %11721 = vmatpush3.bf16.msra.mxu1 %v12787_v41  ;;  %11743 = vmatpush3.bf16.msra.mxu0 %v12788_v5  ;;  %v12834_v41 = vld [vmem:[%s14604_s0 + $0x2c0] sm:$0xff]   ;;  %v6237_v5 = vld [vmem:[%s13812_s27 + $0x8] sm:$0xf] }
 0x565   : > { %11722 = vmatprep.subr.bf16.mxu1 %v12789_v12  ;;  %11744 = vmatprep.subr.bf16.mxu0 %v12790_v24  ;;  %v12835_v12 = vld [vmem:[%s14604_s0 + $0x200] sm:$0xff]   ;;  %v7975_v24 = vpack.c.bf16 %v4735_v18, %v4735_v18  ;;  %v14942_v49 = vrot.slane %v6237_v5, %v14373_v8  ;;  %v14945_v34 = vrot.slane %v6237_v5, %v14376_v9 }
 0x568   : > { %11723 = vmatpush3.bf16.msra.mxu1 %v12791_v3  ;;  %11745 = vmatpush3.bf16.msra.mxu0 %v12792_v15  ;;  %v12836_v3 = vld [vmem:[%s14604_s0 + $0x280] sm:$0xff]   ;;  %v12837_v15 = vld [vmem:[%s14604_s0 + $0x248] sm:$0xff]  }
 0x569   : > { %11724 = vmatprep.subr.bf16.mxu1 %v12793_v35  ;;  %11746 = vmatprep.subr.bf16.mxu0 %v12794_v39  ;;  %v7977_v35 = vpack.c.bf16 %v4737_v17, %v4737_v17  ;;  %v12838_v39 = vld [vmem:[%s14604_s0 + $0x2c8] sm:$0xff]  }
 0x56c   : > { %11725 = vmatpush3.bf16.msra.mxu1 %v12795_v16  ;;  %11747 = vmatpush3.bf16.msra.mxu0 %v12796_v59  ;;  %v14948_v16 = vrot.slane %v6237_v5, %v14379_v10  ;;  %v14951_v59 = vrot.slane %v6237_v5, %v14386_v22 }
 0x56d   : > { %11726 = vmatprep.subr.bf16.mxu1 %v12797_v45  ;;  %11748 = vmatprep.subr.bf16.mxu0 %v12798_v40  ;;  %v12839_v45 = vld [vmem:[%s14604_s0 + $0x208] sm:$0xff]  }
 0x56e   : > { %v12840_v40 = vld [vmem:[%s14604_s0 + $0x288] sm:$0xff]  }
 0x570   : > { %11727 = vmatpush3.bf16.msra.mxu1 %v12799_v42  ;;  %11749 = vmatpush3.bf16.msra.mxu0 %v12800_v26  ;;  %v12841_v42 = vld [vmem:[%s14604_s0 + $0x250] sm:$0xff]  }
 0x571   : > { %11756 = vmatprep.subr.bf16.mxu1 %v12801_v37  ;;  %11778 = vmatprep.subr.bf16.mxu0 %v12802_v11 }
 0x573   : > { %9051 = vmatmul.mubr.bf16.vlgmr.msra.gmra.mrb[56].mxu1 %v7971_v23  ;;  %9091 = vmatmul.mubr.bf16.vlgmr.msra.gmra.mrb[48].mxu0 %v7973_v33 }
 0x574   : > { %11757 = vmatpush3.bf16.msra.mxu1 %v12803_v25  ;;  %9130 = vmatprep.mubr.bf16.mxu1 %v7976_v4  ;;  %v12843_v4 = vld [vmem:[%s14604_s0 + $0x210] sm:$0xff]  }
 0x575   : > { %11779 = vmatpush3.bf16.msra.mxu0 %v12804_v57  ;;  %9170 = vmatprep.mubr.bf16.mxu0 %v7978_v13 }
 0x576   : > { %11758 = vmatprep.subr.bf16.mxu1 %v12805_v20  ;;  %11780 = vmatprep.subr.bf16.mxu0 %v12806_v51 }
 0x578   : > { %11759 = vmatpush3.bf16.msra.mxu1 %v12807_v0 }
 0x579   : > { %11781 = vmatpush3.bf16.msra.mxu0 %v12808_v43  ;;  %11760 = vmatprep.subr.bf16.mxu1 %v12809_v52  ;;  %v12844_v43 = vld [vmem:[%s14604_s0 + $0x290] sm:$0xff]   ;;  %v12845_v52 = vld [vmem:[%s14604_s0 + $0x258] sm:$0xff]  }
 0x57a   : > { %11782 = vmatprep.subr.bf16.mxu0 %v12810_v56 }
 0x57c   : > { %11761 = vmatpush3.bf16.msra.mxu1 %v12811_v28 }
 0x57d   : > { %11783 = vmatpush3.bf16.msra.mxu0 %v12812_v60  ;;  %11762 = vmatprep.subr.bf16.mxu1 %v12813_v19  ;;  %v12846_v60 = vld [vmem:[%s14604_s0 + $0x2d8] sm:$0xff]  }
 0x57e   : > { %11784 = vmatprep.subr.bf16.mxu0 %v12814_v38 }
 0x580   : > { %11763 = vmatpush3.bf16.msra.mxu1 %v12815_v55 }
 0x581   : > { %11785 = vmatpush3.bf16.msra.mxu0 %v12816_v30  ;;  %11764 = vmatprep.subr.bf16.mxu1 %v12817_v46 }
 0x582   : > { %11786 = vmatprep.subr.bf16.mxu0 %v12818_v29 }
 0x584   : > { %11765 = vmatpush3.bf16.msra.mxu1 %v12819_v2 }
 0x585   : > { %11787 = vmatpush3.bf16.msra.mxu0 %v12820_v27  ;;  %11766 = vmatprep.subr.bf16.mxu1 %v12821_v7  ;;  %v12847_v7 = vld [vmem:[%s14604_s0 + $0x218] sm:$0xff]  }
 0x586   : > { %11788 = vmatprep.subr.bf16.mxu0 %v12822_v6 }
 0x588   : > { %11767 = vmatpush3.bf16.msra.mxu1 %v12823_v50 }
 0x589   : > { %11789 = vmatpush3.bf16.msra.mxu0 %v12824_v14  ;;  %11768 = vmatprep.subr.bf16.mxu1 %v12825_v44  ;;  %v12848_v14 = vld [vmem:[%s14604_s0 + $0x298] sm:$0xff]   ;;  %v12849_v44 = vld [vmem:[%s14604_s0 + $0x260] sm:$0xff]  }
 0x58a   : > { %11790 = vmatprep.subr.bf16.mxu0 %v12826_v21 }
 0x58c   : > { %11769 = vmatpush3.bf16.msra.mxu1 %v12827_v31 }
 0x58d   : > { %11791 = vmatpush3.bf16.msra.mxu0 %v12828_v61  ;;  %11770 = vmatprep.subr.bf16.mxu1 %v12829_v58 }
 0x58e   : > { %11792 = vmatprep.subr.bf16.mxu0 %v12830_v63  ;;  %v12850_v63 = vld [vmem:[%s14604_s0 + $0x2e0] sm:$0xff]  }
 0x590   : > { %11771 = vmatpush3.bf16.msra.mxu1 %v12831_v48 }
 0x591   : > { %11793 = vmatpush3.bf16.msra.mxu0 %v12832_v54  ;;  %11800 = vmatprep.subr.bf16.mxu1 %v12833_v62 }
 0x592   : > { %11822 = vmatprep.subr.bf16.mxu0 %v12834_v41 }
 0x593   : > { %9131 = vmatmul.mubr.bf16.vlgmr.msra.gmra.mrb[60].mxu1 %v7975_v24  ;;  %v12851_v24 = vld [vmem:[%s14604_s0 + $0x220] sm:$0xff]  }
 0x594   : > { %9171 = vmatmul.mubr.bf16.vlgmr.msra.gmra.mrb[52].mxu0 %v7977_v35  ;;  %11801 = vmatpush3.bf16.msra.mxu1 %v12835_v12 }
 0x595   : > { %11823 = vmatpush3.bf16.msra.mxu0 %v12836_v3  ;;  %11802 = vmatprep.subr.bf16.mxu1 %v12837_v15 }
 0x596   : > { %v6149_v26 = vpop.f32.mrb[40].mxu1  ;;  %v6202_v47 = vpop.f32.mrb[32].mxu0  ;;  %11824 = vmatprep.subr.bf16.mxu0 %v12838_v39 }
 0x597   : > { %v6259_v37 = vadd.f32 %v14942_v49, %v6149_v26  ;;  %v6261_v11 = vadd.f32 %v14945_v34, %v6202_v47  ;;  %v6151_v32 = vpop.f32.mrb[41].mxu1  ;;  %v6204_v36 = vpop.f32.mrb[33].mxu0  ;;  %v12854_v47 = vld [vmem:[%s14604_s0 + $0x2e8] sm:$0xff]  }
 0x598   : > { %v6260_v25 = vadd.f32 %v14948_v16, %v6151_v32  ;;  %v6262_v23 = vadd.f32 %v14951_v59, %v6204_v36  ;;  %v6153_v33 = vpop.f32.mrb[42].mxu1  ;;  %v6206_v57 = vpop.f32.mrb[34].mxu0  ;;  %11803 = vmatpush3.bf16.msra.mxu1 %v12839_v45  ;;  %v12852_v45 = vld [vmem:[%s14604_s0 + $0x2a0] sm:$0xff]  }
 0x599   : > { %v6263_v20 = vadd.f32 %v14942_v49, %v6153_v33  ;;  %v6265_v51 = vadd.f32 %v14945_v34, %v6206_v57  ;;  %v6155_v13 = vpop.f32.mrb[43].mxu1  ;;  %v6208_v0 = vpop.f32.mrb[35].mxu0  ;;  %11825 = vmatpush3.bf16.msra.mxu0 %v12840_v40  ;;  %11804 = vmatprep.subr.bf16.mxu1 %v12841_v42  ;;  %v6275_v19 = vmax.f32 %v6259_v37, 0.0  ;;  %v6277_v38 = vmax.f32 %v6261_v11, 0.0  ;;  %v12853_v40 = vld [vmem:[%s14604_s0 + $0x268] sm:$0xff]  }
 0x59a   : > { %v6264_v56 = vadd.f32 %v14948_v16, %v6155_v13  ;;  %v6266_v28 = vadd.f32 %v14951_v59, %v6208_v0  ;;  %11826 = vmatprep.subr.bf16.mxu0 %v12842_v1  ;;  %v6276_v46 = vmax.f32 %v6260_v25, 0.0  ;;  %v6278_v29 = vmax.f32 %v6262_v23, 0.0  ;;  %v12855_v57 = vld [vmem:[%s14604_s0 + $0x228] sm:$0xff]  }
 0x59b   : > { %v6279_v55 = vmax.f32 %v6263_v20, 0.0  ;;  %v6281_v30 = vmax.f32 %v6265_v51, 0.0  ;;  %v12856_v0 = vld [vmem:[%s14604_s0 + $0x2a8] sm:$0xff]  }
 0x59c   : > { %v6280_v2 = vmax.f32 %v6264_v56, 0.0  ;;  %v6282_v27 = vmax.f32 %v6266_v28, 0.0  ;;  %11805 = vmatpush3.bf16.msra.mxu1 %v12843_v4 }
 0x59d   : > { %v6291_v6 = vadd.f32 %v6279_v55, %v6275_v19  ;;  %v6305_v50 = vadd.f32 %v6281_v30, %v6277_v38  ;;  %11827 = vmatpush3.bf16.msra.mxu0 %v12844_v43  ;;  %11806 = vmatprep.subr.bf16.mxu1 %v12845_v52  ;;  %v12857_v43 = vld [vmem:[%s14604_s0 + $0x270] sm:$0xff]  }
 0x59e   : > { %v6298_v21 = vadd.f32 %v6280_v2, %v6276_v46  ;;  %v6312_v31 = vadd.f32 %v6282_v27, %v6278_v29  ;;  %v6159_v61 = vpop.f32.mrb[44].mxu1  ;;  %v6212_v58 = vpop.f32.mrb[36].mxu0  ;;  %11828 = vmatprep.subr.bf16.mxu0 %v12846_v60  ;;  %v12859_v29 = vld [vmem:[%s14604_s0 + $0x230] sm:$0xff]  }
 0x59f   : > { %v6292_v48 = vrot.slane %v6291_v6, 4  ;;  %v6306_v54 = vrot.slane %v6305_v50, 4  ;;  %v6161_v18 = vpop.f32.mrb[45].mxu1  ;;  %v6214_v62 = vpop.f32.mrb[37].mxu0  ;;  %v6267_v3 = vadd.f32 %v14942_v49, %v6159_v61  ;;  %v6269_v15 = vadd.f32 %v14945_v34, %v6212_v58 }
 0x5a0   : > { %v6299_v17 = vrot.slane %v6298_v21, 4  ;;  %v6313_v41 = vrot.slane %v6312_v31, 4  ;;  %v6163_v5 = vpop.f32.mrb[46].mxu1  ;;  %v6216_v12 = vpop.f32.mrb[38].mxu0  ;;  %11807 = vmatpush3.bf16.msra.mxu1 %v12847_v7  ;;  %v6268_v42 = vadd.f32 %v14948_v16, %v6161_v18  ;;  %v6270_v26 = vadd.f32 %v14951_v59, %v6214_v62  ;;  %v12860_v7 = vld [vmem:[%s14604_s0 + $0x2b0] sm:$0xff]   ;;  %v12863_v62 = vld [vmem:[%s14604_s0 + $0x238] sm:$0xff]  }
 0x5a1   : > { %v6165_v35 = vpop.f32.mrb[47].mxu1  ;;  %v6218_v39 = vpop.f32.mrb[39].mxu0  ;;  %11829 = vmatpush3.bf16.msra.mxu0 %v12848_v14  ;;  %11808 = vmatprep.subr.bf16.mxu1 %v12849_v44  ;;  %v6293_v1 = vadd.f32 %v6292_v48, %v6291_v6  ;;  %v6307_v37 = vadd.f32 %v6306_v54, %v6305_v50  ;;  %v6271_v11 = vadd.f32 %v14942_v49, %v6163_v5  ;;  %v6283_v4 = vmax.f32 %v6267_v3, 0.0  ;;  %v12861_v6 = vld [vmem:[%s14604_s0 + $0x278] sm:$0xff]  }
 0x5a2   : > { %11830 = vmatprep.subr.bf16.mxu0 %v12850_v63  ;;  %v6273_v32 = vadd.f32 %v14945_v34, %v6216_v12  ;;  %v6300_v36 = vadd.f32 %v6299_v17, %v6298_v21  ;;  %v6314_v25 = vadd.f32 %v6313_v41, %v6312_v31  ;;  %v6272_v23 = vadd.f32 %v14948_v16, %v6165_v35  ;;  %v12858_v16 = vld [vmem:[%s14604_s0 + $0x2f0] sm:$0xff]   ;;  %v12862_v44 = vld [vmem:[%s14604_s0 + $0x2f8] sm:$0xff]   ;;  %v12865_v12 = vld [vmem:[%s14604_s0 + $0x340] sm:$0xff]  }
 0x5a3   : > { %v6274_v33 = vadd.f32 %v14951_v59, %v6218_v39  ;;  %v6285_v20 = vmax.f32 %v6269_v15, 0.0  ;;  %v6287_v51 = vmax.f32 %v6271_v11, 0.0  ;;  %v6284_v49 = vmax.f32 %v6268_v42, 0.0  ;;  %v12864_v5 = vld [vmem:[%s14604_s0 + $0x2b8] sm:$0xff]   ;;  %v12866_v15 = vld [vmem:[%s14604_s0 + $0x3c0] sm:$0xff]  }
 0x5a4   : > { %11809 = vmatpush3.bf16.msra.mxu1 %v12851_v24  ;;  %v6289_v13 = vmax.f32 %v6273_v32, 0.0  ;;  %v6286_v34 = vmax.f32 %v6270_v26, 0.0  ;;  %v6288_v52 = vmax.f32 %v6272_v23, 0.0  ;;  %v6294_v59 = vrot.slane %v6293_v1, 2 }
 0x5a5   : > { %11831 = vmatpush3.bf16.msra.mxu0 %v12852_v45  ;;  %11810 = vmatprep.subr.bf16.mxu1 %v12853_v40  ;;  %v6290_v56 = vmax.f32 %v6274_v33, 0.0  ;;  %v6308_v28 = vrot.slane %v6307_v37, 2  ;;  %v6319_v60 = vadd.f32 %v6287_v51, %v6283_v4  ;;  %v6301_v38 = vrot.slane %v6300_v36, 2 }
 0x5a6   : > { %11832 = vmatprep.subr.bf16.mxu0 %v12854_v47  ;;  %v6333_v19 = vadd.f32 %v6289_v13, %v6285_v20  ;;  %v6315_v55 = vrot.slane %v6314_v25, 2  ;;  %v6326_v30 = vadd.f32 %v6288_v52, %v6284_v49  ;;  %v6295_v21 = vadd.f32 %v6294_v59, %v6293_v1 }
 0x5a7   : > { %v6340_v46 = vadd.f32 %v6290_v56, %v6286_v34  ;;  %v6320_v2 = vrot.slane %v6319_v60, 4  ;;  %v6309_v31 = vadd.f32 %v6308_v28, %v6307_v37  ;;  %v6302_v63 = vadd.f32 %v6301_v38, %v6300_v36  ;;  %v12868_v38 = vld [vmem:[%s14604_s0 + $0x380] sm:$0xff]  }
 0x5a8   : > { %11811 = vmatpush3.bf16.msra.mxu1 %v12855_v57  ;;  %v6334_v27 = vrot.slane %v6333_v19, 4  ;;  %v6327_v50 = vrot.slane %v6326_v30, 4  ;;  %v6316_v48 = vadd.f32 %v6315_v55, %v6314_v25  ;;  %v6296_v35 = vrot.slane %v6295_v21, 1 }
 0x5a9   : > { %11833 = vmatpush3.bf16.msra.mxu0 %v12856_v0  ;;  %11812 = vmatprep.subr.bf16.mxu1 %v12857_v43  ;;  %v6341_v14 = vrot.slane %v6340_v46, 4  ;;  %v6321_v61 = vadd.f32 %v6320_v2, %v6319_v60  ;;  %v6310_v39 = vrot.slane %v6309_v31, 1  ;;  %v6303_v42 = vrot.slane %v6302_v63, 1  ;;  %v12871_v2 = vld [vmem:[%s14604_s0 + $0x308] sm:$0xff]  }
 0x5aa   : > { %11834 = vmatprep.subr.bf16.mxu0 %v12858_v16  ;;  %v6335_v58 = vadd.f32 %v6334_v27, %v6333_v19  ;;  %v6328_v54 = vadd.f32 %v6327_v50, %v6326_v30  ;;  %v6317_v26 = vrot.slane %v6316_v48, 1  ;;  %v6297_v25 = vadd.f32 %v6296_v35, %v6295_v21  ;;  %v12867_v19 = vld [vmem:[%s14604_s0 + $0x300] sm:$0xff]   ;;  %v12872_v27 = vld [vmem:[%s14604_s0 + $0x388] sm:$0xff]   ;;  %v12875_v50 = vld [vmem:[%s14604_s0 + $0x310] sm:$0xff]  }
 0x5ab   : > { %v6342_v18 = vadd.f32 %v6341_v14, %v6340_v46  ;;  %v6322_v17 = vrot.slane %v6321_v61, 2  ;;  %v6311_v23 = vadd.f32 %v6310_v39, %v6309_v31  ;;  %v6304_v4 = vadd.f32 %v6303_v42, %v6302_v63  ;;  %v12869_v46 = vld [vmem:[%s14604_s0 + $0x348] sm:$0xff]   ;;  %v12876_v14 = vld [vmem:[%s14604_s0 + $0x390] sm:$0xff]   ;;  %v12878_v21 = vld [vmem:[%s14604_s0 + $0x3d8] sm:$0xff]  }
 0x5ac   : > { %11813 = vmatpush3.bf16.msra.mxu1 %v12859_v29  ;;  %v6336_v41 = vrot.slane %v6335_v58, 2  ;;  %v6329_v24 = vrot.slane %v6328_v54, 2  ;;  %v6318_v20 = vadd.f32 %v6317_v26, %v6316_v48  ;;  %v12870_v29 = vld [vmem:[%s14604_s0 + $0x3c8] sm:$0xff]   ;;  %v12879_v31 = vld [vmem:[%s14604_s0 + $0x318] sm:$0xff]   ;;  %v12882_v63 = vld [vmem:[%s14604_s0 + $0x3e0] sm:$0xff]  }
 0x5ad   : > { %11835 = vmatpush3.bf16.msra.mxu0 %v12860_v7  ;;  %11814 = vmatprep.subr.bf16.mxu1 %v12861_v6  ;;  %v6343_v3 = vrot.slane %v6342_v18, 2  ;;  %v6323_v45 = vadd.f32 %v6322_v17, %v6321_v61  ;;  %v12873_v7 = vld [vmem:[%s14604_s0 + $0x350] sm:$0xff]   ;;  %v12880_v61 = vld [vmem:[%s14604_s0 + $0x398] sm:$0xff]   ;;  %v12883_v48 = vld [vmem:[%s14604_s0 + $0x320] sm:$0xff]  }
 0x5ae   : > { %11836 = vmatprep.subr.bf16.mxu0 %v12862_v44  ;;  %v6337_v40 = vadd.f32 %v6336_v41, %v6335_v58  ;;  %v6330_v47 = vadd.f32 %v6329_v24, %v6328_v54  ;;  %v12874_v6 = vld [vmem:[%s14604_s0 + $0x3d0] sm:$0xff]   ;;  %v12877_v44 = vld [vmem:[%s14604_s0 + $0x358] sm:$0xff]   ;;  %v12881_v58 = vld [vmem:[%s14604_s0 + $0x360] sm:$0xff]  }
 0x5af   : > { %v6344_v1 = vadd.f32 %v6343_v3, %v6342_v18  ;;  %v6324_v37 = vrot.slane %v6323_v45, 1  ;;  %v12884_v54 = vld [vmem:[%s14604_s0 + $0x3a0] sm:$0xff]   ;;  %v12885_v18 = vld [vmem:[%s14604_s0 + $0x368] sm:$0xff]   ;;  %v12891_v24 = vld [vmem:[%s14604_s0 + $0x330] sm:$0xff]  }
 0x5b0   : > { %11815 = vmatpush3.bf16.msra.mxu1 %v12863_v62  ;;  %v6338_v11 = vrot.slane %v6337_v40, 1  ;;  %v6331_v32 = vrot.slane %v6330_v47, 1  ;;  %v12886_v62 = vld [vmem:[%s14604_s0 + $0x3e8] sm:$0xff]   ;;  %v12892_v3 = vld [vmem:[%s14604_s0 + $0x3b0] sm:$0xff]   ;;  %v12894_v35 = vld [vmem:[%s14604_s0 + $0x3f8] sm:$0xff]  }
 0x5b1   : > { %11837 = vmatpush3.bf16.msra.mxu0 %v12864_v5  ;;  %11844 = vmatprep.subr.bf16.mxu1 %v12865_v12  ;;  %v6345_v36 = vrot.slane %v6344_v1, 1  ;;  %v6325_v33 = vadd.f32 %v6324_v37, %v6323_v45  ;;  %v12887_v17 = vld [vmem:[%s14604_s0 + $0x328] sm:$0xff]   ;;  %v12889_v5 = vld [vmem:[%s14604_s0 + $0x370] sm:$0xff]   ;;  %v12895_v39 = vld [vmem:[%s14604_s0 + $0x338] sm:$0xff]  }
 0x5b2   : > { %11866 = vmatprep.subr.bf16.mxu0 %v12866_v15  ;;  %v6339_v57 = vadd.f32 %v6338_v11, %v6337_v40  ;;  %v6332_v51 = vadd.f32 %v6331_v32, %v6330_v47  ;;  %v12888_v41 = vld [vmem:[%s14604_s0 + $0x3a8] sm:$0xff]   ;;  %v12890_v12 = vld [vmem:[%s14604_s0 + $0x3f0] sm:$0xff]   ;;  %v12893_v15 = vld [vmem:[%s14604_s0 + $0x378] sm:$0xff]  }
 0x5b3   : > { %v6346_v13 = vadd.f32 %v6345_v36, %v6344_v1  ;;  %v6347_v0 = vsel %vm3114_vm1, %v6297_v25, %v6325_v33  ;;  %v12896_v45 = vld [vmem:[%s14604_s0 + $0x3b8] sm:$0xff]  }
 0x5b4   : > { %v6349_v43 = vsel %vm3114_vm1, %v6311_v23, %v6339_v57  ;;  %v6348_v49 = vsel %vm3114_vm1, %v6304_v4, %v6332_v51  ;;  %v6351_v52 = vmul.f32 0.0625, %v6347_v0  ;;  %v7853_v40 = vld [vmem:[%s13812_s27 + $0xc] sm:$0xf] }
 0x5b5   : > { %v6350_v34 = vsel %vm3114_vm1, %v6318_v20, %v6346_v13  ;;  %v6353_v56 = vmul.f32 0.0625, %v6349_v43  ;;  %v6352_v16 = vmul.f32 0.0625, %v6348_v49  ;;  %v7858_v42 = vrot.slane %v7853_v40, %v14373_v8 }
 0x5b6   : > { %v6354_v59 = vmul.f32 0.0625, %v6350_v34  ;;  %v7979_v55 = vpack.c.bf16 %v6351_v52, %v6351_v52  ;;  %v7866_v26 = vrot.slane %v7853_v40, %v14376_v9  ;;  %v7862_v47 = vrot.slane %v7853_v40, %v14379_v10 }
 0x5b7   : > { %v7980_v28 = vpack.c.bf16 %v6352_v16, %v6352_v16  ;;  %v7981_v30 = vpack.c.bf16 %v6353_v56, %v6353_v56  ;;  %v7870_v1 = vrot.slane %v7853_v40, %v14386_v22 }
 0x5b8   : > { %v7982_v60 = vpack.c.bf16 %v6354_v59, %v6354_v59 }
 0x5b9   : > { %9210 = vmatprep.mubr.bf16.mxu1 %v7980_v28 }
 0x5ba   : > { %9250 = vmatprep.mubr.bf16.mxu0 %v7982_v60  ;;  %9211 = vmatmul.mubr.bf16.vlgmr.msra.gmra.mrb[64].mxu1 %v7979_v55 }
 0x5bb   : > { %9251 = vmatmul.mubr.bf16.vlgmr.msra.gmra.mrb[56].mxu0 %v7981_v30  ;;  %11845 = vmatpush3.bf16.msra.mxu1 %v12867_v19 }
 0x5bc   : > { %11867 = vmatpush3.bf16.msra.mxu0 %v12868_v38  ;;  %11846 = vmatprep.subr.bf16.mxu1 %v12869_v46 }
 0x5bd   : > { %11868 = vmatprep.subr.bf16.mxu0 %v12870_v29 }
 0x5bf   : > { %11847 = vmatpush3.bf16.msra.mxu1 %v12871_v2 }
 0x5c0   : > { %11869 = vmatpush3.bf16.msra.mxu0 %v12872_v27  ;;  %11848 = vmatprep.subr.bf16.mxu1 %v12873_v7 }
 0x5c1   : > { %11870 = vmatprep.subr.bf16.mxu0 %v12874_v6 }
 0x5c3   : > { %11849 = vmatpush3.bf16.msra.mxu1 %v12875_v50 }
 0x5c4   : > { %11871 = vmatpush3.bf16.msra.mxu0 %v12876_v14  ;;  %11850 = vmatprep.subr.bf16.mxu1 %v12877_v44 }
 0x5c5   : > { %11872 = vmatprep.subr.bf16.mxu0 %v12878_v21 }
 0x5c7   : > { %11851 = vmatpush3.bf16.msra.mxu1 %v12879_v31 }
 0x5c8   : > { %11873 = vmatpush3.bf16.msra.mxu0 %v12880_v61  ;;  %11852 = vmatprep.subr.bf16.mxu1 %v12881_v58 }
 0x5c9   : > { %11874 = vmatprep.subr.bf16.mxu0 %v12882_v63 }
 0x5cb   : > { %11853 = vmatpush3.bf16.msra.mxu1 %v12883_v48 }
 0x5cc   : > { %11875 = vmatpush3.bf16.msra.mxu0 %v12884_v54  ;;  %11854 = vmatprep.subr.bf16.mxu1 %v12885_v18 }
 0x5cd   : > { %11876 = vmatprep.subr.bf16.mxu0 %v12886_v62 }
 0x5cf   : > { %11855 = vmatpush3.bf16.msra.mxu1 %v12887_v17 }
 0x5d0   : > { %11877 = vmatpush3.bf16.msra.mxu0 %v12888_v41  ;;  %11856 = vmatprep.subr.bf16.mxu1 %v12889_v5 }
 0x5d1   : > { %11878 = vmatprep.subr.bf16.mxu0 %v12890_v12 }
 0x5d3   : > { %11857 = vmatpush3.bf16.msra.mxu1 %v12891_v24 }
 0x5d4   : > { %11879 = vmatpush3.bf16.msra.mxu0 %v12892_v3  ;;  %11858 = vmatprep.subr.bf16.mxu1 %v12893_v15 }
 0x5d5   : > { %11880 = vmatprep.subr.bf16.mxu0 %v12894_v35 }
 0x5d7   : > { %11859 = vmatpush3.bf16.msra.mxu1 %v12895_v39 }
 0x5d8   : > { %11881 = vmatpush3.bf16.msra.mxu0 %v12896_v45 }
 0x626   : > { %v7765_v37 = vpop.f32.mrb[48].mxu1  ;;  %v7818_v11 = vpop.f32.mrb[40].mxu0 }
 0x627   : > { %v7875_v32 = vadd.f32 %v7858_v42, %v7765_v37  ;;  %v7877_v36 = vadd.f32 %v7866_v26, %v7818_v11  ;;  %v7767_v25 = vpop.f32.mrb[49].mxu1  ;;  %v7820_v23 = vpop.f32.mrb[41].mxu0 }
 0x628   : > { %v7876_v33 = vadd.f32 %v7862_v47, %v7767_v25  ;;  %v7878_v57 = vadd.f32 %v7870_v1, %v7820_v23  ;;  %v7769_v4 = vpop.f32.mrb[50].mxu1  ;;  %v7822_v20 = vpop.f32.mrb[42].mxu0 }
 0x629   : > { %v7879_v51 = vadd.f32 %v7858_v42, %v7769_v4  ;;  %v7881_v13 = vadd.f32 %v7866_v26, %v7822_v20  ;;  %v7771_v0 = vpop.f32.mrb[51].mxu1  ;;  %v7824_v43 = vpop.f32.mrb[43].mxu0  ;;  %v7891_v52 = vmax.f32 %v7875_v32, 0.0  ;;  %v7893_v56 = vmax.f32 %v7877_v36, 0.0 }
 0x62a   : > { %v7880_v49 = vadd.f32 %v7862_v47, %v7771_v0  ;;  %v7882_v34 = vadd.f32 %v7870_v1, %v7824_v43  ;;  %v7892_v28 = vmax.f32 %v7876_v33, 0.0  ;;  %v7894_v60 = vmax.f32 %v7878_v57, 0.0 }
 0x62b   : > { %v7895_v16 = vmax.f32 %v7879_v51, 0.0  ;;  %v7897_v59 = vmax.f32 %v7881_v13, 0.0 }
 0x62c   : > { %v7896_v19 = vmax.f32 %v7880_v49, 0.0  ;;  %v7898_v38 = vmax.f32 %v7882_v34, 0.0 }
 0x62d   : > { %v7907_v55 = vadd.f32 %v7895_v16, %v7891_v52  ;;  %v7921_v30 = vadd.f32 %v7897_v59, %v7893_v56 }
 0x62e   : > { %v7914_v46 = vadd.f32 %v7896_v19, %v7892_v28  ;;  %v7928_v29 = vadd.f32 %v7898_v38, %v7894_v60  ;;  %v7775_v2 = vpop.f32.mrb[52].mxu1  ;;  %v7828_v27 = vpop.f32.mrb[44].mxu0 }
 0x62f   : > { %v7908_v7 = vrot.slane %v7907_v55, 4  ;;  %v7922_v6 = vrot.slane %v7921_v30, 4  ;;  %v7777_v50 = vpop.f32.mrb[53].mxu1  ;;  %v7830_v14 = vpop.f32.mrb[45].mxu0  ;;  %v7883_v58 = vadd.f32 %v7858_v42, %v7775_v2  ;;  %v7885_v63 = vadd.f32 %v7866_v26, %v7828_v27 }
 0x630   : > { %v7915_v44 = vrot.slane %v7914_v46, 4  ;;  %v7929_v21 = vrot.slane %v7928_v29, 4  ;;  %v7779_v31 = vpop.f32.mrb[54].mxu1  ;;  %v7832_v61 = vpop.f32.mrb[46].mxu0  ;;  %v7884_v18 = vadd.f32 %v7862_v47, %v7777_v50  ;;  %v7886_v62 = vadd.f32 %v7870_v1, %v7830_v14 }
 0x631   : > { %v7781_v48 = vpop.f32.mrb[55].mxu1  ;;  %v7834_v54 = vpop.f32.mrb[47].mxu0  ;;  %v7909_v17 = vadd.f32 %v7908_v7, %v7907_v55  ;;  %v7923_v41 = vadd.f32 %v7922_v6, %v7921_v30  ;;  %v7887_v5 = vadd.f32 %v7858_v42, %v7779_v31  ;;  %v7889_v12 = vadd.f32 %v7866_v26, %v7832_v61 }
 0x632   : > { %v7916_v24 = vadd.f32 %v7915_v44, %v7914_v46  ;;  %v7930_v3 = vadd.f32 %v7929_v21, %v7928_v29  ;;  %v7888_v15 = vadd.f32 %v7862_v47, %v7781_v48  ;;  %v7890_v35 = vadd.f32 %v7870_v1, %v7834_v54 }
 0x633   : > { %v7899_v39 = vmax.f32 %v7883_v58, 0.0  ;;  %v7901_v45 = vmax.f32 %v7885_v63, 0.0  ;;  %v7903_v40 = vmax.f32 %v7887_v5, 0.0  ;;  %v7905_v37 = vmax.f32 %v7889_v12, 0.0 }
 0x634   : > { %v7900_v11 = vmax.f32 %v7884_v18, 0.0  ;;  %v7902_v32 = vmax.f32 %v7886_v62, 0.0  ;;  %v7904_v36 = vmax.f32 %v7888_v15, 0.0  ;;  %v7906_v25 = vmax.f32 %v7890_v35, 0.0 }
 0x635   : > { %v7910_v23 = vrot.slane %v7909_v17, 2  ;;  %v7924_v33 = vrot.slane %v7923_v41, 2  ;;  %v7935_v57 = vadd.f32 %v7903_v40, %v7899_v39  ;;  %v7949_v4 = vadd.f32 %v7905_v37, %v7901_v45  ;;  %v11414_v45 = vld [vmem:[%s572_s6] ss:$0 sm:$0xff] }
 0x636   : > { %v7917_v20 = vrot.slane %v7916_v24, 2  ;;  %v7931_v51 = vrot.slane %v7930_v3, 2  ;;  %v7942_v42 = vadd.f32 %v7904_v36, %v7900_v11  ;;  %v7956_v26 = vadd.f32 %v7906_v25, %v7902_v32 }
 0x637   : > { %v7936_v13 = vrot.slane %v7935_v57, 4  ;;  %v7950_v0 = vrot.slane %v7949_v4, 4  ;;  %v7911_v43 = vadd.f32 %v7910_v23, %v7909_v17  ;;  %v7925_v49 = vadd.f32 %v7924_v33, %v7923_v41 }
 0x638   : > { %v7943_v47 = vrot.slane %v7942_v42, 4  ;;  %v7957_v1 = vrot.slane %v7956_v26, 4  ;;  %v7918_v56 = vadd.f32 %v7917_v20, %v7916_v24  ;;  %v7932_v16 = vadd.f32 %v7931_v51, %v7930_v3 }
 0x639   : > { %v7937_v34 = vadd.f32 %v7936_v13, %v7935_v57  ;;  %v7951_v52 = vadd.f32 %v7950_v0, %v7949_v4  ;;  %v7912_v30 = vrot.slane %v7911_v43, 1  ;;  %v7926_v46 = vrot.slane %v7925_v49, 1 }
 0x63a   : > { %v7944_v59 = vadd.f32 %v7943_v47, %v7942_v42  ;;  %v7958_v28 = vadd.f32 %v7957_v1, %v7956_v26  ;;  %v7919_v27 = vrot.slane %v7918_v56, 1  ;;  %v7933_v7 = vrot.slane %v7932_v16, 1 }
 0x63b   : > { %v7938_v60 = vrot.slane %v7937_v34, 2  ;;  %v7952_v19 = vrot.slane %v7951_v52, 2  ;;  %v7913_v61 = vadd.f32 %v7912_v30, %v7911_v43  ;;  %v7927_v58 = vadd.f32 %v7926_v46, %v7925_v49 }
 0x63c   : > { %v7945_v38 = vrot.slane %v7944_v59, 2  ;;  %v7959_v55 = vrot.slane %v7958_v28, 2  ;;  %v7920_v54 = vadd.f32 %v7919_v27, %v7918_v56  ;;  %v7934_v18 = vadd.f32 %v7933_v7, %v7932_v16 }
 0x63d   : > { %v7939_v29 = vadd.f32 %v7938_v60, %v7937_v34  ;;  %v7953_v2 = vadd.f32 %v7952_v19, %v7951_v52 }
 0x63e   : > { %v7946_v6 = vadd.f32 %v7945_v38, %v7944_v59  ;;  %v7960_v50 = vadd.f32 %v7959_v55, %v7958_v28 }
 0x63f   : > { %v7940_v14 = vrot.slane %v7939_v29, 1  ;;  %v7954_v44 = vrot.slane %v7953_v2, 1 }
 0x640   : > { %v7947_v21 = vrot.slane %v7946_v6, 1  ;;  %v7961_v31 = vrot.slane %v7960_v50, 1 }
 0x641   : > { %v7941_v63 = vadd.f32 %v7940_v14, %v7939_v29  ;;  %v7955_v48 = vadd.f32 %v7954_v44, %v7953_v2  ;;  %v12899_v44 = vld [vmem:[%s13815_s18 + $0x4] ss:$16 sps:$4 sm:$0xff]  }
 0x642   : > { %v7948_v62 = vadd.f32 %v7947_v21, %v7946_v6  ;;  %v7962_v17 = vadd.f32 %v7961_v31, %v7960_v50  ;;  %v12902_v21 = vld [vmem:[%s13815_s18 + $0xc] ss:$16 sps:$4 sm:$0xff]   ;;  %v12897_v31 = vld [vmem:[%s13815_s18] ss:$16 sps:$4 sm:$0xff]   ;;  %9418 = vmatprep.subr.bf16.mxu1 %v12899_v44 }
 0x643   : > { %v7963_v41 = vsel %vm3114_vm1, %v7913_v61, %v7941_v63  ;;  %v7965_v5 = vsel %vm3114_vm1, %v7927_v58, %v7955_v48  ;;  %v12900_v61 = vld [vmem:[%s13815_s18 + $0x8] ss:$16 sps:$4 sm:$0xff]   ;;  %9459 = vmatprep.subr.bf16.mxu0 %v12902_v21  ;;  %v12905_v58 = vld [vmem:[%s13815_s18 + $0x24] ss:$16 sps:$4 sm:$0xff]   ;;  %v12908_v63 = vld [vmem:[%s13815_s18 + $0x2c] ss:$16 sps:$4 sm:$0xff]  }
 0x644   : > { %v7964_v3 = vsel %vm3114_vm1, %v7920_v54, %v7948_v62  ;;  %v7966_v15 = vsel %vm3114_vm1, %v7934_v18, %v7962_v17  ;;  %v7967_v35 = vmul.f32 0.0625, %v7963_v41  ;;  %v7969_v39 = vmul.f32 0.0625, %v7965_v5  ;;  %v12903_v48 = vld [vmem:[%s13815_s18 + $0x20] ss:$16 sps:$4 sm:$0xff]   ;;  %v12906_v54 = vld [vmem:[%s13815_s18 + $0x28] ss:$16 sps:$4 sm:$0xff]  }
 0x645   : > { %v7968_v11 = vmul.f32 0.0625, %v7964_v3  ;;  %v7970_v32 = vmul.f32 0.0625, %v7966_v15  ;;  %v12921_v44 = vld [vmem:[#allocation12 + $0x10] sm:$0xff] (!%p11556_p4)  }
 0x646   : > { %v11728_v12 = vpop.f32.mrb[56].mxu1  ;;  %v11750_v24 = vpop.f32.mrb[48].mxu0  ;;  %v7983_v26 = vpack.c.bf16 %v7967_v35, %v7967_v35  ;;  %v7985_v13 = vpack.c.bf16 %v7969_v39, %v7969_v39  ;;  %v12922_v21 = vld [vmem:[#allocation12 + $0x90] sm:$0xff] (!%p11556_p4)  }
 0x647   : > { %v11729_v40 = vpop.f32.mrb[57].mxu1  ;;  %v11751_v37 = vpop.f32.mrb[49].mxu0  ;;  %v7984_v20 = vpack.c.bf16 %v7968_v11, %v7968_v11  ;;  %v7986_v51 = vpack.c.bf16 %v7970_v32, %v7970_v32 }
 0x648   : > { %v11730_v36 = vadd.f32 %v11729_v40, %v11728_v12  ;;  %v11752_v25 = vadd.f32 %v11751_v37, %v11750_v24  ;;  %v11731_v23 = vpop.f32.mrb[58].mxu1  ;;  %v11753_v33 = vpop.f32.mrb[50].mxu0 }
 0x649   : > { %v11732_v57 = vpop.f32.mrb[59].mxu1  ;;  %v11754_v4 = vpop.f32.mrb[51].mxu0  ;;  %9290 = vmatprep.mubr.bf16.mxu1 %v7984_v20  ;;  %9330 = vmatprep.mubr.bf16.mxu0 %v7986_v51  ;;  %v9353_v23 = vld [vmem:[%s13817_s25] sm:$0xf]  ;;  %v13380_v33 = vmov 1983009808  }
 0x64a   : > { %v9053_v42 = vadd.f32 %v11730_v36, %v11414_v45  ;;  %9291 = vmatmul.mubr.bf16.vlgmr.msra.gmra.mrb[68].mxu1 %v7983_v26  ;;  %9331 = vmatmul.mubr.bf16.vlgmr.msra.gmra.mrb[60].mxu0 %v7985_v13  ;;  %v9507_v57 = vunpack.c.l.s4 %v13380_v33  ;;  %v9358_v4 = vrot.slane %v9353_v23, %v14373_v8  ;;  %v9366_v20 = vrot.slane %v9353_v23, %v14376_v9 }
 0x64b   : > { %9450 = vmatprep.mubr.bf16.mxu1 %v15186_v53  ;;  %9491 = vmatprep.mubr.bf16.mxu0 %v15186_v53  ;;  %v9362_v51 = vrot.slane %v9353_v23, %v14379_v10  ;;  %v9370_v26 = vrot.slane %v9353_v23, %v14386_v22  ;;  %v12944_v23 = vld [vmem:[#allocation12 + $0x1c0] sm:$0xff] (!%p11556_p4)  }
 0x64c   : > { %v9093_v0 = vadd.f32 %v11752_v25, %v9053_v42  ;;  %9419 = vmatpush1.bf16.msra.mxu1 %v12897_v31  ;;  %9460 = vmatpush1.bf16.msra.mxu0 %v12900_v61  ;;  %v9508_v42 = vunpack.c.0.s8 %v9507_v57  ;;  %v12923_v31 = vld [vmem:[#allocation12 + $0x58] sm:$0xff] (!%p11556_p4)  }
 0x64d   : > { %9420 = vmatprep.subr.bf16.mxu1 %v12905_v58  ;;  %9461 = vmatprep.subr.bf16.mxu0 %v12908_v63  ;;  %v12924_v61 = vld [vmem:[#allocation12 + $0xd8] sm:$0xff] (!%p11556_p4)  }
 0x64e   : > { %v12925_v58 = vld [vmem:[#allocation12 + $0x18] sm:$0xff] (!%p11556_p4)  }
 0x64f   : > { %v12926_v63 = vld [vmem:[#allocation12 + $0x98] sm:$0xff] (!%p11556_p4)  }
 0x650   : > { %9421 = vmatpush1.bf16.msra.mxu1 %v12903_v48  ;;  %9462 = vmatpush1.bf16.msra.mxu0 %v12906_v54  ;;  %v12927_v48 = vld [vmem:[#allocation12 + $0x60] sm:$0xff] (!%p11556_p4)  }
 0x651   : > { %v12928_v54 = vld [vmem:[#allocation12 + $0xe0] sm:$0xff] (!%p11556_p4)  }
 0x666   : > { %v11772_v47 = vpop.f32.mrb[60].mxu1 }
 0x667   : > { %v11794_v1 = vpop.f32.mrb[52].mxu0  ;;  %v11773_v43 = vpop.f32.mrb[61].mxu1 }
 0x668   : > { %v11774_v49 = vadd.f32 %v11773_v43, %v11772_v47  ;;  %v11795_v34 = vpop.f32.mrb[53].mxu0  ;;  %v11775_v52 = vpop.f32.mrb[62].mxu1 }
 0x669   : > { %v11796_v56 = vadd.f32 %v11795_v34, %v11794_v1  ;;  %v11797_v16 = vpop.f32.mrb[54].mxu0  ;;  %v11776_v59 = vpop.f32.mrb[63].mxu1  ;;  %v15189_v52 = vld [vmem:[#allocation27_spill] sm:$0xff] }
 0x66a   : > { %v9133_v28 = vadd.f32 %v11774_v49, %v9093_v0  ;;  %v11798_v60 = vpop.f32.mrb[55].mxu0 }
 0x66c   : > { %v9173_v19 = vadd.f32 %v11796_v56, %v9133_v28  ;;  %v15060_v56 = vsub.s32 %v9508_v42, %v15189_v52  ;;  %v12949_v52 = vld [vmem:[#allocation12 + $0x108] sm:$0xff] (!%p11556_p4)  }
 0x68d   : > { %v11816_v38 = vpop.f32.mrb[64].mxu1 }
 0x68e   : > { %v11838_v55 = vpop.f32.mrb[56].mxu0  ;;  %v11817_v30 = vpop.f32.mrb[65].mxu1 }
 0x68f   : > { %v11839_v53 = vpop.f32.mrb[57].mxu0  ;;  %v11818_v46 = vadd.f32 %v11817_v30, %v11816_v38  ;;  %v11819_v2 = vpop.f32.mrb[66].mxu1  ;;  %v12911_v30 = vld [vmem:[#allocation12 + $0x40] sm:$0xff] (!%p11556_p4)  }
 0x690   : > { %v11840_v29 = vadd.f32 %v11839_v53, %v11838_v55  ;;  %v11841_v27 = vpop.f32.mrb[58].mxu0  ;;  %v11820_v7 = vpop.f32.mrb[67].mxu1  ;;  %v12912_v53 = vld [vmem:[#allocation12 + $0xc0] sm:$0xff] (!%p11556_p4)   ;;  %11888 = vmatprep.subr.bf16.mxu0 (!%p11556_p4), %v12911_v30  ;;  %v12915_v2 = vld [vmem:[#allocation12 + $0x48] sm:$0xff] (!%p11556_p4)  }
 0x691   : > { %v11842_v6 = vpop.f32.mrb[59].mxu0  ;;  %v9213_v50 = vadd.f32 %v11818_v46, %v9173_v19  ;;  %v12913_v46 = vld [vmem:[#allocation12] sm:$0xff] (!%p11556_p4)   ;;  %11910 = vmatprep.subr.bf16.mxu1 (!%p11556_p4), %v12912_v53  ;;  %v12916_v27 = vld [vmem:[#allocation12 + $0xc8] sm:$0xff] (!%p11556_p4)  }
 0x692   : > { %v12917_v7 = vld [vmem:[#allocation12 + $0x8] sm:$0xff] (!%p11556_p4)   ;;  %v12960_v30 = vld [vmem:[#allocation12 + $0x1e0] sm:$0xff] (!%p11556_p4)  }
 0x693   : > { %v9253_v14 = vadd.f32 %v11840_v29, %v9213_v50  ;;  %v12914_v29 = vld [vmem:[#allocation12 + $0x80] sm:$0xff] (!%p11556_p4)   ;;  %v12918_v6 = vld [vmem:[#allocation12 + $0x88] sm:$0xff] (!%p11556_p4)   ;;  %v12919_v50 = vld [vmem:[#allocation12 + $0x50] sm:$0xff] (!%p11556_p4)  }
 0x694   : > { %v12961_v53 = vld [vmem:[#allocation12 + $0x120] sm:$0xff] (!%p11556_p4)  }
 0x71d   : > { %v11860_v18 = vpop.f32.mrb[68].mxu1  ;;  %v11882_v62 = vpop.f32.mrb[60].mxu0 }
 0x71e   : > { %v11861_v17 = vpop.f32.mrb[69].mxu1  ;;  %v11883_v41 = vpop.f32.mrb[61].mxu0 }
 0x71f   : > { %v11862_v5 = vadd.f32 %v11861_v17, %v11860_v18  ;;  %v11884_v12 = vadd.f32 %v11883_v41, %v11882_v62  ;;  %v11863_v24 = vpop.f32.mrb[70].mxu1  ;;  %v11885_v3 = vpop.f32.mrb[62].mxu0  ;;  %v12929_v18 = vld [vmem:[#allocation12 + $0x20] sm:$0xff] (!%p11556_p4)   ;;  %v12931_v17 = vld [vmem:[#allocation12 + $0x68] sm:$0xff] (!%p11556_p4)  }
 0x720   : > { %v11864_v15 = vpop.f32.mrb[71].mxu1  ;;  %v11886_v35 = vpop.f32.mrb[63].mxu0  ;;  %v12930_v62 = vld [vmem:[#allocation12 + $0xa0] sm:$0xff] (!%p11556_p4)   ;;  %v12932_v41 = vld [vmem:[#allocation12 + $0xe8] sm:$0xff] (!%p11556_p4)   ;;  %v12935_v24 = vld [vmem:[#allocation12 + $0x70] sm:$0xff] (!%p11556_p4)  }
 0x721   : > { %v9293_v39 = vadd.f32 %v11862_v5, %v9253_v14  ;;  %v12920_v14 = vld [vmem:[#allocation12 + $0xd0] sm:$0xff] (!%p11556_p4)   ;;  %v12933_v5 = vld [vmem:[#allocation12 + $0x28] sm:$0xff] (!%p11556_p4)  }
 0x722   : > { %v12936_v3 = vld [vmem:[#allocation12 + $0xf0] sm:$0xff] (!%p11556_p4)  }
 0x723   : > { %v9333_v45 = vadd.f32 %v11884_v12, %v9293_v39  ;;  %v12934_v12 = vld [vmem:[#allocation12 + $0xa8] sm:$0xff] (!%p11556_p4)   ;;  %v12937_v15 = vld [vmem:[#allocation12 + $0x30] sm:$0xff] (!%p11556_p4)   ;;  %v12939_v39 = vld [vmem:[#allocation12 + $0x78] sm:$0xff] (!%p11556_p4)  }
 0x724   : > { %v12938_v35 = vld [vmem:[#allocation12 + $0xb0] sm:$0xff] (!%p11556_p4)  }
 0x725   : > { %v9339_v40 = vmin.f32 %v9333_v45, 0.0  ;;  %vm9338_vm2 = vcmp.gt.f32.partialorder %v9333_v45, 0.0 }
 0x727   : > { %v9340_v37 = vmul.f32 1.442695, %v9339_v40  ;;  %v12941_v40 = vld [vmem:[#allocation12 + $0x38] sm:$0xff] (!%p11556_p4)  }
 0x729   : > { %12909 = vpow2.f32 %v9340_v37  ;;  %v12942_v37 = vld [vmem:[#allocation12 + $0xb8] sm:$0xff] (!%p11556_p4)  }
 0x733   : > { %v12910_v11 = vpop.eup %12909 }
 0x734   : > { %v11543_v32 = vadd.f32 -1.0, %v12910_v11 }
 0x736   : > { %v9343_v36 = vsel %vm9338_vm2, %v9333_v45, %v11543_v32  ;;  %v12940_v45 = vld [vmem:[#allocation12 + $0xf8] sm:$0xff] (!%p11556_p4)  }
 0x737   : > { %v9344_v25 = vpack.c.bf16 %v9343_v36, %v9343_v36 }
 0x739   : > { %11552 = vmatmul.mubr.msk.bf16.vlgmr.msra.gmra.mrb[72].mxu1 %vm818_vm0, %v9344_v25  ;;  %11553 = vmatmul.mubr.msk.bf16.vlgmr.msra.gmra.mrb[64].mxu0 %vm818_vm0, %v9344_v25  ;;  %v12943_v25 = vld [vmem:[#allocation12 + $0x140] sm:$0xff] (!%p11556_p4)  }
 0x73a   : > { %11889 = vmatpush3.bf16.msra.mxu0 (!%p11556_p4), %v12913_v46  ;;  %11911 = vmatpush3.bf16.msra.mxu1 (!%p11556_p4), %v12914_v29  ;;  %v12963_v46 = vld [vmem:[#allocation12 + $0x168] sm:$0xff] (!%p11556_p4)   ;;  %v12962_v29 = vld [vmem:[#allocation12 + $0x1a0] sm:$0xff] (!%p11556_p4)  }
 0x73b   : > { %11890 = vmatprep.subr.bf16.mxu0 (!%p11556_p4), %v12915_v2  ;;  %11912 = vmatprep.subr.bf16.mxu1 (!%p11556_p4), %v12916_v27  ;;  %v12964_v2 = vld [vmem:[#allocation12 + $0x1e8] sm:$0xff] (!%p11556_p4)  }
 0x73c   : > { %v12965_v27 = vld [vmem:[#allocation12 + $0x128] sm:$0xff] (!%p11556_p4)  }
 0x73e   : > { %11891 = vmatpush3.bf16.msra.mxu0 (!%p11556_p4), %v12917_v7  ;;  %11913 = vmatpush3.bf16.msra.mxu1 (!%p11556_p4), %v12918_v6  ;;  %v12967_v7 = vld [vmem:[#allocation12 + $0x170] sm:$0xff] (!%p11556_p4)   ;;  %v12966_v6 = vld [vmem:[#allocation12 + $0x1a8] sm:$0xff] (!%p11556_p4)  }
 0x73f   : > { %11892 = vmatprep.subr.bf16.mxu0 (!%p11556_p4), %v12919_v50  ;;  %11914 = vmatprep.subr.bf16.mxu1 (!%p11556_p4), %v12920_v14  ;;  %v12968_v50 = vld [vmem:[#allocation12 + $0x1f0] sm:$0xff] (!%p11556_p4)  }
 0x742   : > { %11893 = vmatpush3.bf16.msra.mxu0 (!%p11556_p4), %v12921_v44  ;;  %11915 = vmatpush3.bf16.msra.mxu1 (!%p11556_p4), %v12922_v21  ;;  %v12969_v44 = vld [vmem:[#allocation12 + $0x130] sm:$0xff] (!%p11556_p4)  }
 0x743   : > { %11894 = vmatprep.subr.bf16.mxu0 (!%p11556_p4), %v12923_v31  ;;  %11916 = vmatprep.subr.bf16.mxu1 (!%p11556_p4), %v12924_v61  ;;  %v12971_v31 = vld [vmem:[#allocation12 + $0x178] sm:$0xff] (!%p11556_p4)   ;;  %v12970_v61 = vld [vmem:[#allocation12 + $0x1b0] sm:$0xff] (!%p11556_p4)  }
 0x746   : > { %11895 = vmatpush3.bf16.msra.mxu0 (!%p11556_p4), %v12925_v58  ;;  %11917 = vmatpush3.bf16.msra.mxu1 (!%p11556_p4), %v12926_v63 }
 0x747   : > { %11896 = vmatprep.subr.bf16.mxu0 (!%p11556_p4), %v12927_v48  ;;  %11918 = vmatprep.subr.bf16.mxu1 (!%p11556_p4), %v12928_v54  ;;  %v12972_v48 = vld [vmem:[#allocation12 + $0x1f8] sm:$0xff] (!%p11556_p4)  }
 0x748   : > { %v12973_v54 = vld [vmem:[#allocation12 + $0x138] sm:$0xff] (!%p11556_p4)  }
 0x74a   : > { %11897 = vmatpush3.bf16.msra.mxu0 (!%p11556_p4), %v12929_v18  ;;  %11919 = vmatpush3.bf16.msra.mxu1 (!%p11556_p4), %v12930_v62 }
 0x74b   : > { %11898 = vmatprep.subr.bf16.mxu0 (!%p11556_p4), %v12931_v17  ;;  %11920 = vmatprep.subr.bf16.mxu1 (!%p11556_p4), %v12932_v41  ;;  %v12975_v17 = vld [vmem:[#allocation12 + $0x240] sm:$0xff] (!%p11556_p4)   ;;  %v12974_v41 = vld [vmem:[#allocation12 + $0x1b8] sm:$0xff] (!%p11556_p4)  }
 0x74e   : > { %11899 = vmatpush3.bf16.msra.mxu0 (!%p11556_p4), %v12933_v5  ;;  %11921 = vmatpush3.bf16.msra.mxu1 (!%p11556_p4), %v12934_v12 }
 0x74f   : > { %11900 = vmatprep.subr.bf16.mxu0 (!%p11556_p4), %v12935_v24  ;;  %11922 = vmatprep.subr.bf16.mxu1 (!%p11556_p4), %v12936_v3  ;;  %v12976_v3 = vld [vmem:[#allocation12 + $0x2c0] sm:$0xff] (!%p11556_p4)  }
 0x752   : > { %11901 = vmatpush3.bf16.msra.mxu0 (!%p11556_p4), %v12937_v15  ;;  %11923 = vmatpush3.bf16.msra.mxu1 (!%p11556_p4), %v12938_v35  ;;  %v12977_v35 = vld [vmem:[#allocation12 + $0x200] sm:$0xff] (!%p11556_p4)  }
 0x753   : > { %11902 = vmatprep.subr.bf16.mxu0 (!%p11556_p4), %v12939_v39  ;;  %11924 = vmatprep.subr.bf16.mxu1 (!%p11556_p4), %v12940_v45  ;;  %v12979_v45 = vld [vmem:[#allocation12 + $0x248] sm:$0xff] (!%p11556_p4)  }
 0x756   : > { %11903 = vmatpush3.bf16.msra.mxu0 (!%p11556_p4), %v12941_v40  ;;  %11925 = vmatpush3.bf16.msra.mxu1 (!%p11556_p4), %v12942_v37  ;;  %v12978_v40 = vld [vmem:[#allocation12 + $0x280] sm:$0xff] (!%p11556_p4)   ;;  %v12980_v37 = vld [vmem:[#allocation12 + $0x2c8] sm:$0xff] (!%p11556_p4)  }
 0x757   : > { %11932 = vmatprep.subr.bf16.mxu0 (!%p11556_p4), %v12943_v25  ;;  %11954 = vmatprep.subr.bf16.mxu1 (!%p11556_p4), %v12944_v23  ;;  %v12984_v25 = vld [vmem:[#allocation12 + $0x2d0] sm:$0xff] (!%p11556_p4)  }
 0x758   : > { %v12985_v23 = vld [vmem:[#allocation12 + $0x210] sm:$0xff] (!%p11556_p4)  }
 0x80c   : > { %v9452_v13 = vpop.f32.mrb[72].mxu1  ;;  %v9493_v0 = vpop.f32.mrb[64].mxu0 }
 0x80d   : > { %v9453_v47 = vadd.f32 %v9452_v13, %v9358_v4  ;;  %v9494_v1 = vadd.f32 %v9493_v0, %v9366_v20  ;;  %v9454_v43 = vpop.f32.mrb[73].mxu1  ;;  %v9495_v49 = vpop.f32.mrb[65].mxu0  ;;  %v12945_v0 = vld [vmem:[#allocation12 + $0x100] sm:$0xff] (!%p11556_p4)  }
 0x80e   : > { %v9455_v34 = vadd.f32 %v9454_v43, %v9362_v51  ;;  %v9496_v16 = vadd.f32 %v9495_v49, %v9370_v26  ;;  %v9456_v59 = vpop.f32.mrb[74].mxu1  ;;  %v9497_v28 = vpop.f32.mrb[66].mxu0  ;;  %v12946_v49 = vld [vmem:[#allocation12 + $0x180] sm:$0xff] (!%p11556_p4)  }
 0x80f   : > { %v9457_v9 = vpop.f32.mrb[75].mxu1  ;;  %v9498_v60 = vpop.f32.mrb[67].mxu0  ;;  %v12950_v59 = vld [vmem:[#allocation12 + $0x188] sm:$0xff] (!%p11556_p4)   ;;  %v12952_v28 = vld [vmem:[#allocation12 + $0x1d0] sm:$0xff] (!%p11556_p4)  }
 0x810   : > { %v9504_v10 = vcombine.low %v9453_v47, %v9455_v34  ;;  %v9505_v19 = vcombine.low %v9494_v1, %v9496_v16  ;;  %9529 = sbr.rel (%p11556_p4) target bundleno = 2407 (0x967), region = 112  ;;  %v12947_v1 = vld [vmem:[#allocation12 + $0x148] sm:$0xff] (!%p11556_p4)   ;;  %v12951_v16 = vld [vmem:[#allocation12 + $0x150] sm:$0xff] (!%p11556_p4)   ;;  %v12955_v60 = vld [vmem:[#allocation12 + $0x158] sm:$0xff] (!%p11556_p4)  }
 0x811   : > { %v12948_v34 = vld [vmem:[#allocation12 + $0x1c8] sm:$0xff] (!%p11556_p4)   ;;  %v12953_v9 = vld [vmem:[#allocation12 + $0x110] sm:$0xff] (!%p11556_p4)  }
 0x812   : > { %v9512_v22 = vrot.slane %v9504_v10, %v15060_v56  ;;  %v9519_v38 = vrot.slane %v9505_v19, %v15060_v56  ;;  %v12954_v10 = vld [vmem:[#allocation12 + $0x190] sm:$0xff] (!%p11556_p4)   ;;  %v12956_v19 = vld [vmem:[#allocation12 + $0x1d8] sm:$0xff] (!%p11556_p4)  }
 0x814   : > { %v9520_v55 = vcombine.low %v9512_v22, %v9519_v38  ;;  %v12957_v22 = vld [vmem:[#allocation12 + $0x118] sm:$0xff] (!%p11556_p4)   ;;  %v12959_v38 = vld [vmem:[#allocation12 + $0x160] sm:$0xff] (!%p11556_p4)  }
 0x816   : > { %9525 = vst [vmem:[%s9524_s23] sm:$0xff] %v9520_v55  ;;  %v12958_v55 = vld [vmem:[#allocation12 + $0x198] sm:$0xff] (!%p11556_p4)  }
 0x81d   : > { %v9530_v11 = vld [vmem:[#allocation2] sm:$0xff]  ;;  %v9532_v32 = vld [vmem:[#allocation2 + $0x8] sm:$0xff]  ;;  %v9536_v14 = vld [vmem:[#allocation2 + $0x10] sm:$0xff] }
 0x81e   : > { %v9533_v36 = vadd.f32 %v9532_v32, %v9530_v11  ;;  %v9537_v21 = vmax.f32 %v9536_v14, 0.0  ;;  %v12981_v11 = vld [vmem:[#allocation12 + $0x208] sm:$0xff]   ;;  %v12983_v32 = vld [vmem:[#allocation12 + $0x250] sm:$0xff]  }
 0x820   : > { %v9534_v33 = vmax.f32 %v9533_v36, 0.0  ;;  %v9938_v58 = vrot.slane %v9537_v21, %v15060_v56  ;;  %v9931_v63 = vcombine.high %v9537_v21, %v9537_v21  ;;  %v12982_v36 = vld [vmem:[#allocation12 + $0x288] sm:$0xff]  }
 0x822   : > { %v9549_v57 = vrot.slane %v9534_v33, %v15060_v56  ;;  %v9542_v4 = vcombine.high %v9534_v33, %v9534_v33  ;;  %v9946_v18 = vcombine.high %v9938_v58, %v9938_v58  ;;  %v9945_v62 = vrot.slane %v9931_v63, %v15060_v56  ;;  %v12987_v33 = vld [vmem:[#allocation12 + $0x258] sm:$0xff]  }
 0x823   : > { %v9952_v24 = vpack.c.bf16 %v9938_v58, %v9938_v58 }
 0x824   : > { %v9557_v20 = vcombine.high %v9549_v57, %v9549_v57  ;;  %v9556_v51 = vrot.slane %v9542_v4, %v15060_v56  ;;  %v9563_v42 = vpack.c.bf16 %v9549_v57, %v9549_v57  ;;  %v9953_v5 = vpack.c.bf16 %v9946_v18, %v9946_v18  ;;  %v12986_v57 = vld [vmem:[#allocation12 + $0x290] sm:$0xff]   ;;  %v12988_v4 = vld [vmem:[#allocation12 + $0x2d8] sm:$0xff]  }
 0x825   : > { %v9947_v12 = vcombine.high %v9945_v62, %v9945_v62  ;;  %v9954_v39 = vpack.c.bf16 %v9945_v62, %v9945_v62 }
 0x826   : > { %v9564_v26 = vpack.c.bf16 %v9557_v20, %v9557_v20  ;;  %v9558_v13 = vcombine.high %v9556_v51, %v9556_v51  ;;  %v9565_v47 = vpack.c.bf16 %v9556_v51, %v9556_v51  ;;  %v12989_v20 = vld [vmem:[#allocation12 + $0x218] sm:$0xff]   ;;  %v12991_v51 = vld [vmem:[#allocation12 + $0x260] sm:$0xff]  }
 0x827   : > { %v9955_v15 = vpack.c.bf16 %v9947_v12, %v9947_v12 }
 0x828   : > { %9862 = vmatprep.mubr.bf16.mxu0 %v9564_v26  ;;  %v9566_v43 = vpack.c.bf16 %v9558_v13, %v9558_v13  ;;  %v12992_v26 = vld [vmem:[#allocation12 + $0x2e0] sm:$0xff]  }
 0x829   : > { %9863 = vmatmul.mubr.bf16.vlgmr.msra.gmra.mrb[0].mxu0 %v9563_v42  ;;  %v12990_v42 = vld [vmem:[#allocation12 + $0x298] sm:$0xff]   ;;  %v12993_v13 = vld [vmem:[#allocation12 + $0x220] sm:$0xff]  }
 0x82a   : > { %9902 = vmatprep.mubr.bf16.mxu1 %v9566_v43  ;;  %11933 = vmatpush3.bf16.msra.mxu0 %v12945_v0  ;;  %v12995_v0 = vld [vmem:[#allocation12 + $0x268] sm:$0xff]  }
 0x82b   : > { %9903 = vmatmul.mubr.bf16.vlgmr.msra.gmra.mrb[0].mxu1 %v9565_v47  ;;  %11934 = vmatprep.subr.bf16.mxu0 %v12947_v1  ;;  %v12994_v47 = vld [vmem:[#allocation12 + $0x2a0] sm:$0xff]   ;;  %v12996_v1 = vld [vmem:[#allocation12 + $0x2e8] sm:$0xff]  }
 0x82c   : > { %11955 = vmatpush3.bf16.msra.mxu1 %v12946_v49  ;;  %10253 = vmatprep.mubr.bf16.mxu0 %v9953_v5  ;;  %v12997_v43 = vld [vmem:[#allocation12 + $0x228] sm:$0xff]   ;;  %v12999_v49 = vld [vmem:[#allocation12 + $0x270] sm:$0xff]  }
 0x82d   : > { %11956 = vmatprep.subr.bf16.mxu1 %v12948_v34  ;;  %10293 = vmatprep.mubr.bf16.mxu1 %v9955_v15  ;;  %v12998_v34 = vld [vmem:[#allocation12 + $0x2a8] sm:$0xff]  }
 0x82e   : > { %11935 = vmatpush3.bf16.msra.mxu0 %v12949_v52  ;;  %v13000_v52 = vld [vmem:[#allocation12 + $0x2f0] sm:$0xff]  }
 0x82f   : > { %11936 = vmatprep.subr.bf16.mxu0 %v12951_v16  ;;  %v13001_v16 = vld [vmem:[#allocation12 + $0x230] sm:$0xff]  }
 0x830   : > { %11957 = vmatpush3.bf16.msra.mxu1 %v12950_v59  ;;  %v9539_v59 = vld [vmem:[#allocation2 + $0x18] sm:$0xff] }
 0x831   : > { %11958 = vmatprep.subr.bf16.mxu1 %v12952_v28  ;;  %v13003_v28 = vld [vmem:[#allocation12 + $0x278] sm:$0xff]  }
 0x832   : > { %11937 = vmatpush3.bf16.msra.mxu0 %v12953_v9  ;;  %v9540_v9 = vmax.f32 %v9539_v59, 0.0  ;;  %v11624_v59 = vld [vmem:[#allocation13 + $0x2] ss:$0 sm:$0xff] }
 0x833   : > { %11938 = vmatprep.subr.bf16.mxu0 %v12955_v60  ;;  %v13002_v60 = vld [vmem:[#allocation12 + $0x2b0] sm:$0xff]  }
 0x834   : > { %11959 = vmatpush3.bf16.msra.mxu1 %v12954_v10  ;;  %v13004_v10 = vld [vmem:[#allocation12 + $0x2f8] sm:$0xff]  }
 0x835   : > { %11960 = vmatprep.subr.bf16.mxu1 %v12956_v19  ;;  %v10331_v19 = vrot.slane %v9540_v9, %v15060_v56 }
 0x836   : > { %11939 = vmatpush3.bf16.msra.mxu0 %v12957_v22  ;;  %v10324_v22 = vcombine.high %v9540_v9, %v9540_v9 }
 0x837   : > { %11940 = vmatprep.subr.bf16.mxu0 %v12959_v38  ;;  %v13005_v38 = vld [vmem:[#allocation12 + $0x238] sm:$0xff]  }
 0x838   : > { %11961 = vmatpush3.bf16.msra.mxu1 %v12958_v55  ;;  %v10339_v55 = vcombine.high %v10331_v19, %v10331_v19 }
 0x839   : > { %11962 = vmatprep.subr.bf16.mxu1 %v12960_v30  ;;  %v10338_v30 = vrot.slane %v10324_v22, %v15060_v56 }
 0x83a   : > { %11941 = vmatpush3.bf16.msra.mxu0 %v12961_v53  ;;  %v13006_v53 = vld [vmem:[#allocation12 + $0x2b8] sm:$0xff]  }
 0x83b   : > { %11942 = vmatprep.subr.bf16.mxu0 %v12963_v46  ;;  %v10346_v46 = vpack.c.bf16 %v10339_v55, %v10339_v55 }
 0x83c   : > { %11963 = vmatpush3.bf16.msra.mxu1 %v12962_v29  ;;  %v10340_v29 = vcombine.high %v10338_v30, %v10338_v30 }
 0x83d   : > { %11964 = vmatprep.subr.bf16.mxu1 %v12964_v2  ;;  %v10345_v2 = vpack.c.bf16 %v10331_v19, %v10331_v19 }
 0x83e   : > { %11943 = vmatpush3.bf16.msra.mxu0 %v12965_v27  ;;  %v10348_v27 = vpack.c.bf16 %v10340_v29, %v10340_v29 }
 0x83f   : > { %11944 = vmatprep.subr.bf16.mxu0 %v12967_v7  ;;  %v10347_v7 = vpack.c.bf16 %v10338_v30, %v10338_v30 }
 0x840   : > { %11965 = vmatpush3.bf16.msra.mxu1 %v12966_v6 }
 0x841   : > { %11966 = vmatprep.subr.bf16.mxu1 %v12968_v50  ;;  %v11557_v50 = vld [vmem:[#allocation13] ss:$0 sm:$0xff] }
 0x842   : > { %11945 = vmatpush3.bf16.msra.mxu0 %v12969_v44 }
 0x843   : > { %11946 = vmatprep.subr.bf16.mxu0 %v12971_v31 }
 0x844   : > { %11967 = vmatpush3.bf16.msra.mxu1 %v12970_v61 }
 0x845   : > { %11968 = vmatprep.subr.bf16.mxu1 %v12972_v48 }
 0x846   : > { %11947 = vmatpush3.bf16.msra.mxu0 %v12973_v54 }
 0x847   : > { %11976 = vmatprep.subr.bf16.mxu0 %v12975_v17 }
 0x848   : > { %11969 = vmatpush3.bf16.msra.mxu1 %v12974_v41 }
 0x849   : > { %10254 = vmatmul.mubr.bf16.vlgmr.msra.gmra.mrb[4].mxu0 %v9952_v24  ;;  %11998 = vmatprep.subr.bf16.mxu1 %v12976_v3  ;;  %v9920_v24 = vld [vmem:[#allocation15] sm:$0x1]  ;;  %v13381_v3 = vmov 0  }
 0x84a   : > { %11977 = vmatpush3.bf16.msra.mxu0 %v12977_v35  ;;  %10646 = vmatprep.mubr.bf16.mxu0 %v10346_v46  ;;  %vm9921_vm3 = vcmp.gt.f32.partialorder %v9920_v24, 0.5 }
 0x84b   : > { %10294 = vmatmul.mubr.bf16.vlgmr.msra.gmra.mrb[4].mxu1 %v9954_v39  ;;  %11978 = vmatprep.subr.bf16.mxu0 %v12979_v45  ;;  %v9922_v15 = vsel %vm9921_vm3, 1, %v13381_v3  ;;  %v11590_v39 = vld [vmem:[#allocation13 + $0x1] ss:$0 sm:$0xff] }
 0x84c   : > { %11999 = vmatpush3.bf16.msra.mxu1 %v12978_v40  ;;  %10686 = vmatprep.mubr.bf16.mxu1 %v10348_v27  ;;  %v9926_v40 = vrot.slane %v9922_v15, %v14373_v8 }
 0x84d   : > { %12000 = vmatprep.subr.bf16.mxu1 %v12980_v37 }
 0x84e   : > { %11979 = vmatpush3.bf16.msra.mxu0 %v12981_v11  ;;  %vm9927_vm4 = vcmp.eq.s32.totalorder %v9926_v40, 1 }
 0x84f   : > { %11980 = vmatprep.subr.bf16.mxu0 %v12983_v32 }
 0x850   : > { %12001 = vmatpush3.bf16.msra.mxu1 %v12982_v36 }
 0x851   : > { %12002 = vmatprep.subr.bf16.mxu1 %v12984_v25 }
 0x852   : > { %11981 = vmatpush3.bf16.msra.mxu0 %v12985_v23 }
 0x853   : > { %11982 = vmatprep.subr.bf16.mxu0 %v12987_v33 }
 0x854   : > { %12003 = vmatpush3.bf16.msra.mxu1 %v12986_v57 }
 0x855   : > { %12004 = vmatprep.subr.bf16.mxu1 %v12988_v4 }
 0x856   : > { %11983 = vmatpush3.bf16.msra.mxu0 %v12989_v20 }
 0x857   : > { %11984 = vmatprep.subr.bf16.mxu0 %v12991_v51 }
 0x858   : > { %12005 = vmatpush3.bf16.msra.mxu1 %v12990_v42 }
 0x859   : > { %12006 = vmatprep.subr.bf16.mxu1 %v12992_v26 }
 0x85a   : > { %11985 = vmatpush3.bf16.msra.mxu0 %v12993_v13 }
 0x85b   : > { %11986 = vmatprep.subr.bf16.mxu0 %v12995_v0 }
 0x85c   : > { %12007 = vmatpush3.bf16.msra.mxu1 %v12994_v47 }
 0x85d   : > { %12008 = vmatprep.subr.bf16.mxu1 %v12996_v1 }
 0x85e   : > { %11987 = vmatpush3.bf16.msra.mxu0 %v12997_v43 }
 0x85f   : > { %11988 = vmatprep.subr.bf16.mxu0 %v12999_v49 }
 0x860   : > { %12009 = vmatpush3.bf16.msra.mxu1 %v12998_v34  ;;  %v10312_v34 = vld [vmem:[#allocation15 + $0x1] sm:$0x1] }
 0x861   : > { %12010 = vmatprep.subr.bf16.mxu1 %v13000_v52  ;;  %vm10313_vm6 = vcmp.gt.f32.partialorder %v10312_v34, 0.5 }
 0x862   : > { %11989 = vmatpush3.bf16.msra.mxu0 %v13001_v16  ;;  %v10314_v52 = vsel %vm10313_vm6, 1, %v13381_v3 }
 0x863   : > { %11990 = vmatprep.subr.bf16.mxu0 %v13003_v28  ;;  %v10318_v9 = vrot.slane %v10314_v52, %v14373_v8 }
 0x864   : > { %12011 = vmatpush3.bf16.msra.mxu1 %v13002_v60 }
 0x865   : > { %12012 = vmatprep.subr.bf16.mxu1 %v13004_v10  ;;  %vm10319_vm7 = vcmp.eq.s32.totalorder %v10318_v9, 1 }
 0x866   : > { %11991 = vmatpush3.bf16.msra.mxu0 %v13005_v38 }
 0x868   : > { %12013 = vmatpush3.bf16.msra.mxu1 %v13006_v53 }
 0x869   : > { %10647 = vmatmul.mubr.bf16.vlgmr.msra.gmra.mrb[8].mxu0 %v10345_v2 }
 0x86b   : > { %10687 = vmatmul.mubr.bf16.vlgmr.msra.gmra.mrb[8].mxu1 %v10347_v7 }
 0x8fc   : > { %v11904_v6 = vpop.f32.mrb[0].mxu0 }
 0x8fd   : > { %v11905_v14 = vpop.f32.mrb[1].mxu0 }
 0x8fe   : > { %v11926_v44 = vpop.f32.mrb[0].mxu1  ;;  %v11906_v21 = vadd.f32 %v11905_v14, %v11904_v6  ;;  %v11907_v56 = vpop.f32.mrb[2].mxu0 }
 0x8ff   : > { %v11927_v31 = vpop.f32.mrb[1].mxu1  ;;  %v11908_v61 = vpop.f32.mrb[3].mxu0 }
 0x900   : > { %v9865_v58 = vadd.f32 %v11906_v21, %v11557_v50  ;;  %v11928_v63 = vadd.f32 %v11927_v31, %v11926_v44  ;;  %v11929_v48 = vpop.f32.mrb[2].mxu1  ;;  %v10705_v31 = vld [vmem:[#allocation15 + $0x2] sm:$0x1] }
 0x901   : > { %v11930_v54 = vpop.f32.mrb[3].mxu1  ;;  %vm10706_vm9 = vcmp.gt.f32.partialorder %v10705_v31, 0.5 }
 0x902   : > { %v9905_v18 = vadd.f32 %v11928_v63, %v9865_v58  ;;  %v10707_v61 = vsel %vm10706_vm9, 1, %v13381_v3 }
 0x903   : > { %v10711_v58 = vrot.slane %v10707_v61, %v14373_v8 }
 0x904   : > { %v9910_v62 = vand.u32 2147483647, %v9905_v18  ;;  %vm9914_vm5 = vcmp.ge.f32.partialorder %v9905_v18, 0.0 }
 0x905   : > { %vm10712_vm10 = vcmp.eq.s32.totalorder %v10711_v58, 1 }
 0x906   : > { %v9911_v17 = vsub.f32 0.0, %v9910_v62 }
 0x908   : > { %v9912_v41 = vmul.f32 1.442695, %v9911_v17 }
 0x90a   : > { %13007 = vpow2.f32 %v9912_v41 }
 0x914   : > { %v13008_v5 = vpop.eup %13007 }
 0x915   : > { %v9915_v12 = vadd.f32 1.0, %v13008_v5 }
 0x917   : > { %13009 = vrcp.f32 %v9915_v12 }
 0x91c   : > { %v11948_v35 = vpop.f32.mrb[4].mxu0 }
 0x91d   : > { %v11949_v45 = vpop.f32.mrb[5].mxu0 }
 0x91e   : > { %v11970_v37 = vpop.f32.mrb[4].mxu1  ;;  %v11950_v11 = vadd.f32 %v11949_v45, %v11948_v35  ;;  %v11951_v32 = vpop.f32.mrb[6].mxu0 }
 0x91f   : > { %v11971_v36 = vpop.f32.mrb[5].mxu1  ;;  %v11952_v25 = vpop.f32.mrb[7].mxu0 }
 0x920   : > { %v10256_v23 = vadd.f32 %v11950_v11, %v11590_v39  ;;  %v11972_v33 = vadd.f32 %v11971_v36, %v11970_v37  ;;  %v11973_v57 = vpop.f32.mrb[6].mxu1 }
 0x921   : > { %v13010_v4 = vpop.eup %13009  ;;  %v11974_v20 = vpop.f32.mrb[7].mxu1 }
 0x922   : > { %v9918_v51 = vmul.f32 %v13010_v4, %v13008_v5  ;;  %v10296_v42 = vadd.f32 %v11972_v33, %v10256_v23 }
 0x924   : > { %v9919_v26 = vsel %vm9914_vm5, %v13010_v4, %v9918_v51  ;;  %v10301_v13 = vand.u32 2147483647, %v10296_v42  ;;  %vm10305_vm8 = vcmp.ge.f32.partialorder %v10296_v42, 0.0 }
 0x925   : > { %v9928_v0 = vsel %vm9927_vm4, %v9919_v26, %v9905_v18 }
 0x926   : > { %9929 = vst [vmem:[%s15190_s19] sm:$0x3] %v9928_v0  ;;  %v10302_v47 = vsub.f32 0.0, %v10301_v13 }
 0x928   : > { %v10303_v1 = vmul.f32 1.442695, %v10302_v47 }
 0x92a   : > { %13011 = vpow2.f32 %v10303_v1 }
 0x934   : > { %v13012_v43 = vpop.eup %13011 }
 0x935   : > { %v10306_v49 = vadd.f32 1.0, %v13012_v43 }
 0x937   : > { %13013 = vrcp.f32 %v10306_v49 }
 0x93c   : > { %v11992_v16 = vpop.f32.mrb[8].mxu0 }
 0x93d   : > { %v11993_v28 = vpop.f32.mrb[9].mxu0 }
 0x93e   : > { %v12014_v60 = vpop.f32.mrb[8].mxu1  ;;  %v11994_v10 = vadd.f32 %v11993_v28, %v11992_v16  ;;  %v11995_v19 = vpop.f32.mrb[10].mxu0 }
 0x93f   : > { %v12015_v22 = vpop.f32.mrb[9].mxu1  ;;  %v11996_v38 = vpop.f32.mrb[11].mxu0 }
 0x940   : > { %v10649_v55 = vadd.f32 %v11994_v10, %v11624_v59  ;;  %v12016_v30 = vadd.f32 %v12015_v22, %v12014_v60  ;;  %v12017_v53 = vpop.f32.mrb[10].mxu1 }
 0x941   : > { %v13014_v46 = vpop.eup %13013  ;;  %v12018_v29 = vpop.f32.mrb[11].mxu1 }
 0x942   : > { %v10309_v2 = vmul.f32 %v13014_v46, %v13012_v43  ;;  %v10689_v27 = vadd.f32 %v12016_v30, %v10649_v55 }
 0x944   : > { %v10310_v7 = vsel %vm10305_vm8, %v13014_v46, %v10309_v2  ;;  %v10694_v6 = vand.u32 2147483647, %v10689_v27  ;;  %vm10698_vm11 = vcmp.ge.f32.partialorder %v10689_v27, 0.0 }
 0x945   : > { %v10320_v50 = vsel %vm10319_vm7, %v10310_v7, %v10296_v42 }
 0x946   : > { %11623 = vst [vmem:[%s15190_s19 + $0x2] sm:$0x3] %v10320_v50  ;;  %v10695_v14 = vsub.f32 0.0, %v10694_v6 }
 0x948   : > { %v10696_v44 = vmul.f32 1.442695, %v10695_v14 }
 0x94a   : > { %13015 = vpow2.f32 %v10696_v44 }
 0x954   : > { %v13016_v21 = vpop.eup %13015 }
 0x955   : > { %v10699_v56 = vadd.f32 1.0, %v13016_v21 }
 0x957   : > { %13017 = vrcp.f32 %v10699_v56 }
 0x961   : > { %v13018_v63 = vpop.eup %13017 }
 0x962   : > { %v10702_v48 = vmul.f32 %v13018_v63, %v13016_v21 }
 0x964   : > { %v10703_v54 = vsel %vm10698_vm11, %v13018_v63, %v10702_v48 }
 0x965   : > { %v10713_v18 = vsel %vm10712_vm10, %v10703_v54, %v10689_v27 }
 0x966   : > { %11657 = vst [vmem:[%s15190_s19 + $0x4] sm:$0x3] %v10713_v18 }
 0x967 PF: > { %s15191_s24 = sld [smem:[#allocation23_spill]]  ;;  %s15192_s21 = sld [smem:[#allocation21_spill]] }
 0x968   : > { %s15193_s22 = sld [smem:[#allocation22_spill]]  ;;  %s15194_s23 = sld [smem:[#allocation24_spill]] }
 0x96d   : > { %p24_p3 = scmp.ge.s32.totalorder %s15191_s24, 6  }
 0x96f   :  { %26 = sbr.rel (!%p24_p3) target bundleno = 13 (0xd), region = 202 }
 0x976   :  { %10727 = vsyncpa [#allocation4], 1 }
 0x977   :  { %10729 = vsyncpa [#allocation4 + $0x1], 1 }
 0x978   :  { %10730 = vsyncpa [#allocation6], 1 }
 0x979   :  { %10731 = vsyncpa [#allocation14], 1 }

</bundles_post_ra>
